<compile_context>
chip_gen: v6e
topology: v6e:2x2x1
jax: 0.10.0
libtpu: 0.0.40
codegen_flags: <defaults>
</compile_context>

<pallas_src>
import jax
import jax.numpy as jnp
from jax.experimental import pallas as pl
from jax.experimental.pallas import tpu as pltpu

NYU40CLASSES = 41
OBJ_ORI_BIN = 6          # len(bins['ori_bin'])
OBJ_CENTER_BIN = 6       # len(bins['centroid_bin'])

FEAT = 2048              # a_features / r_features width (module uses 2048 + 41)
HIDDEN = 128             # per-head fc hidden width
NUM_HEADS = 4            # size / ori / centroid / offset
HID_TOT = HIDDEN * NUM_HEADS       # 512 fused hidden width
OUT_PAD = 128            # each head's output zero-padded to one 128-lane tile
OUT_TOT = OUT_PAD * NUM_HEADS      # 512 fused (padded) output width
SIZE_CLS_PAD = 128       # 41 real classes zero-padded to one 128-lane tile

G_DIM = 64               # relnet-stub geometric feature width
IMG_C, IMG_H, IMG_W = 3, 16, 16
XFLAT = IMG_C * IMG_H * IMG_W      # 768

# true output widths per head, in fused-column order [size, ori, centroid, off]
HEAD_OUT = (3, OBJ_ORI_BIN * 2, OBJ_CENTER_BIN * 2, 2)


def _leaky_relu(x):
    # nn.LeakyReLU(0.2)
    return jnp.where(x > 0, x, 0.2 * x)


def bdb3d_kernel(xflat_ref, wback_ref,
                 g_ref, wrel_ref,
                 szcls_ref,
                 w1a_ref, w1b_ref, b1_ref,
                 w2_ref, b2_ref,
                 out_ref):
    # backbone stub: flattened image -> 2048-wide appearance features
    a_features = jnp.dot(xflat_ref[...], wback_ref[...],
                         preferred_element_type=jnp.float32)          # (N, 2048) f32

    # relnet stub: per-object geometric features -> 2048-wide relation features
    r_features = jnp.dot(g_ref[...], wrel_ref[...],
                         preferred_element_type=jnp.float32)          # (N, 2048) f32

    # torch.add(a_features, r_features); cast down for the bf16 MXU path
    a_r_features = (a_features + r_features).astype(jnp.bfloat16)     # (N, 2048)

    # fused layer 1 of all four heads.  The torch.cat([a_r_features, size_cls])
    # is replaced by two dots into the same f32 accumulator (no lane concat).
    h = (jnp.dot(a_r_features, w1a_ref[...],
                 preferred_element_type=jnp.float32)
         + jnp.dot(szcls_ref[...], w1b_ref[...],
                   preferred_element_type=jnp.float32)
         + b1_ref[...])                                               # (N, 512) f32
    h = _leaky_relu(h)
    # self.dropout_1 : identity at inference time
    h = h.astype(jnp.bfloat16)

    # fused layer 2: block-diagonal (512, 512) weight, one dot, one dense store
    out_ref[...] = (jnp.dot(h, w2_ref[...],
                            preferred_element_type=jnp.float32)
                    + b2_ref[...])                                    # (N, 512) f32


def init_params(key):
    """Deterministic init mirroring the module: Linear weights ~ N(0, 0.01),
    biases = 0.  Per-head weights are then fused into the packed layout the
    kernel consumes and cast to bfloat16."""
    ks = jax.random.split(key, 12)
    std = 0.01

    def lin_w(k, din, dout):
        return std * jax.random.normal(k, (din, dout), jnp.float32)

    # ---- stubs for resnet34 / RelationNet (external modules) ----
    w_back = lin_w(ks[0], XFLAT, FEAT)
    w_rel = lin_w(ks[1], G_DIM, FEAT)

    # ---- per-head layer-1 weights (2048 + 41 -> 128), fused column-wise ----
    # column order: [size (fc1), ori (fc3), centroid (fc5), offset (fc_off_1)]
    w1_heads = [lin_w(ks[2 + i], FEAT + NYU40CLASSES, HIDDEN) for i in range(4)]
    w1_full = jnp.concatenate(w1_heads, axis=1)                # (2089, 512)
    w1a = w1_full[:FEAT, :]                                    # rows for a_r_features
    w1b = jnp.pad(w1_full[FEAT:, :],                           # rows for size_cls
                  ((0, SIZE_CLS_PAD - NYU40CLASSES), (0, 0)))  # (128, 512), pad rows inert
    b1 = jnp.zeros((1, HID_TOT), jnp.float32)

    # ---- per-head layer-2 weights (128 -> out), block-diagonal fused ----
    # [fc2 (->3), fc4 (->12), fc_centroid (->12), fc_off_2 (->2)]
    w2 = jnp.zeros((HID_TOT, OUT_TOT), jnp.float32)
    for i, dout in enumerate(HEAD_OUT):
        blk = lin_w(ks[6 + i], HIDDEN, dout)
        w2 = w2.at[i * HIDDEN:(i + 1) * HIDDEN,
                   i * OUT_PAD:i * OUT_PAD + dout].set(blk)
    b2 = jnp.zeros((1, OUT_TOT), jnp.float32)

    return {
        "w_back": w_back.astype(jnp.bfloat16),
        "w_rel": w_rel.astype(jnp.bfloat16),
        "w1a": w1a.astype(jnp.bfloat16),
        "w1b": w1b.astype(jnp.bfloat16),
        "b1": b1,
        "w2": w2.astype(jnp.bfloat16),
        "b2": b2,
    }


def bdb3d_forward(params, x, size_cls, g_features, split, rel_pair_counts):
    # TODO(synk): split / rel_pair_counts drive the (unavailable) RelationNet
    # pair-indexing; they are accepted but unused by the stub.
    del split, rel_pair_counts

    n = x.shape[0]
    x_flat = x.reshape(n, -1).astype(jnp.bfloat16)                     # (N, C*H*W)
    size_cls_pad = jnp.pad(size_cls, ((0, 0), (0, SIZE_CLS_PAD - NYU40CLASSES))
                           ).astype(jnp.bfloat16)                      # (N, 128)
    g_bf16 = g_features.astype(jnp.bfloat16)

    vmem = pl.BlockSpec(memory_space=pltpu.MemorySpace.VMEM)

    ins = (x_flat, params["w_back"],
           g_bf16, params["w_rel"],
           size_cls_pad,
           params["w1a"], params["w1b"], params["b1"],
           params["w2"], params["b2"])

    out = pl.pallas_call(
        bdb3d_kernel,
        out_shape=jax.ShapeDtypeStruct((n, OUT_TOT), jnp.float32),
        in_specs=[vmem] * len(ins),
        out_specs=vmem,
        compiler_params=pltpu.CompilerParams(vmem_limit_bytes=32 << 20),
    )(*ins)

    # slice the single fused (N, 512) output slab back into per-head results
    size = out[:, 0:3]
    ori = out[:, OUT_PAD:OUT_PAD + OBJ_ORI_BIN * 2].reshape(n, OBJ_ORI_BIN, 2)
    ori_reg = ori[:, :, 0]
    ori_cls = ori[:, :, 1]
    centroid = out[:, 2 * OUT_PAD:2 * OUT_PAD + OBJ_CENTER_BIN * 2
                   ].reshape(n, OBJ_CENTER_BIN, 2)
    centroid_cls = centroid[:, :, 0]
    centroid_reg = centroid[:, :, 1]
    offset = out[:, 3 * OUT_PAD:3 * OUT_PAD + 2]
    return size, ori_reg, ori_cls, centroid_reg, centroid_cls, offset


if __name__ == "__main__":
    key = jax.random.PRNGKey(0)
    k_param, k_x, k_cls, k_g = jax.random.split(key, 4)

    params = init_params(k_param)

    N = 8  # number of detected objects in the batch
    x = jax.random.normal(k_x, (N, IMG_C, IMG_H, IMG_W), jnp.float32)   # NCHW
    size_cls = jax.nn.one_hot(
        jax.random.randint(k_cls, (N,), 0, NYU40CLASSES), NYU40CLASSES,
        dtype=jnp.float32)
    g_features = jax.random.normal(k_g, (N, G_DIM), jnp.float32)
    split = jnp.array([[0, 4], [4, 8]], jnp.int32)          # unused by stub relnet
    rel_pair_counts = jnp.array([0, 16, 32], jnp.int32)     # unused by stub relnet

    outs = bdb3d_forward(params, x, size_cls, g_features, split, rel_pair_counts)
    outs = jax.block_until_ready(outs)

    size, ori_reg, ori_cls, centroid_reg, centroid_cls, offset = outs
    assert size.shape == (N, 3)
    assert ori_reg.shape == (N, OBJ_ORI_BIN) and ori_cls.shape == (N, OBJ_ORI_BIN)
    assert centroid_reg.shape == (N, OBJ_CENTER_BIN)
    assert centroid_cls.shape == (N, OBJ_CENTER_BIN)
    assert offset.shape == (N, 2)
    print("KERNEL_OK")
</pallas_src>

<mosaic_0001>
module attributes {stable_mosaic.version = 11 : i64} {
  func.func @bdb3d_kernel(%arg0: memref<8x768xbf16, #tpu.memory_space<vmem>>, %arg1: memref<768x2048xbf16, #tpu.memory_space<vmem>>, %arg2: memref<8x64xbf16, #tpu.memory_space<vmem>>, %arg3: memref<64x2048xbf16, #tpu.memory_space<vmem>>, %arg4: memref<8x128xbf16, #tpu.memory_space<vmem>>, %arg5: memref<2048x512xbf16, #tpu.memory_space<vmem>>, %arg6: memref<128x512xbf16, #tpu.memory_space<vmem>>, %arg7: memref<1x512xf32, #tpu.memory_space<vmem>>, %arg8: memref<512x512xbf16, #tpu.memory_space<vmem>>, %arg9: memref<1x512xf32, #tpu.memory_space<vmem>>, %arg10: memref<8x512xf32, #tpu.memory_space<vmem>>) attributes {dimension_semantics = [], scalar_prefetch = 0 : i64, scratch_operands = 0 : i64, tpu.core_type = #tpu.core_type<tc>} {
    %c0 = arith.constant 0 : index
    %c0_0 = arith.constant 0 : index
    %0 = vector.load %arg0[%c0, %c0_0] : memref<8x768xbf16, #tpu.memory_space<vmem>>, vector<8x768xbf16>
    %c0_1 = arith.constant 0 : index
    %c0_2 = arith.constant 0 : index
    %1 = vector.load %arg1[%c0_1, %c0_2] : memref<768x2048xbf16, #tpu.memory_space<vmem>>, vector<768x2048xbf16>
    %cst = arith.constant dense<0.000000e+00> : vector<8x2048xf32>
    %2 = tpu.matmul %0, %1, %cst {dimension_numbers = #tpu.dot_dimension_numbers<[1], [0], [0], [1], [0, 0, 1, 1], [], []>} : vector<8x768xbf16>, vector<768x2048xbf16>, vector<8x2048xf32> -> vector<8x2048xf32>
    %c0_3 = arith.constant 0 : index
    %c0_4 = arith.constant 0 : index
    %3 = vector.load %arg2[%c0_3, %c0_4] : memref<8x64xbf16, #tpu.memory_space<vmem>>, vector<8x64xbf16>
    %c0_5 = arith.constant 0 : index
    %c0_6 = arith.constant 0 : index
    %4 = vector.load %arg3[%c0_5, %c0_6] : memref<64x2048xbf16, #tpu.memory_space<vmem>>, vector<64x2048xbf16>
    %cst_7 = arith.constant dense<0.000000e+00> : vector<8x2048xf32>
    %5 = tpu.matmul %3, %4, %cst_7 {dimension_numbers = #tpu.dot_dimension_numbers<[1], [0], [0], [1], [0, 0, 1, 1], [], []>} : vector<8x64xbf16>, vector<64x2048xbf16>, vector<8x2048xf32> -> vector<8x2048xf32>
    %6 = arith.addf %2, %5 : vector<8x2048xf32>
    %7 = arith.truncf %6 : vector<8x2048xf32> to vector<8x2048xbf16>
    %c0_8 = arith.constant 0 : index
    %c0_9 = arith.constant 0 : index
    %8 = vector.load %arg5[%c0_8, %c0_9] : memref<2048x512xbf16, #tpu.memory_space<vmem>>, vector<2048x512xbf16>
    %cst_10 = arith.constant dense<0.000000e+00> : vector<8x512xf32>
    %9 = tpu.matmul %7, %8, %cst_10 {dimension_numbers = #tpu.dot_dimension_numbers<[1], [0], [0], [1], [0, 0, 1, 1], [], []>} : vector<8x2048xbf16>, vector<2048x512xbf16>, vector<8x512xf32> -> vector<8x512xf32>
    %c0_11 = arith.constant 0 : index
    %c0_12 = arith.constant 0 : index
    %10 = vector.load %arg4[%c0_11, %c0_12] : memref<8x128xbf16, #tpu.memory_space<vmem>>, vector<8x128xbf16>
    %c0_13 = arith.constant 0 : index
    %c0_14 = arith.constant 0 : index
    %11 = vector.load %arg6[%c0_13, %c0_14] : memref<128x512xbf16, #tpu.memory_space<vmem>>, vector<128x512xbf16>
    %cst_15 = arith.constant dense<0.000000e+00> : vector<8x512xf32>
    %12 = tpu.matmul %10, %11, %cst_15 {dimension_numbers = #tpu.dot_dimension_numbers<[1], [0], [0], [1], [0, 0, 1, 1], [], []>} : vector<8x128xbf16>, vector<128x512xbf16>, vector<8x512xf32> -> vector<8x512xf32>
    %13 = arith.addf %9, %12 : vector<8x512xf32>
    %c0_16 = arith.constant 0 : index
    %c0_17 = arith.constant 0 : index
    %14 = vector.load %arg7[%c0_16, %c0_17] : memref<1x512xf32, #tpu.memory_space<vmem>>, vector<1x512xf32>
    %15 = vector.broadcast %14 : vector<1x512xf32> to vector<8x512xf32>
    %16 = arith.addf %13, %15 : vector<8x512xf32>
    %cst_18 = arith.constant 0.000000e+00 : f32
    %17 = vector.broadcast %cst_18 : f32 to vector<8x512xf32>
    %18 = arith.cmpf ogt, %16, %17 : vector<8x512xf32>
    %cst_19 = arith.constant 2.000000e-01 : f32
    %19 = vector.broadcast %cst_19 : f32 to vector<8x512xf32>
    %20 = arith.mulf %19, %16 : vector<8x512xf32>
    %21 = arith.select %18, %16, %20 : vector<8x512xi1>, vector<8x512xf32>
    %22 = arith.truncf %21 : vector<8x512xf32> to vector<8x512xbf16>
    %c0_20 = arith.constant 0 : index
    %c0_21 = arith.constant 0 : index
    %23 = vector.load %arg8[%c0_20, %c0_21] : memref<512x512xbf16, #tpu.memory_space<vmem>>, vector<512x512xbf16>
    %cst_22 = arith.constant dense<0.000000e+00> : vector<8x512xf32>
    %24 = tpu.matmul %22, %23, %cst_22 {dimension_numbers = #tpu.dot_dimension_numbers<[1], [0], [0], [1], [0, 0, 1, 1], [], []>} : vector<8x512xbf16>, vector<512x512xbf16>, vector<8x512xf32> -> vector<8x512xf32>
    %c0_23 = arith.constant 0 : index
    %c0_24 = arith.constant 0 : index
    %25 = vector.load %arg9[%c0_23, %c0_24] : memref<1x512xf32, #tpu.memory_space<vmem>>, vector<1x512xf32>
    %26 = vector.broadcast %25 : vector<1x512xf32> to vector<8x512xf32>
    %27 = arith.addf %24, %26 : vector<8x512xf32>
    %c0_25 = arith.constant 0 : index
    %c0_26 = arith.constant 0 : index
    %28 = vector.load %arg10[%c0_25, %c0_26] : memref<8x512xf32, #tpu.memory_space<vmem>>, vector<8x512xf32>
    tpu.vector_store %arg10[%c0_25, %c0_26], %27 {strides = array<i32>} : memref<8x512xf32, #tpu.memory_space<vmem>>, vector<8x512xf32>,
    return
  }
}

</mosaic_0001>

<bundles_post_ra>
// kernel: tpu_custom_call.1
= control target key start
LH: loop header
LB: loop body
LE: loop exit
PB: predicated region body
PF: predicated region fallthrough
CT: control target
= control target key end

     0   :  { %15 = vsyncpa [#allocation3], 0  ;;  %s14847_s0 = inlined_call_operand.hbm [shape: bf16[8,768], index: 0, kind: input, shape index: {}]   ;;  %s14848_s1 = inlined_call_operand.hbm [shape: bf16[768,2048], index: 1, kind: input, shape index: {}]   ;;  %s14849_s2 = inlined_call_operand.hbm [shape: bf16[8,64], index: 2, kind: input, shape index: {}]   ;;  %s14850_s3 = inlined_call_operand.hbm [shape: bf16[64,2048], index: 3, kind: input, shape index: {}]   ;;  %s14851_s4 = inlined_call_operand.hbm [shape: bf16[8,128], index: 4, kind: input, shape index: {}]   ;;  %s14852_s5 = inlined_call_operand.hbm [shape: bf16[2048,512], index: 5, kind: input, shape index: {}]   ;;  %s14853_s6 = inlined_call_operand.hbm [shape: bf16[128,512], index: 6, kind: input, shape index: {}]   ;;  %s14854_s7 = inlined_call_operand.hbm [shape: f32[1,512], index: 7, kind: input, shape index: {}]   ;;  %s14855_s8 = inlined_call_operand.hbm [shape: bf16[512,512], index: 8, kind: input, shape index: {}]   ;;  %s14856_s9 = inlined_call_operand.hbm [shape: f32[1,512], index: 9, kind: input, shape index: {}]   ;;  %s14857_s10 = inlined_call_operand.hbm [shape: f32[8,512], index: 10, kind: output, shape index: {}]  }
   0x1   :  { %16 = vsyncpa [#allocation6], 0 }
   0x2   :  { %17 = vsyncpa [#allocation9], 0 }
   0x3   :  { %18 = vsyncpa [#allocation12], 0 }
   0x4   :  { %19 = vsyncpa [#allocation15], 0 }
   0x5   :  { %20 = vsyncpa [#allocation18], 0 }
   0x6   :  { %21 = vsyncpa [#allocation4], 0  ;;  %s14317_s13 = smov [#allocation5]  }
   0x7   :  { %s37_s14 = sshll.u32 %s14317_s13, 4  ;;  %s38_s14 = int_to_ptr.vmem [resolvable:$true] %s37_s14 }
   0x8   :  { %s14091_s15 = scalar_lea.vmem %s38_s14, 98304  ;;  %p14096_p1 = scmp.lt.s32.totalorder %s38_s14, %s38_s14 }
   0x9   :  { %p14092_p0 = scmp.ne.s32.totalorder %s38_s14, %s14091_s15  ;;  %p14097_p2 = scmp.lt.s32.totalorder %s14091_s15, %s14091_s15 }
   0xb   :  { %p14098_p3 = por %p14097_p2, %p14096_p1 }
   0xd   :  { %p14099_p4 = pnand %p14098_p3, %p14092_p0 }
   0xf   :  { %14102 = shalt.err (!%p14099_p4)
}
  0x10   :  { %s14318_s16 = smov 1024   ;;  %s14319_s17 = smov 64  }
  0x11   :  { %43 = dma.hbm_to_vmem [thread:$0]  %s14848_s1, 98304, %s38_s14, [#allocation6], %s14318_s16, %s14318_s16, %s14319_s17  }
  0x12   :  { %s14320_s20 = smov [#allocation8]   ;;  %s14321_s22 = smov [#allocation11]  }
  0x13   :  { %s59_s21 = sshll.u32 %s14320_s20, 4  ;;  %s81_s23 = sshll.u32 %s14321_s22, 4  ;;  %s60_s21 = int_to_ptr.vmem [resolvable:$true] %s59_s21  ;;  %s82_s23 = int_to_ptr.vmem [resolvable:$true] %s81_s23 }
  0x14   :  { %s14111_s24 = scalar_lea.vmem %s60_s21, 8192  ;;  %p14116_p6 = scmp.lt.s32.totalorder %s60_s21, %s60_s21 }
  0x15   :  { %p14112_p5 = scmp.ne.s32.totalorder %s60_s21, %s14111_s24  ;;  %p14117_p7 = scmp.lt.s32.totalorder %s14111_s24, %s14111_s24 }
  0x17   :  { %p14118_p8 = por %p14117_p7, %p14116_p6 }
  0x19   :  { %p14119_p9 = pnand %p14118_p8, %p14112_p5 }
  0x1b   :  { %14122 = shalt.err (!%p14119_p9)
}
  0x1c   :  { %65 = dma.hbm_to_vmem [thread:$0]  %s14850_s3, 8192, %s60_s21, [#allocation9], %s14318_s16, %s14318_s16, %s14319_s17  }
  0x1d   :  { %s14131_s27 = scalar_lea.vmem %s82_s23, 65536  ;;  %p14136_p11 = scmp.lt.s32.totalorder %s82_s23, %s82_s23 }
  0x1e   :  { %p14132_p10 = scmp.ne.s32.totalorder %s82_s23, %s14131_s27  ;;  %p14137_p12 = scmp.lt.s32.totalorder %s14131_s27, %s14131_s27 }
  0x20   :  { %p14138_p13 = por %p14137_p12, %p14136_p11 }
  0x22   :  { %p14139_p0 = pnand %p14138_p13, %p14132_p10 }
  0x24   :  { %14142 = shalt.err (!%p14139_p0)
}
  0x25   :  { %s14322_s1 = smov 256   ;;  %s14323_s28 = smov 16  }
  0x26   :  { %87 = dma.hbm_to_vmem [thread:$0]  %s14852_s5, 65536, %s82_s23, [#allocation12], %s14322_s1, %s14322_s1, %s14323_s28  }
  0x27   :  { %s14324_s11 = smov [#allocation14]   ;;  %s14325_s3 = smov [#allocation2]  }
  0x28   :  { %s106_s12 = sshll.u32 %s14324_s11, 4  ;;  %s28_s13 = sshll.u32 %s14325_s3, 4  ;;  %s107_s12 = int_to_ptr.vmem [resolvable:$true] %s106_s12  ;;  %s29_s13 = int_to_ptr.vmem [resolvable:$true] %s28_s13 }
  0x29   :  { %s14151_s14 = scalar_lea.vmem %s107_s12, 64  ;;  %p14156_p2 = scmp.lt.s32.totalorder %s107_s12, %s107_s12 }
  0x2a   :  { %p14152_p1 = scmp.ne.s32.totalorder %s107_s12, %s14151_s14  ;;  %p14157_p3 = scmp.lt.s32.totalorder %s14151_s14, %s14151_s14 }
  0x2c   :  { %p14158_p4 = por %p14157_p3, %p14156_p2 }
  0x2e   :  { %p14159_p5 = pnand %p14158_p4, %p14152_p1 }
  0x30   :  { %14162 = shalt.err (!%p14159_p5)
}
  0x31   :  { %109 = dma.hbm_to_vmem [thread:$0]  %s14854_s7, 64, %s107_s12, [#allocation15]  }
  0x32   :  { %s14171_s17 = scalar_lea.vmem %s29_s13, 384  ;;  %p14176_p7 = scmp.lt.s32.totalorder %s29_s13, %s29_s13 }
  0x33   :  { %p14172_p6 = scmp.ne.s32.totalorder %s29_s13, %s14171_s17  ;;  %p14177_p8 = scmp.lt.s32.totalorder %s14171_s17, %s14171_s17 }
  0x35   :  { %p14178_p9 = por %p14177_p8, %p14176_p7 }
  0x37   :  { %p14179_p10 = pnand %p14178_p9, %p14172_p6 }
  0x39   :  { %14182 = shalt.err (!%p14179_p10)
}
  0x3a   :  { %31 = dma.hbm_to_vmem [thread:$0]  %s14847_s0, 384, %s29_s13, [#allocation3]  }
  0x3b   :  { %s14326_s19 = smov [#allocation7]   ;;  %s14327_s21 = smov [#allocation10]  }
  0x3c   :  { %s50_s20 = sshll.u32 %s14326_s19, 4  ;;  %s72_s22 = sshll.u32 %s14327_s21, 4  ;;  %s51_s20 = int_to_ptr.vmem [resolvable:$true] %s50_s20  ;;  %s73_s22 = int_to_ptr.vmem [resolvable:$true] %s72_s22 }
  0x3d   :  { %s14191_s23 = scalar_lea.vmem %s51_s20, 64  ;;  %p14196_p12 = scmp.lt.s32.totalorder %s51_s20, %s51_s20 }
  0x3e   :  { %p14192_p11 = scmp.ne.s32.totalorder %s51_s20, %s14191_s23  ;;  %p14197_p13 = scmp.lt.s32.totalorder %s14191_s23, %s14191_s23 }
  0x40   :  { %p14198_p0 = por %p14197_p13, %p14196_p12 }
  0x42   :  { %p14199_p1 = pnand %p14198_p0, %p14192_p11 }
  0x44   :  { %14202 = shalt.err (!%p14199_p1)
}
  0x45   :  { %53 = dma.hbm_to_vmem [thread:$0]  %s14849_s2, 64, %s51_s20, [#allocation6]  }
  0x46   :  { %s14211_s25 = scalar_lea.vmem %s73_s22, 64  ;;  %p14216_p3 = scmp.lt.s32.totalorder %s73_s22, %s73_s22 }
  0x47   :  { %p14212_p2 = scmp.ne.s32.totalorder %s73_s22, %s14211_s25  ;;  %p14217_p4 = scmp.lt.s32.totalorder %s14211_s25, %s14211_s25 }
  0x49   :  { %p14218_p5 = por %p14217_p4, %p14216_p3 }
  0x4b   :  { %p14219_p6 = pnand %p14218_p5, %p14212_p2 }
  0x4d   :  { %14222 = shalt.err (!%p14219_p6)
}
  0x4e   :  { %75 = dma.hbm_to_vmem [thread:$0]  %s14851_s4, 64, %s73_s22, [#allocation9]  }
  0x4f   :  { %s14328_s27 = smov [#allocation13]   ;;  %s14329_s30 = smov [#allocation16]  }
  0x50   :  { %s93_s29 = sshll.u32 %s14328_s27, 4  ;;  %s115_s11 = sshll.u32 %s14329_s30, 4  ;;  %s94_s29 = int_to_ptr.vmem [resolvable:$true] %s93_s29  ;;  %s116_s11 = int_to_ptr.vmem [resolvable:$true] %s115_s11 }
  0x51   :  { %s14231_s12 = scalar_lea.vmem %s94_s29, 4096  ;;  %p14236_p8 = scmp.lt.s32.totalorder %s94_s29, %s94_s29 }
  0x52   :  { %p14232_p7 = scmp.ne.s32.totalorder %s94_s29, %s14231_s12  ;;  %p14237_p9 = scmp.lt.s32.totalorder %s14231_s12, %s14231_s12 }
  0x54   :  { %p14238_p10 = por %p14237_p9, %p14236_p8 }
  0x56   :  { %p14239_p11 = pnand %p14238_p10, %p14232_p7 }
  0x58   :  { %14242 = shalt.err (!%p14239_p11)
}
  0x59   :  { %99 = dma.hbm_to_vmem [thread:$0]  %s14853_s6, 4096, %s94_s29, [#allocation12], %s14322_s1, %s14322_s1, %s14323_s28  }
  0x5a   :  { %s14251_s4 = scalar_lea.vmem %s116_s11, 16384  ;;  %p14256_p13 = scmp.lt.s32.totalorder %s116_s11, %s116_s11 }
  0x5b   :  { %p14252_p12 = scmp.ne.s32.totalorder %s116_s11, %s14251_s4  ;;  %p14257_p0 = scmp.lt.s32.totalorder %s14251_s4, %s14251_s4 }
  0x5d   :  { %p14258_p1 = por %p14257_p0, %p14256_p13 }
  0x5f   :  { %p14259_p2 = pnand %p14258_p1, %p14252_p12 }
  0x61   :  { %14262 = shalt.err (!%p14259_p2)
}
  0x62   :  { %121 = dma.hbm_to_vmem [thread:$0]  %s14855_s8, 16384, %s116_s11, [#allocation15], %s14322_s1, %s14322_s1, %s14323_s28  }
  0x63   :  { %s14330_s15 = smov [#allocation17]  }
  0x64   :  { %s128_s16 = sshll.u32 %s14330_s15, 4  ;;  %s129_s16 = int_to_ptr.vmem [resolvable:$true] %s128_s16 }
  0x65   :  { %s14271_s17 = scalar_lea.vmem %s129_s16, 64  ;;  %p14276_p4 = scmp.lt.s32.totalorder %s129_s16, %s129_s16 }
  0x66   :  { %p14272_p3 = scmp.ne.s32.totalorder %s129_s16, %s14271_s17  ;;  %p14277_p5 = scmp.lt.s32.totalorder %s14271_s17, %s14271_s17 }
  0x68   :  { %p14278_p6 = por %p14277_p5, %p14276_p4 }
  0x6a   :  { %p14279_p7 = pnand %p14278_p6, %p14272_p3 }
  0x6c   :  { %14282 = shalt.err (!%p14279_p7)
}
  0x6d   :  { %131 = dma.hbm_to_vmem [thread:$0]  %s14856_s9, 64, %s129_s16, [#allocation18]  }
  0x6e   :  { %14303 = dma.done.wait [#allocation3], 384  }
  0x6f   :  { %14304 = vsyncadd [#allocation3], 4294966912 }
  0x70   :  { %14305 = dma.done.wait [#allocation6], 98368  }
  0x71   :  { %14306 = vsyncadd [#allocation6], 4294868928 }
  0x72   :  { %14307 = dma.done.wait [#allocation9], 8256  }
  0x73   :  { %14308 = vsyncadd [#allocation9], 4294959040 }
  0x74   :  { %14309 = dma.done.wait [#allocation12], 69632  }
  0x75   :  { %14310 = vsyncadd [#allocation12], 4294897664 }
  0x76   :  { %14311 = dma.done.wait [#allocation15], 16448  }
  0x77   :  { %14312 = vsyncadd [#allocation15], 4294950848 }
  0x78   :  { %14313 = dma.done.wait [#allocation18], 64  }
  0x79   :  { %14314 = vsyncadd [#allocation18], 4294967232  ;;  %v14331_v0 = vmov 0   ;;  %v983_v1 = vld [vmem:[#allocation8 + $0x180] sm:$0xff]  ;;  %v984_v3 = vld [vmem:[#allocation8 + $0x188] sm:$0xff]  ;;  %vm1319_vm0 = vcmask 523264  }
  0x7a   :  { %1355 = vmatprep.mubr.bf16.mxu0 %v14331_v0  ;;  %1396 = vmatprep.mubr.bf16.mxu1 %v14331_v0  ;;  %v991_v2 = vld [vmem:[#allocation8 + $0x1c0] sm:$0xff]  ;;  %v992_v5 = vld [vmem:[#allocation8 + $0x1c8] sm:$0xff]  ;;  %v985_v31 = vld [vmem:[#allocation8 + $0x190] sm:$0xff]  ;;  %s14332_s8 = smov [#allocation19]  }
  0x7b   :  { %v11584_v4 = vcombine.high %v983_v1, %v991_v2  ;;  %v11583_v6 = vcombine.low %v983_v1, %v991_v2  ;;  %v967_v7 = vld [vmem:[#allocation8 + $0x100] sm:$0xff]  ;;  %v11586_v9 = vcombine.high %v984_v3, %v992_v5  ;;  %v11585_v10 = vcombine.low %v984_v3, %v992_v5  ;;  %v968_v12 = vld [vmem:[#allocation8 + $0x108] sm:$0xff]  ;;  %v993_v32 = vld [vmem:[#allocation8 + $0x1d0] sm:$0xff]  ;;  %s11521_s9 = sshll.u32 %s14332_s8, 4  ;;  %s11522_s9 = int_to_ptr.vmem [resolvable:$true] %s11521_s9 }
  0x7c   :  { %v975_v8 = vld [vmem:[#allocation8 + $0x140] sm:$0xff]  ;;  %v976_v13 = vld [vmem:[#allocation8 + $0x148] sm:$0xff]  ;;  %v986_v33 = vld [vmem:[#allocation8 + $0x198] sm:$0xff]  ;;  %v11588_v37 = vcombine.high %v985_v31, %v993_v32  ;;  %v11587_v44 = vcombine.low %v985_v31, %v993_v32  ;;  %s14283_s1 = scalar_lea.vmem %s11522_s9, 512  ;;  %p14288_p9 = scmp.lt.s32.totalorder %s11522_s9, %s11522_s9 }
  0x7d   :  { %v11568_v11 = vcombine.high %v967_v7, %v975_v8  ;;  %v951_v14 = vld [vmem:[#allocation8 + $0x80] sm:$0xff]  ;;  %1331 = vmatprep.subr.bf16.mxu0 %v11584_v4  ;;  %v11570_v15 = vcombine.high %v968_v12, %v976_v13  ;;  %v952_v17 = vld [vmem:[#allocation8 + $0x88] sm:$0xff]  ;;  %1372 = vmatprep.subr.bf16.mxu1 %v11586_v9  ;;  %v11567_v19 = vcombine.low %v967_v7, %v975_v8  ;;  %v994_v34 = vld [vmem:[#allocation8 + $0x1d8] sm:$0xff]  ;;  %p14284_p8 = scmp.ne.s32.totalorder %s11522_s9, %s14283_s1  ;;  %p14289_p10 = scmp.lt.s32.totalorder %s14283_s1, %s14283_s1 }
  0x7e   :  { %v959_v16 = vld [vmem:[#allocation8 + $0xc0] sm:$0xff]  ;;  %v960_v18 = vld [vmem:[#allocation8 + $0xc8] sm:$0xff]  ;;  %1332 = vmatpush1.bf16.msra.mxu0 %v11583_v6  ;;  %1373 = vmatpush1.bf16.msra.mxu1 %v11585_v10  ;;  %v11569_v20 = vcombine.low %v968_v12, %v976_v13  ;;  %v11590_v38 = vcombine.high %v986_v33, %v994_v34  ;;  %v969_v39 = vld [vmem:[#allocation8 + $0x110] sm:$0xff]  ;;  %v11589_v45 = vcombine.low %v986_v33, %v994_v34 }
  0x7f   :  { %1333 = vmatprep.subr.bf16.mxu0 %v11568_v11  ;;  %v11552_v21 = vcombine.high %v951_v14, %v959_v16  ;;  %1374 = vmatprep.subr.bf16.mxu1 %v11570_v15  ;;  %v11554_v22 = vcombine.high %v952_v17, %v960_v18  ;;  %v935_v23 = vld [vmem:[#allocation8] sm:$0xff]  ;;  %v936_v25 = vld [vmem:[#allocation8 + $0x8] sm:$0xff]  ;;  %v11551_v27 = vcombine.low %v951_v14, %v959_v16  ;;  %v977_v40 = vld [vmem:[#allocation8 + $0x150] sm:$0xff]  ;;  %p14290_p11 = por %p14289_p10, %p14288_p9 }
  0x80   :  { %v943_v24 = vld [vmem:[#allocation8 + $0x40] sm:$0xff]  ;;  %v944_v26 = vld [vmem:[#allocation8 + $0x48] sm:$0xff]  ;;  %v11553_v28 = vcombine.low %v952_v17, %v960_v18  ;;  %v970_v41 = vld [vmem:[#allocation8 + $0x118] sm:$0xff]  ;;  %v11572_v46 = vcombine.high %v969_v39, %v977_v40  ;;  %v11571_v52 = vcombine.low %v969_v39, %v977_v40 }
  0x81   :  { %v11536_v29 = vcombine.high %v935_v23, %v943_v24  ;;  %v11538_v30 = vcombine.high %v936_v25, %v944_v26  ;;  %v11535_v35 = vcombine.low %v935_v23, %v943_v24  ;;  %v11537_v36 = vcombine.low %v936_v25, %v944_v26  ;;  %v978_v42 = vld [vmem:[#allocation8 + $0x158] sm:$0xff]  ;;  %v953_v48 = vld [vmem:[#allocation8 + $0x90] sm:$0xff]  ;;  %v987_v1 = vld [vmem:[#allocation8 + $0x1a0] sm:$0xff]  ;;  %p14291_p12 = pnand %p14290_p11, %p14284_p8 }
  0x82   :  { %1334 = vmatpush1.bf16.msra.mxu0 %v11567_v19  ;;  %1375 = vmatpush1.bf16.msra.mxu1 %v11569_v20  ;;  %v14429_v43 = vld [vmem:[#allocation7] sm:$0xf]  ;;  %v11574_v47 = vcombine.high %v970_v41, %v978_v42  ;;  %v961_v49 = vld [vmem:[#allocation8 + $0xd0] sm:$0xff]  ;;  %v11573_v53 = vcombine.low %v970_v41, %v978_v42  ;;  %v995_v2 = vld [vmem:[#allocation8 + $0x1e0] sm:$0xff] }
  0x83   :  { %1335 = vmatprep.subr.bf16.mxu0 %v11552_v21  ;;  %1376 = vmatprep.subr.bf16.mxu1 %v11554_v22  ;;  %v954_v50 = vld [vmem:[#allocation8 + $0x98] sm:$0xff]  ;;  %v11556_v54 = vcombine.high %v953_v48, %v961_v49  ;;  %v937_v56 = vld [vmem:[#allocation8 + $0x10] sm:$0xff]  ;;  %v11555_v60 = vcombine.low %v953_v48, %v961_v49  ;;  %v988_v3 = vld [vmem:[#allocation8 + $0x1a8] sm:$0xff]  ;;  %v11592_v7 = vcombine.high %v987_v1, %v995_v2 }
  0x84   :  { %v962_v51 = vld [vmem:[#allocation8 + $0xd8] sm:$0xff]  ;;  %v945_v57 = vld [vmem:[#allocation8 + $0x50] sm:$0xff]  ;;  %v996_v4 = vld [vmem:[#allocation8 + $0x1e8] sm:$0xff]  ;;  %v11591_v13 = vcombine.low %v987_v1, %v995_v2 }
  0x85   :  { %v11558_v55 = vcombine.high %v954_v50, %v962_v51  ;;  %v938_v58 = vld [vmem:[#allocation8 + $0x18] sm:$0xff]  ;;  %v11557_v61 = vcombine.low %v954_v50, %v962_v51  ;;  %v11540_v62 = vcombine.high %v937_v56, %v945_v57  ;;  %v11539_v5 = vcombine.low %v937_v56, %v945_v57  ;;  %v971_v9 = vld [vmem:[#allocation8 + $0x120] sm:$0xff]  ;;  %v972_v11 = vld [vmem:[#allocation8 + $0x128] sm:$0xff] }
  0x86   :  { %1336 = vmatpush1.bf16.msra.mxu0 %v11551_v27  ;;  %1377 = vmatpush1.bf16.msra.mxu1 %v11553_v28  ;;  %v946_v59 = vld [vmem:[#allocation8 + $0x58] sm:$0xff]  ;;  %v11594_v8 = vcombine.high %v988_v3, %v996_v4  ;;  %v979_v10 = vld [vmem:[#allocation8 + $0x160] sm:$0xff]  ;;  %v980_v12 = vld [vmem:[#allocation8 + $0x168] sm:$0xff]  ;;  %v11593_v14 = vcombine.low %v988_v3, %v996_v4 }
  0x87   :  { %1337 = vmatprep.subr.bf16.mxu0 %v11536_v29  ;;  %1378 = vmatprep.subr.bf16.mxu1 %v11538_v30  ;;  %v11542_v63 = vcombine.high %v938_v58, %v946_v59  ;;  %v11541_v6 = vcombine.low %v938_v58, %v946_v59  ;;  %v11576_v15 = vcombine.high %v971_v9, %v979_v10  ;;  %v955_v17 = vld [vmem:[#allocation8 + $0xa0] sm:$0xff]  ;;  %v956_v19 = vld [vmem:[#allocation8 + $0xa8] sm:$0xff]  ;;  %v989_v33 = vld [vmem:[#allocation8 + $0x1b0] sm:$0xff] }
  0x88   :  { %v11578_v16 = vcombine.high %v972_v11, %v980_v12  ;;  %v963_v18 = vld [vmem:[#allocation8 + $0xe0] sm:$0xff]  ;;  %v964_v20 = vld [vmem:[#allocation8 + $0xe8] sm:$0xff]  ;;  %v11575_v21 = vcombine.low %v971_v9, %v979_v10  ;;  %v11577_v22 = vcombine.low %v972_v11, %v980_v12  ;;  %v997_v34 = vld [vmem:[#allocation8 + $0x1f0] sm:$0xff] }
  0x89   :  { %v11560_v23 = vcombine.high %v955_v17, %v963_v18  ;;  %v11562_v24 = vcombine.high %v956_v19, %v964_v20  ;;  %v939_v25 = vld [vmem:[#allocation8 + $0x20] sm:$0xff]  ;;  %v940_v27 = vld [vmem:[#allocation8 + $0x28] sm:$0xff]  ;;  %v11559_v29 = vcombine.low %v955_v17, %v963_v18  ;;  %v11561_v30 = vcombine.low %v956_v19, %v964_v20  ;;  %v973_v41 = vld [vmem:[#allocation8 + $0x130] sm:$0xff] }
  0x8a   :  { %1338 = vmatpush1.bf16.msra.mxu0 %v11535_v35  ;;  %1379 = vmatpush1.bf16.msra.mxu1 %v11537_v36  ;;  %v947_v26 = vld [vmem:[#allocation8 + $0x60] sm:$0xff]  ;;  %v948_v28 = vld [vmem:[#allocation8 + $0x68] sm:$0xff]  ;;  %v990_v35 = vld [vmem:[#allocation8 + $0x1b8] sm:$0xff]  ;;  %v11596_v39 = vcombine.high %v989_v33, %v997_v34 }
  0x8b   :  { %1413 = vmatprep.subr.bf16.mxu0 %v11588_v37  ;;  %1454 = vmatprep.subr.bf16.mxu1 %v11590_v38  ;;  %v11544_v31 = vcombine.high %v939_v25, %v947_v26  ;;  %v11546_v32 = vcombine.high %v940_v27, %v948_v28  ;;  %v998_v36 = vld [vmem:[#allocation8 + $0x1f8] sm:$0xff]  ;;  %v11543_v37 = vcombine.low %v939_v25, %v947_v26  ;;  %v981_v42 = vld [vmem:[#allocation8 + $0x170] sm:$0xff] }
  0x8c   :  { %v11545_v38 = vcombine.low %v940_v27, %v948_v28  ;;  %v11598_v40 = vcombine.high %v990_v35, %v998_v36  ;;  %v11580_v48 = vcombine.high %v973_v41, %v981_v42  ;;  %v957_v50 = vld [vmem:[#allocation8 + $0xb0] sm:$0xff]  ;;  %v278_v3 = vld [vmem:[#allocation5 + $0x380] sm:$0xff] }
  0x8d   :  { %11599 = vmatmul.mubr.msk.bf16.vlgmr.msra.gmra.mxu0 %vm1319_vm0, %v14429_v43  ;;  %11600 = vmatmul.mubr.msk.bf16.vlgmr.msra.gmra.mxu1 %vm1319_vm0, %v14429_v43  ;;  %v965_v51 = vld [vmem:[#allocation8 + $0xf0] sm:$0xff]  ;;  %v286_v4 = vld [vmem:[#allocation5 + $0x3c0] sm:$0xff] }
  0x8e   :  { %1414 = vmatpush1.bf16.msra.mxu0 %v11587_v44  ;;  %1455 = vmatpush1.bf16.msra.mxu1 %v11589_v45  ;;  %v974_v44 = vld [vmem:[#allocation8 + $0x138] sm:$0xff]  ;;  %v11564_v56 = vcombine.high %v957_v50, %v965_v51  ;;  %v941_v58 = vld [vmem:[#allocation8 + $0x30] sm:$0xff]  ;;  %v11726_v9 = vcombine.high %v278_v3, %v286_v4 }
  0x8f   :  { %1415 = vmatprep.subr.bf16.mxu0 %v11572_v46  ;;  %1456 = vmatprep.subr.bf16.mxu1 %v11574_v47  ;;  %v982_v45 = vld [vmem:[#allocation8 + $0x178] sm:$0xff]  ;;  %v11595_v46 = vcombine.low %v989_v33, %v997_v34  ;;  %v11597_v47 = vcombine.low %v990_v35, %v998_v36  ;;  %v949_v59 = vld [vmem:[#allocation8 + $0x70] sm:$0xff] }
  0x90   :  { %1437 = vmatprep.mubr.bf16.mxu0 %v14331_v0  ;;  %1478 = vmatprep.mubr.bf16.mxu1 %v14331_v0  ;;  %v11582_v49 = vcombine.high %v974_v44, %v982_v45  ;;  %v11548_v1 = vcombine.high %v941_v58, %v949_v59  ;;  %v262_v11 = vld [vmem:[#allocation5 + $0x300] sm:$0xff]  ;;  %v14451_v17 = vld [vmem:[#allocation2 + $0x8] sm:$0xff] }
  0x91   :  { %v270_v12 = vld [vmem:[#allocation5 + $0x340] sm:$0xff]  ;;  %v14461_v26 = vcombine.high %v14451_v17, %v14451_v17 }
  0x92   :  { %1416 = vmatpush1.bf16.msra.mxu0 %v11571_v52  ;;  %1457 = vmatpush1.bf16.msra.mxu1 %v11573_v53  ;;  %v958_v52 = vld [vmem:[#allocation8 + $0xb8] sm:$0xff]  ;;  %v11710_v19 = vcombine.high %v262_v11, %v270_v12  ;;  %v11709_v27 = vcombine.low %v262_v11, %v270_v12 }
  0x93   :  { %1417 = vmatprep.subr.bf16.mxu0 %v11556_v54  ;;  %1458 = vmatprep.subr.bf16.mxu1 %v11558_v55  ;;  %v966_v53 = vld [vmem:[#allocation8 + $0xf8] sm:$0xff]  ;;  %v11579_v54 = vcombine.low %v973_v41, %v981_v42  ;;  %v11581_v55 = vcombine.low %v974_v44, %v982_v45 }
  0x94   :  { %v11566_v57 = vcombine.high %v958_v52, %v966_v53  ;;  %v246_v20 = vld [vmem:[#allocation5 + $0x280] sm:$0xff] }
  0x95   :  { %v494_v34 = vld [vmem:[#allocation5 + $0xa40] sm:$0xff] }
  0x96   :  { %1418 = vmatpush1.bf16.msra.mxu0 %v11555_v60  ;;  %1459 = vmatpush1.bf16.msra.mxu1 %v11557_v61  ;;  %v942_v60 = vld [vmem:[#allocation8 + $0x38] sm:$0xff] }
  0x97   :  { %1419 = vmatprep.subr.bf16.mxu0 %v11540_v62  ;;  %1460 = vmatprep.subr.bf16.mxu1 %v11542_v63  ;;  %v950_v61 = vld [vmem:[#allocation8 + $0x78] sm:$0xff]  ;;  %v11563_v62 = vcombine.low %v957_v50, %v965_v51  ;;  %v11565_v63 = vcombine.low %v958_v52, %v966_v53 }
  0x98   :  { %v11550_v2 = vcombine.high %v942_v60, %v950_v61  ;;  %v478_v41 = vld [vmem:[#allocation5 + $0x9c0] sm:$0xff] }
  0x99   :  { %v462_v50 = vld [vmem:[#allocation5 + $0x940] sm:$0xff] }
  0x9a   :  { %1420 = vmatpush1.bf16.msra.mxu0 %v11539_v5  ;;  %1461 = vmatpush1.bf16.msra.mxu1 %v11541_v6  ;;  %v534_v5 = vld [vmem:[#allocation5 + $0xb80] sm:$0xff] }
  0x9b   :  { %1495 = vmatprep.subr.bf16.mxu0 %v11592_v7  ;;  %1536 = vmatprep.subr.bf16.mxu1 %v11594_v8  ;;  %v542_v6 = vld [vmem:[#allocation5 + $0xbc0] sm:$0xff]  ;;  %v11547_v7 = vcombine.low %v941_v58, %v949_v59  ;;  %v11549_v8 = vcombine.low %v942_v60, %v950_v61 }
  0x9c   :  { %v11982_v10 = vcombine.high %v534_v5, %v542_v6  ;;  %v11981_v18 = vcombine.low %v534_v5, %v542_v6  ;;  %v446_v58 = vld [vmem:[#allocation5 + $0x8c0] sm:$0xff] }
  0x9d   :  { %11601 = vmatmul.mubr.msk.bf16.vlgmr.msra.gmra.mxu0 %vm1319_vm0, %v14429_v43  ;;  %11602 = vmatmul.mubr.msk.bf16.vlgmr.msra.gmra.mxu1 %vm1319_vm0, %v14429_v43  ;;  %v670_v11 = vld [vmem:[#allocation5 + $0xfc0] sm:$0xff] }
  0x9e   :  { %1496 = vmatpush1.bf16.msra.mxu0 %v11591_v13  ;;  %1537 = vmatpush1.bf16.msra.mxu1 %v11593_v14  ;;  %v518_v13 = vld [vmem:[#allocation5 + $0xb00] sm:$0xff] }
  0x9f   :  { %1497 = vmatprep.subr.bf16.mxu0 %v11576_v15  ;;  %1538 = vmatprep.subr.bf16.mxu1 %v11578_v16  ;;  %v526_v14 = vld [vmem:[#allocation5 + $0xb40] sm:$0xff]  ;;  %v14449_v15 = vld [vmem:[#allocation2] sm:$0xff]  ;;  %v11725_v16 = vcombine.low %v278_v3, %v286_v4 }
  0xa0   :  { %1519 = vmatprep.mubr.bf16.mxu0 %v14331_v0  ;;  %1560 = vmatprep.mubr.bf16.mxu1 %v14331_v0  ;;  %v14455_v25 = vcombine.high %v14449_v15, %v14449_v15  ;;  %v11965_v28 = vcombine.low %v518_v13, %v526_v14  ;;  %v430_v3 = vld [vmem:[#allocation5 + $0x840] sm:$0xff] }
  0xa2   :  { %1498 = vmatpush1.bf16.msra.mxu0 %v11575_v21  ;;  %1539 = vmatpush1.bf16.msra.mxu1 %v11577_v22  ;;  %v254_v21 = vld [vmem:[#allocation5 + $0x2c0] sm:$0xff]  ;;  %v11966_v22 = vcombine.high %v518_v13, %v526_v14 }
  0xa3   :  { %1499 = vmatprep.subr.bf16.mxu0 %v11560_v23  ;;  %1540 = vmatprep.subr.bf16.mxu1 %v11562_v24  ;;  %v502_v23 = vld [vmem:[#allocation5 + $0xa80] sm:$0xff]  ;;  %v11693_v35 = vcombine.low %v246_v20, %v254_v21 }
  0xa4   :  { %v510_v24 = vld [vmem:[#allocation5 + $0xac0] sm:$0xff] }
  0xa5   :  { %v11950_v33 = vcombine.high %v502_v23, %v510_v24 }
  0xa6   :  { %1500 = vmatpush1.bf16.msra.mxu0 %v11559_v29  ;;  %1541 = vmatpush1.bf16.msra.mxu1 %v11561_v30  ;;  %v11694_v29 = vcombine.high %v246_v20, %v254_v21  ;;  %v230_v30 = vld [vmem:[#allocation5 + $0x200] sm:$0xff] }
  0xa7   :  { %1501 = vmatprep.subr.bf16.mxu0 %v11544_v31  ;;  %1542 = vmatprep.subr.bf16.mxu1 %v11546_v32  ;;  %v238_v31 = vld [vmem:[#allocation5 + $0x240] sm:$0xff] }
  0xa8   :  { %v486_v32 = vld [vmem:[#allocation5 + $0xa00] sm:$0xff]  ;;  %v11678_v36 = vcombine.high %v230_v30, %v238_v31  ;;  %v11677_v42 = vcombine.low %v230_v30, %v238_v31 }
  0xa9   :  { %v11933_v44 = vcombine.low %v486_v32, %v494_v34  ;;  %v654_v21 = vld [vmem:[#allocation5 + $0xf40] sm:$0xff] }
  0xaa   :  { %1502 = vmatpush1.bf16.msra.mxu0 %v11543_v37  ;;  %1543 = vmatpush1.bf16.msra.mxu1 %v11545_v38  ;;  %v214_v37 = vld [vmem:[#allocation5 + $0x180] sm:$0xff] }
  0xab   :  { %1577 = vmatprep.subr.bf16.mxu0 %v11596_v39  ;;  %1618 = vmatprep.subr.bf16.mxu1 %v11598_v40  ;;  %v222_v38 = vld [vmem:[#allocation5 + $0x1c0] sm:$0xff]  ;;  %v11934_v40 = vcombine.high %v486_v32, %v494_v34 }
  0xac   :  { %v470_v39 = vld [vmem:[#allocation5 + $0x980] sm:$0xff]  ;;  %v11662_v45 = vcombine.high %v214_v37, %v222_v38  ;;  %v11661_v51 = vcombine.low %v214_v37, %v222_v38 }
  0xad   :  { %11603 = vmatmul.mubr.msk.bf16.vlgmr.msra.gmra.mxu0 %vm1319_vm0, %v14429_v43  ;;  %11604 = vmatmul.mubr.msk.bf16.vlgmr.msra.gmra.mxu1 %vm1319_vm0, %v14429_v43  ;;  %v11917_v52 = vcombine.low %v470_v39, %v478_v41  ;;  %v638_v31 = vld [vmem:[#allocation5 + $0xec0] sm:$0xff] }
  0xae   :  { %1578 = vmatpush1.bf16.msra.mxu0 %v11595_v46  ;;  %1619 = vmatpush1.bf16.msra.mxu1 %v11597_v47  ;;  %v198_v46 = vld [vmem:[#allocation5 + $0x100] sm:$0xff] }
  0xaf   :  { %1579 = vmatprep.subr.bf16.mxu0 %v11580_v48  ;;  %1620 = vmatprep.subr.bf16.mxu1 %v11582_v49  ;;  %v206_v47 = vld [vmem:[#allocation5 + $0x140] sm:$0xff]  ;;  %v11918_v49 = vcombine.high %v470_v39, %v478_v41 }
  0xb0   :  { %1601 = vmatprep.mubr.bf16.mxu0 %v14331_v0  ;;  %1642 = vmatprep.mubr.bf16.mxu1 %v14331_v0  ;;  %v454_v48 = vld [vmem:[#allocation5 + $0x900] sm:$0xff]  ;;  %v11646_v53 = vcombine.high %v198_v46, %v206_v47  ;;  %v11645_v59 = vcombine.low %v198_v46, %v206_v47 }
  0xb1   :  { %v11901_v60 = vcombine.low %v454_v48, %v462_v50  ;;  %v622_v38 = vld [vmem:[#allocation5 + $0xe40] sm:$0xff] }
  0xb2   :  { %1580 = vmatpush1.bf16.msra.mxu0 %v11579_v54  ;;  %1621 = vmatpush1.bf16.msra.mxu1 %v11581_v55  ;;  %v182_v54 = vld [vmem:[#allocation5 + $0x80] sm:$0xff] }
  0xb3   :  { %1581 = vmatprep.subr.bf16.mxu0 %v11564_v56  ;;  %1622 = vmatprep.subr.bf16.mxu1 %v11566_v57  ;;  %v190_v55 = vld [vmem:[#allocation5 + $0xc0] sm:$0xff]  ;;  %v11902_v57 = vcombine.high %v454_v48, %v462_v50 }
  0xb4   :  { %v438_v56 = vld [vmem:[#allocation5 + $0x880] sm:$0xff]  ;;  %v11630_v61 = vcombine.high %v182_v54, %v190_v55  ;;  %v11629_v4 = vcombine.low %v182_v54, %v190_v55 }
  0xb5   :  { %v11885_v5 = vcombine.low %v438_v56, %v446_v58  ;;  %v606_v47 = vld [vmem:[#allocation5 + $0xdc0] sm:$0xff] }
  0xb6   :  { %1582 = vmatpush1.bf16.msra.mxu0 %v11563_v62  ;;  %1623 = vmatpush1.bf16.msra.mxu1 %v11565_v63  ;;  %v166_v62 = vld [vmem:[#allocation5] sm:$0xff] }
  0xb7   :  { %1583 = vmatprep.subr.bf16.mxu0 %v11548_v1  ;;  %1624 = vmatprep.subr.bf16.mxu1 %v11550_v2  ;;  %v174_v63 = vld [vmem:[#allocation5 + $0x40] sm:$0xff]  ;;  %v11886_v2 = vcombine.high %v438_v56, %v446_v58 }
  0xb8   :  { %v422_v1 = vld [vmem:[#allocation5 + $0x800] sm:$0xff]  ;;  %v11614_v6 = vcombine.high %v166_v62, %v174_v63  ;;  %v11613_v12 = vcombine.low %v166_v62, %v174_v63 }
  0xb9   :  { %v11869_v13 = vcombine.low %v422_v1, %v430_v3  ;;  %v590_v55 = vld [vmem:[#allocation5 + $0xd40] sm:$0xff] }
  0xba   :  { %1584 = vmatpush1.bf16.msra.mxu0 %v11547_v7  ;;  %1625 = vmatpush1.bf16.msra.mxu1 %v11549_v8  ;;  %v406_v7 = vld [vmem:[#allocation5 + $0x780] sm:$0xff] }
  0xbb   :  { %5512 = vmatprep.subr.bf16.mxu0 %v11726_v9  ;;  %5553 = vmatprep.subr.bf16.mxu1 %v11982_v10  ;;  %v414_v8 = vld [vmem:[#allocation5 + $0x7c0] sm:$0xff]  ;;  %v11870_v10 = vcombine.high %v422_v1, %v430_v3 }
  0xbc   :  { %v662_v9 = vld [vmem:[#allocation5 + $0xf80] sm:$0xff]  ;;  %v11854_v14 = vcombine.high %v406_v7, %v414_v8 }
  0xbd   :  { %11605 = vmatmul.mubr.msk.bf16.vlgmr.msra.gmra.mxu0 %vm1319_vm0, %v14429_v43  ;;  %11606 = vmatmul.mubr.msk.bf16.vlgmr.msra.gmra.mxu1 %vm1319_vm0, %v14429_v43  ;;  %v11949_v43 = vcombine.low %v502_v23, %v510_v24  ;;  %v12110_v20 = vcombine.high %v662_v9, %v670_v11  ;;  %v12109_v23 = vcombine.low %v662_v9, %v670_v11  ;;  %v574_v63 = vld [vmem:[#allocation5 + $0xcc0] sm:$0xff] }
  0xbe   :  { %5513 = vmatpush1.bf16.msra.mxu0 %v11725_v16  ;;  %5554 = vmatpush1.bf16.msra.mxu1 %v11981_v18  ;;  %v390_v16 = vld [vmem:[#allocation5 + $0x700] sm:$0xff] }
  0xbf   :  { %5514 = vmatprep.subr.bf16.mxu0 %v11710_v19  ;;  %5555 = vmatprep.subr.bf16.mxu1 %v11966_v22  ;;  %v398_v18 = vld [vmem:[#allocation5 + $0x740] sm:$0xff]  ;;  %v11853_v22 = vcombine.low %v406_v7, %v414_v8 }
  0xc0   :  { %5544 = vmatprep.mubr.bf16.mxu0 %v14455_v25  ;;  %5585 = vmatprep.mubr.bf16.mxu1 %v14461_v26  ;;  %v646_v19 = vld [vmem:[#allocation5 + $0xf00] sm:$0xff]  ;;  %v11838_v24 = vcombine.high %v390_v16, %v398_v18  ;;  %v11837_v32 = vcombine.low %v390_v16, %v398_v18  ;;  %v287_v18 = vld [vmem:[#allocation5 + $0x3c8] sm:$0xff] }
  0xc1   :  { %v12094_v30 = vcombine.high %v646_v19, %v654_v21  ;;  %v558_v8 = vld [vmem:[#allocation5 + $0xc40] sm:$0xff] }
  0xc2   :  { %5515 = vmatpush1.bf16.msra.mxu0 %v11709_v27  ;;  %5556 = vmatpush1.bf16.msra.mxu1 %v11965_v28  ;;  %v374_v27 = vld [vmem:[#allocation5 + $0x680] sm:$0xff] }
  0xc3   :  { %5516 = vmatprep.subr.bf16.mxu0 %v11694_v29  ;;  %5557 = vmatprep.subr.bf16.mxu1 %v11950_v33  ;;  %v382_v28 = vld [vmem:[#allocation5 + $0x6c0] sm:$0xff]  ;;  %v12093_v33 = vcombine.low %v646_v19, %v654_v21 }
  0xc4   :  { %v630_v29 = vld [vmem:[#allocation5 + $0xe80] sm:$0xff]  ;;  %v11822_v34 = vcombine.high %v374_v27, %v382_v28  ;;  %v11821_v39 = vcombine.low %v374_v27, %v382_v28  ;;  %v271_v27 = vld [vmem:[#allocation5 + $0x348] sm:$0xff] }
  0xc5   :  { %v12078_v37 = vcombine.high %v630_v29, %v638_v31 }
  0xc6   :  { %5517 = vmatpush1.bf16.msra.mxu0 %v11693_v35  ;;  %5558 = vmatpush1.bf16.msra.mxu1 %v11949_v43  ;;  %v358_v35 = vld [vmem:[#allocation5 + $0x600] sm:$0xff] }
  0xc7   :  { %5518 = vmatprep.subr.bf16.mxu0 %v11678_v36  ;;  %5559 = vmatprep.subr.bf16.mxu1 %v11934_v40  ;;  %v366_v43 = vld [vmem:[#allocation5 + $0x640] sm:$0xff]  ;;  %v12077_v40 = vcombine.low %v630_v29, %v638_v31  ;;  %v14467_v29 = vld [vmem:[#allocation2 + $0x10] sm:$0xff]  ;;  %v14475_v31 = vcombine.low %v14451_v17, %v14451_v17 }
  0xc8   :  { %v614_v36 = vld [vmem:[#allocation5 + $0xe00] sm:$0xff]  ;;  %v11806_v41 = vcombine.high %v358_v35, %v366_v43  ;;  %v11805_v48 = vcombine.low %v358_v35, %v366_v43 }
  0xc9   :  { %v12062_v46 = vcombine.high %v614_v36, %v622_v38  ;;  %v758_v35 = vld [vmem:[#allocation5 + $0x1280] sm:$0xff] }
  0xca   :  { %5519 = vmatpush1.bf16.msra.mxu0 %v11677_v42  ;;  %5560 = vmatpush1.bf16.msra.mxu1 %v11933_v44  ;;  %v342_v42 = vld [vmem:[#allocation5 + $0x580] sm:$0xff] }
  0xcb   :  { %5520 = vmatprep.subr.bf16.mxu0 %v11662_v45  ;;  %5561 = vmatprep.subr.bf16.mxu1 %v11918_v49  ;;  %v350_v44 = vld [vmem:[#allocation5 + $0x5c0] sm:$0xff]  ;;  %v12061_v49 = vcombine.low %v614_v36, %v622_v38  ;;  %v247_v36 = vld [vmem:[#allocation5 + $0x288] sm:$0xff] }
  0xcc   :  { %v598_v45 = vld [vmem:[#allocation5 + $0xd80] sm:$0xff]  ;;  %v11790_v50 = vcombine.high %v342_v42, %v350_v44  ;;  %v11789_v56 = vcombine.low %v342_v42, %v350_v44  ;;  %v255_v38 = vld [vmem:[#allocation5 + $0x2c8] sm:$0xff] }
  0xcd   :  { %v12046_v54 = vcombine.high %v598_v45, %v606_v47  ;;  %v766_v43 = vld [vmem:[#allocation5 + $0x12c0] sm:$0xff]  ;;  %v231_v44 = vld [vmem:[#allocation5 + $0x208] sm:$0xff] }
  0xce   :  { %5521 = vmatpush1.bf16.msra.mxu0 %v11661_v51  ;;  %5562 = vmatpush1.bf16.msra.mxu1 %v11917_v52  ;;  %v326_v51 = vld [vmem:[#allocation5 + $0x500] sm:$0xff] }
  0xcf   :  { %5522 = vmatprep.subr.bf16.mxu0 %v11646_v53  ;;  %5563 = vmatprep.subr.bf16.mxu1 %v11902_v57  ;;  %v334_v52 = vld [vmem:[#allocation5 + $0x540] sm:$0xff]  ;;  %v12045_v57 = vcombine.low %v598_v45, %v606_v47  ;;  %v11696_v45 = vcombine.high %v247_v36, %v255_v38  ;;  %v12205_v47 = vcombine.low %v758_v35, %v766_v43 }
  0xd0   :  { %v582_v53 = vld [vmem:[#allocation5 + $0xd00] sm:$0xff]  ;;  %v11774_v58 = vcombine.high %v326_v51, %v334_v52  ;;  %v11773_v1 = vcombine.low %v326_v51, %v334_v52  ;;  %v215_v52 = vld [vmem:[#allocation5 + $0x188] sm:$0xff] }
  0xd1   :  { %v12030_v62 = vcombine.high %v582_v53, %v590_v55  ;;  %v750_v42 = vld [vmem:[#allocation5 + $0x1240] sm:$0xff] }
  0xd2   :  { %5523 = vmatpush1.bf16.msra.mxu0 %v11645_v59  ;;  %5564 = vmatpush1.bf16.msra.mxu1 %v11901_v60  ;;  %v310_v59 = vld [vmem:[#allocation5 + $0x480] sm:$0xff] }
  0xd3   :  { %5524 = vmatprep.subr.bf16.mxu0 %v11630_v61  ;;  %5565 = vmatprep.subr.bf16.mxu1 %v11886_v2  ;;  %v318_v60 = vld [vmem:[#allocation5 + $0x4c0] sm:$0xff]  ;;  %v12029_v2 = vcombine.low %v582_v53, %v590_v55 }
  0xd4   :  { %v566_v61 = vld [vmem:[#allocation5 + $0xc80] sm:$0xff]  ;;  %v11758_v3 = vcombine.high %v310_v59, %v318_v60  ;;  %v11757_v9 = vcombine.low %v310_v59, %v318_v60  ;;  %v199_v60 = vld [vmem:[#allocation5 + $0x108] sm:$0xff] }
  0xd5   :  { %v12014_v7 = vcombine.high %v566_v61, %v574_v63  ;;  %v734_v51 = vld [vmem:[#allocation5 + $0x11c0] sm:$0xff] }
  0xd6   :  { %5525 = vmatpush1.bf16.msra.mxu0 %v11629_v4  ;;  %5566 = vmatpush1.bf16.msra.mxu1 %v11885_v5  ;;  %v294_v4 = vld [vmem:[#allocation5 + $0x400] sm:$0xff] }
  0xd7   :  { %5526 = vmatprep.subr.bf16.mxu0 %v11614_v6  ;;  %5567 = vmatprep.subr.bf16.mxu1 %v11870_v10  ;;  %v302_v5 = vld [vmem:[#allocation5 + $0x440] sm:$0xff]  ;;  %v12013_v10 = vcombine.low %v566_v61, %v574_v63 }
  0xd8   :  { %v550_v6 = vld [vmem:[#allocation5 + $0xc00] sm:$0xff]  ;;  %v11742_v11 = vcombine.high %v294_v4, %v302_v5  ;;  %v11741_v19 = vcombine.low %v294_v4, %v302_v5  ;;  %v183_v5 = vld [vmem:[#allocation5 + $0x88] sm:$0xff] }
  0xd9   :  { %v11998_v16 = vcombine.high %v550_v6, %v558_v8  ;;  %v11997_v21 = vcombine.low %v550_v6, %v558_v8  ;;  %v718_v59 = vld [vmem:[#allocation5 + $0x1140] sm:$0xff] }
  0xda   :  { %5527 = vmatpush1.bf16.msra.mxu0 %v11613_v12  ;;  %5568 = vmatpush1.bf16.msra.mxu1 %v11869_v13  ;;  %v790_v12 = vld [vmem:[#allocation5 + $0x1380] sm:$0xff] }
  0xdb   :  { %5528 = vmatprep.subr.bf16.mxu0 %v11854_v14  ;;  %5569 = vmatprep.subr.bf16.mxu1 %v12110_v20  ;;  %v798_v13 = vld [vmem:[#allocation5 + $0x13c0] sm:$0xff]  ;;  %v279_v14 = vld [vmem:[#allocation5 + $0x388] sm:$0xff] }
  0xdc   :  { %v774_v20 = vld [vmem:[#allocation5 + $0x1300] sm:$0xff]  ;;  %v11728_v28 = vcombine.high %v279_v14, %v287_v18 }
  0xdd   :  { %v702_v4 = vld [vmem:[#allocation5 + $0x10c0] sm:$0xff] }
  0xde   :  { %5529 = vmatpush2.bf16.msra.mxu0 %v11853_v22  ;;  %5570 = vmatpush2.bf16.msra.mxu1 %v12109_v23  ;;  %v12238_v22 = vcombine.high %v790_v12, %v798_v13  ;;  %v782_v23 = vld [vmem:[#allocation5 + $0x1340] sm:$0xff] }
  0xdf   :  { %5530 = vmatprep.subr.bf16.mxu0 %v11838_v24  ;;  %5571 = vmatprep.subr.bf16.mxu1 %v12094_v30  ;;  %v263_v24 = vld [vmem:[#allocation5 + $0x308] sm:$0xff]  ;;  %v14471_v30 = vcombine.low %v14449_v15, %v14449_v15  ;;  %v14479_v15 = vcombine.high %v14467_v29, %v14467_v29  ;;  %v12221_v17 = vcombine.low %v774_v20, %v782_v23 }
  0xe2   :  { %5531 = vmatpush2.bf16.msra.mxu0 %v11837_v32  ;;  %5572 = vmatpush2.bf16.msra.mxu1 %v12093_v33  ;;  %v12237_v32 = vcombine.low %v790_v12, %v798_v13  ;;  %v11727_v33 = vcombine.low %v279_v14, %v287_v18  ;;  %v686_v12 = vld [vmem:[#allocation5 + $0x1040] sm:$0xff]  ;;  %v167_v13 = vld [vmem:[#allocation5 + $0x8] sm:$0xff] }
  0xe3   :  { %5532 = vmatprep.subr.bf16.mxu0 %v11822_v34  ;;  %5573 = vmatprep.subr.bf16.mxu1 %v12078_v37  ;;  %v12222_v34 = vcombine.high %v774_v20, %v782_v23  ;;  %v11712_v37 = vcombine.high %v263_v24, %v271_v27  ;;  %v407_v23 = vld [vmem:[#allocation5 + $0x788] sm:$0xff] }
  0xe6   :  { %5533 = vmatpush2.bf16.msra.mxu0 %v11821_v39  ;;  %5574 = vmatpush2.bf16.msra.mxu1 %v12077_v40  ;;  %v11711_v39 = vcombine.low %v263_v24, %v271_v27  ;;  %v12206_v40 = vcombine.high %v758_v35, %v766_v43  ;;  %v415_v27 = vld [vmem:[#allocation5 + $0x7c8] sm:$0xff]  ;;  %v910_v35 = vld [vmem:[#allocation5 + $0x1740] sm:$0xff] }
  0xe7   :  { %5534 = vmatprep.subr.bf16.mxu0 %v11806_v41  ;;  %5575 = vmatprep.subr.bf16.mxu1 %v12062_v46  ;;  %v742_v41 = vld [vmem:[#allocation5 + $0x1200] sm:$0xff]  ;;  %v239_v46 = vld [vmem:[#allocation5 + $0x248] sm:$0xff] }
  0xe8   :  { %v11680_v53 = vcombine.high %v231_v44, %v239_v46  ;;  %v12189_v55 = vcombine.low %v742_v41, %v750_v42  ;;  %v391_v43 = vld [vmem:[#allocation5 + $0x708] sm:$0xff] }
  0xea   :  { %5535 = vmatpush2.bf16.msra.mxu0 %v11805_v48  ;;  %5576 = vmatpush2.bf16.msra.mxu1 %v12061_v49  ;;  %v11695_v48 = vcombine.low %v247_v36, %v255_v38  ;;  %v12190_v49 = vcombine.high %v742_v41, %v750_v42  ;;  %v11856_v36 = vcombine.high %v407_v23, %v415_v27  ;;  %v894_v41 = vld [vmem:[#allocation5 + $0x16c0] sm:$0xff]  ;;  %v375_v42 = vld [vmem:[#allocation5 + $0x688] sm:$0xff] }
  0xeb   :  { %5536 = vmatprep.subr.bf16.mxu0 %v11790_v50  ;;  %5577 = vmatprep.subr.bf16.mxu1 %v12046_v54  ;;  %v726_v50 = vld [vmem:[#allocation5 + $0x1180] sm:$0xff]  ;;  %v223_v54 = vld [vmem:[#allocation5 + $0x1c8] sm:$0xff] }
  0xec   :  { %v11664_v61 = vcombine.high %v215_v52, %v223_v54  ;;  %v12173_v63 = vcombine.low %v726_v50, %v734_v51 }
  0xee   :  { %5537 = vmatpush2.bf16.msra.mxu0 %v11789_v56  ;;  %5578 = vmatpush2.bf16.msra.mxu1 %v12045_v57  ;;  %v11679_v56 = vcombine.low %v231_v44, %v239_v46  ;;  %v12174_v57 = vcombine.high %v726_v50, %v734_v51  ;;  %v878_v50 = vld [vmem:[#allocation5 + $0x1640] sm:$0xff]  ;;  %v359_v51 = vld [vmem:[#allocation5 + $0x608] sm:$0xff] }
  0xef   :  { %5538 = vmatprep.subr.bf16.mxu0 %v11774_v58  ;;  %5579 = vmatprep.subr.bf16.mxu1 %v12030_v62  ;;  %v710_v58 = vld [vmem:[#allocation5 + $0x1100] sm:$0xff]  ;;  %v207_v62 = vld [vmem:[#allocation5 + $0x148] sm:$0xff] }
  0xf0   :  { %v11648_v6 = vcombine.high %v199_v60, %v207_v62  ;;  %v12157_v8 = vcombine.low %v710_v58, %v718_v59 }
  0xf2   :  { %5539 = vmatpush2.bf16.msra.mxu0 %v11773_v1  ;;  %5580 = vmatpush2.bf16.msra.mxu1 %v12029_v2  ;;  %v11663_v1 = vcombine.low %v215_v52, %v223_v54  ;;  %v12158_v2 = vcombine.high %v710_v58, %v718_v59  ;;  %v862_v58 = vld [vmem:[#allocation5 + $0x15c0] sm:$0xff]  ;;  %v343_v59 = vld [vmem:[#allocation5 + $0x588] sm:$0xff] }
  0xf3   :  { %5540 = vmatprep.subr.bf16.mxu0 %v11758_v3  ;;  %5581 = vmatprep.subr.bf16.mxu1 %v12014_v7  ;;  %v694_v3 = vld [vmem:[#allocation5 + $0x1080] sm:$0xff]  ;;  %v191_v7 = vld [vmem:[#allocation5 + $0xc8] sm:$0xff] }
  0xf4   :  { %v11632_v14 = vcombine.high %v183_v5, %v191_v7  ;;  %v12141_v18 = vcombine.low %v694_v3, %v702_v4 }
  0xf6   :  { %5541 = vmatpush2.bf16.msra.mxu0 %v11757_v9  ;;  %5582 = vmatpush2.bf16.msra.mxu1 %v12013_v10  ;;  %v11647_v9 = vcombine.low %v199_v60, %v207_v62  ;;  %v12142_v10 = vcombine.high %v694_v3, %v702_v4  ;;  %v846_v3 = vld [vmem:[#allocation5 + $0x1540] sm:$0xff]  ;;  %v327_v4 = vld [vmem:[#allocation5 + $0x508] sm:$0xff] }
  0xf7   :  { %5542 = vmatprep.subr.bf16.mxu0 %v11742_v11  ;;  %5583 = vmatprep.subr.bf16.mxu1 %v11998_v16  ;;  %v678_v11 = vld [vmem:[#allocation5 + $0x1000] sm:$0xff]  ;;  %v175_v16 = vld [vmem:[#allocation5 + $0x48] sm:$0xff] }
  0xf8   :  { %v12126_v20 = vcombine.high %v678_v11, %v686_v12  ;;  %v11616_v24 = vcombine.high %v167_v13, %v175_v16 }
  0xfa   :  { %5543 = vmatpush2.bf16.msra.mxu0 %v11741_v19  ;;  %5584 = vmatpush2.bf16.msra.mxu1 %v11997_v21  ;;  %v11631_v19 = vcombine.low %v183_v5, %v191_v7  ;;  %v918_v21 = vld [vmem:[#allocation5 + $0x1780] sm:$0xff] }
  0xfb   :  { %5594 = vmatprep.subr.bf16.mxu0 %v12238_v22  ;;  %5635 = vmatprep.subr.bf16.mxu1 %v11728_v28  ;;  %v926_v22 = vld [vmem:[#allocation5 + $0x17c0] sm:$0xff]  ;;  %v12125_v28 = vcombine.low %v678_v11, %v686_v12  ;;  %v311_v12 = vld [vmem:[#allocation5 + $0x488] sm:$0xff] }
  0xfc   :  { %v12365_v38 = vcombine.low %v918_v21, %v926_v22  ;;  %v830_v11 = vld [vmem:[#allocation5 + $0x14c0] sm:$0xff] }
  0xfd   :  { %5545 = vmatmul.mubr.bf16.vlgmr.msra.gmra.mxu0 %v14471_v30  ;;  %5586 = vmatmul.mubr.bf16.vlgmr.msra.gmra.mxu1 %v14475_v31 }
  0xfe   :  { %5595 = vmatpush1.bf16.msra.mxu0 %v12237_v32  ;;  %5636 = vmatpush1.bf16.msra.mxu1 %v11727_v33  ;;  %v11615_v32 = vcombine.low %v167_v13, %v175_v16  ;;  %v12366_v33 = vcombine.high %v918_v21, %v926_v22  ;;  %v814_v21 = vld [vmem:[#allocation5 + $0x1440] sm:$0xff]  ;;  %v295_v22 = vld [vmem:[#allocation5 + $0x408] sm:$0xff] }
  0xff   :  { %5596 = vmatprep.subr.bf16.mxu0 %v12222_v34  ;;  %5637 = vmatprep.subr.bf16.mxu1 %v11712_v37  ;;  %v902_v34 = vld [vmem:[#allocation5 + $0x1700] sm:$0xff]  ;;  %v399_v37 = vld [vmem:[#allocation5 + $0x748] sm:$0xff] }
 0x100   :  { %5626 = vmatprep.mubr.bf16.mxu0 %v14479_v15  ;;  %5667 = vmatprep.mubr.bf16.mxu1 %v14455_v25  ;;  %v11840_v44 = vcombine.high %v391_v43, %v399_v37  ;;  %v12349_v46 = vcombine.low %v902_v34, %v910_v35 }
 0x102   :  { %5597 = vmatpush1.bf16.msra.mxu0 %v12221_v17  ;;  %5638 = vmatpush1.bf16.msra.mxu1 %v11711_v39  ;;  %v11855_v17 = vcombine.low %v407_v23, %v415_v27  ;;  %v12350_v39 = vcombine.high %v902_v34, %v910_v35  ;;  %v543_v34 = vld [vmem:[#allocation5 + $0xbc8] sm:$0xff] }
 0x103   :  { %5598 = vmatprep.subr.bf16.mxu0 %v12206_v40  ;;  %5639 = vmatprep.subr.bf16.mxu1 %v11696_v45  ;;  %v886_v40 = vld [vmem:[#allocation5 + $0x1680] sm:$0xff]  ;;  %v383_v45 = vld [vmem:[#allocation5 + $0x6c8] sm:$0xff] }
 0x104   :  { %v11824_v52 = vcombine.high %v375_v42, %v383_v45  ;;  %v12333_v54 = vcombine.low %v886_v40, %v894_v41  ;;  %v791_v35 = vld [vmem:[#allocation5 + $0x1388] sm:$0xff] }
 0x106   :  { %5599 = vmatpush1.bf16.msra.mxu0 %v12205_v47  ;;  %5640 = vmatpush1.bf16.msra.mxu1 %v11695_v48  ;;  %v11839_v47 = vcombine.low %v391_v43, %v399_v37  ;;  %v12334_v48 = vcombine.high %v886_v40, %v894_v41  ;;  %v527_v40 = vld [vmem:[#allocation5 + $0xb48] sm:$0xff] }
 0x107   :  { %5600 = vmatprep.subr.bf16.mxu0 %v12190_v49  ;;  %5641 = vmatprep.subr.bf16.mxu1 %v11680_v53  ;;  %v870_v49 = vld [vmem:[#allocation5 + $0x1600] sm:$0xff]  ;;  %v367_v53 = vld [vmem:[#allocation5 + $0x648] sm:$0xff] }
 0x108   :  { %v11808_v60 = vcombine.high %v359_v51, %v367_v53  ;;  %v12317_v62 = vcombine.low %v870_v49, %v878_v50  ;;  %v775_v41 = vld [vmem:[#allocation5 + $0x1308] sm:$0xff] }
 0x10a   :  { %5601 = vmatpush1.bf16.msra.mxu0 %v12189_v55  ;;  %5642 = vmatpush1.bf16.msra.mxu1 %v11679_v56  ;;  %v11823_v55 = vcombine.low %v375_v42, %v383_v45  ;;  %v12318_v56 = vcombine.high %v870_v49, %v878_v50  ;;  %v14487_v45 = vcombine.low %v14467_v29, %v14467_v29  ;;  %v503_v49 = vld [vmem:[#allocation5 + $0xa88] sm:$0xff] }
 0x10b   :  { %5602 = vmatprep.subr.bf16.mxu0 %v12174_v57  ;;  %5643 = vmatprep.subr.bf16.mxu1 %v11664_v61  ;;  %v854_v57 = vld [vmem:[#allocation5 + $0x1580] sm:$0xff]  ;;  %v351_v61 = vld [vmem:[#allocation5 + $0x5c8] sm:$0xff] }
 0x10c   :  { %v11792_v5 = vcombine.high %v343_v59, %v351_v61  ;;  %v12301_v7 = vcombine.low %v854_v57, %v862_v58  ;;  %v511_v50 = vld [vmem:[#allocation5 + $0xac8] sm:$0xff] }
 0x10e   :  { %5603 = vmatpush1.bf16.msra.mxu0 %v12173_v63  ;;  %5644 = vmatpush1.bf16.msra.mxu1 %v11663_v1  ;;  %v11807_v63 = vcombine.low %v359_v51, %v367_v53  ;;  %v12302_v1 = vcombine.high %v854_v57, %v862_v58  ;;  %v759_v51 = vld [vmem:[#allocation5 + $0x1288] sm:$0xff] }
 0x10f   :  { %5604 = vmatprep.subr.bf16.mxu0 %v12158_v2  ;;  %5645 = vmatprep.subr.bf16.mxu1 %v11648_v6  ;;  %v838_v2 = vld [vmem:[#allocation5 + $0x1500] sm:$0xff]  ;;  %v335_v6 = vld [vmem:[#allocation5 + $0x548] sm:$0xff] }
 0x110   :  { %v11776_v13 = vcombine.high %v327_v4, %v335_v6  ;;  %v12285_v16 = vcombine.low %v838_v2, %v846_v3  ;;  %v767_v53 = vld [vmem:[#allocation5 + $0x12c8] sm:$0xff] }
 0x111   :  { %v495_v57 = vld [vmem:[#allocation5 + $0xa48] sm:$0xff] }
 0x112   :  { %5605 = vmatpush1.bf16.msra.mxu0 %v12157_v8  ;;  %5646 = vmatpush1.bf16.msra.mxu1 %v11647_v9  ;;  %v11791_v8 = vcombine.low %v343_v59, %v351_v61  ;;  %v12286_v9 = vcombine.high %v838_v2, %v846_v3  ;;  %v743_v58 = vld [vmem:[#allocation5 + $0x1208] sm:$0xff]  ;;  %v12208_v59 = vcombine.high %v759_v51, %v767_v53 }
 0x113   :  { %5606 = vmatprep.subr.bf16.mxu0 %v12142_v10  ;;  %5647 = vmatprep.subr.bf16.mxu1 %v11632_v14  ;;  %v822_v10 = vld [vmem:[#allocation5 + $0x1480] sm:$0xff]  ;;  %v319_v14 = vld [vmem:[#allocation5 + $0x4c8] sm:$0xff]  ;;  %v11951_v61 = vcombine.low %v503_v49, %v511_v50 }
 0x114   :  { %v11760_v23 = vcombine.high %v311_v12, %v319_v14  ;;  %v12269_v27 = vcombine.low %v822_v10, %v830_v11  ;;  %v479_v2 = vld [vmem:[#allocation5 + $0x9c8] sm:$0xff] }
 0x115   :  { %v727_v3 = vld [vmem:[#allocation5 + $0x1188] sm:$0xff] }
 0x116   :  { %5607 = vmatpush1.bf16.msra.mxu0 %v12141_v18  ;;  %5648 = vmatpush1.bf16.msra.mxu1 %v11631_v19  ;;  %v11775_v18 = vcombine.low %v327_v4, %v335_v6  ;;  %v12270_v19 = vcombine.high %v822_v10, %v830_v11  ;;  %v463_v10 = vld [vmem:[#allocation5 + $0x948] sm:$0xff] }
 0x117   :  { %5608 = vmatprep.subr.bf16.mxu0 %v12126_v20  ;;  %5649 = vmatprep.subr.bf16.mxu1 %v11616_v24  ;;  %v806_v20 = vld [vmem:[#allocation5 + $0x1400] sm:$0xff]  ;;  %v303_v24 = vld [vmem:[#allocation5 + $0x448] sm:$0xff] }
 0x118   :  { %v11744_v43 = vcombine.high %v295_v22, %v303_v24  ;;  %v12253_v37 = vcombine.low %v806_v20, %v814_v21  ;;  %v711_v11 = vld [vmem:[#allocation5 + $0x1108] sm:$0xff] }
 0x11a   :  { %5609 = vmatpush1.bf16.msra.mxu0 %v12125_v28  ;;  %5650 = vmatpush1.bf16.msra.mxu1 %v11615_v32  ;;  %v11759_v28 = vcombine.low %v311_v12, %v319_v14  ;;  %v12254_v32 = vcombine.high %v806_v20, %v814_v21  ;;  %v447_v20 = vld [vmem:[#allocation5 + $0x8c8] sm:$0xff] }
 0x11b   :  { %5610 = vmatprep.subr.bf16.mxu0 %v12366_v33  ;;  %5651 = vmatprep.subr.bf16.mxu1 %v11856_v36  ;;  %v535_v33 = vld [vmem:[#allocation5 + $0xb88] sm:$0xff] }
 0x11c   :  { %v799_v36 = vld [vmem:[#allocation5 + $0x13c8] sm:$0xff] }
 0x11d   :  { %v12240_v42 = vcombine.high %v791_v35, %v799_v36  ;;  %v695_v21 = vld [vmem:[#allocation5 + $0x1088] sm:$0xff] }
 0x11e   :  { %5611 = vmatpush2.bf16.msra.mxu0 %v12365_v38  ;;  %5652 = vmatpush2.bf16.msra.mxu1 %v11855_v17  ;;  %v11743_v38 = vcombine.low %v295_v22, %v303_v24  ;;  %v11984_v17 = vcombine.high %v535_v33, %v543_v34 }
 0x11f   :  { %5612 = vmatprep.subr.bf16.mxu0 %v12350_v39  ;;  %5653 = vmatprep.subr.bf16.mxu1 %v11840_v44  ;;  %v519_v39 = vld [vmem:[#allocation5 + $0xb08] sm:$0xff] }
 0x120   :  { %v783_v44 = vld [vmem:[#allocation5 + $0x1348] sm:$0xff] }
 0x121   :  { %v12223_v29 = vcombine.low %v775_v41, %v783_v44 }
 0x122   :  { %5613 = vmatpush2.bf16.msra.mxu0 %v12349_v46  ;;  %5654 = vmatpush2.bf16.msra.mxu1 %v11839_v47  ;;  %v11983_v46 = vcombine.low %v535_v33, %v543_v34  ;;  %v12239_v47 = vcombine.low %v791_v35, %v799_v36  ;;  %v423_v35 = vld [vmem:[#allocation5 + $0x808] sm:$0xff] }
 0x123   :  { %5614 = vmatprep.subr.bf16.mxu0 %v12334_v48  ;;  %5655 = vmatprep.subr.bf16.mxu1 %v11824_v52  ;;  %v11968_v48 = vcombine.high %v519_v39, %v527_v40  ;;  %v12224_v52 = vcombine.high %v775_v41, %v783_v44  ;;  %v679_v36 = vld [vmem:[#allocation5 + $0x1008] sm:$0xff] }
 0x126   :  { %5615 = vmatpush2.bf16.msra.mxu0 %v12333_v54  ;;  %5656 = vmatpush2.bf16.msra.mxu1 %v11823_v55  ;;  %v11967_v54 = vcombine.low %v519_v39, %v527_v40  ;;  %v11952_v55 = vcombine.high %v503_v49, %v511_v50  ;;  %v919_v49 = vld [vmem:[#allocation5 + $0x1788] sm:$0xff] }
 0x127   :  { %5616 = vmatprep.subr.bf16.mxu0 %v12318_v56  ;;  %5657 = vmatprep.subr.bf16.mxu1 %v11808_v60  ;;  %v487_v56 = vld [vmem:[#allocation5 + $0xa08] sm:$0xff] }
 0x128   :  { %v751_v60 = vld [vmem:[#allocation5 + $0x1248] sm:$0xff]  ;;  %v11935_v6 = vcombine.low %v487_v56, %v495_v57 }
 0x129   :  { %v12192_v4 = vcombine.high %v743_v58, %v751_v60 }
 0x12a   :  { %5617 = vmatpush2.bf16.msra.mxu0 %v12317_v62  ;;  %5658 = vmatpush2.bf16.msra.mxu1 %v11807_v63  ;;  %v12207_v62 = vcombine.low %v759_v51, %v767_v53  ;;  %v11936_v63 = vcombine.high %v487_v56, %v495_v57  ;;  %v655_v56 = vld [vmem:[#allocation5 + $0xf48] sm:$0xff] }
 0x12b   :  { %5618 = vmatprep.subr.bf16.mxu0 %v12302_v1  ;;  %5659 = vmatprep.subr.bf16.mxu1 %v11792_v5  ;;  %v471_v1 = vld [vmem:[#allocation5 + $0x988] sm:$0xff] }
 0x12c   :  { %v735_v5 = vld [vmem:[#allocation5 + $0x11c8] sm:$0xff]  ;;  %v11919_v14 = vcombine.low %v471_v1, %v479_v2 }
 0x12d   :  { %v12176_v12 = vcombine.high %v727_v3, %v735_v5  ;;  %v903_v57 = vld [vmem:[#allocation5 + $0x1708] sm:$0xff] }
 0x12e   :  { %5619 = vmatpush2.bf16.msra.mxu0 %v12301_v7  ;;  %5660 = vmatpush2.bf16.msra.mxu1 %v11791_v8  ;;  %v12191_v7 = vcombine.low %v743_v58, %v751_v60  ;;  %v11920_v8 = vcombine.high %v471_v1, %v479_v2  ;;  %v639_v1 = vld [vmem:[#allocation5 + $0xec8] sm:$0xff] }
 0x12f   :  { %5620 = vmatprep.subr.bf16.mxu0 %v12286_v9  ;;  %5661 = vmatprep.subr.bf16.mxu1 %v11776_v13  ;;  %v455_v9 = vld [vmem:[#allocation5 + $0x908] sm:$0xff] }
 0x130   :  { %v719_v13 = vld [vmem:[#allocation5 + $0x1148] sm:$0xff] }
 0x131   :  { %v12160_v22 = vcombine.high %v711_v11, %v719_v13  ;;  %v12159_v33 = vcombine.low %v711_v11, %v719_v13  ;;  %v887_v2 = vld [vmem:[#allocation5 + $0x1688] sm:$0xff] }
 0x132   :  { %5621 = vmatpush2.bf16.msra.mxu0 %v12285_v16  ;;  %5662 = vmatpush2.bf16.msra.mxu1 %v11775_v18  ;;  %v12175_v16 = vcombine.low %v727_v3, %v735_v5  ;;  %v11904_v18 = vcombine.high %v455_v9, %v463_v10  ;;  %v615_v11 = vld [vmem:[#allocation5 + $0xe08] sm:$0xff] }
 0x133   :  { %5622 = vmatprep.subr.bf16.mxu0 %v12270_v19  ;;  %5663 = vmatprep.subr.bf16.mxu1 %v11760_v23  ;;  %v439_v19 = vld [vmem:[#allocation5 + $0x888] sm:$0xff] }
 0x134   :  { %v703_v23 = vld [vmem:[#allocation5 + $0x10c8] sm:$0xff]  ;;  %v11888_v34 = vcombine.high %v439_v19, %v447_v20  ;;  %v11887_v41 = vcombine.low %v439_v19, %v447_v20 }
 0x135   :  { %v12143_v44 = vcombine.low %v695_v21, %v703_v23  ;;  %v871_v13 = vld [vmem:[#allocation5 + $0x1608] sm:$0xff] }
 0x136   :  { %5623 = vmatpush2.bf16.msra.mxu0 %v12269_v27  ;;  %5664 = vmatpush2.bf16.msra.mxu1 %v11759_v28  ;;  %v11903_v28 = vcombine.low %v455_v9, %v463_v10 }
 0x137   :  { %5624 = vmatprep.subr.bf16.mxu0 %v12254_v32  ;;  %5665 = vmatprep.subr.bf16.mxu1 %v11744_v43  ;;  %v431_v43 = vld [vmem:[#allocation5 + $0x848] sm:$0xff] }
 0x138   :  { %v11871_v53 = vcombine.low %v423_v35, %v431_v43 }
 0x13a   :  { %5625 = vmatpush2.bf16.msra.mxu0 %v12253_v37  ;;  %5666 = vmatpush2.bf16.msra.mxu1 %v11743_v38  ;;  %v12144_v38 = vcombine.high %v695_v21, %v703_v23 }
 0x13b   :  { %5676 = vmatprep.subr.bf16.mxu0 %v11984_v17  ;;  %5717 = vmatprep.subr.bf16.mxu1 %v12240_v42  ;;  %v687_v17 = vld [vmem:[#allocation5 + $0x1048] sm:$0xff] }
 0x13c   :  { %v12128_v51 = vcombine.high %v679_v36, %v687_v17 }
 0x13d   :  { %5627 = vmatmul.mubr.bf16.vlgmr.msra.gmra.mxu0 %v14487_v45  ;;  %5668 = vmatmul.mubr.bf16.vlgmr.msra.gmra.mxu1 %v14471_v30 }
 0x13e   :  { %5677 = vmatpush1.bf16.msra.mxu0 %v11983_v46  ;;  %5718 = vmatpush1.bf16.msra.mxu1 %v12239_v47  ;;  %v11872_v46 = vcombine.high %v423_v35, %v431_v43  ;;  %v663_v47 = vld [vmem:[#allocation5 + $0xf88] sm:$0xff] }
 0x13f   :  { %5678 = vmatprep.subr.bf16.mxu0 %v11968_v48  ;;  %5719 = vmatprep.subr.bf16.mxu1 %v12224_v52  ;;  %v671_v48 = vld [vmem:[#allocation5 + $0xfc8] sm:$0xff] }
 0x140   :  { %5708 = vmatprep.mubr.bf16.mxu0 %v14461_v26  ;;  %5749 = vmatprep.mubr.bf16.mxu1 %v14479_v15  ;;  %v927_v52 = vld [vmem:[#allocation5 + $0x17c8] sm:$0xff]  ;;  %v12111_v60 = vcombine.low %v663_v47, %v671_v48 }
 0x141   :  { %v12368_v58 = vcombine.high %v919_v49, %v927_v52  ;;  %v855_v35 = vld [vmem:[#allocation5 + $0x1588] sm:$0xff] }
 0x142   :  { %5679 = vmatpush1.bf16.msra.mxu0 %v11967_v54  ;;  %5720 = vmatpush1.bf16.msra.mxu1 %v12223_v29  ;;  %v12127_v54 = vcombine.low %v679_v36, %v687_v17  ;;  %v12112_v29 = vcombine.high %v663_v47, %v671_v48  ;;  %v847_v47 = vld [vmem:[#allocation5 + $0x1548] sm:$0xff] }
 0x143   :  { %5680 = vmatprep.subr.bf16.mxu0 %v11952_v55  ;;  %5721 = vmatprep.subr.bf16.mxu1 %v12208_v59  ;;  %v647_v55 = vld [vmem:[#allocation5 + $0xf08] sm:$0xff] }
 0x144   :  { %v911_v59 = vld [vmem:[#allocation5 + $0x1748] sm:$0xff] }
 0x145   :  { %v12352_v3 = vcombine.high %v903_v57, %v911_v59  ;;  %v12351_v9 = vcombine.low %v903_v57, %v911_v59 }
 0x146   :  { %5681 = vmatpush1.bf16.msra.mxu0 %v11951_v61  ;;  %5722 = vmatpush1.bf16.msra.mxu1 %v12207_v62  ;;  %v12367_v61 = vcombine.low %v919_v49, %v927_v52  ;;  %v12096_v62 = vcombine.high %v647_v55, %v655_v56  ;;  %v575_v52 = vld [vmem:[#allocation5 + $0xcc8] sm:$0xff] }
 0x147   :  { %5682 = vmatprep.subr.bf16.mxu0 %v11936_v63  ;;  %5723 = vmatprep.subr.bf16.mxu1 %v12192_v4  ;;  %v631_v63 = vld [vmem:[#allocation5 + $0xe88] sm:$0xff] }
 0x148   :  { %v895_v4 = vld [vmem:[#allocation5 + $0x16c8] sm:$0xff]  ;;  %v12080_v10 = vcombine.high %v631_v63, %v639_v1  ;;  %v12079_v21 = vcombine.low %v631_v63, %v639_v1 }
 0x149   :  { %v12335_v23 = vcombine.low %v887_v2, %v895_v4  ;;  %v807_v63 = vld [vmem:[#allocation5 + $0x1408] sm:$0xff] }
 0x14a   :  { %5683 = vmatpush1.bf16.msra.mxu0 %v11935_v6  ;;  %5724 = vmatpush1.bf16.msra.mxu1 %v12191_v7  ;;  %v12095_v7 = vcombine.low %v647_v55, %v655_v56 }
 0x14b   :  { %5684 = vmatprep.subr.bf16.mxu0 %v11920_v8  ;;  %5725 = vmatprep.subr.bf16.mxu1 %v12176_v12  ;;  %v623_v12 = vld [vmem:[#allocation5 + $0xe48] sm:$0xff] }
 0x14c   :  { %v12063_v17 = vcombine.low %v615_v11, %v623_v12 }
 0x14d   :  { %v14493_v24 = vpop.f32.mrf.mxu0  ;;  %v14495_v27 = vpop.f32.mrf.mxu1 }
 0x14e   :  { %5685 = vmatpush1.bf16.msra.mxu0 %v11919_v14  ;;  %5726 = vmatpush1.bf16.msra.mxu1 %v12175_v16  ;;  %v12336_v16 = vcombine.high %v887_v2, %v895_v4 }
 0x14f   :  { %v14497_v32 = vpop.f32.mrf.mxu0  ;;  %5686 = vmatprep.subr.bf16.mxu0 %v11904_v18  ;;  %v14499_v37 = vpop.f32.mrf.mxu1  ;;  %5727 = vmatprep.subr.bf16.mxu1 %v12160_v22  ;;  %v879_v18 = vld [vmem:[#allocation5 + $0x1648] sm:$0xff] }
 0x150   :  { %v12320_v36 = vcombine.high %v871_v13, %v879_v18 }
 0x151   :  { %v1361_v39 = vpop.f32.mrf.mxu0  ;;  %v1402_v40 = vpop.f32.mrf.mxu1 }
 0x152   :  { %5687 = vmatpush1.bf16.msra.mxu0 %v11903_v28  ;;  %5728 = vmatpush1.bf16.msra.mxu1 %v12159_v33  ;;  %v12064_v28 = vcombine.high %v615_v11, %v623_v12  ;;  %v599_v33 = vld [vmem:[#allocation5 + $0xd88] sm:$0xff]  ;;  %v12319_v39 = vcombine.low %v871_v13, %v879_v18  ;;  %v280_v13 = vld [vmem:[#allocation5 + $0x390] sm:$0xff] }
 0x153   :  { %v1362_v42 = vpop.f32.mrf.mxu0  ;;  %5688 = vmatprep.subr.bf16.mxu0 %v11888_v34  ;;  %v1403_v50 = vpop.f32.mrf.mxu1  ;;  %5729 = vmatprep.subr.bf16.mxu1 %v12144_v38  ;;  %v607_v34 = vld [vmem:[#allocation5 + $0xdc8] sm:$0xff]  ;;  %v536_v18 = vld [vmem:[#allocation5 + $0xb90] sm:$0xff] }
 0x154   :  { %v863_v38 = vld [vmem:[#allocation5 + $0x15c8] sm:$0xff]  ;;  %v12048_v40 = vcombine.high %v599_v33, %v607_v34  ;;  %v12047_v48 = vcombine.low %v599_v33, %v607_v34  ;;  %v264_v33 = vld [vmem:[#allocation5 + $0x310] sm:$0xff] }
 0x155   :  { %v591_v42 = vld [vmem:[#allocation5 + $0xd48] sm:$0xff]  ;;  %v12303_v49 = vcombine.low %v855_v35, %v863_v38  ;;  %v272_v34 = vld [vmem:[#allocation5 + $0x350] sm:$0xff] }
 0x156   :  { %5689 = vmatpush1.bf16.msra.mxu0 %v11887_v41  ;;  %5730 = vmatpush1.bf16.msra.mxu1 %v12143_v44  ;;  %v583_v41 = vld [vmem:[#allocation5 + $0xd08] sm:$0xff] }
 0x157   :  { %5690 = vmatprep.subr.bf16.mxu0 %v11872_v46  ;;  %5731 = vmatprep.subr.bf16.mxu1 %v12128_v51  ;;  %v839_v44 = vld [vmem:[#allocation5 + $0x1508] sm:$0xff]  ;;  %v12304_v46 = vcombine.high %v855_v35, %v863_v38  ;;  %v12032_v50 = vcombine.high %v583_v41, %v591_v42  ;;  %v12031_v57 = vcombine.low %v583_v41, %v591_v42  ;;  %v520_v35 = vld [vmem:[#allocation5 + $0xb10] sm:$0xff] }
 0x158   :  { %v567_v51 = vld [vmem:[#allocation5 + $0xc88] sm:$0xff]  ;;  %v12287_v59 = vcombine.low %v839_v44, %v847_v47  ;;  %v256_v41 = vld [vmem:[#allocation5 + $0x2d0] sm:$0xff] }
 0x159   :  { %v504_v42 = vld [vmem:[#allocation5 + $0xa90] sm:$0xff] }
 0x15a   :  { %5691 = vmatpush1.bf16.msra.mxu0 %v11871_v53  ;;  %5732 = vmatpush1.bf16.msra.mxu1 %v12127_v54  ;;  %v823_v53 = vld [vmem:[#allocation5 + $0x1488] sm:$0xff]  ;;  %v12288_v54 = vcombine.high %v839_v44, %v847_v47 }
 0x15b   :  { %5692 = vmatprep.subr.bf16.mxu0 %v12112_v29  ;;  %5733 = vmatprep.subr.bf16.mxu1 %v12368_v58  ;;  %v831_v29 = vld [vmem:[#allocation5 + $0x14c8] sm:$0xff] }
 0x15c   :  { %v12272_v2 = vcombine.high %v823_v53, %v831_v29  ;;  %v12271_v11 = vcombine.low %v823_v53, %v831_v29  ;;  %v232_v53 = vld [vmem:[#allocation5 + $0x210] sm:$0xff] }
 0x15d   :  { %v14501_v5 = vpop.f32.mrf.mxu0  ;;  %v14503_v6 = vpop.f32.mrf.mxu1  ;;  %v488_v29 = vld [vmem:[#allocation5 + $0xa10] sm:$0xff] }
 0x15e   :  { %5693 = vmatpush2.bf16.msra.mxu0 %v12111_v60  ;;  %5734 = vmatpush2.bf16.msra.mxu1 %v12367_v61  ;;  %v12016_v60 = vcombine.high %v567_v51, %v575_v52  ;;  %v551_v61 = vld [vmem:[#allocation5 + $0xc08] sm:$0xff] }
 0x15f   :  { %v14505_v8 = vpop.f32.mrf.mxu0  ;;  %5694 = vmatprep.subr.bf16.mxu0 %v12096_v62  ;;  %v14507_v14 = vpop.f32.mrf.mxu1  ;;  %5735 = vmatprep.subr.bf16.mxu1 %v12352_v3  ;;  %v559_v62 = vld [vmem:[#allocation5 + $0xc48] sm:$0xff] }
 0x160   :  { %v815_v3 = vld [vmem:[#allocation5 + $0x1448] sm:$0xff]  ;;  %v12000_v12 = vcombine.high %v551_v61, %v559_v62 }
 0x161   :  { %v1443_v19 = vpop.f32.mrf.mxu0  ;;  %v1484_v20 = vpop.f32.mrf.mxu1 }
 0x162   :  { %5695 = vmatpush2.bf16.msra.mxu0 %v12095_v7  ;;  %5736 = vmatpush2.bf16.msra.mxu1 %v12351_v9  ;;  %v12015_v9 = vcombine.low %v567_v51, %v575_v52  ;;  %v12256_v20 = vcombine.high %v807_v63, %v815_v3 }
 0x163   :  { %v1444_v22 = vpop.f32.mrf.mxu0  ;;  %5696 = vmatprep.subr.bf16.mxu0 %v12080_v10  ;;  %v1485_v43 = vpop.f32.mrf.mxu1  ;;  %5737 = vmatprep.subr.bf16.mxu1 %v12336_v16  ;;  %v288_v16 = vld [vmem:[#allocation5 + $0x3d0] sm:$0xff] }
 0x164   :  { %v11999_v22 = vcombine.low %v551_v61, %v559_v62  ;;  %v11729_v38 = vcombine.low %v280_v13, %v288_v16 }
 0x166   :  { %5697 = vmatpush2.bf16.msra.mxu0 %v12079_v21  ;;  %5738 = vmatpush2.bf16.msra.mxu1 %v12335_v23  ;;  %v544_v21 = vld [vmem:[#allocation5 + $0xbd0] sm:$0xff]  ;;  %v12255_v23 = vcombine.low %v807_v63, %v815_v3 }
 0x167   :  { %5698 = vmatprep.subr.bf16.mxu0 %v12064_v28  ;;  %5739 = vmatprep.subr.bf16.mxu1 %v12320_v36  ;;  %v11730_v28 = vcombine.high %v280_v13, %v288_v16  ;;  %v11986_v43 = vcombine.high %v536_v18, %v544_v21  ;;  %v528_v36 = vld [vmem:[#allocation5 + $0xb50] sm:$0xff] }
 0x168   :  { %v11970_v44 = vcombine.high %v520_v35, %v528_v36  ;;  %v11969_v51 = vcombine.low %v520_v35, %v528_v36  ;;  %v480_v13 = vld [vmem:[#allocation5 + $0x9d0] sm:$0xff] }
 0x169   :  { %v192_v36 = vld [vmem:[#allocation5 + $0xd0] sm:$0xff] }
 0x16a   :  { %5699 = vmatpush2.bf16.msra.mxu0 %v12063_v17  ;;  %5740 = vmatpush2.bf16.msra.mxu1 %v12319_v39  ;;  %v11985_v17 = vcombine.low %v536_v18, %v544_v21  ;;  %v11714_v39 = vcombine.high %v264_v33, %v272_v34  ;;  %v208_v21 = vld [vmem:[#allocation5 + $0x150] sm:$0xff] }
 0x16b   :  { %5700 = vmatprep.subr.bf16.mxu0 %v12048_v40  ;;  %5741 = vmatprep.subr.bf16.mxu1 %v12304_v46  ;;  %v248_v40 = vld [vmem:[#allocation5 + $0x290] sm:$0xff] }
 0x16c   :  { %v512_v46 = vld [vmem:[#allocation5 + $0xad0] sm:$0xff]  ;;  %v11698_v52 = vcombine.high %v248_v40, %v256_v41  ;;  %v11697_v63 = vcombine.low %v248_v40, %v256_v41 }
 0x16d   :  { %v14509_v55 = vpop.f32.mrf.mxu0  ;;  %v14511_v56 = vpop.f32.mrf.mxu1  ;;  %v11953_v3 = vcombine.low %v504_v42, %v512_v46 }
 0x16e   :  { %5701 = vmatpush2.bf16.msra.mxu0 %v12047_v48  ;;  %5742 = vmatpush2.bf16.msra.mxu1 %v12303_v49  ;;  %v11713_v49 = vcombine.low %v264_v33, %v272_v34 }
 0x16f   :  { %v14513_v58 = vpop.f32.mrf.mxu0  ;;  %5702 = vmatprep.subr.bf16.mxu0 %v12032_v50  ;;  %v14515_v1 = vpop.f32.mrf.mxu1  ;;  %5743 = vmatprep.subr.bf16.mxu1 %v12288_v54  ;;  %v240_v54 = vld [vmem:[#allocation5 + $0x250] sm:$0xff] }
 0x170   :  { %v11681_v16 = vcombine.low %v232_v53, %v240_v54 }
 0x171   :  { %v1525_v4 = vpop.f32.mrf.mxu0  ;;  %v1566_v7 = vpop.f32.mrf.mxu1 }
 0x172   :  { %5703 = vmatpush2.bf16.msra.mxu0 %v12031_v57  ;;  %5744 = vmatpush2.bf16.msra.mxu1 %v12287_v59  ;;  %v11954_v59 = vcombine.high %v504_v42, %v512_v46  ;;  %v11682_v4 = vcombine.high %v232_v53, %v240_v54  ;;  %v216_v7 = vld [vmem:[#allocation5 + $0x190] sm:$0xff] }
 0x173   :  { %v1526_v10 = vpop.f32.mrf.mxu0  ;;  %5704 = vmatprep.subr.bf16.mxu0 %v12016_v60  ;;  %v1567_v19 = vpop.f32.mrf.mxu1  ;;  %5745 = vmatprep.subr.bf16.mxu1 %v12272_v2  ;;  %v496_v60 = vld [vmem:[#allocation5 + $0xa50] sm:$0xff] }
 0x174   :  { %v472_v10 = vld [vmem:[#allocation5 + $0x990] sm:$0xff]  ;;  %v11937_v18 = vcombine.low %v488_v29, %v496_v60 }
 0x175   :  { %v11921_v34 = vcombine.low %v472_v10, %v480_v13  ;;  %v176_v46 = vld [vmem:[#allocation5 + $0x50] sm:$0xff] }
 0x176   :  { %5705 = vmatpush2.bf16.msra.mxu0 %v12015_v9  ;;  %5746 = vmatpush2.bf16.msra.mxu1 %v12271_v11  ;;  %v224_v9 = vld [vmem:[#allocation5 + $0x1d0] sm:$0xff] }
 0x177   :  { %5706 = vmatprep.subr.bf16.mxu0 %v12000_v12  ;;  %5747 = vmatprep.subr.bf16.mxu1 %v12256_v20  ;;  %v11938_v12 = vcombine.high %v488_v29, %v496_v60  ;;  %v11666_v19 = vcombine.high %v216_v7, %v224_v9  ;;  %v200_v20 = vld [vmem:[#allocation5 + $0x110] sm:$0xff]  ;;  %v11665_v33 = vcombine.low %v216_v7, %v224_v9 }
 0x178   :  { %v11650_v35 = vcombine.high %v200_v20, %v208_v21  ;;  %v11649_v40 = vcombine.low %v200_v20, %v208_v21  ;;  %v416_v60 = vld [vmem:[#allocation5 + $0x7d0] sm:$0xff] }
 0x179   :  { %v392_v7 = vld [vmem:[#allocation5 + $0x710] sm:$0xff] }
 0x17a   :  { %5707 = vmatpush2.bf16.msra.mxu0 %v11999_v22  ;;  %5748 = vmatpush2.bf16.msra.mxu1 %v12255_v23  ;;  %v456_v22 = vld [vmem:[#allocation5 + $0x910] sm:$0xff]  ;;  %v11922_v23 = vcombine.high %v472_v10, %v480_v13 }
 0x17b   :  { %5758 = vmatprep.subr.bf16.mxu0 %v11730_v28  ;;  %5799 = vmatprep.subr.bf16.mxu1 %v11986_v43  ;;  %v464_v28 = vld [vmem:[#allocation5 + $0x950] sm:$0xff] }
 0x17c   :  { %v184_v43 = vld [vmem:[#allocation5 + $0x90] sm:$0xff]  ;;  %v11905_v41 = vcombine.low %v456_v22, %v464_v28 }
 0x17d   :  { %v14517_v47 = vpop.f32.mrf.mxu0  ;;  %5709 = vmatmul.mubr.bf16.vlgmr.msra.gmra.mxu0 %v14475_v31  ;;  %v14520_v48 = vpop.f32.mrf.mxu1  ;;  %5750 = vmatmul.mubr.bf16.vlgmr.msra.gmra.mxu1 %v14487_v45  ;;  %v11634_v42 = vcombine.high %v184_v43, %v192_v36  ;;  %v11633_v53 = vcombine.low %v184_v43, %v192_v36  ;;  %v400_v9 = vld [vmem:[#allocation5 + $0x750] sm:$0xff] }
 0x17e   :  { %5759 = vmatpush1.bf16.msra.mxu0 %v11729_v38  ;;  %5800 = vmatpush1.bf16.msra.mxu1 %v11985_v17  ;;  %v440_v38 = vld [vmem:[#allocation5 + $0x890] sm:$0xff]  ;;  %v11906_v17 = vcombine.high %v456_v22, %v464_v28  ;;  %v11841_v28 = vcombine.low %v392_v7, %v400_v9 }
 0x17f   :  { %v14523_v50 = vpop.f32.mrf.mxu0  ;;  %5760 = vmatprep.subr.bf16.mxu0 %v11714_v39  ;;  %v14525_v57 = vpop.f32.mrf.mxu1  ;;  %5801 = vmatprep.subr.bf16.mxu1 %v11970_v44  ;;  %v448_v39 = vld [vmem:[#allocation5 + $0x8d0] sm:$0xff] }
 0x180   :  { %5790 = vmatprep.mubr.bf16.mxu0 %v14455_v25  ;;  %5831 = vmatprep.mubr.bf16.mxu1 %v14461_v26  ;;  %v168_v44 = vld [vmem:[#allocation5 + $0x10] sm:$0xff]  ;;  %v11889_v54 = vcombine.low %v440_v38, %v448_v39 }
 0x181   :  { %v1607_v61 = vpop.f32.mrf.mxu0  ;;  %v1648_v62 = vpop.f32.mrf.mxu1  ;;  %v11618_v29 = vcombine.high %v168_v44, %v176_v46  ;;  %v648_v10 = vld [vmem:[#allocation5 + $0xf10] sm:$0xff] }
 0x182   :  { %5761 = vmatpush1.bf16.msra.mxu0 %v11713_v49  ;;  %5802 = vmatpush1.bf16.msra.mxu1 %v11969_v51  ;;  %v424_v49 = vld [vmem:[#allocation5 + $0x810] sm:$0xff]  ;;  %v11890_v51 = vcombine.high %v440_v38, %v448_v39 }
 0x183   :  { %v1608_v2 = vpop.f32.mrf.mxu0  ;;  %5762 = vmatprep.subr.bf16.mxu0 %v11698_v52  ;;  %v1649_v11 = vpop.f32.mrf.mxu1  ;;  %5803 = vmatprep.subr.bf16.mxu1 %v11954_v59  ;;  %v432_v52 = vld [vmem:[#allocation5 + $0x850] sm:$0xff] }
 0x184   :  { %v408_v59 = vld [vmem:[#allocation5 + $0x790] sm:$0xff]  ;;  %v11874_v62 = vcombine.high %v424_v49, %v432_v52  ;;  %v11617_v2 = vcombine.low %v168_v44, %v176_v46 }
 0x185   :  { %v664_v61 = vld [vmem:[#allocation5 + $0xf90] sm:$0xff]  ;;  %v11857_v13 = vcombine.low %v408_v59, %v416_v60 }
 0x186   :  { %5763 = vmatpush1.bf16.msra.mxu0 %v11697_v63  ;;  %5804 = vmatpush1.bf16.msra.mxu1 %v11953_v3  ;;  %v672_v63 = vld [vmem:[#allocation5 + $0xfd0] sm:$0xff]  ;;  %v11873_v3 = vcombine.low %v424_v49, %v432_v52 }
 0x187   :  { %5764 = vmatprep.subr.bf16.mxu0 %v11682_v4  ;;  %5805 = vmatprep.subr.bf16.mxu1 %v11938_v12  ;;  %v11858_v4 = vcombine.high %v408_v59, %v416_v60  ;;  %v12114_v11 = vcombine.high %v664_v61, %v672_v63  ;;  %v656_v12 = vld [vmem:[#allocation5 + $0xf50] sm:$0xff] }
 0x188   :  { %v384_v20 = vld [vmem:[#allocation5 + $0x6d0] sm:$0xff]  ;;  %v12098_v22 = vcombine.high %v648_v10, %v656_v12 }
 0x189   :  { %v632_v21 = vld [vmem:[#allocation5 + $0xe90] sm:$0xff] }
 0x18a   :  { %5765 = vmatpush1.bf16.msra.mxu0 %v11681_v16  ;;  %5806 = vmatpush1.bf16.msra.mxu1 %v11937_v18  ;;  %v12113_v16 = vcombine.low %v664_v61, %v672_v63  ;;  %v11842_v18 = vcombine.high %v392_v7, %v400_v9  ;;  %v368_v43 = vld [vmem:[#allocation5 + $0x650] sm:$0xff] }
 0x18b   :  { %5766 = vmatprep.subr.bf16.mxu0 %v11666_v19  ;;  %5807 = vmatprep.subr.bf16.mxu1 %v11922_v23  ;;  %v376_v19 = vld [vmem:[#allocation5 + $0x690] sm:$0xff] }
 0x18c   :  { %v640_v23 = vld [vmem:[#allocation5 + $0xed0] sm:$0xff]  ;;  %v11825_v39 = vcombine.low %v376_v19, %v384_v20 }
 0x18d   :  { %v616_v36 = vld [vmem:[#allocation5 + $0xe10] sm:$0xff]  ;;  %v12082_v38 = vcombine.high %v632_v21, %v640_v23 }
 0x18e   :  { %5767 = vmatpush1.bf16.msra.mxu0 %v11665_v33  ;;  %5808 = vmatpush1.bf16.msra.mxu1 %v11921_v34  ;;  %v12097_v33 = vcombine.low %v648_v10, %v656_v12  ;;  %v11826_v34 = vcombine.high %v376_v19, %v384_v20  ;;  %v352_v44 = vld [vmem:[#allocation5 + $0x5d0] sm:$0xff] }
 0x18f   :  { %5768 = vmatprep.subr.bf16.mxu0 %v11650_v35  ;;  %5809 = vmatprep.subr.bf16.mxu1 %v11906_v17  ;;  %v360_v35 = vld [vmem:[#allocation5 + $0x610] sm:$0xff] }
 0x190   :  { %v624_v17 = vld [vmem:[#allocation5 + $0xe50] sm:$0xff]  ;;  %v11809_v52 = vcombine.low %v360_v35, %v368_v43 }
 0x191   :  { %v600_v46 = vld [vmem:[#allocation5 + $0xd90] sm:$0xff]  ;;  %v12066_v49 = vcombine.high %v616_v36, %v624_v17 }
 0x192   :  { %5769 = vmatpush1.bf16.msra.mxu0 %v11649_v40  ;;  %5810 = vmatpush1.bf16.msra.mxu1 %v11905_v41  ;;  %v12081_v40 = vcombine.low %v632_v21, %v640_v23  ;;  %v11810_v41 = vcombine.high %v360_v35, %v368_v43  ;;  %v336_v59 = vld [vmem:[#allocation5 + $0x550] sm:$0xff]  ;;  %v281_v43 = vld [vmem:[#allocation5 + $0x398] sm:$0xff] }
 0x193   :  { %5770 = vmatprep.subr.bf16.mxu0 %v11634_v42  ;;  %5811 = vmatprep.subr.bf16.mxu1 %v11890_v51  ;;  %v344_v42 = vld [vmem:[#allocation5 + $0x590] sm:$0xff] }
 0x194   :  { %v608_v51 = vld [vmem:[#allocation5 + $0xdd0] sm:$0xff]  ;;  %v11793_v63 = vcombine.low %v344_v42, %v352_v44 }
 0x195   :  { %v584_v60 = vld [vmem:[#allocation5 + $0xd10] sm:$0xff]  ;;  %v12050_v61 = vcombine.high %v600_v46, %v608_v51 }
 0x196   :  { %5771 = vmatpush1.bf16.msra.mxu0 %v11633_v53  ;;  %5812 = vmatpush1.bf16.msra.mxu1 %v11889_v54  ;;  %v12065_v53 = vcombine.low %v616_v36, %v624_v17  ;;  %v11794_v54 = vcombine.high %v344_v42, %v352_v44  ;;  %v320_v7 = vld [vmem:[#allocation5 + $0x4d0] sm:$0xff]  ;;  %v265_v44 = vld [vmem:[#allocation5 + $0x318] sm:$0xff] }
 0x197   :  { %5772 = vmatprep.subr.bf16.mxu0 %v11618_v29  ;;  %5813 = vmatprep.subr.bf16.mxu1 %v11874_v62  ;;  %v328_v29 = vld [vmem:[#allocation5 + $0x510] sm:$0xff] }
 0x198   :  { %v592_v62 = vld [vmem:[#allocation5 + $0xd50] sm:$0xff]  ;;  %v11777_v12 = vcombine.low %v328_v29, %v336_v59 }
 0x199   :  { %v568_v9 = vld [vmem:[#allocation5 + $0xc90] sm:$0xff]  ;;  %v12034_v10 = vcombine.high %v584_v60, %v592_v62 }
 0x19a   :  { %5773 = vmatpush1.bf16.msra.mxu0 %v11617_v2  ;;  %5814 = vmatpush1.bf16.msra.mxu1 %v11873_v3  ;;  %v12049_v2 = vcombine.low %v600_v46, %v608_v51  ;;  %v11778_v3 = vcombine.high %v328_v29, %v336_v59  ;;  %v304_v19 = vld [vmem:[#allocation5 + $0x450] sm:$0xff]  ;;  %v249_v59 = vld [vmem:[#allocation5 + $0x298] sm:$0xff] }
 0x19b   :  { %5774 = vmatprep.subr.bf16.mxu0 %v11858_v4  ;;  %5815 = vmatprep.subr.bf16.mxu1 %v12114_v11  ;;  %v312_v4 = vld [vmem:[#allocation5 + $0x490] sm:$0xff] }
 0x19c   :  { %v576_v11 = vld [vmem:[#allocation5 + $0xcd0] sm:$0xff]  ;;  %v11761_v23 = vcombine.low %v312_v4, %v320_v7 }
 0x19d   :  { %v552_v20 = vld [vmem:[#allocation5 + $0xc10] sm:$0xff]  ;;  %v12018_v21 = vcombine.high %v568_v9, %v576_v11 }
 0x19e   :  { %5775 = vmatpush2.bf16.msra.mxu0 %v11857_v13  ;;  %5816 = vmatpush2.bf16.msra.mxu1 %v12113_v16  ;;  %v12033_v13 = vcombine.low %v584_v60, %v592_v62  ;;  %v11762_v16 = vcombine.high %v312_v4, %v320_v7  ;;  %v800_v35 = vld [vmem:[#allocation5 + $0x13d0] sm:$0xff] }
 0x19f   :  { %5776 = vmatprep.subr.bf16.mxu0 %v11842_v18  ;;  %5817 = vmatprep.subr.bf16.mxu1 %v12098_v22  ;;  %v296_v18 = vld [vmem:[#allocation5 + $0x410] sm:$0xff] }
 0x1a0   :  { %v560_v22 = vld [vmem:[#allocation5 + $0xc50] sm:$0xff]  ;;  %v11745_v17 = vcombine.low %v296_v18, %v304_v19 }
 0x1a1   :  { %v12002_v36 = vcombine.high %v552_v20, %v560_v22  ;;  %v784_v42 = vld [vmem:[#allocation5 + $0x1350] sm:$0xff] }
 0x1a2   :  { %5777 = vmatpush2.bf16.msra.mxu0 %v11841_v28  ;;  %5818 = vmatpush2.bf16.msra.mxu1 %v12097_v33  ;;  %v12017_v28 = vcombine.low %v568_v9, %v576_v11  ;;  %v11746_v33 = vcombine.high %v296_v18, %v304_v19  ;;  %v768_v29 = vld [vmem:[#allocation5 + $0x12d0] sm:$0xff]  ;;  %v241_v19 = vld [vmem:[#allocation5 + $0x258] sm:$0xff] }
 0x1a3   :  { %5778 = vmatprep.subr.bf16.mxu0 %v11826_v34  ;;  %5819 = vmatprep.subr.bf16.mxu1 %v12082_v38  ;;  %v792_v34 = vld [vmem:[#allocation5 + $0x1390] sm:$0xff]  ;;  %v289_v38 = vld [vmem:[#allocation5 + $0x3d8] sm:$0xff] }
 0x1a4   :  { %v11732_v46 = vcombine.high %v281_v43, %v289_v38  ;;  %v12241_v51 = vcombine.low %v792_v34, %v800_v35  ;;  %v752_v11 = vld [vmem:[#allocation5 + $0x1250] sm:$0xff] }
 0x1a6   :  { %5779 = vmatpush2.bf16.msra.mxu0 %v11825_v39  ;;  %5820 = vmatpush2.bf16.msra.mxu1 %v12081_v40  ;;  %v12001_v39 = vcombine.low %v552_v20, %v560_v22  ;;  %v12242_v40 = vcombine.high %v792_v34, %v800_v35  ;;  %v736_v35 = vld [vmem:[#allocation5 + $0x11d0] sm:$0xff] }
 0x1a7   :  { %5780 = vmatprep.subr.bf16.mxu0 %v11810_v41  ;;  %5821 = vmatprep.subr.bf16.mxu1 %v12066_v49  ;;  %v776_v41 = vld [vmem:[#allocation5 + $0x1310] sm:$0xff]  ;;  %v273_v49 = vld [vmem:[#allocation5 + $0x358] sm:$0xff] }
 0x1a8   :  { %v11716_v60 = vcombine.high %v265_v44, %v273_v49  ;;  %v11715_v7 = vcombine.low %v265_v44, %v273_v49  ;;  %v720_v44 = vld [vmem:[#allocation5 + $0x1150] sm:$0xff] }
 0x1aa   :  { %5781 = vmatpush2.bf16.msra.mxu0 %v11809_v52  ;;  %5822 = vmatpush2.bf16.msra.mxu1 %v12065_v53  ;;  %v11731_v52 = vcombine.low %v281_v43, %v289_v38  ;;  %v12226_v53 = vcombine.high %v776_v41, %v784_v42  ;;  %v217_v43 = vld [vmem:[#allocation5 + $0x198] sm:$0xff] }
 0x1ab   :  { %5782 = vmatprep.subr.bf16.mxu0 %v11794_v54  ;;  %5823 = vmatprep.subr.bf16.mxu1 %v12050_v61  ;;  %v760_v54 = vld [vmem:[#allocation5 + $0x1290] sm:$0xff]  ;;  %v257_v61 = vld [vmem:[#allocation5 + $0x2d8] sm:$0xff] }
 0x1ac   :  { %v12210_v9 = vcombine.high %v760_v54, %v768_v29 }
 0x1ae   :  { %5783 = vmatpush2.bf16.msra.mxu0 %v11793_v63  ;;  %5824 = vmatpush2.bf16.msra.mxu1 %v12049_v2 }
 0x1af   :  { %5784 = vmatprep.subr.bf16.mxu0 %v11778_v3  ;;  %5825 = vmatprep.subr.bf16.mxu1 %v12034_v10  ;;  %v12225_v3 = vcombine.low %v776_v41, %v784_v42  ;;  %v744_v10 = vld [vmem:[#allocation5 + $0x1210] sm:$0xff] }
 0x1b0   :  { %v12194_v34 = vcombine.high %v744_v10, %v752_v11  ;;  %v712_v42 = vld [vmem:[#allocation5 + $0x1110] sm:$0xff] }
 0x1b2   :  { %5785 = vmatpush2.bf16.msra.mxu0 %v11777_v12  ;;  %5826 = vmatpush2.bf16.msra.mxu1 %v12033_v13  ;;  %v233_v12 = vld [vmem:[#allocation5 + $0x218] sm:$0xff] }
 0x1b3   :  { %5786 = vmatprep.subr.bf16.mxu0 %v11762_v16  ;;  %5827 = vmatprep.subr.bf16.mxu1 %v12018_v21  ;;  %v11684_v38 = vcombine.high %v233_v12, %v241_v19 }
 0x1b6   :  { %5787 = vmatpush2.bf16.msra.mxu0 %v11761_v23  ;;  %5828 = vmatpush2.bf16.msra.mxu1 %v12017_v28  ;;  %v12209_v23 = vcombine.low %v760_v54, %v768_v29  ;;  %v12162_v54 = vcombine.high %v712_v42, %v720_v44  ;;  %v696_v29 = vld [vmem:[#allocation5 + $0x1090] sm:$0xff] }
 0x1b7   :  { %5788 = vmatprep.subr.bf16.mxu0 %v11746_v33  ;;  %5829 = vmatprep.subr.bf16.mxu1 %v12002_v36  ;;  %v11699_v33 = vcombine.low %v249_v59, %v257_v61 }
 0x1ba   :  { %5789 = vmatpush2.bf16.msra.mxu0 %v11745_v17  ;;  %5830 = vmatpush2.bf16.msra.mxu1 %v12001_v39  ;;  %v225_v17 = vld [vmem:[#allocation5 + $0x1d8] sm:$0xff]  ;;  %v12193_v39 = vcombine.low %v744_v10, %v752_v11 }
 0x1bb   :  { %5840 = vmatprep.subr.bf16.mxu0 %v12242_v40  ;;  %5881 = vmatprep.subr.bf16.mxu1 %v11732_v46  ;;  %v11683_v40 = vcombine.low %v233_v12, %v241_v19  ;;  %v201_v46 = vld [vmem:[#allocation5 + $0x118] sm:$0xff]  ;;  %v11668_v49 = vcombine.high %v217_v43, %v225_v17  ;;  %v928_v19 = vld [vmem:[#allocation5 + $0x17d0] sm:$0xff] }
 0x1bc   :  { %v177_v11 = vld [vmem:[#allocation5 + $0x58] sm:$0xff] }
 0x1bd   :  { %v5546_v62 = vpop.f32.mrf.mxu0  ;;  %5791 = vmatmul.mubr.bf16.vlgmr.msra.gmra.mxu0 %v14471_v30  ;;  %v5587_v2 = vpop.f32.mrf.mxu1  ;;  %5832 = vmatmul.mubr.bf16.vlgmr.msra.gmra.mxu1 %v14475_v31 }
 0x1be   :  { %v5547_v63 = vadd.f32 %v5546_v62, %v14493_v24  ;;  %5841 = vmatpush1.bf16.msra.mxu0 %v12241_v51  ;;  %5882 = vmatpush1.bf16.msra.mxu1 %v11731_v52  ;;  %v11700_v24 = vcombine.high %v249_v59, %v257_v61  ;;  %v209_v51 = vld [vmem:[#allocation5 + $0x158] sm:$0xff]  ;;  %v704_v59 = vld [vmem:[#allocation5 + $0x10d0] sm:$0xff] }
 0x1bf   :  { %v5548_v4 = vpop.f32.mrf.mxu0  ;;  %5842 = vmatprep.subr.bf16.mxu0 %v12226_v53  ;;  %v5589_v18 = vpop.f32.mrf.mxu1  ;;  %5883 = vmatprep.subr.bf16.mxu1 %v11716_v60  ;;  %v11667_v53 = vcombine.low %v217_v43, %v225_v17  ;;  %v185_v60 = vld [vmem:[#allocation5 + $0x98] sm:$0xff]  ;;  %v11652_v61 = vcombine.high %v201_v46, %v209_v51  ;;  %v12145_v12 = vcombine.low %v696_v29, %v704_v59 }
 0x1c0   :  { %v14532_v13 = vadd.f32 %v5587_v2, %v5547_v63  ;;  %v5549_v16 = vadd.f32 %v5548_v4, %v14497_v32  ;;  %5872 = vmatprep.mubr.bf16.mxu0 %v14479_v15  ;;  %5913 = vmatprep.mubr.bf16.mxu1 %v14455_v25  ;;  %v728_v32 = vld [vmem:[#allocation5 + $0x1190] sm:$0xff]  ;;  %v193_v62 = vld [vmem:[#allocation5 + $0xd8] sm:$0xff]  ;;  %v12161_v63 = vcombine.low %v712_v42, %v720_v44 }
 0x1c1   :  { %v5550_v20 = vpop.f32.mrf.mxu0  ;;  %v5591_v22 = vpop.f32.mrf.mxu1  ;;  %v12178_v41 = vcombine.high %v728_v32, %v736_v35  ;;  %v12177_v52 = vcombine.low %v728_v32, %v736_v35  ;;  %v11651_v2 = vcombine.low %v201_v46, %v209_v51  ;;  %v680_v4 = vld [vmem:[#allocation5 + $0x1010] sm:$0xff]  ;;  %v11636_v10 = vcombine.high %v185_v60, %v193_v62  ;;  %v393_v43 = vld [vmem:[#allocation5 + $0x718] sm:$0xff] }
 0x1c2   :  { %v14537_v21 = vadd.f32 %v5589_v18, %v5549_v16  ;;  %5843 = vmatpush1.bf16.msra.mxu0 %v12225_v3  ;;  %5884 = vmatpush1.bf16.msra.mxu1 %v11715_v7  ;;  %v12146_v3 = vcombine.high %v696_v29, %v704_v59  ;;  %v688_v7 = vld [vmem:[#allocation5 + $0x1050] sm:$0xff]  ;;  %v11635_v16 = vcombine.low %v185_v60, %v193_v62  ;;  %v409_v20 = vld [vmem:[#allocation5 + $0x798] sm:$0xff] }
 0x1c3   :  { %v5551_v28 = vpop.f32.mrf.mxu0  ;;  %5844 = vmatprep.subr.bf16.mxu0 %v12210_v9  ;;  %v5592_v36 = vpop.f32.mrf.mxu1  ;;  %5885 = vmatprep.subr.bf16.mxu1 %v11700_v24  ;;  %v169_v9 = vld [vmem:[#allocation5 + $0x18] sm:$0xff]  ;;  %v12130_v18 = vcombine.high %v680_v4, %v688_v7  ;;  %v920_v24 = vld [vmem:[#allocation5 + $0x1790] sm:$0xff] }
 0x1c4   :  { %v11620_v22 = vcombine.high %v169_v9, %v177_v11  ;;  %v12129_v28 = vcombine.low %v680_v4, %v688_v7  ;;  %v904_v32 = vld [vmem:[#allocation5 + $0x1710] sm:$0xff]  ;;  %v12369_v17 = vcombine.low %v920_v24, %v928_v19  ;;  %v377_v44 = vld [vmem:[#allocation5 + $0x698] sm:$0xff] }
 0x1c5   :  { %v912_v35 = vld [vmem:[#allocation5 + $0x1750] sm:$0xff]  ;;  %v361_v59 = vld [vmem:[#allocation5 + $0x618] sm:$0xff] }
 0x1c6   :  { %5845 = vmatpush1.bf16.msra.mxu0 %v12209_v23  ;;  %5886 = vmatpush1.bf16.msra.mxu1 %v11699_v33  ;;  %v417_v23 = vld [vmem:[#allocation5 + $0x7d8] sm:$0xff]  ;;  %v11619_v33 = vcombine.low %v169_v9, %v177_v11  ;;  %v896_v42 = vld [vmem:[#allocation5 + $0x16d0] sm:$0xff]  ;;  %v12353_v51 = vcombine.low %v904_v32, %v912_v35 }
 0x1c7   :  { %5846 = vmatprep.subr.bf16.mxu0 %v12194_v34  ;;  %5887 = vmatprep.subr.bf16.mxu1 %v11684_v38  ;;  %v12370_v34 = vcombine.high %v920_v24, %v928_v19  ;;  %v11860_v36 = vcombine.high %v409_v20, %v417_v23  ;;  %v401_v38 = vld [vmem:[#allocation5 + $0x758] sm:$0xff]  ;;  %v880_v29 = vld [vmem:[#allocation5 + $0x1650] sm:$0xff] }
 0x1c8   :  { %v11844_v46 = vcombine.high %v393_v43, %v401_v38  ;;  %v864_v4 = vld [vmem:[#allocation5 + $0x15d0] sm:$0xff]  ;;  %v345_v7 = vld [vmem:[#allocation5 + $0x598] sm:$0xff] }
 0x1c9   :  { %v848_v24 = vld [vmem:[#allocation5 + $0x1550] sm:$0xff]  ;;  %v329_v19 = vld [vmem:[#allocation5 + $0x518] sm:$0xff] }
 0x1ca   :  { %5847 = vmatpush1.bf16.msra.mxu0 %v12193_v39  ;;  %5888 = vmatpush1.bf16.msra.mxu1 %v11683_v40  ;;  %v11859_v39 = vcombine.low %v409_v20, %v417_v23  ;;  %v12354_v40 = vcombine.high %v904_v32, %v912_v35  ;;  %v832_v32 = vld [vmem:[#allocation5 + $0x14d0] sm:$0xff]  ;;  %v313_v35 = vld [vmem:[#allocation5 + $0x498] sm:$0xff] }
 0x1cb   :  { %5848 = vmatprep.subr.bf16.mxu0 %v12178_v41  ;;  %5889 = vmatprep.subr.bf16.mxu1 %v11668_v49  ;;  %v888_v41 = vld [vmem:[#allocation5 + $0x1690] sm:$0xff]  ;;  %v385_v49 = vld [vmem:[#allocation5 + $0x6d8] sm:$0xff] }
 0x1cc   :  { %v11828_v60 = vcombine.high %v377_v44, %v385_v49  ;;  %v12337_v62 = vcombine.low %v888_v41, %v896_v42 }
 0x1ce   :  { %5849 = vmatpush1.bf16.msra.mxu0 %v12177_v52  ;;  %5890 = vmatpush1.bf16.msra.mxu1 %v11667_v53  ;;  %v11843_v52 = vcombine.low %v393_v43, %v401_v38  ;;  %v12338_v53 = vcombine.high %v888_v41, %v896_v42  ;;  %v816_v41 = vld [vmem:[#allocation5 + $0x1450] sm:$0xff]  ;;  %v297_v42 = vld [vmem:[#allocation5 + $0x418] sm:$0xff] }
 0x1cf   :  { %5850 = vmatprep.subr.bf16.mxu0 %v12162_v54  ;;  %5891 = vmatprep.subr.bf16.mxu1 %v11652_v61  ;;  %v872_v54 = vld [vmem:[#allocation5 + $0x1610] sm:$0xff]  ;;  %v369_v61 = vld [vmem:[#allocation5 + $0x658] sm:$0xff] }
 0x1d0   :  { %v11812_v9 = vcombine.high %v361_v59, %v369_v61  ;;  %v12321_v11 = vcombine.low %v872_v54, %v880_v29 }
 0x1d2   :  { %5851 = vmatpush1.bf16.msra.mxu0 %v12161_v63  ;;  %5892 = vmatpush1.bf16.msra.mxu1 %v11651_v2  ;;  %v11827_v63 = vcombine.low %v377_v44, %v385_v49  ;;  %v12322_v2 = vcombine.high %v872_v54, %v880_v29  ;;  %v545_v54 = vld [vmem:[#allocation5 + $0xbd8] sm:$0xff] }
 0x1d3   :  { %5852 = vmatprep.subr.bf16.mxu0 %v12146_v3  ;;  %5893 = vmatprep.subr.bf16.mxu1 %v11636_v10  ;;  %v856_v3 = vld [vmem:[#allocation5 + $0x1590] sm:$0xff]  ;;  %v353_v10 = vld [vmem:[#allocation5 + $0x5d8] sm:$0xff] }
 0x1d4   :  { %v11796_v20 = vcombine.high %v345_v7, %v353_v10  ;;  %v12305_v23 = vcombine.low %v856_v3, %v864_v4  ;;  %v793_v29 = vld [vmem:[#allocation5 + $0x1398] sm:$0xff] }
 0x1d6   :  { %5853 = vmatpush1.bf16.msra.mxu0 %v12145_v12  ;;  %5894 = vmatpush1.bf16.msra.mxu1 %v11635_v16  ;;  %v11811_v12 = vcombine.low %v361_v59, %v369_v61  ;;  %v12306_v16 = vcombine.high %v856_v3, %v864_v4  ;;  %v529_v3 = vld [vmem:[#allocation5 + $0xb58] sm:$0xff] }
 0x1d7   :  { %5854 = vmatprep.subr.bf16.mxu0 %v12130_v18  ;;  %5895 = vmatprep.subr.bf16.mxu1 %v11620_v22  ;;  %v840_v18 = vld [vmem:[#allocation5 + $0x1510] sm:$0xff]  ;;  %v337_v22 = vld [vmem:[#allocation5 + $0x558] sm:$0xff] }
 0x1d8   :  { %v11780_v43 = vcombine.high %v329_v19, %v337_v22  ;;  %v12289_v38 = vcombine.low %v840_v18, %v848_v24  ;;  %v777_v4 = vld [vmem:[#allocation5 + $0x1318] sm:$0xff] }
 0x1da   :  { %5855 = vmatpush1.bf16.msra.mxu0 %v12129_v28  ;;  %5896 = vmatpush1.bf16.msra.mxu1 %v11619_v33  ;;  %v11795_v28 = vcombine.low %v345_v7, %v353_v10  ;;  %v12290_v33 = vcombine.high %v840_v18, %v848_v24  ;;  %v513_v18 = vld [vmem:[#allocation5 + $0xad8] sm:$0xff] }
 0x1db   :  { %5856 = vmatprep.subr.bf16.mxu0 %v12370_v34  ;;  %5897 = vmatprep.subr.bf16.mxu1 %v11860_v36  ;;  %v824_v34 = vld [vmem:[#allocation5 + $0x1490] sm:$0xff]  ;;  %v321_v36 = vld [vmem:[#allocation5 + $0x4d8] sm:$0xff] }
 0x1dc   :  { %v11764_v44 = vcombine.high %v313_v35, %v321_v36  ;;  %v12273_v49 = vcombine.low %v824_v34, %v832_v32  ;;  %v761_v24 = vld [vmem:[#allocation5 + $0x1298] sm:$0xff] }
 0x1de   :  { %5857 = vmatpush2.bf16.msra.mxu0 %v12369_v17  ;;  %5898 = vmatpush2.bf16.msra.mxu1 %v11859_v39  ;;  %v11779_v17 = vcombine.low %v329_v19, %v337_v22  ;;  %v12274_v39 = vcombine.high %v824_v34, %v832_v32 }
 0x1df   :  { %5858 = vmatprep.subr.bf16.mxu0 %v12354_v40  ;;  %5899 = vmatprep.subr.bf16.mxu1 %v11844_v46  ;;  %v808_v40 = vld [vmem:[#allocation5 + $0x1410] sm:$0xff]  ;;  %v305_v46 = vld [vmem:[#allocation5 + $0x458] sm:$0xff] }
 0x1e0   :  { %v11748_v59 = vcombine.high %v297_v42, %v305_v46  ;;  %v12257_v61 = vcombine.low %v808_v40, %v816_v41 }
 0x1e2   :  { %5859 = vmatpush2.bf16.msra.mxu0 %v12353_v51  ;;  %5900 = vmatpush2.bf16.msra.mxu1 %v11843_v52  ;;  %v11763_v51 = vcombine.low %v313_v35, %v321_v36  ;;  %v12258_v52 = vcombine.high %v808_v40, %v816_v41  ;;  %v497_v36 = vld [vmem:[#allocation5 + $0xa58] sm:$0xff] }
 0x1e3   :  { %5860 = vmatprep.subr.bf16.mxu0 %v12338_v53  ;;  %5901 = vmatprep.subr.bf16.mxu1 %v11828_v60  ;;  %v537_v53 = vld [vmem:[#allocation5 + $0xb98] sm:$0xff] }
 0x1e4   :  { %v801_v60 = vld [vmem:[#allocation5 + $0x13d8] sm:$0xff]  ;;  %v11987_v10 = vcombine.low %v537_v53, %v545_v54 }
 0x1e5   :  { %v12244_v7 = vcombine.high %v793_v29, %v801_v60  ;;  %v753_v40 = vld [vmem:[#allocation5 + $0x1258] sm:$0xff] }
 0x1e6   :  { %5861 = vmatpush2.bf16.msra.mxu0 %v12337_v62  ;;  %5902 = vmatpush2.bf16.msra.mxu1 %v11827_v63  ;;  %v11747_v62 = vcombine.low %v297_v42, %v305_v46  ;;  %v11988_v63 = vcombine.high %v537_v53, %v545_v54  ;;  %v729_v53 = vld [vmem:[#allocation5 + $0x1198] sm:$0xff] }
 0x1e7   :  { %5862 = vmatprep.subr.bf16.mxu0 %v12322_v2  ;;  %5903 = vmatprep.subr.bf16.mxu1 %v11812_v9  ;;  %v521_v2 = vld [vmem:[#allocation5 + $0xb18] sm:$0xff] }
 0x1e8   :  { %v785_v9 = vld [vmem:[#allocation5 + $0x1358] sm:$0xff] }
 0x1e9   :  { %v12228_v19 = vcombine.high %v777_v4, %v785_v9  ;;  %v12227_v32 = vcombine.low %v777_v4, %v785_v9 }
 0x1ea   :  { %5863 = vmatpush2.bf16.msra.mxu0 %v12321_v11  ;;  %5904 = vmatpush2.bf16.msra.mxu1 %v11811_v12  ;;  %v12243_v11 = vcombine.low %v793_v29, %v801_v60  ;;  %v11972_v12 = vcombine.high %v521_v2, %v529_v3 }
 0x1eb   :  { %5864 = vmatprep.subr.bf16.mxu0 %v12306_v16  ;;  %5905 = vmatprep.subr.bf16.mxu1 %v11796_v20  ;;  %v505_v16 = vld [vmem:[#allocation5 + $0xa98] sm:$0xff] }
 0x1ec   :  { %v769_v20 = vld [vmem:[#allocation5 + $0x12d8] sm:$0xff]  ;;  %v11956_v35 = vcombine.high %v505_v16, %v513_v18 }
 0x1ee   :  { %5865 = vmatpush2.bf16.msra.mxu0 %v12305_v23  ;;  %5906 = vmatpush2.bf16.msra.mxu1 %v11795_v28 }
 0x1ef   :  { %5866 = vmatprep.subr.bf16.mxu0 %v12290_v33  ;;  %5907 = vmatprep.subr.bf16.mxu1 %v11780_v43  ;;  %v11971_v33 = vcombine.low %v521_v2, %v529_v3  ;;  %v489_v43 = vld [vmem:[#allocation5 + $0xa18] sm:$0xff] }
 0x1f0   :  { %v11939_v60 = vcombine.low %v489_v43, %v497_v36  ;;  %v465_v2 = vld [vmem:[#allocation5 + $0x958] sm:$0xff] }
 0x1f1   :  { %v713_v3 = vld [vmem:[#allocation5 + $0x1118] sm:$0xff] }
 0x1f2   :  { %5867 = vmatpush2.bf16.msra.mxu0 %v12289_v38  ;;  %5908 = vmatpush2.bf16.msra.mxu1 %v11779_v17  ;;  %v745_v38 = vld [vmem:[#allocation5 + $0x1218] sm:$0xff] }
 0x1f3   :  { %5868 = vmatprep.subr.bf16.mxu0 %v12274_v39  ;;  %5909 = vmatprep.subr.bf16.mxu1 %v11764_v44  ;;  %v11955_v44 = vcombine.low %v505_v16, %v513_v18  ;;  %v12196_v29 = vcombine.high %v745_v38, %v753_v40  ;;  %v441_v16 = vld [vmem:[#allocation5 + $0x898] sm:$0xff] }
 0x1f4   :  { %v449_v18 = vld [vmem:[#allocation5 + $0x8d8] sm:$0xff] }
 0x1f6   :  { %5869 = vmatpush2.bf16.msra.mxu0 %v12273_v49  ;;  %5910 = vmatpush2.bf16.msra.mxu1 %v11763_v51  ;;  %v12211_v49 = vcombine.low %v761_v24, %v769_v20  ;;  %v11940_v51 = vcombine.high %v489_v43, %v497_v36  ;;  %v681_v43 = vld [vmem:[#allocation5 + $0x1018] sm:$0xff] }
 0x1f7   :  { %5870 = vmatprep.subr.bf16.mxu0 %v12258_v52  ;;  %5911 = vmatprep.subr.bf16.mxu1 %v11748_v59  ;;  %v481_v52 = vld [vmem:[#allocation5 + $0x9d8] sm:$0xff] }
 0x1f8   :  { %v737_v59 = vld [vmem:[#allocation5 + $0x11d8] sm:$0xff] }
 0x1f9   :  { %v12180_v4 = vcombine.high %v729_v53, %v737_v59  ;;  %v689_v36 = vld [vmem:[#allocation5 + $0x1058] sm:$0xff] }
 0x1fa   :  { %5871 = vmatpush2.bf16.msra.mxu0 %v12257_v61  ;;  %5912 = vmatpush2.bf16.msra.mxu1 %v11747_v62  ;;  %v12195_v61 = vcombine.low %v745_v38, %v753_v40  ;;  %v11891_v38 = vcombine.low %v441_v16, %v449_v18 }
 0x1fb   :  { %5922 = vmatprep.subr.bf16.mxu0 %v11988_v63  ;;  %5963 = vmatprep.subr.bf16.mxu1 %v12244_v7  ;;  %v457_v63 = vld [vmem:[#allocation5 + $0x918] sm:$0xff] }
 0x1fc   :  { %v721_v7 = vld [vmem:[#allocation5 + $0x1158] sm:$0xff] }
 0x1fd   :  { %v5628_v22 = vpop.f32.mrf.mxu0  ;;  %5873 = vmatmul.mubr.bf16.vlgmr.msra.gmra.mxu0 %v14487_v45  ;;  %v14543_v28 = vpop.f32.mrf.mxu1  ;;  %5914 = vmatmul.mubr.bf16.vlgmr.msra.gmra.mxu1 %v14471_v30 }
 0x1fe   :  { %v14541_v23 = vadd.f32 %v5628_v22, %v14532_v13  ;;  %5923 = vmatpush1.bf16.msra.mxu0 %v11987_v10  ;;  %5964 = vmatpush1.bf16.msra.mxu1 %v12243_v11  ;;  %v12212_v13 = vcombine.high %v761_v24, %v769_v20  ;;  %v12179_v10 = vcombine.low %v729_v53, %v737_v59  ;;  %v697_v24 = vld [vmem:[#allocation5 + $0x1098] sm:$0xff] }
 0x1ff   :  { %v5630_v34 = vpop.f32.mrf.mxu0  ;;  %5924 = vmatprep.subr.bf16.mxu0 %v11972_v12  ;;  %v14549_v39 = vpop.f32.mrf.mxu1  ;;  %5965 = vmatprep.subr.bf16.mxu1 %v12228_v19  ;;  %v11908_v11 = vcombine.high %v457_v63, %v465_v2  ;;  %v12164_v12 = vcombine.high %v713_v3, %v721_v7  ;;  %v705_v19 = vld [vmem:[#allocation5 + $0x10d8] sm:$0xff]  ;;  %v11907_v20 = vcombine.low %v457_v63, %v465_v2 }
 0x200   :  { %v14547_v17 = vadd.f32 %v5630_v34, %v14537_v21  ;;  %5954 = vmatprep.mubr.bf16.mxu0 %v14461_v26  ;;  %5995 = vmatprep.mubr.bf16.mxu1 %v14479_v15  ;;  %v473_v21 = vld [vmem:[#allocation5 + $0x998] sm:$0xff]  ;;  %v12163_v22 = vcombine.low %v713_v3, %v721_v7  ;;  %v12148_v34 = vcombine.high %v697_v24, %v705_v19 }
 0x201   :  { %v5632_v41 = vpop.f32.mrf.mxu0  ;;  %v5673_v42 = vpop.f32.mrf.mxu1  ;;  %v11924_v62 = vcombine.high %v473_v21, %v481_v52  ;;  %v11923_v9 = vcombine.low %v473_v21, %v481_v52  ;;  %v12131_v21 = vcombine.low %v681_v43, %v689_v36  ;;  %v905_v59 = vld [vmem:[#allocation5 + $0x1718] sm:$0xff] }
 0x202   :  { %5925 = vmatpush1.bf16.msra.mxu0 %v11971_v33  ;;  %5966 = vmatpush1.bf16.msra.mxu1 %v12227_v32  ;;  %v11892_v33 = vcombine.high %v441_v16, %v449_v18  ;;  %v425_v32 = vld [vmem:[#allocation5 + $0x818] sm:$0xff]  ;;  %v12132_v41 = vcombine.high %v681_v43, %v689_v36 }
 0x203   :  { %v5633_v46 = vpop.f32.mrf.mxu0  ;;  %5926 = vmatprep.subr.bf16.mxu0 %v11956_v35  ;;  %v5674_v54 = vpop.f32.mrf.mxu1  ;;  %5967 = vmatprep.subr.bf16.mxu1 %v12212_v13  ;;  %v433_v35 = vld [vmem:[#allocation5 + $0x858] sm:$0xff]  ;;  %v12147_v13 = vcombine.low %v697_v24, %v705_v19 }
 0x204   :  { %v11876_v40 = vcombine.high %v425_v32, %v433_v35  ;;  %v665_v42 = vld [vmem:[#allocation5 + $0xf98] sm:$0xff] }
 0x205   :  { %v921_v46 = vld [vmem:[#allocation5 + $0x1798] sm:$0xff] }
 0x206   :  { %5927 = vmatpush1.bf16.msra.mxu0 %v11955_v44  ;;  %5968 = vmatpush1.bf16.msra.mxu1 %v12211_v49  ;;  %v673_v44 = vld [vmem:[#allocation5 + $0xfd8] sm:$0xff] }
 0x207   :  { %5928 = vmatprep.subr.bf16.mxu0 %v11940_v51  ;;  %5969 = vmatprep.subr.bf16.mxu1 %v12196_v29  ;;  %v929_v49 = vld [vmem:[#allocation5 + $0x17d8] sm:$0xff]  ;;  %v11875_v51 = vcombine.low %v425_v32, %v433_v35  ;;  %v12116_v52 = vcombine.high %v665_v42, %v673_v44 }
 0x208   :  { %v12372_v53 = vcombine.high %v921_v46, %v929_v49  ;;  %v649_v54 = vld [vmem:[#allocation5 + $0xf18] sm:$0xff] }
 0x209   :  { %v657_v29 = vld [vmem:[#allocation5 + $0xf58] sm:$0xff] }
 0x20a   :  { %5929 = vmatpush1.bf16.msra.mxu0 %v11939_v60  ;;  %5970 = vmatpush1.bf16.msra.mxu1 %v12195_v61  ;;  %v913_v60 = vld [vmem:[#allocation5 + $0x1758] sm:$0xff]  ;;  %v12115_v61 = vcombine.low %v665_v42, %v673_v44  ;;  %v12100_v63 = vcombine.high %v649_v54, %v657_v29 }
 0x20b   :  { %5930 = vmatprep.subr.bf16.mxu0 %v11924_v62  ;;  %5971 = vmatprep.subr.bf16.mxu1 %v12180_v4  ;;  %v12371_v62 = vcombine.low %v921_v46, %v929_v49  ;;  %v12356_v2 = vcombine.high %v905_v59, %v913_v60  ;;  %v633_v3 = vld [vmem:[#allocation5 + $0xe98] sm:$0xff] }
 0x20c   :  { %v641_v4 = vld [vmem:[#allocation5 + $0xed8] sm:$0xff] }
 0x20d   :  { %v889_v7 = vld [vmem:[#allocation5 + $0x1698] sm:$0xff] }
 0x20e   :  { %5931 = vmatpush1.bf16.msra.mxu0 %v11923_v9  ;;  %5972 = vmatpush1.bf16.msra.mxu1 %v12179_v10  ;;  %v897_v9 = vld [vmem:[#allocation5 + $0x16d8] sm:$0xff]  ;;  %v12099_v10 = vcombine.low %v649_v54, %v657_v29 }
 0x20f   :  { %5932 = vmatprep.subr.bf16.mxu0 %v11908_v11  ;;  %5973 = vmatprep.subr.bf16.mxu1 %v12164_v12  ;;  %v12355_v11 = vcombine.low %v905_v59, %v913_v60  ;;  %v12084_v12 = vcombine.high %v633_v3, %v641_v4  ;;  %v12340_v16 = vcombine.high %v889_v7, %v897_v9  ;;  %v617_v18 = vld [vmem:[#allocation5 + $0xe18] sm:$0xff] }
 0x210   :  { %v625_v24 = vld [vmem:[#allocation5 + $0xe58] sm:$0xff] }
 0x211   :  { %v873_v19 = vld [vmem:[#allocation5 + $0x1618] sm:$0xff] }
 0x212   :  { %5933 = vmatpush1.bf16.msra.mxu0 %v11907_v20  ;;  %5974 = vmatpush1.bf16.msra.mxu1 %v12163_v22  ;;  %v881_v20 = vld [vmem:[#allocation5 + $0x1658] sm:$0xff]  ;;  %v12083_v22 = vcombine.low %v633_v3, %v641_v4 }
 0x213   :  { %5934 = vmatprep.subr.bf16.mxu0 %v11892_v33  ;;  %5975 = vmatprep.subr.bf16.mxu1 %v12148_v34  ;;  %v12339_v33 = vcombine.low %v889_v7, %v897_v9  ;;  %v12068_v34 = vcombine.high %v617_v18, %v625_v24  ;;  %v12324_v32 = vcombine.high %v873_v19, %v881_v20  ;;  %v601_v35 = vld [vmem:[#allocation5 + $0xd98] sm:$0xff] }
 0x214   :  { %v609_v43 = vld [vmem:[#allocation5 + $0xdd8] sm:$0xff] }
 0x215   :  { %v857_v36 = vld [vmem:[#allocation5 + $0x1598] sm:$0xff] }
 0x216   :  { %5935 = vmatpush1.bf16.msra.mxu0 %v11891_v38  ;;  %5976 = vmatpush1.bf16.msra.mxu1 %v12147_v13  ;;  %v865_v38 = vld [vmem:[#allocation5 + $0x15d8] sm:$0xff]  ;;  %v12067_v13 = vcombine.low %v617_v18, %v625_v24  ;;  %v282_v24 = vld [vmem:[#allocation5 + $0x3a0] sm:$0xff] }
 0x217   :  { %5936 = vmatprep.subr.bf16.mxu0 %v11876_v40  ;;  %5977 = vmatprep.subr.bf16.mxu1 %v12132_v41  ;;  %v12323_v40 = vcombine.low %v873_v19, %v881_v20  ;;  %v12052_v41 = vcombine.high %v601_v35, %v609_v43  ;;  %v12308_v42 = vcombine.high %v857_v36, %v865_v38  ;;  %v585_v44 = vld [vmem:[#allocation5 + $0xd18] sm:$0xff]  ;;  %v290_v19 = vld [vmem:[#allocation5 + $0x3e0] sm:$0xff] }
 0x218   :  { %v593_v46 = vld [vmem:[#allocation5 + $0xd58] sm:$0xff]  ;;  %v538_v20 = vld [vmem:[#allocation5 + $0xba0] sm:$0xff] }
 0x219   :  { %v841_v49 = vld [vmem:[#allocation5 + $0x1518] sm:$0xff] }
 0x21a   :  { %5937 = vmatpush1.bf16.msra.mxu0 %v11875_v51  ;;  %5978 = vmatpush1.bf16.msra.mxu1 %v12131_v21  ;;  %v849_v51 = vld [vmem:[#allocation5 + $0x1558] sm:$0xff]  ;;  %v12051_v21 = vcombine.low %v601_v35, %v609_v43  ;;  %v266_v43 = vld [vmem:[#allocation5 + $0x320] sm:$0xff] }
 0x21b   :  { %5938 = vmatprep.subr.bf16.mxu0 %v12116_v52  ;;  %5979 = vmatprep.subr.bf16.mxu1 %v12372_v53  ;;  %v12307_v52 = vcombine.low %v857_v36, %v865_v38  ;;  %v12036_v53 = vcombine.high %v585_v44, %v593_v46  ;;  %v12292_v54 = vcombine.high %v841_v49, %v849_v51  ;;  %v569_v29 = vld [vmem:[#allocation5 + $0xc98] sm:$0xff]  ;;  %v274_v36 = vld [vmem:[#allocation5 + $0x360] sm:$0xff] }
 0x21c   :  { %v577_v59 = vld [vmem:[#allocation5 + $0xcd8] sm:$0xff]  ;;  %v522_v38 = vld [vmem:[#allocation5 + $0xb20] sm:$0xff] }
 0x21d   :  { %v825_v60 = vld [vmem:[#allocation5 + $0x1498] sm:$0xff] }
 0x21e   :  { %5939 = vmatpush2.bf16.msra.mxu0 %v12115_v61  ;;  %5980 = vmatpush2.bf16.msra.mxu1 %v12371_v62  ;;  %v833_v61 = vld [vmem:[#allocation5 + $0x14d8] sm:$0xff]  ;;  %v12035_v62 = vcombine.low %v585_v44, %v593_v46  ;;  %v5670_v44 = vadd.f32 %v14543_v28, %v14495_v27 }
 0x21f   :  { %5940 = vmatprep.subr.bf16.mxu0 %v12100_v63  ;;  %5981 = vmatprep.subr.bf16.mxu1 %v12356_v2  ;;  %v12291_v63 = vcombine.low %v841_v49, %v849_v51  ;;  %v12020_v2 = vcombine.high %v569_v29, %v577_v59  ;;  %v12276_v3 = vcombine.high %v825_v60, %v833_v61  ;;  %v553_v4 = vld [vmem:[#allocation5 + $0xc18] sm:$0xff]  ;;  %v250_v49 = vld [vmem:[#allocation5 + $0x2a0] sm:$0xff] }
 0x220   :  { %v561_v7 = vld [vmem:[#allocation5 + $0xc58] sm:$0xff]  ;;  %v258_v51 = vld [vmem:[#allocation5 + $0x2e0] sm:$0xff] }
 0x221   :  { %v809_v9 = vld [vmem:[#allocation5 + $0x1418] sm:$0xff] }
 0x222   :  { %5941 = vmatpush2.bf16.msra.mxu0 %v12099_v10  ;;  %5982 = vmatpush2.bf16.msra.mxu1 %v12355_v11  ;;  %v817_v10 = vld [vmem:[#allocation5 + $0x1458] sm:$0xff]  ;;  %v12019_v11 = vcombine.low %v569_v29, %v577_v59 }
 0x223   :  { %5942 = vmatprep.subr.bf16.mxu0 %v12084_v12  ;;  %5983 = vmatprep.subr.bf16.mxu1 %v12340_v16  ;;  %v12275_v12 = vcombine.low %v825_v60, %v833_v61  ;;  %v12004_v16 = vcombine.high %v553_v4, %v561_v7  ;;  %v12260_v18 = vcombine.high %v809_v9, %v817_v10 }
 0x224   :  { %v11717_v60 = vcombine.low %v266_v43, %v274_v36  ;;  %v11702_v61 = vcombine.high %v250_v49, %v258_v51 }
 0x226   :  { %5943 = vmatpush2.bf16.msra.mxu0 %v12083_v22  ;;  %5984 = vmatpush2.bf16.msra.mxu1 %v12339_v33  ;;  %v546_v22 = vld [vmem:[#allocation5 + $0xbe0] sm:$0xff]  ;;  %v12003_v33 = vcombine.low %v553_v4, %v561_v7 }
 0x227   :  { %5944 = vmatprep.subr.bf16.mxu0 %v12068_v34  ;;  %5985 = vmatprep.subr.bf16.mxu1 %v12324_v32  ;;  %v12259_v34 = vcombine.low %v809_v9, %v817_v10  ;;  %v11734_v32 = vcombine.high %v282_v24, %v290_v19  ;;  %v11990_v35 = vcombine.high %v538_v20, %v546_v22  ;;  %v234_v4 = vld [vmem:[#allocation5 + $0x220] sm:$0xff] }
 0x228   :  { %v242_v7 = vld [vmem:[#allocation5 + $0x260] sm:$0xff] }
 0x229   :  { %v498_v9 = vld [vmem:[#allocation5 + $0xa60] sm:$0xff] }
 0x22a   :  { %5945 = vmatpush2.bf16.msra.mxu0 %v12067_v13  ;;  %5986 = vmatpush2.bf16.msra.mxu1 %v12323_v40  ;;  %v530_v13 = vld [vmem:[#allocation5 + $0xb60] sm:$0xff]  ;;  %v11733_v40 = vcombine.low %v282_v24, %v290_v19  ;;  %v11686_v24 = vcombine.high %v234_v4, %v242_v7 }
 0x22b   :  { %5946 = vmatprep.subr.bf16.mxu0 %v12052_v41  ;;  %5987 = vmatprep.subr.bf16.mxu1 %v12308_v42  ;;  %v11989_v41 = vcombine.low %v538_v20, %v546_v22  ;;  %v11718_v42 = vcombine.high %v266_v43, %v274_v36  ;;  %v11974_v46 = vcombine.high %v522_v38, %v530_v13  ;;  %v218_v22 = vld [vmem:[#allocation5 + $0x1a0] sm:$0xff] }
 0x22c   :  { %v11973_v28 = vcombine.low %v522_v38, %v530_v13  ;;  %v202_v13 = vld [vmem:[#allocation5 + $0x120] sm:$0xff] }
 0x22e   :  { %5947 = vmatpush2.bf16.msra.mxu0 %v12051_v21  ;;  %5988 = vmatpush2.bf16.msra.mxu1 %v12307_v52  ;;  %v506_v52 = vld [vmem:[#allocation5 + $0xaa0] sm:$0xff] }
 0x22f   :  { %5948 = vmatprep.subr.bf16.mxu0 %v12036_v53  ;;  %5989 = vmatprep.subr.bf16.mxu1 %v12292_v54  ;;  %v514_v53 = vld [vmem:[#allocation5 + $0xae0] sm:$0xff]  ;;  %v5672_v54 = vadd.f32 %v14549_v39, %v14499_v37 }
 0x230   :  { %v490_v39 = vld [vmem:[#allocation5 + $0xa20] sm:$0xff] }
 0x231   :  { %v11942_v20 = vcombine.high %v490_v39, %v498_v9  ;;  %v11941_v43 = vcombine.low %v490_v39, %v498_v9  ;;  %v410_v39 = vld [vmem:[#allocation5 + $0x7a0] sm:$0xff] }
 0x232   :  { %5949 = vmatpush2.bf16.msra.mxu0 %v12035_v62  ;;  %5990 = vmatpush2.bf16.msra.mxu1 %v12291_v63  ;;  %v418_v9 = vld [vmem:[#allocation5 + $0x7e0] sm:$0xff] }
 0x233   :  { %5950 = vmatprep.subr.bf16.mxu0 %v12020_v2  ;;  %5991 = vmatprep.subr.bf16.mxu1 %v12276_v3  ;;  %v11958_v3 = vcombine.high %v506_v52, %v514_v53 }
 0x236   :  { %5951 = vmatpush2.bf16.msra.mxu0 %v12019_v11  ;;  %5992 = vmatpush2.bf16.msra.mxu1 %v12275_v12  ;;  %v11701_v12 = vcombine.low %v250_v49, %v258_v51 }
 0x237   :  { %5952 = vmatprep.subr.bf16.mxu0 %v12004_v16  ;;  %5993 = vmatprep.subr.bf16.mxu1 %v12260_v18  ;;  %v11957_v18 = vcombine.low %v506_v52, %v514_v53  ;;  %v194_v52 = vld [vmem:[#allocation5 + $0xe0] sm:$0xff] }
 0x238   :  { %v442_v53 = vld [vmem:[#allocation5 + $0x8a0] sm:$0xff] }
 0x23a   :  { %5953 = vmatpush2.bf16.msra.mxu0 %v12003_v33  ;;  %5994 = vmatpush2.bf16.msra.mxu1 %v12259_v34  ;;  %v226_v33 = vld [vmem:[#allocation5 + $0x1e0] sm:$0xff] }
 0x23b   :  { %6004 = vmatprep.subr.bf16.mxu0 %v11734_v32  ;;  %6045 = vmatprep.subr.bf16.mxu1 %v11990_v35  ;;  %v474_v34 = vld [vmem:[#allocation5 + $0x9a0] sm:$0xff]  ;;  %v11685_v35 = vcombine.low %v234_v4, %v242_v7  ;;  %v11670_v36 = vcombine.high %v218_v22, %v226_v33 }
 0x23c   :  { %v482_v32 = vld [vmem:[#allocation5 + $0x9e0] sm:$0xff] }
 0x23d   :  { %v5710_v21 = vpop.f32.mrf.mxu0  ;;  %5955 = vmatmul.mubr.bf16.vlgmr.msra.gmra.mxu0 %v14475_v31  ;;  %v5751_v59 = vpop.f32.mrf.mxu1  ;;  %5996 = vmatmul.mubr.bf16.vlgmr.msra.gmra.mxu1 %v14487_v45  ;;  %v11926_v38 = vcombine.high %v474_v34, %v482_v32 }
 0x23e   :  { %v5711_v29 = vadd.f32 %v5710_v21, %v5670_v44  ;;  %6005 = vmatpush1.bf16.msra.mxu0 %v11733_v40  ;;  %6046 = vmatpush1.bf16.msra.mxu1 %v11989_v41  ;;  %v210_v40 = vld [vmem:[#allocation5 + $0x160] sm:$0xff]  ;;  %v11669_v44 = vcombine.low %v218_v22, %v226_v33 }
 0x23f   :  { %v5712_v27 = vpop.f32.mrf.mxu0  ;;  %6006 = vmatprep.subr.bf16.mxu0 %v11718_v42  ;;  %v5753_v2 = vpop.f32.mrf.mxu1  ;;  %6047 = vmatprep.subr.bf16.mxu1 %v11974_v46  ;;  %v458_v41 = vld [vmem:[#allocation5 + $0x920] sm:$0xff]  ;;  %v11925_v46 = vcombine.low %v474_v34, %v482_v32  ;;  %v11654_v49 = vcombine.high %v202_v13, %v210_v40  ;;  %v11861_v32 = vcombine.low %v410_v39, %v418_v9 }
 0x240   :  { %v14559_v62 = vadd.f32 %v5751_v59, %v5711_v29  ;;  %v5713_v63 = vadd.f32 %v5712_v27, %v5672_v54  ;;  %6036 = vmatprep.mubr.bf16.mxu0 %v14455_v25  ;;  %6077 = vmatprep.mubr.bf16.mxu1 %v14461_v26  ;;  %v466_v42 = vld [vmem:[#allocation5 + $0x960] sm:$0xff]  ;;  %v11653_v29 = vcombine.low %v202_v13, %v210_v40 }
 0x241   :  { %v5714_v37 = vpop.f32.mrf.mxu0  ;;  %v5755_v11 = vpop.f32.mrf.mxu1  ;;  %v11910_v51 = vcombine.high %v458_v41, %v466_v42  ;;  %v186_v21 = vld [vmem:[#allocation5 + $0xa0] sm:$0xff]  ;;  %v11909_v59 = vcombine.low %v458_v41, %v466_v42 }
 0x242   :  { %v14563_v10 = vadd.f32 %v5753_v2, %v5713_v63  ;;  %6007 = vmatpush1.bf16.msra.mxu0 %v11717_v60  ;;  %6048 = vmatpush1.bf16.msra.mxu1 %v11973_v28  ;;  %v450_v54 = vld [vmem:[#allocation5 + $0x8e0] sm:$0xff]  ;;  %v11638_v60 = vcombine.high %v186_v21, %v194_v52 }
 0x243   :  { %v5715_v16 = vpop.f32.mrf.mxu0  ;;  %6008 = vmatprep.subr.bf16.mxu0 %v11702_v61  ;;  %v5756_v19 = vpop.f32.mrf.mxu1  ;;  %6049 = vmatprep.subr.bf16.mxu1 %v11958_v3  ;;  %v11894_v27 = vcombine.high %v442_v53, %v450_v54  ;;  %v170_v28 = vld [vmem:[#allocation5 + $0x20] sm:$0xff]  ;;  %v11637_v3 = vcombine.low %v186_v21, %v194_v52  ;;  %v11893_v4 = vcombine.low %v442_v53, %v450_v54 }
 0x244   :  { %v178_v61 = vld [vmem:[#allocation5 + $0x60] sm:$0xff] }
 0x245   :  { %v426_v63 = vld [vmem:[#allocation5 + $0x820] sm:$0xff]  ;;  %v11622_v7 = vcombine.high %v170_v28, %v178_v61  ;;  %v11621_v16 = vcombine.low %v170_v28, %v178_v61 }
 0x246   :  { %6009 = vmatpush1.bf16.msra.mxu0 %v11701_v12  ;;  %6050 = vmatpush1.bf16.msra.mxu1 %v11957_v18  ;;  %v434_v2 = vld [vmem:[#allocation5 + $0x860] sm:$0xff] }
 0x247   :  { %6010 = vmatprep.subr.bf16.mxu0 %v11686_v24  ;;  %6051 = vmatprep.subr.bf16.mxu1 %v11942_v20  ;;  %v11878_v37 = vcombine.high %v426_v63, %v434_v2  ;;  %v666_v11 = vld [vmem:[#allocation5 + $0xfa0] sm:$0xff]  ;;  %v11877_v18 = vcombine.low %v426_v63, %v434_v2  ;;  %v11862_v24 = vcombine.high %v410_v39, %v418_v9 }
 0x248   :  { %v674_v12 = vld [vmem:[#allocation5 + $0xfe0] sm:$0xff] }
 0x249   :  { %v12118_v19 = vcombine.high %v666_v11, %v674_v12  ;;  %v394_v20 = vld [vmem:[#allocation5 + $0x720] sm:$0xff] }
 0x24a   :  { %6011 = vmatpush1.bf16.msra.mxu0 %v11685_v35  ;;  %6052 = vmatpush1.bf16.msra.mxu1 %v11941_v43  ;;  %v402_v22 = vld [vmem:[#allocation5 + $0x760] sm:$0xff]  ;;  %v12117_v35 = vcombine.low %v666_v11, %v674_v12 }
 0x24b   :  { %6012 = vmatprep.subr.bf16.mxu0 %v11670_v36  ;;  %6053 = vmatprep.subr.bf16.mxu1 %v11926_v38  ;;  %v650_v33 = vld [vmem:[#allocation5 + $0xf20] sm:$0xff]  ;;  %v11846_v43 = vcombine.high %v394_v20, %v402_v22  ;;  %v11845_v42 = vcombine.low %v394_v20, %v402_v22 }
 0x24c   :  { %v658_v34 = vld [vmem:[#allocation5 + $0xf60] sm:$0xff] }
 0x24d   :  { %v12102_v36 = vcombine.high %v650_v33, %v658_v34  ;;  %v378_v38 = vld [vmem:[#allocation5 + $0x6a0] sm:$0xff] }
 0x24e   :  { %6013 = vmatpush1.bf16.msra.mxu0 %v11669_v44  ;;  %6054 = vmatpush1.bf16.msra.mxu1 %v11925_v46  ;;  %v386_v13 = vld [vmem:[#allocation5 + $0x6e0] sm:$0xff]  ;;  %v12101_v44 = vcombine.low %v650_v33, %v658_v34 }
 0x24f   :  { %6014 = vmatprep.subr.bf16.mxu0 %v11654_v49  ;;  %6055 = vmatprep.subr.bf16.mxu1 %v11910_v51  ;;  %v634_v40 = vld [vmem:[#allocation5 + $0xea0] sm:$0xff]  ;;  %v11830_v46 = vcombine.high %v378_v38, %v386_v13  ;;  %v11829_v54 = vcombine.low %v378_v38, %v386_v13 }
 0x250   :  { %v642_v41 = vld [vmem:[#allocation5 + $0xee0] sm:$0xff] }
 0x251   :  { %v12086_v49 = vcombine.high %v634_v40, %v642_v41  ;;  %v362_v51 = vld [vmem:[#allocation5 + $0x620] sm:$0xff] }
 0x252   :  { %6015 = vmatpush1.bf16.msra.mxu0 %v11653_v29  ;;  %6056 = vmatpush1.bf16.msra.mxu1 %v11909_v59  ;;  %v370_v21 = vld [vmem:[#allocation5 + $0x660] sm:$0xff]  ;;  %v12085_v29 = vcombine.low %v634_v40, %v642_v41 }
 0x253   :  { %6016 = vmatprep.subr.bf16.mxu0 %v11638_v60  ;;  %6057 = vmatprep.subr.bf16.mxu1 %v11894_v27  ;;  %v618_v52 = vld [vmem:[#allocation5 + $0xe20] sm:$0xff]  ;;  %v11814_v59 = vcombine.high %v362_v51, %v370_v21  ;;  %v11813_v2 = vcombine.low %v362_v51, %v370_v21  ;;  %v283_v21 = vld [vmem:[#allocation5 + $0x3a8] sm:$0xff] }
 0x254   :  { %v626_v53 = vld [vmem:[#allocation5 + $0xe60] sm:$0xff] }
 0x255   :  { %v12070_v60 = vcombine.high %v618_v52, %v626_v53  ;;  %v346_v27 = vld [vmem:[#allocation5 + $0x5a0] sm:$0xff] }
 0x256   :  { %6017 = vmatpush1.bf16.msra.mxu0 %v11637_v3  ;;  %6058 = vmatpush1.bf16.msra.mxu1 %v11893_v4  ;;  %v354_v28 = vld [vmem:[#allocation5 + $0x5e0] sm:$0xff]  ;;  %v12069_v3 = vcombine.low %v618_v52, %v626_v53  ;;  %v291_v52 = vld [vmem:[#allocation5 + $0x3e8] sm:$0xff] }
 0x257   :  { %6018 = vmatprep.subr.bf16.mxu0 %v11622_v7  ;;  %6059 = vmatprep.subr.bf16.mxu1 %v11878_v37  ;;  %v602_v61 = vld [vmem:[#allocation5 + $0xda0] sm:$0xff]  ;;  %v11798_v4 = vcombine.high %v346_v27, %v354_v28  ;;  %v11797_v12 = vcombine.low %v346_v27, %v354_v28  ;;  %v267_v28 = vld [vmem:[#allocation5 + $0x328] sm:$0xff] }
 0x258   :  { %v610_v63 = vld [vmem:[#allocation5 + $0xde0] sm:$0xff] }
 0x259   :  { %v12054_v7 = vcombine.high %v602_v61, %v610_v63  ;;  %v330_v37 = vld [vmem:[#allocation5 + $0x520] sm:$0xff] }
 0x25a   :  { %6019 = vmatpush1.bf16.msra.mxu0 %v11621_v16  ;;  %6060 = vmatpush1.bf16.msra.mxu1 %v11877_v18  ;;  %v338_v39 = vld [vmem:[#allocation5 + $0x560] sm:$0xff]  ;;  %v12053_v16 = vcombine.low %v602_v61, %v610_v63  ;;  %v275_v61 = vld [vmem:[#allocation5 + $0x368] sm:$0xff] }
 0x25b   :  { %6020 = vmatprep.subr.bf16.mxu0 %v11862_v24  ;;  %6061 = vmatprep.subr.bf16.mxu1 %v12118_v19  ;;  %v586_v9 = vld [vmem:[#allocation5 + $0xd20] sm:$0xff]  ;;  %v11782_v18 = vcombine.high %v330_v37, %v338_v39  ;;  %v11781_v34 = vcombine.low %v330_v37, %v338_v39 }
 0x25c   :  { %v594_v11 = vld [vmem:[#allocation5 + $0xd60] sm:$0xff] }
 0x25d   :  { %v12038_v24 = vcombine.high %v586_v9, %v594_v11  ;;  %v314_v19 = vld [vmem:[#allocation5 + $0x4a0] sm:$0xff] }
 0x25e   :  { %6021 = vmatpush2.bf16.msra.mxu0 %v11861_v32  ;;  %6062 = vmatpush2.bf16.msra.mxu1 %v12117_v35  ;;  %v322_v20 = vld [vmem:[#allocation5 + $0x4e0] sm:$0xff]  ;;  %v12037_v32 = vcombine.low %v586_v9, %v594_v11  ;;  %v251_v9 = vld [vmem:[#allocation5 + $0x2a8] sm:$0xff] }
 0x25f   :  { %6022 = vmatprep.subr.bf16.mxu0 %v11846_v43  ;;  %6063 = vmatprep.subr.bf16.mxu1 %v12102_v36  ;;  %v570_v22 = vld [vmem:[#allocation5 + $0xca0] sm:$0xff]  ;;  %v11766_v35 = vcombine.high %v314_v19, %v322_v20  ;;  %v11765_v41 = vcombine.low %v314_v19, %v322_v20  ;;  %v259_v11 = vld [vmem:[#allocation5 + $0x2e8] sm:$0xff]  ;;  %v11719_v19 = vcombine.low %v267_v28, %v275_v61 }
 0x260   :  { %v578_v33 = vld [vmem:[#allocation5 + $0xce0] sm:$0xff] }
 0x261   :  { %v12022_v43 = vcombine.high %v570_v22, %v578_v33  ;;  %v298_v36 = vld [vmem:[#allocation5 + $0x420] sm:$0xff] }
 0x262   :  { %6023 = vmatpush2.bf16.msra.mxu0 %v11845_v42  ;;  %6064 = vmatpush2.bf16.msra.mxu1 %v12101_v44  ;;  %v306_v38 = vld [vmem:[#allocation5 + $0x460] sm:$0xff]  ;;  %v12021_v42 = vcombine.low %v570_v22, %v578_v33 }
 0x263   :  { %6024 = vmatprep.subr.bf16.mxu0 %v11830_v46  ;;  %6065 = vmatprep.subr.bf16.mxu1 %v12086_v49  ;;  %v554_v13 = vld [vmem:[#allocation5 + $0xc20] sm:$0xff]  ;;  %v11750_v44 = vcombine.high %v298_v36, %v306_v38  ;;  %v11749_v53 = vcombine.low %v298_v36, %v306_v38  ;;  %v235_v36 = vld [vmem:[#allocation5 + $0x228] sm:$0xff] }
 0x264   :  { %v562_v40 = vld [vmem:[#allocation5 + $0xc60] sm:$0xff]  ;;  %v243_v38 = vld [vmem:[#allocation5 + $0x268] sm:$0xff] }
 0x265   :  { %v12006_v46 = vcombine.high %v554_v13, %v562_v40  ;;  %v794_v49 = vld [vmem:[#allocation5 + $0x13a0] sm:$0xff] }
 0x266   :  { %6025 = vmatpush2.bf16.msra.mxu0 %v11829_v54  ;;  %6066 = vmatpush2.bf16.msra.mxu1 %v12085_v29  ;;  %v802_v51 = vld [vmem:[#allocation5 + $0x13e0] sm:$0xff]  ;;  %v12005_v54 = vcombine.low %v554_v13, %v562_v40 }
 0x267   :  { %6026 = vmatprep.subr.bf16.mxu0 %v11814_v59  ;;  %6067 = vmatprep.subr.bf16.mxu1 %v12070_v60  ;;  %v12246_v29 = vcombine.high %v794_v49, %v802_v51  ;;  %v11736_v59 = vcombine.high %v283_v21, %v291_v52  ;;  %v778_v60 = vld [vmem:[#allocation5 + $0x1320] sm:$0xff]  ;;  %v12245_v63 = vcombine.low %v794_v49, %v802_v51 }
 0x268   :  { %v786_v27 = vld [vmem:[#allocation5 + $0x1360] sm:$0xff]  ;;  %v11688_v49 = vcombine.high %v235_v36, %v243_v38 }
 0x269   :  { %v770_v37 = vld [vmem:[#allocation5 + $0x12e0] sm:$0xff] }
 0x26a   :  { %6027 = vmatpush2.bf16.msra.mxu0 %v11813_v2  ;;  %6068 = vmatpush2.bf16.msra.mxu1 %v12069_v3  ;;  %v11735_v2 = vcombine.low %v283_v21, %v291_v52  ;;  %v12230_v3 = vcombine.high %v778_v60, %v786_v27  ;;  %v730_v51 = vld [vmem:[#allocation5 + $0x11a0] sm:$0xff]  ;;  %v219_v52 = vld [vmem:[#allocation5 + $0x1a8] sm:$0xff] }
 0x26b   :  { %6028 = vmatprep.subr.bf16.mxu0 %v11798_v4  ;;  %6069 = vmatprep.subr.bf16.mxu1 %v12054_v7  ;;  %v11720_v4 = vcombine.high %v267_v28, %v275_v61  ;;  %v762_v7 = vld [vmem:[#allocation5 + $0x12a0] sm:$0xff]  ;;  %v203_v61 = vld [vmem:[#allocation5 + $0x128] sm:$0xff] }
 0x26c   :  { %v12214_v20 = vcombine.high %v762_v7, %v770_v37  ;;  %v738_v21 = vld [vmem:[#allocation5 + $0x11e0] sm:$0xff] }
 0x26d   :  { %v722_v28 = vld [vmem:[#allocation5 + $0x1160] sm:$0xff] }
 0x26e   :  { %6029 = vmatpush2.bf16.msra.mxu0 %v11797_v12  ;;  %6070 = vmatpush2.bf16.msra.mxu1 %v12053_v16 }
 0x26f   :  { %6030 = vmatprep.subr.bf16.mxu0 %v11782_v18  ;;  %6071 = vmatprep.subr.bf16.mxu1 %v12038_v24  ;;  %v12229_v18 = vcombine.low %v778_v60, %v786_v27  ;;  %v714_v27 = vld [vmem:[#allocation5 + $0x1120] sm:$0xff] }
 0x272   :  { %6031 = vmatpush2.bf16.msra.mxu0 %v11781_v34  ;;  %6072 = vmatpush2.bf16.msra.mxu1 %v12037_v32  ;;  %v11704_v32 = vcombine.high %v251_v9, %v259_v11 }
 0x273   :  { %6032 = vmatprep.subr.bf16.mxu0 %v11766_v35  ;;  %6073 = vmatprep.subr.bf16.mxu1 %v12022_v43  ;;  %v746_v35 = vld [vmem:[#allocation5 + $0x1220] sm:$0xff] }
 0x274   :  { %v754_v43 = vld [vmem:[#allocation5 + $0x1260] sm:$0xff] }
 0x276   :  { %6033 = vmatpush2.bf16.msra.mxu0 %v11765_v41  ;;  %6074 = vmatpush2.bf16.msra.mxu1 %v12021_v42  ;;  %v12213_v41 = vcombine.low %v762_v7, %v770_v37  ;;  %v698_v37 = vld [vmem:[#allocation5 + $0x10a0] sm:$0xff] }
 0x277   :  { %6034 = vmatprep.subr.bf16.mxu0 %v11750_v44  ;;  %6075 = vmatprep.subr.bf16.mxu1 %v12006_v46  ;;  %v12198_v44 = vcombine.high %v746_v35, %v754_v43 }
 0x27a   :  { %6035 = vmatpush2.bf16.msra.mxu0 %v11749_v53  ;;  %6076 = vmatpush2.bf16.msra.mxu1 %v12005_v54  ;;  %v227_v53 = vld [vmem:[#allocation5 + $0x1e8] sm:$0xff]  ;;  %v12197_v54 = vcombine.low %v746_v35, %v754_v43 }
 0x27b   :  { %6086 = vmatprep.subr.bf16.mxu0 %v12246_v29  ;;  %6127 = vmatprep.subr.bf16.mxu1 %v11736_v59  ;;  %v11687_v29 = vcombine.low %v235_v36, %v243_v38  ;;  %v12182_v59 = vcombine.high %v730_v51, %v738_v21  ;;  %v11672_v60 = vcombine.high %v219_v52, %v227_v53  ;;  %v922_v36 = vld [vmem:[#allocation5 + $0x17a0] sm:$0xff] }
 0x27c   :  { %v930_v38 = vld [vmem:[#allocation5 + $0x17e0] sm:$0xff] }
 0x27d   :  { %v5792_v39 = vpop.f32.mrf.mxu0  ;;  %6037 = vmatmul.mubr.bf16.vlgmr.msra.gmra.mxu0 %v14471_v30  ;;  %v5833_v16 = vpop.f32.mrf.mxu1  ;;  %6078 = vmatmul.mubr.bf16.vlgmr.msra.gmra.mxu1 %v14475_v31 }
 0x27e   :  { %v5793_v12 = vadd.f32 %v5792_v39, %v14501_v5  ;;  %6087 = vmatpush1.bf16.msra.mxu0 %v12245_v63  ;;  %6128 = vmatpush1.bf16.msra.mxu1 %v11735_v2  ;;  %v211_v63 = vld [vmem:[#allocation5 + $0x168] sm:$0xff]  ;;  %v12181_v2 = vcombine.low %v730_v51, %v738_v21  ;;  %v706_v39 = vld [vmem:[#allocation5 + $0x10e0] sm:$0xff] }
 0x27f   :  { %v5794_v24 = vpop.f32.mrf.mxu0  ;;  %6088 = vmatprep.subr.bf16.mxu0 %v12230_v3  ;;  %v5835_v34 = vpop.f32.mrf.mxu1  ;;  %6129 = vmatprep.subr.bf16.mxu1 %v11720_v4  ;;  %v11671_v3 = vcombine.low %v219_v52, %v227_v53  ;;  %v12166_v4 = vcombine.high %v714_v27, %v722_v28  ;;  %v11656_v7 = vcombine.high %v203_v61, %v211_v63  ;;  %v914_v51 = vld [vmem:[#allocation5 + $0x1760] sm:$0xff]  ;;  %v395_v21 = vld [vmem:[#allocation5 + $0x728] sm:$0xff] }
 0x280   :  { %v14568_v22 = vadd.f32 %v5833_v16, %v5793_v12  ;;  %v5795_v33 = vadd.f32 %v5794_v24, %v14505_v8  ;;  %6118 = vmatprep.mubr.bf16.mxu0 %v14479_v15  ;;  %6159 = vmatprep.mubr.bf16.mxu1 %v14455_v25  ;;  %v11703_v8 = vcombine.low %v251_v9, %v259_v11  ;;  %v187_v9 = vld [vmem:[#allocation5 + $0xa8] sm:$0xff] }
 0x281   :  { %v5796_v5 = vpop.f32.mrf.mxu0  ;;  %v5837_v40 = vpop.f32.mrf.mxu1  ;;  %v195_v11 = vld [vmem:[#allocation5 + $0xe8] sm:$0xff]  ;;  %v12165_v12 = vcombine.low %v714_v27, %v722_v28  ;;  %v11655_v16 = vcombine.low %v203_v61, %v211_v63  ;;  %v12373_v53 = vcombine.low %v922_v36, %v930_v38  ;;  %v898_v27 = vld [vmem:[#allocation5 + $0x16e0] sm:$0xff] }
 0x282   :  { %v14573_v13 = vadd.f32 %v5835_v34, %v5795_v33  ;;  %6089 = vmatpush1.bf16.msra.mxu0 %v12229_v18  ;;  %6130 = vmatpush1.bf16.msra.mxu1 %v11719_v19  ;;  %v12150_v18 = vcombine.high %v698_v37, %v706_v39  ;;  %v11640_v24 = vcombine.high %v187_v9, %v195_v11  ;;  %v682_v19 = vld [vmem:[#allocation5 + $0x1020] sm:$0xff]  ;;  %v171_v33 = vld [vmem:[#allocation5 + $0x28] sm:$0xff] }
 0x283   :  { %v5797_v42 = vpop.f32.mrf.mxu0  ;;  %6090 = vmatprep.subr.bf16.mxu0 %v12214_v20  ;;  %v5838_v46 = vpop.f32.mrf.mxu1  ;;  %6131 = vmatprep.subr.bf16.mxu1 %v11704_v32  ;;  %v690_v20 = vld [vmem:[#allocation5 + $0x1060] sm:$0xff]  ;;  %v179_v34 = vld [vmem:[#allocation5 + $0x68] sm:$0xff]  ;;  %v12149_v32 = vcombine.low %v698_v37, %v706_v39  ;;  %v11639_v35 = vcombine.low %v187_v9, %v195_v11 }
 0x284   :  { %v12134_v43 = vcombine.high %v682_v19, %v690_v20  ;;  %v11624_v5 = vcombine.high %v171_v33, %v179_v34  ;;  %v411_v40 = vld [vmem:[#allocation5 + $0x7a8] sm:$0xff]  ;;  %v12133_v42 = vcombine.low %v682_v19, %v690_v20  ;;  %v882_v37 = vld [vmem:[#allocation5 + $0x1660] sm:$0xff] }
 0x285   :  { %v403_v52 = vld [vmem:[#allocation5 + $0x768] sm:$0xff]  ;;  %v866_v19 = vld [vmem:[#allocation5 + $0x15e0] sm:$0xff] }
 0x286   :  { %6091 = vmatpush1.bf16.msra.mxu0 %v12213_v41  ;;  %6132 = vmatpush1.bf16.msra.mxu1 %v11703_v8  ;;  %v419_v41 = vld [vmem:[#allocation5 + $0x7e8] sm:$0xff]  ;;  %v11623_v8 = vcombine.low %v171_v33, %v179_v34 }
 0x287   :  { %6092 = vmatprep.subr.bf16.mxu0 %v12198_v44  ;;  %6133 = vmatprep.subr.bf16.mxu1 %v11688_v49  ;;  %v12374_v44 = vcombine.high %v922_v36, %v930_v38  ;;  %v11864_v46 = vcombine.high %v411_v40, %v419_v41  ;;  %v906_v49 = vld [vmem:[#allocation5 + $0x1720] sm:$0xff]  ;;  %v379_v28 = vld [vmem:[#allocation5 + $0x6a8] sm:$0xff] }
 0x288   :  { %v387_v61 = vld [vmem:[#allocation5 + $0x6e8] sm:$0xff]  ;;  %v12357_v63 = vcombine.low %v906_v49, %v914_v51  ;;  %v850_v36 = vld [vmem:[#allocation5 + $0x1560] sm:$0xff] }
 0x289   :  { %v363_v39 = vld [vmem:[#allocation5 + $0x628] sm:$0xff] }
 0x28a   :  { %6093 = vmatpush1.bf16.msra.mxu0 %v12197_v54  ;;  %6134 = vmatpush1.bf16.msra.mxu1 %v11687_v29  ;;  %v11863_v54 = vcombine.low %v411_v40, %v419_v41  ;;  %v12358_v29 = vcombine.high %v906_v49, %v914_v51  ;;  %v371_v9 = vld [vmem:[#allocation5 + $0x668] sm:$0xff]  ;;  %v834_v49 = vld [vmem:[#allocation5 + $0x14e0] sm:$0xff] }
 0x28b   :  { %6094 = vmatprep.subr.bf16.mxu0 %v12182_v59  ;;  %6135 = vmatprep.subr.bf16.mxu1 %v11672_v60  ;;  %v11848_v59 = vcombine.high %v395_v21, %v403_v52  ;;  %v890_v60 = vld [vmem:[#allocation5 + $0x16a0] sm:$0xff]  ;;  %v347_v20 = vld [vmem:[#allocation5 + $0x5a8] sm:$0xff] }
 0x28c   :  { %v12341_v11 = vcombine.low %v890_v60, %v898_v27  ;;  %v355_v33 = vld [vmem:[#allocation5 + $0x5e8] sm:$0xff] }
 0x28d   :  { %v331_v38 = vld [vmem:[#allocation5 + $0x528] sm:$0xff] }
 0x28e   :  { %6095 = vmatpush1.bf16.msra.mxu0 %v12181_v2  ;;  %6136 = vmatpush1.bf16.msra.mxu1 %v11671_v3  ;;  %v11847_v2 = vcombine.low %v395_v21, %v403_v52  ;;  %v12342_v3 = vcombine.high %v890_v60, %v898_v27  ;;  %v339_v40 = vld [vmem:[#allocation5 + $0x568] sm:$0xff]  ;;  %v818_v60 = vld [vmem:[#allocation5 + $0x1460] sm:$0xff] }
 0x28f   :  { %6096 = vmatprep.subr.bf16.mxu0 %v12166_v4  ;;  %6137 = vmatprep.subr.bf16.mxu1 %v11656_v7  ;;  %v11832_v4 = vcombine.high %v379_v28, %v387_v61  ;;  %v874_v7 = vld [vmem:[#allocation5 + $0x1620] sm:$0xff]  ;;  %v315_v51 = vld [vmem:[#allocation5 + $0x4a8] sm:$0xff] }
 0x290   :  { %v12325_v34 = vcombine.low %v874_v7, %v882_v37  ;;  %v323_v21 = vld [vmem:[#allocation5 + $0x4e8] sm:$0xff] }
 0x291   :  { %v299_v27 = vld [vmem:[#allocation5 + $0x428] sm:$0xff] }
 0x292   :  { %6097 = vmatpush1.bf16.msra.mxu0 %v12165_v12  ;;  %6138 = vmatpush1.bf16.msra.mxu1 %v11655_v16  ;;  %v11831_v12 = vcombine.low %v379_v28, %v387_v61  ;;  %v12326_v16 = vcombine.high %v874_v7, %v882_v37  ;;  %v307_v28 = vld [vmem:[#allocation5 + $0x468] sm:$0xff] }
 0x293   :  { %6098 = vmatprep.subr.bf16.mxu0 %v12150_v18  ;;  %6139 = vmatprep.subr.bf16.mxu1 %v11640_v24  ;;  %v11816_v18 = vcombine.high %v363_v39, %v371_v9  ;;  %v858_v24 = vld [vmem:[#allocation5 + $0x15a0] sm:$0xff]  ;;  %v547_v7 = vld [vmem:[#allocation5 + $0xbe8] sm:$0xff] }
 0x294   :  { %v12309_v41 = vcombine.low %v858_v24, %v866_v19  ;;  %v795_v37 = vld [vmem:[#allocation5 + $0x13a8] sm:$0xff] }
 0x296   :  { %6099 = vmatpush1.bf16.msra.mxu0 %v12149_v32  ;;  %6140 = vmatpush1.bf16.msra.mxu1 %v11639_v35  ;;  %v11815_v32 = vcombine.low %v363_v39, %v371_v9  ;;  %v12310_v35 = vcombine.high %v858_v24, %v866_v19  ;;  %v803_v39 = vld [vmem:[#allocation5 + $0x13e8] sm:$0xff] }
 0x297   :  { %6100 = vmatprep.subr.bf16.mxu0 %v12134_v43  ;;  %6141 = vmatprep.subr.bf16.mxu1 %v11624_v5  ;;  %v11800_v43 = vcombine.high %v347_v20, %v355_v33  ;;  %v842_v5 = vld [vmem:[#allocation5 + $0x1520] sm:$0xff]  ;;  %v531_v24 = vld [vmem:[#allocation5 + $0xb68] sm:$0xff] }
 0x298   :  { %v12293_v52 = vcombine.low %v842_v5, %v850_v36  ;;  %v779_v19 = vld [vmem:[#allocation5 + $0x1328] sm:$0xff] }
 0x29a   :  { %6101 = vmatpush1.bf16.msra.mxu0 %v12133_v42  ;;  %6142 = vmatpush1.bf16.msra.mxu1 %v11623_v8  ;;  %v11799_v42 = vcombine.low %v347_v20, %v355_v33  ;;  %v12294_v8 = vcombine.high %v842_v5, %v850_v36  ;;  %v787_v20 = vld [vmem:[#allocation5 + $0x1368] sm:$0xff] }
 0x29b   :  { %6102 = vmatprep.subr.bf16.mxu0 %v12374_v44  ;;  %6143 = vmatprep.subr.bf16.mxu1 %v11864_v46  ;;  %v11784_v44 = vcombine.high %v331_v38, %v339_v40  ;;  %v826_v46 = vld [vmem:[#allocation5 + $0x14a0] sm:$0xff]  ;;  %v515_v5 = vld [vmem:[#allocation5 + $0xae8] sm:$0xff] }
 0x29c   :  { %v12277_v61 = vcombine.low %v826_v46, %v834_v49 }
 0x29e   :  { %6103 = vmatpush2.bf16.msra.mxu0 %v12373_v53  ;;  %6144 = vmatpush2.bf16.msra.mxu1 %v11863_v54  ;;  %v11783_v53 = vcombine.low %v331_v38, %v339_v40  ;;  %v12278_v54 = vcombine.high %v826_v46, %v834_v49  ;;  %v763_v38 = vld [vmem:[#allocation5 + $0x12a8] sm:$0xff]  ;;  %v12231_v46 = vcombine.low %v779_v19, %v787_v20 }
 0x29f   :  { %6104 = vmatprep.subr.bf16.mxu0 %v12358_v29  ;;  %6145 = vmatprep.subr.bf16.mxu1 %v11848_v59  ;;  %v11768_v29 = vcombine.high %v315_v51, %v323_v21  ;;  %v810_v59 = vld [vmem:[#allocation5 + $0x1420] sm:$0xff]  ;;  %v771_v40 = vld [vmem:[#allocation5 + $0x12e8] sm:$0xff] }
 0x2a0   :  { %v12261_v9 = vcombine.low %v810_v59, %v818_v60 }
 0x2a2   :  { %6105 = vmatpush2.bf16.msra.mxu0 %v12357_v63  ;;  %6146 = vmatpush2.bf16.msra.mxu1 %v11847_v2  ;;  %v11767_v63 = vcombine.low %v315_v51, %v323_v21  ;;  %v12262_v2 = vcombine.high %v810_v59, %v818_v60  ;;  %v755_v59 = vld [vmem:[#allocation5 + $0x1268] sm:$0xff] }
 0x2a3   :  { %6106 = vmatprep.subr.bf16.mxu0 %v12342_v3  ;;  %6147 = vmatprep.subr.bf16.mxu1 %v11832_v4  ;;  %v11752_v3 = vcombine.high %v299_v27, %v307_v28  ;;  %v539_v4 = vld [vmem:[#allocation5 + $0xba8] sm:$0xff] }
 0x2a4   :  { %v11991_v33 = vcombine.low %v539_v4, %v547_v7 }
 0x2a6   :  { %6107 = vmatpush2.bf16.msra.mxu0 %v12341_v11  ;;  %6148 = vmatpush2.bf16.msra.mxu1 %v11831_v12  ;;  %v11751_v11 = vcombine.low %v299_v27, %v307_v28  ;;  %v11992_v12 = vcombine.high %v539_v4, %v547_v7  ;;  %v483_v4 = vld [vmem:[#allocation5 + $0x9e8] sm:$0xff] }
 0x2a7   :  { %6108 = vmatprep.subr.bf16.mxu0 %v12326_v16  ;;  %6149 = vmatprep.subr.bf16.mxu1 %v11816_v18  ;;  %v12248_v16 = vcombine.high %v795_v37, %v803_v39  ;;  %v523_v18 = vld [vmem:[#allocation5 + $0xb28] sm:$0xff] }
 0x2a8   :  { %v731_v7 = vld [vmem:[#allocation5 + $0x11a8] sm:$0xff] }
 0x2aa   :  { %6109 = vmatpush2.bf16.msra.mxu0 %v12325_v34  ;;  %6150 = vmatpush2.bf16.msra.mxu1 %v11815_v32  ;;  %v12247_v34 = vcombine.low %v795_v37, %v803_v39  ;;  %v11976_v32 = vcombine.high %v523_v18, %v531_v24  ;;  %v739_v37 = vld [vmem:[#allocation5 + $0x11e8] sm:$0xff] }
 0x2ab   :  { %6110 = vmatprep.subr.bf16.mxu0 %v12310_v35  ;;  %6151 = vmatprep.subr.bf16.mxu1 %v11800_v43  ;;  %v12232_v35 = vcombine.high %v779_v19, %v787_v20  ;;  %v507_v43 = vld [vmem:[#allocation5 + $0xaa8] sm:$0xff] }
 0x2ac   :  { %v11960_v49 = vcombine.high %v507_v43, %v515_v5  ;;  %v11959_v27 = vcombine.low %v507_v43, %v515_v5  ;;  %v723_v19 = vld [vmem:[#allocation5 + $0x1168] sm:$0xff] }
 0x2ad   :  { %v451_v43 = vld [vmem:[#allocation5 + $0x8e8] sm:$0xff] }
 0x2ae   :  { %6111 = vmatpush2.bf16.msra.mxu0 %v12309_v41  ;;  %6152 = vmatpush2.bf16.msra.mxu1 %v11799_v42  ;;  %v699_v5 = vld [vmem:[#allocation5 + $0x10a8] sm:$0xff] }
 0x2af   :  { %6112 = vmatprep.subr.bf16.mxu0 %v12294_v8  ;;  %6153 = vmatprep.subr.bf16.mxu1 %v11784_v44  ;;  %v11975_v8 = vcombine.low %v523_v18, %v531_v24  ;;  %v467_v18 = vld [vmem:[#allocation5 + $0x968] sm:$0xff] }
 0x2b0   :  { %v715_v24 = vld [vmem:[#allocation5 + $0x1128] sm:$0xff] }
 0x2b2   :  { %6113 = vmatpush2.bf16.msra.mxu0 %v12293_v52  ;;  %6154 = vmatpush2.bf16.msra.mxu1 %v11783_v53  ;;  %v12216_v52 = vcombine.high %v763_v38, %v771_v40  ;;  %v499_v53 = vld [vmem:[#allocation5 + $0xa68] sm:$0xff] }
 0x2b3   :  { %6114 = vmatprep.subr.bf16.mxu0 %v12278_v54  ;;  %6155 = vmatprep.subr.bf16.mxu1 %v11768_v29  ;;  %v747_v29 = vld [vmem:[#allocation5 + $0x1228] sm:$0xff] }
 0x2b6   :  { %6115 = vmatpush2.bf16.msra.mxu0 %v12277_v61  ;;  %6156 = vmatpush2.bf16.msra.mxu1 %v11767_v63 }
 0x2b7   :  { %6116 = vmatprep.subr.bf16.mxu0 %v12262_v2  ;;  %6157 = vmatprep.subr.bf16.mxu1 %v11752_v3  ;;  %v12200_v2 = vcombine.high %v747_v29, %v755_v59  ;;  %v475_v3 = vld [vmem:[#allocation5 + $0x9a8] sm:$0xff] }
 0x2b8   :  { %v11927_v20 = vcombine.low %v475_v3, %v483_v4 }
 0x2ba   :  { %6117 = vmatpush2.bf16.msra.mxu0 %v12261_v9  ;;  %6158 = vmatpush2.bf16.msra.mxu1 %v11751_v11  ;;  %v12199_v9 = vcombine.low %v747_v29, %v755_v59  ;;  %v11928_v11 = vcombine.high %v475_v3, %v483_v4  ;;  %v651_v4 = vld [vmem:[#allocation5 + $0xf28] sm:$0xff] }
 0x2bb   :  { %6168 = vmatprep.subr.bf16.mxu0 %v11992_v12  ;;  %6209 = vmatprep.subr.bf16.mxu1 %v12248_v16  ;;  %v12184_v12 = vcombine.high %v731_v7, %v739_v37  ;;  %v459_v16 = vld [vmem:[#allocation5 + $0x928] sm:$0xff] }
 0x2bd   :  { %v5874_v36 = vpop.f32.mrf.mxu0  ;;  %6119 = vmatmul.mubr.bf16.vlgmr.msra.gmra.mxu0 %v14487_v45  ;;  %v14579_v42 = vpop.f32.mrf.mxu1  ;;  %6160 = vmatmul.mubr.bf16.vlgmr.msra.gmra.mxu1 %v14471_v30 }
 0x2be   :  { %v14577_v41 = vadd.f32 %v5874_v36, %v14568_v22  ;;  %6169 = vmatpush1.bf16.msra.mxu0 %v11991_v33  ;;  %6210 = vmatpush1.bf16.msra.mxu1 %v12247_v34  ;;  %v491_v22 = vld [vmem:[#allocation5 + $0xa28] sm:$0xff]  ;;  %v12183_v33 = vcombine.low %v731_v7, %v739_v37  ;;  %v11912_v34 = vcombine.high %v459_v16, %v467_v18 }
 0x2bf   :  { %v5876_v44 = vpop.f32.mrf.mxu0  ;;  %6170 = vmatprep.subr.bf16.mxu0 %v11976_v32  ;;  %v14585_v21 = vpop.f32.mrf.mxu1  ;;  %6211 = vmatprep.subr.bf16.mxu1 %v12232_v35  ;;  %v11944_v61 = vcombine.high %v491_v22, %v499_v53  ;;  %v11943_v39 = vcombine.low %v491_v22, %v499_v53  ;;  %v12168_v32 = vcombine.high %v715_v24, %v723_v19  ;;  %v443_v35 = vld [vmem:[#allocation5 + $0x8a8] sm:$0xff] }
 0x2c0   :  { %v14583_v51 = vadd.f32 %v5876_v44, %v14573_v13  ;;  %6200 = vmatprep.mubr.bf16.mxu0 %v14461_v26  ;;  %6241 = vmatprep.mubr.bf16.mxu1 %v14479_v15  ;;  %v12215_v13 = vcombine.low %v763_v38, %v771_v40  ;;  %v707_v36 = vld [vmem:[#allocation5 + $0x10e8] sm:$0xff]  ;;  %v11911_v38 = vcombine.low %v459_v16, %v467_v18 }
 0x2c1   :  { %v5878_v54 = vpop.f32.mrf.mxu0  ;;  %v5919_v60 = vpop.f32.mrf.mxu1  ;;  %v12167_v40 = vcombine.low %v715_v24, %v723_v19  ;;  %v12152_v44 = vcombine.high %v699_v5, %v707_v36  ;;  %v691_v22 = vld [vmem:[#allocation5 + $0x1068] sm:$0xff]  ;;  %v11895_v53 = vcombine.low %v443_v35, %v451_v43 }
 0x2c2   :  { %6171 = vmatpush1.bf16.msra.mxu0 %v11975_v8  ;;  %6212 = vmatpush1.bf16.msra.mxu1 %v12231_v46  ;;  %v11896_v8 = vcombine.high %v443_v35, %v451_v43  ;;  %v427_v46 = vld [vmem:[#allocation5 + $0x828] sm:$0xff]  ;;  %v12151_v54 = vcombine.low %v699_v5, %v707_v36 }
 0x2c3   :  { %v5879_v28 = vpop.f32.mrf.mxu0  ;;  %6172 = vmatprep.subr.bf16.mxu0 %v11960_v49  ;;  %v5920_v63 = vpop.f32.mrf.mxu1  ;;  %6213 = vmatprep.subr.bf16.mxu1 %v12216_v52  ;;  %v435_v49 = vld [vmem:[#allocation5 + $0x868] sm:$0xff] }
 0x2c4   :  { %v683_v52 = vld [vmem:[#allocation5 + $0x1028] sm:$0xff]  ;;  %v11880_v29 = vcombine.high %v427_v46, %v435_v49 }
 0x2c5   :  { %v12136_v59 = vcombine.high %v683_v52, %v691_v22  ;;  %v667_v60 = vld [vmem:[#allocation5 + $0xfa8] sm:$0xff]  ;;  %v12135_v63 = vcombine.low %v683_v52, %v691_v22 }
 0x2c6   :  { %6173 = vmatpush1.bf16.msra.mxu0 %v11959_v27  ;;  %6214 = vmatpush1.bf16.msra.mxu1 %v12215_v13  ;;  %v675_v27 = vld [vmem:[#allocation5 + $0xfe8] sm:$0xff] }
 0x2c7   :  { %6174 = vmatprep.subr.bf16.mxu0 %v11944_v61  ;;  %6215 = vmatprep.subr.bf16.mxu1 %v12200_v2  ;;  %v923_v28 = vld [vmem:[#allocation5 + $0x17a8] sm:$0xff]  ;;  %v11879_v61 = vcombine.low %v427_v46, %v435_v49  ;;  %v12120_v2 = vcombine.high %v667_v60, %v675_v27 }
 0x2c8   :  { %v931_v13 = vld [vmem:[#allocation5 + $0x17e8] sm:$0xff] }
 0x2c9   :  { %v12376_v3 = vcombine.high %v923_v28, %v931_v13  ;;  %v659_v7 = vld [vmem:[#allocation5 + $0xf68] sm:$0xff] }
 0x2ca   :  { %6175 = vmatpush1.bf16.msra.mxu0 %v11943_v39  ;;  %6216 = vmatpush1.bf16.msra.mxu1 %v12199_v9  ;;  %v907_v37 = vld [vmem:[#allocation5 + $0x1728] sm:$0xff]  ;;  %v12119_v9 = vcombine.low %v667_v60, %v675_v27 }
 0x2cb   :  { %6176 = vmatprep.subr.bf16.mxu0 %v11928_v11  ;;  %6217 = vmatprep.subr.bf16.mxu1 %v12184_v12  ;;  %v915_v39 = vld [vmem:[#allocation5 + $0x1768] sm:$0xff]  ;;  %v12375_v11 = vcombine.low %v923_v28, %v931_v13  ;;  %v12104_v12 = vcombine.high %v651_v4, %v659_v7 }
 0x2cc   :  { %v12360_v16 = vcombine.high %v907_v37, %v915_v39  ;;  %v635_v18 = vld [vmem:[#allocation5 + $0xea8] sm:$0xff] }
 0x2cd   :  { %v643_v24 = vld [vmem:[#allocation5 + $0xee8] sm:$0xff] }
 0x2ce   :  { %6177 = vmatpush1.bf16.msra.mxu0 %v11927_v20  ;;  %6218 = vmatpush1.bf16.msra.mxu1 %v12183_v33  ;;  %v891_v19 = vld [vmem:[#allocation5 + $0x16a8] sm:$0xff]  ;;  %v12103_v33 = vcombine.low %v651_v4, %v659_v7 }
 0x2cf   :  { %6178 = vmatprep.subr.bf16.mxu0 %v11912_v34  ;;  %6219 = vmatprep.subr.bf16.mxu1 %v12168_v32  ;;  %v899_v20 = vld [vmem:[#allocation5 + $0x16e8] sm:$0xff]  ;;  %v12359_v34 = vcombine.low %v907_v37, %v915_v39  ;;  %v12088_v32 = vcombine.high %v635_v18, %v643_v24 }
 0x2d0   :  { %v12344_v35 = vcombine.high %v891_v19, %v899_v20  ;;  %v619_v43 = vld [vmem:[#allocation5 + $0xe28] sm:$0xff] }
 0x2d1   :  { %v627_v5 = vld [vmem:[#allocation5 + $0xe68] sm:$0xff] }
 0x2d2   :  { %6179 = vmatpush1.bf16.msra.mxu0 %v11911_v38  ;;  %6220 = vmatpush1.bf16.msra.mxu1 %v12167_v40  ;;  %v875_v36 = vld [vmem:[#allocation5 + $0x1628] sm:$0xff]  ;;  %v12087_v40 = vcombine.low %v635_v18, %v643_v24 }
 0x2d3   :  { %6180 = vmatprep.subr.bf16.mxu0 %v11896_v8  ;;  %6221 = vmatprep.subr.bf16.mxu1 %v12152_v44  ;;  %v883_v38 = vld [vmem:[#allocation5 + $0x1668] sm:$0xff]  ;;  %v12343_v8 = vcombine.low %v891_v19, %v899_v20  ;;  %v12072_v44 = vcombine.high %v619_v43, %v627_v5 }
 0x2d4   :  { %v12328_v46 = vcombine.high %v875_v36, %v883_v38  ;;  %v603_v49 = vld [vmem:[#allocation5 + $0xda8] sm:$0xff] }
 0x2d5   :  { %v611_v52 = vld [vmem:[#allocation5 + $0xde8] sm:$0xff] }
 0x2d6   :  { %6181 = vmatpush1.bf16.msra.mxu0 %v11895_v53  ;;  %6222 = vmatpush1.bf16.msra.mxu1 %v12151_v54  ;;  %v859_v22 = vld [vmem:[#allocation5 + $0x15a8] sm:$0xff]  ;;  %v12071_v54 = vcombine.low %v619_v43, %v627_v5  ;;  %v284_v5 = vld [vmem:[#allocation5 + $0x3b0] sm:$0xff] }
 0x2d7   :  { %6182 = vmatprep.subr.bf16.mxu0 %v11880_v29  ;;  %6223 = vmatprep.subr.bf16.mxu1 %v12136_v59  ;;  %v867_v53 = vld [vmem:[#allocation5 + $0x15e8] sm:$0xff]  ;;  %v12327_v29 = vcombine.low %v875_v36, %v883_v38  ;;  %v12056_v59 = vcombine.high %v603_v49, %v611_v52  ;;  %v292_v36 = vld [vmem:[#allocation5 + $0x3f0] sm:$0xff] }
 0x2d8   :  { %v12312_v60 = vcombine.high %v859_v22, %v867_v53  ;;  %v587_v27 = vld [vmem:[#allocation5 + $0xd28] sm:$0xff]  ;;  %v540_v38 = vld [vmem:[#allocation5 + $0xbb0] sm:$0xff] }
 0x2d9   :  { %v595_v28 = vld [vmem:[#allocation5 + $0xd68] sm:$0xff] }
 0x2da   :  { %6183 = vmatpush1.bf16.msra.mxu0 %v11879_v61  ;;  %6224 = vmatpush1.bf16.msra.mxu1 %v12135_v63  ;;  %v843_v13 = vld [vmem:[#allocation5 + $0x1528] sm:$0xff]  ;;  %v12055_v63 = vcombine.low %v603_v49, %v611_v52  ;;  %v268_v52 = vld [vmem:[#allocation5 + $0x330] sm:$0xff] }
 0x2db   :  { %6184 = vmatprep.subr.bf16.mxu0 %v12120_v2  ;;  %6225 = vmatprep.subr.bf16.mxu1 %v12376_v3  ;;  %v851_v61 = vld [vmem:[#allocation5 + $0x1568] sm:$0xff]  ;;  %v12311_v2 = vcombine.low %v859_v22, %v867_v53  ;;  %v12040_v3 = vcombine.high %v587_v27, %v595_v28  ;;  %v276_v22 = vld [vmem:[#allocation5 + $0x370] sm:$0xff] }
 0x2dc   :  { %v12296_v4 = vcombine.high %v843_v13, %v851_v61  ;;  %v571_v7 = vld [vmem:[#allocation5 + $0xca8] sm:$0xff]  ;;  %v524_v53 = vld [vmem:[#allocation5 + $0xb30] sm:$0xff] }
 0x2dd   :  { %v579_v37 = vld [vmem:[#allocation5 + $0xce8] sm:$0xff] }
 0x2de   :  { %6185 = vmatpush2.bf16.msra.mxu0 %v12119_v9  ;;  %6226 = vmatpush2.bf16.msra.mxu1 %v12375_v11  ;;  %v827_v39 = vld [vmem:[#allocation5 + $0x14a8] sm:$0xff]  ;;  %v12039_v11 = vcombine.low %v587_v27, %v595_v28  ;;  %v5916_v27 = vadd.f32 %v14579_v42, %v14503_v6 }
 0x2df   :  { %6186 = vmatprep.subr.bf16.mxu0 %v12104_v12  ;;  %6227 = vmatprep.subr.bf16.mxu1 %v12360_v16  ;;  %v835_v9 = vld [vmem:[#allocation5 + $0x14e8] sm:$0xff]  ;;  %v12295_v12 = vcombine.low %v843_v13, %v851_v61  ;;  %v12024_v16 = vcombine.high %v571_v7, %v579_v37  ;;  %v252_v13 = vld [vmem:[#allocation5 + $0x2b0] sm:$0xff] }
 0x2e0   :  { %v12280_v18 = vcombine.high %v827_v39, %v835_v9  ;;  %v555_v24 = vld [vmem:[#allocation5 + $0xc28] sm:$0xff]  ;;  %v260_v61 = vld [vmem:[#allocation5 + $0x2f0] sm:$0xff] }
 0x2e1   :  { %v563_v19 = vld [vmem:[#allocation5 + $0xc68] sm:$0xff] }
 0x2e2   :  { %6187 = vmatpush2.bf16.msra.mxu0 %v12103_v33  ;;  %6228 = vmatpush2.bf16.msra.mxu1 %v12359_v34  ;;  %v811_v20 = vld [vmem:[#allocation5 + $0x1428] sm:$0xff]  ;;  %v12023_v34 = vcombine.low %v571_v7, %v579_v37 }
 0x2e3   :  { %6188 = vmatprep.subr.bf16.mxu0 %v12088_v32  ;;  %6229 = vmatprep.subr.bf16.mxu1 %v12344_v35  ;;  %v819_v33 = vld [vmem:[#allocation5 + $0x1468] sm:$0xff]  ;;  %v12279_v32 = vcombine.low %v827_v39, %v835_v9  ;;  %v12008_v35 = vcombine.high %v555_v24, %v563_v19  ;;  %v11721_v39 = vcombine.low %v268_v52, %v276_v22 }
 0x2e4   :  { %v12264_v43 = vcombine.high %v811_v20, %v819_v33  ;;  %v11706_v9 = vcombine.high %v252_v13, %v260_v61 }
 0x2e6   :  { %6189 = vmatpush2.bf16.msra.mxu0 %v12087_v40  ;;  %6230 = vmatpush2.bf16.msra.mxu1 %v12343_v8  ;;  %v548_v40 = vld [vmem:[#allocation5 + $0xbf0] sm:$0xff]  ;;  %v12007_v8 = vcombine.low %v555_v24, %v563_v19 }
 0x2e7   :  { %6190 = vmatprep.subr.bf16.mxu0 %v12072_v44  ;;  %6231 = vmatprep.subr.bf16.mxu1 %v12328_v46  ;;  %v12263_v44 = vcombine.low %v811_v20, %v819_v33  ;;  %v11738_v46 = vcombine.high %v284_v5, %v292_v36  ;;  %v11994_v49 = vcombine.high %v540_v38, %v548_v40  ;;  %v236_v24 = vld [vmem:[#allocation5 + $0x230] sm:$0xff] }
 0x2e8   :  { %v244_v19 = vld [vmem:[#allocation5 + $0x270] sm:$0xff] }
 0x2e9   :  { %v500_v20 = vld [vmem:[#allocation5 + $0xa70] sm:$0xff] }
 0x2ea   :  { %6191 = vmatpush2.bf16.msra.mxu0 %v12071_v54  ;;  %6232 = vmatpush2.bf16.msra.mxu1 %v12327_v29  ;;  %v532_v54 = vld [vmem:[#allocation5 + $0xb70] sm:$0xff]  ;;  %v11737_v29 = vcombine.low %v284_v5, %v292_v36  ;;  %v11690_v5 = vcombine.high %v236_v24, %v244_v19 }
 0x2eb   :  { %6192 = vmatprep.subr.bf16.mxu0 %v12056_v59  ;;  %6233 = vmatprep.subr.bf16.mxu1 %v12312_v60  ;;  %v11993_v59 = vcombine.low %v540_v38, %v548_v40  ;;  %v11722_v60 = vcombine.high %v268_v52, %v276_v22  ;;  %v11978_v28 = vcombine.high %v524_v53, %v532_v54  ;;  %v220_v40 = vld [vmem:[#allocation5 + $0x1b0] sm:$0xff] }
 0x2ec   :  { %v11977_v42 = vcombine.low %v524_v53, %v532_v54  ;;  %v204_v54 = vld [vmem:[#allocation5 + $0x130] sm:$0xff] }
 0x2ee   :  { %6193 = vmatpush2.bf16.msra.mxu0 %v12055_v63  ;;  %6234 = vmatpush2.bf16.msra.mxu1 %v12311_v2  ;;  %v508_v2 = vld [vmem:[#allocation5 + $0xab0] sm:$0xff] }
 0x2ef   :  { %6194 = vmatprep.subr.bf16.mxu0 %v12040_v3  ;;  %6235 = vmatprep.subr.bf16.mxu1 %v12296_v4  ;;  %v516_v3 = vld [vmem:[#allocation5 + $0xaf0] sm:$0xff]  ;;  %v5918_v4 = vadd.f32 %v14585_v21, %v14507_v14 }
 0x2f0   :  { %v492_v21 = vld [vmem:[#allocation5 + $0xa30] sm:$0xff] }
 0x2f1   :  { %v11946_v38 = vcombine.high %v492_v21, %v500_v20  ;;  %v11945_v52 = vcombine.low %v492_v21, %v500_v20  ;;  %v412_v21 = vld [vmem:[#allocation5 + $0x7b0] sm:$0xff] }
 0x2f2   :  { %6195 = vmatpush2.bf16.msra.mxu0 %v12039_v11  ;;  %6236 = vmatpush2.bf16.msra.mxu1 %v12295_v12  ;;  %v420_v20 = vld [vmem:[#allocation5 + $0x7f0] sm:$0xff] }
 0x2f3   :  { %6196 = vmatprep.subr.bf16.mxu0 %v12024_v16  ;;  %6237 = vmatprep.subr.bf16.mxu1 %v12280_v18  ;;  %v11962_v18 = vcombine.high %v508_v2, %v516_v3 }
 0x2f6   :  { %6197 = vmatpush2.bf16.msra.mxu0 %v12023_v34  ;;  %6238 = vmatpush2.bf16.msra.mxu1 %v12279_v32  ;;  %v11705_v32 = vcombine.low %v252_v13, %v260_v61 }
 0x2f7   :  { %6198 = vmatprep.subr.bf16.mxu0 %v12008_v35  ;;  %6239 = vmatprep.subr.bf16.mxu1 %v12264_v43  ;;  %v11961_v43 = vcombine.low %v508_v2, %v516_v3  ;;  %v196_v2 = vld [vmem:[#allocation5 + $0xf0] sm:$0xff] }
 0x2f8   :  { %v444_v3 = vld [vmem:[#allocation5 + $0x8b0] sm:$0xff] }
 0x2fa   :  { %6199 = vmatpush2.bf16.msra.mxu0 %v12007_v8  ;;  %6240 = vmatpush2.bf16.msra.mxu1 %v12263_v44  ;;  %v228_v8 = vld [vmem:[#allocation5 + $0x1f0] sm:$0xff] }
 0x2fb   :  { %6250 = vmatprep.subr.bf16.mxu0 %v11738_v46  ;;  %6291 = vmatprep.subr.bf16.mxu1 %v11994_v49  ;;  %v476_v44 = vld [vmem:[#allocation5 + $0x9b0] sm:$0xff]  ;;  %v11689_v49 = vcombine.low %v236_v24, %v244_v19  ;;  %v11674_v22 = vcombine.high %v220_v40, %v228_v8 }
 0x2fc   :  { %v484_v46 = vld [vmem:[#allocation5 + $0x9f0] sm:$0xff] }
 0x2fd   :  { %v5956_v63 = vpop.f32.mrf.mxu0  ;;  %6201 = vmatmul.mubr.bf16.vlgmr.msra.gmra.mxu0 %v14475_v31  ;;  %v5997_v37 = vpop.f32.mrf.mxu1  ;;  %6242 = vmatmul.mubr.bf16.vlgmr.msra.gmra.mxu1 %v14487_v45  ;;  %v11930_v53 = vcombine.high %v476_v44, %v484_v46 }
 0x2fe   :  { %v5957_v7 = vadd.f32 %v5956_v63, %v5916_v27  ;;  %6251 = vmatpush1.bf16.msra.mxu0 %v11737_v29  ;;  %6292 = vmatpush1.bf16.msra.mxu1 %v11993_v59  ;;  %v212_v29 = vld [vmem:[#allocation5 + $0x170] sm:$0xff]  ;;  %v11673_v27 = vcombine.low %v220_v40, %v228_v8 }
 0x2ff   :  { %v5958_v6 = vpop.f32.mrf.mxu0  ;;  %6252 = vmatprep.subr.bf16.mxu0 %v11722_v60  ;;  %v5999_v16 = vpop.f32.mrf.mxu1  ;;  %6293 = vmatprep.subr.bf16.mxu1 %v11978_v28  ;;  %v460_v59 = vld [vmem:[#allocation5 + $0x930] sm:$0xff]  ;;  %v11929_v28 = vcombine.low %v476_v44, %v484_v46  ;;  %v11658_v13 = vcombine.high %v204_v54, %v212_v29  ;;  %v11865_v46 = vcombine.low %v412_v21, %v420_v20 }
 0x300   :  { %v14595_v11 = vadd.f32 %v5997_v37, %v5957_v7  ;;  %v5959_v12 = vadd.f32 %v5958_v6, %v5918_v4  ;;  %6282 = vmatprep.mubr.bf16.mxu0 %v14455_v25  ;;  %6323 = vmatprep.mubr.bf16.mxu1 %v14461_v26  ;;  %v468_v60 = vld [vmem:[#allocation5 + $0x970] sm:$0xff]  ;;  %v11657_v7 = vcombine.low %v204_v54, %v212_v29 }
 0x301   :  { %v5960_v14 = vpop.f32.mrf.mxu0  ;;  %v6001_v34 = vpop.f32.mrf.mxu1  ;;  %v11914_v61 = vcombine.high %v460_v59, %v468_v60  ;;  %v188_v63 = vld [vmem:[#allocation5 + $0xb0] sm:$0xff]  ;;  %v11913_v37 = vcombine.low %v460_v59, %v468_v60 }
 0x302   :  { %v14599_v33 = vadd.f32 %v5999_v16, %v5959_v12  ;;  %6253 = vmatpush1.bf16.msra.mxu0 %v11721_v39  ;;  %6294 = vmatpush1.bf16.msra.mxu1 %v11977_v42  ;;  %v452_v4 = vld [vmem:[#allocation5 + $0x8f0] sm:$0xff]  ;;  %v11642_v39 = vcombine.high %v188_v63, %v196_v2 }
 0x303   :  { %v5961_v35 = vpop.f32.mrf.mxu0  ;;  %6254 = vmatprep.subr.bf16.mxu0 %v11706_v9  ;;  %v6002_v36 = vpop.f32.mrf.mxu1  ;;  %6295 = vmatprep.subr.bf16.mxu1 %v11962_v18  ;;  %v11898_v6 = vcombine.high %v444_v3, %v452_v4  ;;  %v172_v42 = vld [vmem:[#allocation5 + $0x30] sm:$0xff]  ;;  %v11641_v18 = vcombine.low %v188_v63, %v196_v2  ;;  %v11897_v24 = vcombine.low %v444_v3, %v452_v4 }
 0x304   :  { %v180_v9 = vld [vmem:[#allocation5 + $0x70] sm:$0xff] }
 0x305   :  { %v428_v12 = vld [vmem:[#allocation5 + $0x830] sm:$0xff]  ;;  %v11626_v19 = vcombine.high %v172_v42, %v180_v9  ;;  %v11625_v35 = vcombine.low %v172_v42, %v180_v9 }
 0x306   :  { %6255 = vmatpush1.bf16.msra.mxu0 %v11705_v32  ;;  %6296 = vmatpush1.bf16.msra.mxu1 %v11961_v43  ;;  %v436_v16 = vld [vmem:[#allocation5 + $0x870] sm:$0xff] }
 0x307   :  { %6256 = vmatprep.subr.bf16.mxu0 %v11690_v5  ;;  %6297 = vmatprep.subr.bf16.mxu1 %v11946_v38  ;;  %v11882_v14 = vcombine.high %v428_v12, %v436_v16  ;;  %v668_v34 = vld [vmem:[#allocation5 + $0xfb0] sm:$0xff]  ;;  %v11881_v43 = vcombine.low %v428_v12, %v436_v16  ;;  %v11866_v5 = vcombine.high %v412_v21, %v420_v20 }
 0x308   :  { %v676_v32 = vld [vmem:[#allocation5 + $0xff0] sm:$0xff] }
 0x309   :  { %v12122_v36 = vcombine.high %v668_v34, %v676_v32  ;;  %v396_v38 = vld [vmem:[#allocation5 + $0x730] sm:$0xff] }
 0x30a   :  { %6257 = vmatpush1.bf16.msra.mxu0 %v11689_v49  ;;  %6298 = vmatpush1.bf16.msra.mxu1 %v11945_v52  ;;  %v404_v40 = vld [vmem:[#allocation5 + $0x770] sm:$0xff]  ;;  %v12121_v49 = vcombine.low %v668_v34, %v676_v32 }
 0x30b   :  { %6258 = vmatprep.subr.bf16.mxu0 %v11674_v22  ;;  %6299 = vmatprep.subr.bf16.mxu1 %v11930_v53  ;;  %v652_v8 = vld [vmem:[#allocation5 + $0xf30] sm:$0xff]  ;;  %v11850_v52 = vcombine.high %v396_v38, %v404_v40  ;;  %v11849_v60 = vcombine.low %v396_v38, %v404_v40 }
 0x30c   :  { %v660_v44 = vld [vmem:[#allocation5 + $0xf70] sm:$0xff] }
 0x30d   :  { %v12106_v22 = vcombine.high %v652_v8, %v660_v44  ;;  %v380_v53 = vld [vmem:[#allocation5 + $0x6b0] sm:$0xff] }
 0x30e   :  { %6259 = vmatpush1.bf16.msra.mxu0 %v11673_v27  ;;  %6300 = vmatpush1.bf16.msra.mxu1 %v11929_v28  ;;  %v388_v54 = vld [vmem:[#allocation5 + $0x6f0] sm:$0xff]  ;;  %v12105_v27 = vcombine.low %v652_v8, %v660_v44 }
 0x30f   :  { %6260 = vmatprep.subr.bf16.mxu0 %v11658_v13  ;;  %6301 = vmatprep.subr.bf16.mxu1 %v11914_v61  ;;  %v636_v29 = vld [vmem:[#allocation5 + $0xeb0] sm:$0xff]  ;;  %v11834_v28 = vcombine.high %v380_v53, %v388_v54  ;;  %v11833_v4 = vcombine.low %v380_v53, %v388_v54 }
 0x310   :  { %v644_v59 = vld [vmem:[#allocation5 + $0xef0] sm:$0xff] }
 0x311   :  { %v12090_v13 = vcombine.high %v636_v29, %v644_v59  ;;  %v364_v61 = vld [vmem:[#allocation5 + $0x630] sm:$0xff] }
 0x312   :  { %6261 = vmatpush1.bf16.msra.mxu0 %v11657_v7  ;;  %6302 = vmatpush1.bf16.msra.mxu1 %v11913_v37  ;;  %v372_v63 = vld [vmem:[#allocation5 + $0x670] sm:$0xff]  ;;  %v12089_v7 = vcombine.low %v636_v29, %v644_v59 }
 0x313   :  { %6262 = vmatprep.subr.bf16.mxu0 %v11642_v39  ;;  %6303 = vmatprep.subr.bf16.mxu1 %v11898_v6  ;;  %v620_v2 = vld [vmem:[#allocation5 + $0xe30] sm:$0xff]  ;;  %v11818_v37 = vcombine.high %v364_v61, %v372_v63  ;;  %v11817_v16 = vcombine.low %v364_v61, %v372_v63  ;;  %v285_v63 = vld [vmem:[#allocation5 + $0x3b8] sm:$0xff] }
 0x314   :  { %v628_v3 = vld [vmem:[#allocation5 + $0xe70] sm:$0xff] }
 0x315   :  { %v12074_v39 = vcombine.high %v620_v2, %v628_v3  ;;  %v348_v6 = vld [vmem:[#allocation5 + $0x5b0] sm:$0xff] }
 0x316   :  { %6263 = vmatpush1.bf16.msra.mxu0 %v11641_v18  ;;  %6304 = vmatpush1.bf16.msra.mxu1 %v11897_v24  ;;  %v356_v42 = vld [vmem:[#allocation5 + $0x5f0] sm:$0xff]  ;;  %v12073_v18 = vcombine.low %v620_v2, %v628_v3  ;;  %v293_v2 = vld [vmem:[#allocation5 + $0x3f8] sm:$0xff] }
 0x317   :  { %6264 = vmatprep.subr.bf16.mxu0 %v11626_v19  ;;  %6305 = vmatprep.subr.bf16.mxu1 %v11882_v14  ;;  %v604_v9 = vld [vmem:[#allocation5 + $0xdb0] sm:$0xff]  ;;  %v11802_v24 = vcombine.high %v348_v6, %v356_v42  ;;  %v11801_v32 = vcombine.low %v348_v6, %v356_v42  ;;  %v269_v42 = vld [vmem:[#allocation5 + $0x338] sm:$0xff] }
 0x318   :  { %v612_v12 = vld [vmem:[#allocation5 + $0xdf0] sm:$0xff] }
 0x319   :  { %v12058_v19 = vcombine.high %v604_v9, %v612_v12  ;;  %v332_v14 = vld [vmem:[#allocation5 + $0x530] sm:$0xff] }
 0x31a   :  { %6265 = vmatpush1.bf16.msra.mxu0 %v11625_v35  ;;  %6306 = vmatpush1.bf16.msra.mxu1 %v11881_v43  ;;  %v340_v21 = vld [vmem:[#allocation5 + $0x570] sm:$0xff]  ;;  %v12057_v35 = vcombine.low %v604_v9, %v612_v12  ;;  %v277_v9 = vld [vmem:[#allocation5 + $0x378] sm:$0xff] }
 0x31b   :  { %6266 = vmatprep.subr.bf16.mxu0 %v11866_v5  ;;  %6307 = vmatprep.subr.bf16.mxu1 %v12122_v36  ;;  %v588_v20 = vld [vmem:[#allocation5 + $0xd30] sm:$0xff]  ;;  %v11786_v43 = vcombine.high %v332_v14, %v340_v21  ;;  %v11785_v44 = vcombine.low %v332_v14, %v340_v21 }
 0x31c   :  { %v596_v34 = vld [vmem:[#allocation5 + $0xd70] sm:$0xff] }
 0x31d   :  { %v12042_v5 = vcombine.high %v588_v20, %v596_v34  ;;  %v316_v36 = vld [vmem:[#allocation5 + $0x4b0] sm:$0xff] }
 0x31e   :  { %6267 = vmatpush2.bf16.msra.mxu0 %v11865_v46  ;;  %6308 = vmatpush2.bf16.msra.mxu1 %v12121_v49  ;;  %v324_v38 = vld [vmem:[#allocation5 + $0x4f0] sm:$0xff]  ;;  %v12041_v46 = vcombine.low %v588_v20, %v596_v34  ;;  %v253_v20 = vld [vmem:[#allocation5 + $0x2b8] sm:$0xff] }
 0x31f   :  { %6268 = vmatprep.subr.bf16.mxu0 %v11850_v52  ;;  %6309 = vmatprep.subr.bf16.mxu1 %v12106_v22  ;;  %v572_v40 = vld [vmem:[#allocation5 + $0xcb0] sm:$0xff]  ;;  %v11770_v49 = vcombine.high %v316_v36, %v324_v38  ;;  %v11769_v59 = vcombine.low %v316_v36, %v324_v38  ;;  %v261_v34 = vld [vmem:[#allocation5 + $0x2f8] sm:$0xff]  ;;  %v11723_v36 = vcombine.low %v269_v42, %v277_v9 }
 0x320   :  { %v580_v8 = vld [vmem:[#allocation5 + $0xcf0] sm:$0xff] }
 0x321   :  { %v12026_v52 = vcombine.high %v572_v40, %v580_v8  ;;  %v300_v22 = vld [vmem:[#allocation5 + $0x430] sm:$0xff] }
 0x322   :  { %6269 = vmatpush2.bf16.msra.mxu0 %v11849_v60  ;;  %6310 = vmatpush2.bf16.msra.mxu1 %v12105_v27  ;;  %v308_v53 = vld [vmem:[#allocation5 + $0x470] sm:$0xff]  ;;  %v12025_v60 = vcombine.low %v572_v40, %v580_v8 }
 0x323   :  { %6270 = vmatprep.subr.bf16.mxu0 %v11834_v28  ;;  %6311 = vmatprep.subr.bf16.mxu1 %v12090_v13  ;;  %v556_v54 = vld [vmem:[#allocation5 + $0xc30] sm:$0xff]  ;;  %v11754_v27 = vcombine.high %v300_v22, %v308_v53  ;;  %v11753_v3 = vcombine.low %v300_v22, %v308_v53  ;;  %v237_v22 = vld [vmem:[#allocation5 + $0x238] sm:$0xff] }
 0x324   :  { %v564_v29 = vld [vmem:[#allocation5 + $0xc70] sm:$0xff]  ;;  %v245_v53 = vld [vmem:[#allocation5 + $0x278] sm:$0xff] }
 0x325   :  { %v12010_v28 = vcombine.high %v556_v54, %v564_v29  ;;  %v796_v13 = vld [vmem:[#allocation5 + $0x13b0] sm:$0xff] }
 0x326   :  { %6271 = vmatpush2.bf16.msra.mxu0 %v11833_v4  ;;  %6312 = vmatpush2.bf16.msra.mxu1 %v12089_v7  ;;  %v804_v61 = vld [vmem:[#allocation5 + $0x13f0] sm:$0xff]  ;;  %v12009_v4 = vcombine.low %v556_v54, %v564_v29 }
 0x327   :  { %6272 = vmatprep.subr.bf16.mxu0 %v11818_v37  ;;  %6313 = vmatprep.subr.bf16.mxu1 %v12074_v39  ;;  %v12250_v7 = vcombine.high %v796_v13, %v804_v61  ;;  %v11740_v37 = vcombine.high %v285_v63, %v293_v2  ;;  %v780_v39 = vld [vmem:[#allocation5 + $0x1330] sm:$0xff]  ;;  %v12249_v12 = vcombine.low %v796_v13, %v804_v61 }
 0x328   :  { %v788_v6 = vld [vmem:[#allocation5 + $0x1370] sm:$0xff]  ;;  %v11692_v13 = vcombine.high %v237_v22, %v245_v53 }
 0x329   :  { %v772_v14 = vld [vmem:[#allocation5 + $0x12f0] sm:$0xff] }
 0x32a   :  { %6273 = vmatpush2.bf16.msra.mxu0 %v11817_v16  ;;  %6314 = vmatpush2.bf16.msra.mxu1 %v12073_v18  ;;  %v11739_v16 = vcombine.low %v285_v63, %v293_v2  ;;  %v12234_v18 = vcombine.high %v780_v39, %v788_v6  ;;  %v732_v61 = vld [vmem:[#allocation5 + $0x11b0] sm:$0xff]  ;;  %v221_v2 = vld [vmem:[#allocation5 + $0x1b8] sm:$0xff] }
 0x32b   :  { %6274 = vmatprep.subr.bf16.mxu0 %v11802_v24  ;;  %6315 = vmatprep.subr.bf16.mxu1 %v12058_v19  ;;  %v11724_v24 = vcombine.high %v269_v42, %v277_v9  ;;  %v764_v19 = vld [vmem:[#allocation5 + $0x12b0] sm:$0xff]  ;;  %v205_v42 = vld [vmem:[#allocation5 + $0x138] sm:$0xff] }
 0x32c   :  { %v12218_v38 = vcombine.high %v764_v19, %v772_v14  ;;  %v740_v63 = vld [vmem:[#allocation5 + $0x11f0] sm:$0xff]  ;;  %v213_v9 = vld [vmem:[#allocation5 + $0x178] sm:$0xff] }
 0x32e   :  { %6275 = vmatpush2.bf16.msra.mxu0 %v11801_v32  ;;  %6316 = vmatpush2.bf16.msra.mxu1 %v12057_v35 }
 0x32f   :  { %6276 = vmatprep.subr.bf16.mxu0 %v11786_v43  ;;  %6317 = vmatprep.subr.bf16.mxu1 %v12042_v5  ;;  %v12233_v43 = vcombine.low %v780_v39, %v788_v6  ;;  %v716_v39 = vld [vmem:[#allocation5 + $0x1130] sm:$0xff] }
 0x330   :  { %v724_v6 = vld [vmem:[#allocation5 + $0x1170] sm:$0xff] }
 0x332   :  { %6277 = vmatpush2.bf16.msra.mxu0 %v11785_v44  ;;  %6318 = vmatpush2.bf16.msra.mxu1 %v12041_v46  ;;  %v11708_v46 = vcombine.high %v253_v20, %v261_v34 }
 0x333   :  { %6278 = vmatprep.subr.bf16.mxu0 %v11770_v49  ;;  %6319 = vmatprep.subr.bf16.mxu1 %v12026_v52  ;;  %v748_v49 = vld [vmem:[#allocation5 + $0x1230] sm:$0xff] }
 0x334   :  { %v756_v52 = vld [vmem:[#allocation5 + $0x1270] sm:$0xff] }
 0x336   :  { %6279 = vmatpush2.bf16.msra.mxu0 %v11769_v59  ;;  %6320 = vmatpush2.bf16.msra.mxu1 %v12025_v60  ;;  %v12217_v59 = vcombine.low %v764_v19, %v772_v14  ;;  %v700_v19 = vld [vmem:[#allocation5 + $0x10b0] sm:$0xff] }
 0x337   :  { %6280 = vmatprep.subr.bf16.mxu0 %v11754_v27  ;;  %6321 = vmatprep.subr.bf16.mxu1 %v12010_v28  ;;  %v12202_v27 = vcombine.high %v748_v49, %v756_v52  ;;  %v708_v14 = vld [vmem:[#allocation5 + $0x10f0] sm:$0xff] }
 0x33a   :  { %6281 = vmatpush2.bf16.msra.mxu0 %v11753_v3  ;;  %6322 = vmatpush2.bf16.msra.mxu1 %v12009_v4  ;;  %v229_v3 = vld [vmem:[#allocation5 + $0x1f8] sm:$0xff]  ;;  %v12201_v4 = vcombine.low %v748_v49, %v756_v52 }
 0x33b   :  { %6332 = vmatprep.subr.bf16.mxu0 %v12250_v7  ;;  %6373 = vmatprep.subr.bf16.mxu1 %v11740_v37  ;;  %v12186_v7 = vcombine.high %v732_v61, %v740_v63  ;;  %v11676_v37 = vcombine.high %v221_v2, %v229_v3 }
 0x33d   :  { %v6038_v21 = vpop.f32.mrf.mxu0  ;;  %6283 = vmatmul.mubr.bf16.vlgmr.msra.gmra.mxu0 %v14471_v30  ;;  %v6079_v35 = vpop.f32.mrf.mxu1  ;;  %6324 = vmatmul.mubr.bf16.vlgmr.msra.gmra.mxu1 %v14475_v31 }
 0x33e   :  { %v6039_v32 = vadd.f32 %v6038_v21, %v14509_v55  ;;  %6333 = vmatpush1.bf16.msra.mxu0 %v12249_v12  ;;  %6374 = vmatpush1.bf16.msra.mxu1 %v11739_v16  ;;  %v12185_v12 = vcombine.low %v732_v61, %v740_v63  ;;  %v11675_v16 = vcombine.low %v221_v2, %v229_v3  ;;  %v189_v21 = vld [vmem:[#allocation5 + $0xb8] sm:$0xff] }
 0x33f   :  { %v6040_v5 = vpop.f32.mrf.mxu0  ;;  %6334 = vmatprep.subr.bf16.mxu0 %v12234_v18  ;;  %v6081_v44 = vpop.f32.mrf.mxu1  ;;  %6375 = vmatprep.subr.bf16.mxu1 %v11724_v24  ;;  %v12170_v18 = vcombine.high %v716_v39, %v724_v6  ;;  %v11660_v24 = vcombine.high %v205_v42, %v213_v9  ;;  %v397_v61 = vld [vmem:[#allocation5 + $0x738] sm:$0xff] }
 0x340   :  { %v14604_v40 = vadd.f32 %v6079_v35, %v6039_v32  ;;  %v6041_v8 = vadd.f32 %v6040_v5, %v14513_v58  ;;  %6364 = vmatprep.mubr.bf16.mxu0 %v14479_v15  ;;  %6405 = vmatprep.mubr.bf16.mxu1 %v14455_v25  ;;  %v11707_v58 = vcombine.low %v253_v20, %v261_v34  ;;  %v197_v20 = vld [vmem:[#allocation5 + $0xf8] sm:$0xff]  ;;  %v684_v5 = vld [vmem:[#allocation5 + $0x1030] sm:$0xff] }
 0x341   :  { %v6042_v55 = vpop.f32.mrf.mxu0  ;;  %v6083_v29 = vpop.f32.mrf.mxu1  ;;  %v11691_v25 = vcombine.low %v237_v22, %v245_v53  ;;  %v12169_v34 = vcombine.low %v716_v39, %v724_v6  ;;  %v11659_v32 = vcombine.low %v205_v42, %v213_v9  ;;  %v12154_v35 = vcombine.high %v700_v19, %v708_v14  ;;  %v932_v22 = vld [vmem:[#allocation5 + $0x17f0] sm:$0xff]  ;;  %v413_v53 = vld [vmem:[#allocation5 + $0x7b8] sm:$0xff] }
 0x342   :  { %v14609_v54 = vadd.f32 %v6081_v44, %v6041_v8  ;;  %6335 = vmatpush1.bf16.msra.mxu0 %v12233_v43  ;;  %6376 = vmatpush1.bf16.msra.mxu1 %v11723_v36  ;;  %v11644_v43 = vcombine.high %v189_v21, %v197_v20  ;;  %v692_v36 = vld [vmem:[#allocation5 + $0x1070] sm:$0xff]  ;;  %v181_v8 = vld [vmem:[#allocation5 + $0x78] sm:$0xff]  ;;  %v12153_v44 = vcombine.low %v700_v19, %v708_v14 }
 0x343   :  { %v6043_v60 = vpop.f32.mrf.mxu0  ;;  %6336 = vmatprep.subr.bf16.mxu0 %v12218_v38  ;;  %v6084_v28 = vpop.f32.mrf.mxu1  ;;  %6377 = vmatprep.subr.bf16.mxu1 %v11708_v46  ;;  %v173_v38 = vld [vmem:[#allocation5 + $0x38] sm:$0xff]  ;;  %v11643_v46 = vcombine.low %v189_v21, %v197_v20  ;;  %v12138_v49 = vcombine.high %v684_v5, %v692_v36  ;;  %v924_v55 = vld [vmem:[#allocation5 + $0x17b0] sm:$0xff] }
 0x344   :  { %v11628_v52 = vcombine.high %v173_v38, %v181_v8  ;;  %v421_v29 = vld [vmem:[#allocation5 + $0x7f8] sm:$0xff]  ;;  %v11627_v60 = vcombine.low %v173_v38, %v181_v8  ;;  %v908_v28 = vld [vmem:[#allocation5 + $0x1730] sm:$0xff]  ;;  %v12377_v2 = vcombine.low %v924_v55, %v932_v22 }
 0x345   :  { %v405_v63 = vld [vmem:[#allocation5 + $0x778] sm:$0xff]  ;;  %v11867_v3 = vcombine.low %v413_v53, %v421_v29 }
 0x346   :  { %6337 = vmatpush1.bf16.msra.mxu0 %v12217_v59  ;;  %6378 = vmatpush1.bf16.msra.mxu1 %v11707_v58  ;;  %v12137_v59 = vcombine.low %v684_v5, %v692_v36  ;;  %v12378_v58 = vcombine.high %v924_v55, %v932_v22  ;;  %v381_v39 = vld [vmem:[#allocation5 + $0x6b8] sm:$0xff]  ;;  %v11851_v9 = vcombine.low %v397_v61, %v405_v63 }
 0x347   :  { %6338 = vmatprep.subr.bf16.mxu0 %v12202_v27  ;;  %6379 = vmatprep.subr.bf16.mxu1 %v11692_v13  ;;  %v11868_v27 = vcombine.high %v413_v53, %v421_v29  ;;  %v916_v13 = vld [vmem:[#allocation5 + $0x1770] sm:$0xff]  ;;  %v389_v6 = vld [vmem:[#allocation5 + $0x6f8] sm:$0xff] }
 0x348   :  { %v12361_v42 = vcombine.low %v908_v28, %v916_v13  ;;  %v365_v19 = vld [vmem:[#allocation5 + $0x638] sm:$0xff]  ;;  %v11835_v20 = vcombine.low %v381_v39, %v389_v6 }
 0x349   :  { %v373_v14 = vld [vmem:[#allocation5 + $0x678] sm:$0xff] }
 0x34a   :  { %6339 = vmatpush1.bf16.msra.mxu0 %v12201_v4  ;;  %6380 = vmatpush1.bf16.msra.mxu1 %v11691_v25  ;;  %v12362_v4 = vcombine.high %v908_v28, %v916_v13  ;;  %v11852_v25 = vcombine.high %v397_v61, %v405_v63  ;;  %v349_v5 = vld [vmem:[#allocation5 + $0x5b8] sm:$0xff]  ;;  %v11819_v8 = vcombine.low %v365_v19, %v373_v14 }
 0x34b   :  { %6340 = vmatprep.subr.bf16.mxu0 %v12186_v7  ;;  %6381 = vmatprep.subr.bf16.mxu1 %v11676_v37  ;;  %v892_v7 = vld [vmem:[#allocation5 + $0x16b0] sm:$0xff]  ;;  %v357_v36 = vld [vmem:[#allocation5 + $0x5f8] sm:$0xff] }
 0x34c   :  { %v900_v37 = vld [vmem:[#allocation5 + $0x16f0] sm:$0xff]  ;;  %v333_v55 = vld [vmem:[#allocation5 + $0x538] sm:$0xff]  ;;  %v11803_v29 = vcombine.low %v349_v5, %v357_v36 }
 0x34d   :  { %v12345_v21 = vcombine.low %v892_v7, %v900_v37  ;;  %v341_v22 = vld [vmem:[#allocation5 + $0x578] sm:$0xff] }
 0x34e   :  { %6341 = vmatpush1.bf16.msra.mxu0 %v12185_v12  ;;  %6382 = vmatpush1.bf16.msra.mxu1 %v11675_v16  ;;  %v12346_v12 = vcombine.high %v892_v7, %v900_v37  ;;  %v11836_v16 = vcombine.high %v381_v39, %v389_v6  ;;  %v317_v28 = vld [vmem:[#allocation5 + $0x4b8] sm:$0xff]  ;;  %v11787_v63 = vcombine.low %v333_v55, %v341_v22 }
 0x34f   :  { %6342 = vmatprep.subr.bf16.mxu0 %v12170_v18  ;;  %6383 = vmatprep.subr.bf16.mxu1 %v11660_v24  ;;  %v876_v18 = vld [vmem:[#allocation5 + $0x1630] sm:$0xff]  ;;  %v325_v13 = vld [vmem:[#allocation5 + $0x4f8] sm:$0xff] }
 0x350   :  { %v884_v24 = vld [vmem:[#allocation5 + $0x1670] sm:$0xff]  ;;  %v301_v7 = vld [vmem:[#allocation5 + $0x438] sm:$0xff]  ;;  %v11771_v6 = vcombine.low %v317_v28, %v325_v13 }
 0x351   :  { %v12329_v38 = vcombine.low %v876_v18, %v884_v24  ;;  %v309_v37 = vld [vmem:[#allocation5 + $0x478] sm:$0xff] }
 0x352   :  { %6343 = vmatpush1.bf16.msra.mxu0 %v12169_v34  ;;  %6384 = vmatpush1.bf16.msra.mxu1 %v11659_v32  ;;  %v12330_v34 = vcombine.high %v876_v18, %v884_v24  ;;  %v11820_v32 = vcombine.high %v365_v19, %v373_v14  ;;  %v797_v18 = vld [vmem:[#allocation5 + $0x13b8] sm:$0xff]  ;;  %v11755_v14 = vcombine.low %v301_v7, %v309_v37 }
 0x353   :  { %6344 = vmatprep.subr.bf16.mxu0 %v12154_v35  ;;  %6385 = vmatprep.subr.bf16.mxu1 %v11644_v43  ;;  %v860_v35 = vld [vmem:[#allocation5 + $0x15b0] sm:$0xff]  ;;  %v805_v24 = vld [vmem:[#allocation5 + $0x13f8] sm:$0xff] }
 0x354   :  { %v868_v43 = vld [vmem:[#allocation5 + $0x15f0] sm:$0xff] }
 0x355   :  { %v12313_v53 = vcombine.low %v860_v35, %v868_v43 }
 0x356   :  { %6345 = vmatpush1.bf16.msra.mxu0 %v12153_v44  ;;  %6386 = vmatpush1.bf16.msra.mxu1 %v11643_v46  ;;  %v12314_v44 = vcombine.high %v860_v35, %v868_v43  ;;  %v11804_v46 = vcombine.high %v349_v5, %v357_v36  ;;  %v781_v35 = vld [vmem:[#allocation5 + $0x1338] sm:$0xff]  ;;  %v12251_v36 = vcombine.low %v797_v18, %v805_v24 }
 0x357   :  { %6346 = vmatprep.subr.bf16.mxu0 %v12138_v49  ;;  %6387 = vmatprep.subr.bf16.mxu1 %v11628_v52  ;;  %v844_v49 = vld [vmem:[#allocation5 + $0x1530] sm:$0xff]  ;;  %v789_v43 = vld [vmem:[#allocation5 + $0x1378] sm:$0xff] }
 0x358   :  { %v852_v52 = vld [vmem:[#allocation5 + $0x1570] sm:$0xff] }
 0x359   :  { %v12297_v61 = vcombine.low %v844_v49, %v852_v52 }
 0x35a   :  { %6347 = vmatpush1.bf16.msra.mxu0 %v12137_v59  ;;  %6388 = vmatpush1.bf16.msra.mxu1 %v11627_v60  ;;  %v12298_v59 = vcombine.high %v844_v49, %v852_v52  ;;  %v11788_v60 = vcombine.high %v333_v55, %v341_v22  ;;  %v765_v52 = vld [vmem:[#allocation5 + $0x12b8] sm:$0xff] }
 0x35b   :  { %6348 = vmatprep.subr.bf16.mxu0 %v12378_v58  ;;  %6389 = vmatprep.subr.bf16.mxu1 %v11868_v27  ;;  %v828_v58 = vld [vmem:[#allocation5 + $0x14b0] sm:$0xff]  ;;  %v773_v55 = vld [vmem:[#allocation5 + $0x12f8] sm:$0xff] }
 0x35c   :  { %v836_v27 = vld [vmem:[#allocation5 + $0x14f0] sm:$0xff] }
 0x35d   :  { %v12281_v39 = vcombine.low %v828_v58, %v836_v27 }
 0x35e   :  { %6349 = vmatpush2.bf16.msra.mxu0 %v12377_v2  ;;  %6390 = vmatpush2.bf16.msra.mxu1 %v11867_v3  ;;  %v12282_v2 = vcombine.high %v828_v58, %v836_v27  ;;  %v11772_v3 = vcombine.high %v317_v28, %v325_v13  ;;  %v12220_v13 = vcombine.high %v765_v52, %v773_v55 }
 0x35f   :  { %6350 = vmatprep.subr.bf16.mxu0 %v12362_v4  ;;  %6391 = vmatprep.subr.bf16.mxu1 %v11852_v25  ;;  %v812_v4 = vld [vmem:[#allocation5 + $0x1430] sm:$0xff] }
 0x360   :  { %v820_v25 = vld [vmem:[#allocation5 + $0x1470] sm:$0xff] }
 0x361   :  { %v12265_v19 = vcombine.low %v812_v4, %v820_v25 }
 0x362   :  { %6351 = vmatpush2.bf16.msra.mxu0 %v12361_v42  ;;  %6392 = vmatpush2.bf16.msra.mxu1 %v11851_v9  ;;  %v12266_v42 = vcombine.high %v812_v4, %v820_v25  ;;  %v11756_v9 = vcombine.high %v301_v7, %v309_v37 }
 0x363   :  { %6352 = vmatprep.subr.bf16.mxu0 %v12346_v12  ;;  %6393 = vmatprep.subr.bf16.mxu1 %v11836_v16  ;;  %v541_v12 = vld [vmem:[#allocation5 + $0xbb8] sm:$0xff] }
 0x364   :  { %v549_v16 = vld [vmem:[#allocation5 + $0xbf8] sm:$0xff] }
 0x365   :  { %v11995_v5 = vcombine.low %v541_v12, %v549_v16 }
 0x366   :  { %6353 = vmatpush2.bf16.msra.mxu0 %v12345_v21  ;;  %6394 = vmatpush2.bf16.msra.mxu1 %v11835_v20  ;;  %v11996_v21 = vcombine.high %v541_v12, %v549_v16  ;;  %v12252_v20 = vcombine.high %v797_v18, %v805_v24  ;;  %v461_v24 = vld [vmem:[#allocation5 + $0x938] sm:$0xff] }
 0x367   :  { %6354 = vmatprep.subr.bf16.mxu0 %v12330_v34  ;;  %6395 = vmatprep.subr.bf16.mxu1 %v11820_v32  ;;  %v525_v34 = vld [vmem:[#allocation5 + $0xb38] sm:$0xff] }
 0x368   :  { %v533_v32 = vld [vmem:[#allocation5 + $0xb78] sm:$0xff] }
 0x36a   :  { %6355 = vmatpush2.bf16.msra.mxu0 %v12329_v38  ;;  %6396 = vmatpush2.bf16.msra.mxu1 %v11819_v8  ;;  %v11980_v38 = vcombine.high %v525_v34, %v533_v32  ;;  %v12236_v8 = vcombine.high %v781_v35, %v789_v43 }
 0x36b   :  { %6356 = vmatprep.subr.bf16.mxu0 %v12314_v44  ;;  %6397 = vmatprep.subr.bf16.mxu1 %v11804_v46  ;;  %v509_v44 = vld [vmem:[#allocation5 + $0xab8] sm:$0xff] }
 0x36c   :  { %v517_v46 = vld [vmem:[#allocation5 + $0xaf8] sm:$0xff] }
 0x36d   :  { %v11964_v58 = vcombine.high %v509_v44, %v517_v46  ;;  %v11963_v4 = vcombine.low %v509_v44, %v517_v46 }
 0x36e   :  { %6357 = vmatpush2.bf16.msra.mxu0 %v12313_v53  ;;  %6398 = vmatpush2.bf16.msra.mxu1 %v11803_v29  ;;  %v11979_v29 = vcombine.low %v525_v34, %v533_v32 }
 0x36f   :  { %6358 = vmatprep.subr.bf16.mxu0 %v12298_v59  ;;  %6399 = vmatprep.subr.bf16.mxu1 %v11788_v60  ;;  %v12235_v60 = vcombine.low %v781_v35, %v789_v43  ;;  %v445_v43 = vld [vmem:[#allocation5 + $0x8b8] sm:$0xff] }
 0x372   :  { %6359 = vmatpush2.bf16.msra.mxu0 %v12297_v61  ;;  %6400 = vmatpush2.bf16.msra.mxu1 %v11787_v63  ;;  %v501_v61 = vld [vmem:[#allocation5 + $0xa78] sm:$0xff] }
 0x373   :  { %6360 = vmatprep.subr.bf16.mxu0 %v12282_v2  ;;  %6401 = vmatprep.subr.bf16.mxu1 %v11772_v3  ;;  %v757_v2 = vld [vmem:[#allocation5 + $0x1278] sm:$0xff] }
 0x376   :  { %6361 = vmatpush2.bf16.msra.mxu0 %v12281_v39  ;;  %6402 = vmatpush2.bf16.msra.mxu1 %v11771_v6  ;;  %v477_v6 = vld [vmem:[#allocation5 + $0x9b8] sm:$0xff] }
 0x377   :  { %6362 = vmatprep.subr.bf16.mxu0 %v12266_v42  ;;  %6403 = vmatprep.subr.bf16.mxu1 %v11756_v9  ;;  %v485_v42 = vld [vmem:[#allocation5 + $0x9f8] sm:$0xff] }
 0x378   :  { %v733_v9 = vld [vmem:[#allocation5 + $0x11b8] sm:$0xff]  ;;  %v11932_v16 = vcombine.high %v477_v6, %v485_v42 }
 0x37a   :  { %6363 = vmatpush2.bf16.msra.mxu0 %v12265_v19  ;;  %6404 = vmatpush2.bf16.msra.mxu1 %v11755_v14  ;;  %v469_v19 = vld [vmem:[#allocation5 + $0x978] sm:$0xff] }
 0x37b   :  { %6414 = vmatprep.subr.bf16.mxu0 %v11996_v21  ;;  %6455 = vmatprep.subr.bf16.mxu1 %v12252_v20  ;;  %v717_v14 = vld [vmem:[#allocation5 + $0x1138] sm:$0xff]  ;;  %v11931_v20 = vcombine.low %v477_v6, %v485_v42  ;;  %v11916_v32 = vcombine.high %v461_v24, %v469_v19 }
 0x37c   :  { %v725_v21 = vld [vmem:[#allocation5 + $0x1178] sm:$0xff] }
 0x37d   :  { %v6120_v49 = vpop.f32.mrf.mxu0  ;;  %6365 = vmatmul.mubr.bf16.vlgmr.msra.gmra.mxu0 %v14487_v45  ;;  %v14615_v53 = vpop.f32.mrf.mxu1  ;;  %6406 = vmatmul.mubr.bf16.vlgmr.msra.gmra.mxu1 %v14471_v30  ;;  %v749_v30 = vld [vmem:[#allocation5 + $0x1238] sm:$0xff]  ;;  %v12172_v35 = vcombine.high %v717_v14, %v725_v21  ;;  %v12171_v44 = vcombine.low %v717_v14, %v725_v21 }
 0x37e   :  { %v14613_v22 = vadd.f32 %v6120_v49, %v14604_v40  ;;  %6415 = vmatpush1.bf16.msra.mxu0 %v11995_v5  ;;  %6456 = vmatpush1.bf16.msra.mxu1 %v12251_v36  ;;  %v493_v40 = vld [vmem:[#allocation5 + $0xa38] sm:$0xff]  ;;  %v12204_v39 = vcombine.high %v749_v30, %v757_v2 }
 0x37f   :  { %v6122_v59 = vpop.f32.mrf.mxu0  ;;  %6416 = vmatprep.subr.bf16.mxu0 %v11980_v38  ;;  %v14621_v28 = vpop.f32.mrf.mxu1  ;;  %6457 = vmatprep.subr.bf16.mxu1 %v12236_v8  ;;  %v11948_v7 = vcombine.high %v493_v40, %v501_v61  ;;  %v11947_v12 = vcombine.low %v493_v40, %v501_v61  ;;  %v453_v5 = vld [vmem:[#allocation5 + $0x8f8] sm:$0xff]  ;;  %v11915_v8 = vcombine.low %v461_v24, %v469_v19 }
 0x380   :  { %v14619_v27 = vadd.f32 %v6122_v59, %v14609_v54  ;;  %6446 = vmatprep.mubr.bf16.mxu0 %v14461_v26  ;;  %6487 = vmatprep.mubr.bf16.mxu1 %v14479_v15  ;;  %v12219_v54 = vcombine.low %v765_v52, %v773_v55  ;;  %v741_v26 = vld [vmem:[#allocation5 + $0x11f8] sm:$0xff]  ;;  %v12203_v15 = vcombine.low %v749_v30, %v757_v2 }
 0x381   :  { %v6124_v63 = vpop.f32.mrf.mxu0  ;;  %v6165_v3 = vpop.f32.mrf.mxu1  ;;  %v12188_v18 = vcombine.high %v733_v9, %v741_v26  ;;  %v12187_v34 = vcombine.low %v733_v9, %v741_v26  ;;  %v701_v36 = vld [vmem:[#allocation5 + $0x10b8] sm:$0xff]  ;;  %v11900_v46 = vcombine.high %v445_v43, %v453_v5 }
 0x382   :  { %6417 = vmatpush1.bf16.msra.mxu0 %v11979_v29  ;;  %6458 = vmatpush1.bf16.msra.mxu1 %v12235_v60  ;;  %v709_v38 = vld [vmem:[#allocation5 + $0x10f8] sm:$0xff]  ;;  %v11899_v60 = vcombine.low %v445_v43, %v453_v5 }
 0x383   :  { %v6125_v25 = vpop.f32.mrf.mxu0  ;;  %6418 = vmatprep.subr.bf16.mxu0 %v11964_v58  ;;  %v6166_v37 = vpop.f32.mrf.mxu1  ;;  %6459 = vmatprep.subr.bf16.mxu1 %v12220_v13  ;;  %v12156_v49 = vcombine.high %v701_v36, %v709_v38  ;;  %v429_v52 = vld [vmem:[#allocation5 + $0x838] sm:$0xff]  ;;  %v12155_v58 = vcombine.low %v701_v36, %v709_v38 }
 0x384   :  { %v437_v55 = vld [vmem:[#allocation5 + $0x878] sm:$0xff] }
 0x385   :  { %v685_v29 = vld [vmem:[#allocation5 + $0x1038] sm:$0xff]  ;;  %v11884_v13 = vcombine.high %v429_v52, %v437_v55  ;;  %v11883_v3 = vcombine.low %v429_v52, %v437_v55 }
 0x386   :  { %6419 = vmatpush1.bf16.msra.mxu0 %v11963_v4  ;;  %6460 = vmatpush1.bf16.msra.mxu1 %v12219_v54  ;;  %v693_v59 = vld [vmem:[#allocation5 + $0x1078] sm:$0xff] }
 0x387   :  { %6420 = vmatprep.subr.bf16.mxu0 %v11948_v7  ;;  %6461 = vmatprep.subr.bf16.mxu1 %v12204_v39  ;;  %v12140_v40 = vcombine.high %v685_v29, %v693_v59  ;;  %v669_v61 = vld [vmem:[#allocation5 + $0xfb8] sm:$0xff]  ;;  %v12139_v4 = vcombine.low %v685_v29, %v693_v59 }
 0x388   :  { %v677_v63 = vld [vmem:[#allocation5 + $0xff8] sm:$0xff] }
 0x389   :  { %v925_v30 = vld [vmem:[#allocation5 + $0x17b8] sm:$0xff]  ;;  %v12124_v25 = vcombine.high %v669_v61, %v677_v63  ;;  %v12123_v42 = vcombine.low %v669_v61, %v677_v63 }
 0x38a   :  { %6421 = vmatpush1.bf16.msra.mxu0 %v11947_v12  ;;  %6462 = vmatpush1.bf16.msra.mxu1 %v12203_v15  ;;  %v933_v2 = vld [vmem:[#allocation5 + $0x17f8] sm:$0xff] }
 0x38b   :  { %6422 = vmatprep.subr.bf16.mxu0 %v11932_v16  ;;  %6463 = vmatprep.subr.bf16.mxu1 %v12188_v18  ;;  %v12380_v54 = vcombine.high %v925_v30, %v933_v2  ;;  %v653_v7 = vld [vmem:[#allocation5 + $0xf38] sm:$0xff]  ;;  %v12379_v9 = vcombine.low %v925_v30, %v933_v2 }
 0x38c   :  { %v661_v37 = vld [vmem:[#allocation5 + $0xf78] sm:$0xff] }
 0x38d   :  { %v909_v39 = vld [vmem:[#allocation5 + $0x1738] sm:$0xff]  ;;  %v12108_v26 = vcombine.high %v653_v7, %v661_v37  ;;  %v12107_v19 = vcombine.low %v653_v7, %v661_v37 }
 0x38e   :  { %6423 = vmatpush1.bf16.msra.mxu0 %v11931_v20  ;;  %6464 = vmatpush1.bf16.msra.mxu1 %v12187_v34  ;;  %v917_v6 = vld [vmem:[#allocation5 + $0x1778] sm:$0xff] }
 0x38f   :  { %6424 = vmatprep.subr.bf16.mxu0 %v11916_v32  ;;  %6465 = vmatprep.subr.bf16.mxu1 %v12172_v35  ;;  %v12364_v12 = vcombine.high %v909_v39, %v917_v6  ;;  %v637_v15 = vld [vmem:[#allocation5 + $0xeb8] sm:$0xff]  ;;  %v12363_v14 = vcombine.low %v909_v39, %v917_v6 }
 0x390   :  { %v645_v16 = vld [vmem:[#allocation5 + $0xef8] sm:$0xff] }
 0x391   :  { %v893_v18 = vld [vmem:[#allocation5 + $0x16b8] sm:$0xff]  ;;  %v12092_v21 = vcombine.high %v637_v15, %v645_v16  ;;  %v12091_v5 = vcombine.low %v637_v15, %v645_v16 }
 0x392   :  { %6425 = vmatpush1.bf16.msra.mxu0 %v11915_v8  ;;  %6466 = vmatpush1.bf16.msra.mxu1 %v12171_v44  ;;  %v901_v24 = vld [vmem:[#allocation5 + $0x16f8] sm:$0xff] }
 0x393   :  { %6426 = vmatprep.subr.bf16.mxu0 %v11900_v46  ;;  %6467 = vmatprep.subr.bf16.mxu1 %v12156_v49  ;;  %v12348_v20 = vcombine.high %v893_v18, %v901_v24  ;;  %v621_v34 = vld [vmem:[#allocation5 + $0xe38] sm:$0xff]  ;;  %v12347_v36 = vcombine.low %v893_v18, %v901_v24 }
 0x394   :  { %v629_v32 = vld [vmem:[#allocation5 + $0xe78] sm:$0xff] }
 0x395   :  { %v877_v35 = vld [vmem:[#allocation5 + $0x1638] sm:$0xff]  ;;  %v12076_v38 = vcombine.high %v621_v34, %v629_v32  ;;  %v12075_v55 = vcombine.low %v621_v34, %v629_v32  ;;  %v13080_v34 = vld [vmem:[#allocation13 + $0xec] ss:$16 sps:$4 sm:$0xff]  }
 0x396   :  { %6427 = vmatpush1.bf16.msra.mxu0 %v11899_v60  ;;  %6468 = vmatpush1.bf16.msra.mxu1 %v12155_v58  ;;  %v885_v43 = vld [vmem:[#allocation5 + $0x1678] sm:$0xff] }
 0x397   :  { %6428 = vmatprep.subr.bf16.mxu0 %v11884_v13  ;;  %6469 = vmatprep.subr.bf16.mxu1 %v12140_v40  ;;  %v12332_v8 = vcombine.high %v877_v35, %v885_v43  ;;  %v605_v44 = vld [vmem:[#allocation5 + $0xdb8] sm:$0xff]  ;;  %v12331_v29 = vcombine.low %v877_v35, %v885_v43  ;;  %v13078_v35 = vld [vmem:[#allocation13 + $0xe8] ss:$16 sps:$4 sm:$0xff]  }
 0x398   :  { %v613_v46 = vld [vmem:[#allocation5 + $0xdf8] sm:$0xff] }
 0x399   :  { %v861_v49 = vld [vmem:[#allocation5 + $0x15b8] sm:$0xff]  ;;  %v12060_v59 = vcombine.high %v605_v44, %v613_v46  ;;  %v12059_v63 = vcombine.low %v605_v44, %v613_v46 }
 0x39a   :  { %6429 = vmatpush1.bf16.msra.mxu0 %v11883_v3  ;;  %6470 = vmatpush1.bf16.msra.mxu1 %v12139_v4  ;;  %v869_v52 = vld [vmem:[#allocation5 + $0x15f8] sm:$0xff] }
 0x39b   :  { %6430 = vmatprep.subr.bf16.mxu0 %v12124_v25  ;;  %6471 = vmatprep.subr.bf16.mxu1 %v12380_v54  ;;  %v12316_v60 = vcombine.high %v861_v49, %v869_v52  ;;  %v589_v58 = vld [vmem:[#allocation5 + $0xd38] sm:$0xff]  ;;  %v12315_v30 = vcombine.low %v861_v49, %v869_v52 }
 0x39c   :  { %v597_v13 = vld [vmem:[#allocation5 + $0xd78] sm:$0xff] }
 0x39d   :  { %v845_v40 = vld [vmem:[#allocation5 + $0x1538] sm:$0xff]  ;;  %v12044_v2 = vcombine.high %v589_v58, %v597_v13  ;;  %v12043_v37 = vcombine.low %v589_v58, %v597_v13  ;;  %v13090_v13 = vld [vmem:[#allocation13 + $0xa8] ss:$16 sps:$4 sm:$0xff]  }
 0x39e   :  { %6431 = vmatpush2.bf16.msra.mxu0 %v12123_v42  ;;  %6472 = vmatpush2.bf16.msra.mxu1 %v12379_v9  ;;  %v853_v61 = vld [vmem:[#allocation5 + $0x1578] sm:$0xff] }
 0x39f   :  { %6432 = vmatprep.subr.bf16.mxu0 %v12108_v26  ;;  %6473 = vmatprep.subr.bf16.mxu1 %v12364_v12  ;;  %v12300_v3 = vcombine.high %v845_v40, %v853_v61  ;;  %v573_v4 = vld [vmem:[#allocation5 + $0xcb8] sm:$0xff]  ;;  %v12299_v39 = vcombine.low %v845_v40, %v853_v61 }
 0x3a0   :  { %v581_v25 = vld [vmem:[#allocation5 + $0xcf8] sm:$0xff] }
 0x3a1   :  { %v829_v54 = vld [vmem:[#allocation5 + $0x14b8] sm:$0xff]  ;;  %v12028_v6 = vcombine.high %v573_v4, %v581_v25  ;;  %v12027_v16 = vcombine.low %v573_v4, %v581_v25  ;;  %v13102_v25 = vld [vmem:[#allocation13 + $0x68] ss:$16 sps:$4 sm:$0xff]  }
 0x3a2   :  { %6433 = vmatpush2.bf16.msra.mxu0 %v12107_v19  ;;  %6474 = vmatpush2.bf16.msra.mxu1 %v12363_v14  ;;  %v837_v7 = vld [vmem:[#allocation5 + $0x14f8] sm:$0xff] }
 0x3a3   :  { %6434 = vmatprep.subr.bf16.mxu0 %v12092_v21  ;;  %6475 = vmatprep.subr.bf16.mxu1 %v12348_v20  ;;  %v12284_v42 = vcombine.high %v829_v54, %v837_v7  ;;  %v557_v9 = vld [vmem:[#allocation5 + $0xc38] sm:$0xff]  ;;  %v12283_v18 = vcombine.low %v829_v54, %v837_v7  ;;  %v13110_v7 = vld [vmem:[#allocation13 + $0x4c] ss:$16 sps:$4 sm:$0xff]  }
 0x3a4   :  { %v565_v26 = vld [vmem:[#allocation5 + $0xc78] sm:$0xff] }
 0x3a5   :  { %v813_v12 = vld [vmem:[#allocation5 + $0x1438] sm:$0xff]  ;;  %v12012_v24 = vcombine.high %v557_v9, %v565_v26  ;;  %v12011_v14 = vcombine.low %v557_v9, %v565_v26  ;;  %v13114_v26 = vld [vmem:[#allocation13 + $0x28] ss:$16 sps:$4 sm:$0xff]  }
 0x3a6   :  { %6435 = vmatpush2.bf16.msra.mxu0 %v12091_v5  ;;  %6476 = vmatpush2.bf16.msra.mxu1 %v12347_v36  ;;  %v821_v15 = vld [vmem:[#allocation5 + $0x1478] sm:$0xff]  ;;  %v6162_v5 = vadd.f32 %v14615_v53, %v14511_v56  ;;  %v13086_v36 = vld [vmem:[#allocation13 + $0xcc] ss:$16 sps:$4 sm:$0xff]  }
 0x3a7   :  { %6436 = vmatprep.subr.bf16.mxu0 %v12076_v38  ;;  %6477 = vmatprep.subr.bf16.mxu1 %v12332_v8  ;;  %v12268_v19 = vcombine.high %v813_v12, %v821_v15  ;;  %v12267_v21 = vcombine.low %v813_v12, %v821_v15  ;;  %v13077_v20 = vld [vmem:[#allocation13 + $0xe4] ss:$16 sps:$4 sm:$0xff]   ;;  %v13075_v32 = vld [vmem:[#allocation13 + $0xe0] ss:$16 sps:$4 sm:$0xff]   ;;  %v6164_v8 = vadd.f32 %v14621_v28, %v14515_v1  ;;  %v13122_v15 = vld [vmem:[#allocation13 + $0xc] ss:$16 sps:$4 sm:$0xff]  }
 0x3a8   :  { %v13083_v43 = vld [vmem:[#allocation13 + $0xc4] ss:$16 sps:$4 sm:$0xff]   ;;  %v13081_v49 = vld [vmem:[#allocation13 + $0xc0] ss:$16 sps:$4 sm:$0xff]  }
 0x3a9   :  { %v13095_v40 = vld [vmem:[#allocation13 + $0x84] ss:$16 sps:$4 sm:$0xff]   ;;  %v13099_v4 = vld [vmem:[#allocation13 + $0x60] ss:$16 sps:$4 sm:$0xff]  }
 0x3aa   :  { %6437 = vmatpush2.bf16.msra.mxu0 %v12075_v55  ;;  %6478 = vmatpush2.bf16.msra.mxu1 %v12331_v29  ;;  %v13084_v55 = vld [vmem:[#allocation13 + $0xc8] ss:$16 sps:$4 sm:$0xff]   ;;  %v13089_v29 = vld [vmem:[#allocation13 + $0xa4] ss:$16 sps:$4 sm:$0xff]   ;;  %v13111_v9 = vld [vmem:[#allocation13 + $0x20] ss:$16 sps:$4 sm:$0xff]  }
 0x3ab   :  { %6438 = vmatprep.subr.bf16.mxu0 %v12060_v59  ;;  %6479 = vmatprep.subr.bf16.mxu1 %v12316_v60  ;;  %v13087_v60 = vld [vmem:[#allocation13 + $0xa0] ss:$16 sps:$4 sm:$0xff]   ;;  %v13107_v54 = vld [vmem:[#allocation13 + $0x44] ss:$16 sps:$4 sm:$0xff]  }
 0x3ac   :  { %v13119_v12 = vld [vmem:[#allocation13 + $0x4] ss:$16 sps:$4 sm:$0xff]  }
 0x3ae   :  { %6439 = vmatpush2.bf16.msra.mxu0 %v12059_v63  ;;  %6480 = vmatpush2.bf16.msra.mxu1 %v12315_v30  ;;  %v13098_v63 = vld [vmem:[#allocation13 + $0x8c] ss:$16 sps:$4 sm:$0xff]   ;;  %v13093_v30 = vld [vmem:[#allocation13 + $0x80] ss:$16 sps:$4 sm:$0xff]  }
 0x3af   :  { %6440 = vmatprep.subr.bf16.mxu0 %v12044_v2  ;;  %6481 = vmatprep.subr.bf16.mxu1 %v12300_v3  ;;  %v13096_v2 = vld [vmem:[#allocation13 + $0x88] ss:$16 sps:$4 sm:$0xff]   ;;  %v13101_v3 = vld [vmem:[#allocation13 + $0x64] ss:$16 sps:$4 sm:$0xff]  }
 0x3b2   :  { %6441 = vmatpush2.bf16.msra.mxu0 %v12043_v37  ;;  %6482 = vmatpush2.bf16.msra.mxu1 %v12299_v39  ;;  %v13105_v37 = vld [vmem:[#allocation13 + $0x40] ss:$16 sps:$4 sm:$0xff]   ;;  %v13108_v39 = vld [vmem:[#allocation13 + $0x48] ss:$16 sps:$4 sm:$0xff]  }
 0x3b3   :  { %6442 = vmatprep.subr.bf16.mxu0 %v12028_v6  ;;  %6483 = vmatprep.subr.bf16.mxu1 %v12284_v42  ;;  %v13113_v6 = vld [vmem:[#allocation13 + $0x24] ss:$16 sps:$4 sm:$0xff]   ;;  %v13116_v42 = vld [vmem:[#allocation13 + $0x2c] ss:$16 sps:$4 sm:$0xff]  }
 0x3b6   :  { %6443 = vmatpush2.bf16.msra.mxu0 %v12027_v16  ;;  %6484 = vmatpush2.bf16.msra.mxu1 %v12283_v18  ;;  %v13117_v16 = vld [vmem:[#allocation13] ss:$16 sps:$4 sm:$0xff]   ;;  %v13120_v18 = vld [vmem:[#allocation13 + $0x8] ss:$16 sps:$4 sm:$0xff]  }
 0x3b7   :  { %6444 = vmatprep.subr.bf16.mxu0 %v12012_v24  ;;  %6485 = vmatprep.subr.bf16.mxu1 %v12268_v19  ;;  %v13125_v24 = vld [vmem:[#allocation11 + $0xe4] ss:$16 sps:$4 sm:$0xff]  }
 0x3b8   :  { %v13128_v19 = vld [vmem:[#allocation11 + $0x2e4] ss:$16 sps:$4 sm:$0xff]  }
 0x3ba   :  { %6445 = vmatpush2.bf16.msra.mxu0 %v12011_v14  ;;  %6486 = vmatpush2.bf16.msra.mxu1 %v12267_v21  ;;  %v7024_v14 = vld [vmem:[#allocation10] sm:$0xf]  ;;  %v13123_v21 = vld [vmem:[#allocation11 + $0xe0] ss:$16 sps:$4 sm:$0xff]  }
 0x3bb   :  { %7217 = vmatprep.subr.bf16.mxu0 %v13077_v20  ;;  %7258 = vmatprep.subr.bf16.mxu1 %v13080_v34  ;;  %v13126_v20 = vld [vmem:[#allocation11 + $0x2e0] ss:$16 sps:$4 sm:$0xff]   ;;  %v13131_v34 = vld [vmem:[#allocation11 + $0xc4] ss:$16 sps:$4 sm:$0xff]  }
 0x3bd   :  { %v6202_v38 = vpop.f32.mrf.mxu0  ;;  %6447 = vmatmul.mubr.bf16.vlgmr.msra.gmra.mxu0 %v14475_v31  ;;  %v6243_v46 = vpop.f32.mrf.mxu1  ;;  %6488 = vmatmul.mubr.bf16.vlgmr.msra.gmra.mxu1 %v14487_v45  ;;  %v13092_v31 = vld [vmem:[#allocation13 + $0xac] ss:$16 sps:$4 sm:$0xff]  }
 0x3be   :  { %v6203_v44 = vadd.f32 %v6202_v38, %v6162_v5  ;;  %7218 = vmatpush1.bf16.msra.mxu0 %v13075_v32  ;;  %7259 = vmatpush1.bf16.msra.mxu1 %v13078_v35  ;;  %v14639_v32 = vpack.c.bf16 %v14547_v17, %v14547_v17  ;;  %v13134_v35 = vld [vmem:[#allocation11 + $0x2c4] ss:$16 sps:$4 sm:$0xff]   ;;  %v13129_v5 = vld [vmem:[#allocation11 + $0xc0] ss:$16 sps:$4 sm:$0xff]  }
 0x3bf   :  { %v6204_v52 = vpop.f32.mrf.mxu0  ;;  %7219 = vmatprep.subr.bf16.mxu0 %v13083_v43  ;;  %v6245_v59 = vpop.f32.mrf.mxu1  ;;  %7260 = vmatprep.subr.bf16.mxu1 %v13086_v36  ;;  %v14643_v43 = vpack.c.bf16 %v14563_v10, %v14563_v10  ;;  %v13132_v36 = vld [vmem:[#allocation11 + $0x2c0] ss:$16 sps:$4 sm:$0xff]   ;;  %v13137_v38 = vld [vmem:[#allocation11 + $0xa4] ss:$16 sps:$4 sm:$0xff]  }
 0x3c0   :  { %v14631_v56 = vadd.f32 %v6243_v46, %v6203_v44  ;;  %v6205_v53 = vadd.f32 %v6204_v52, %v6164_v8  ;;  %7249 = vmatprep.mubr.bf16.mxu0 %v14331_v0  ;;  %7290 = vmatprep.mubr.bf16.mxu1 %v14331_v0  ;;  %v13104_v0 = vld [vmem:[#allocation13 + $0x6c] ss:$16 sps:$4 sm:$0xff]   ;;  %v13140_v8 = vld [vmem:[#allocation11 + $0x2a4] ss:$16 sps:$4 sm:$0xff]   ;;  %v13135_v17 = vld [vmem:[#allocation11 + $0xa0] ss:$16 sps:$4 sm:$0xff]  }
 0x3c1   :  { %v6206_v1 = vpop.f32.mrf.mxu0  ;;  %v6247_v45 = vpop.f32.mrf.mxu1  ;;  %v13138_v44 = vld [vmem:[#allocation11 + $0x2a0] ss:$16 sps:$4 sm:$0xff]   ;;  %v13143_v10 = vld [vmem:[#allocation11 + $0x84] ss:$16 sps:$4 sm:$0xff]  }
 0x3c2   :  { %v14635_v28 = vadd.f32 %v6245_v59, %v6205_v53  ;;  %7220 = vmatpush1.bf16.msra.mxu0 %v13081_v49  ;;  %7261 = vmatpush1.bf16.msra.mxu1 %v13084_v55  ;;  %v13146_v46 = vld [vmem:[#allocation11 + $0x284] ss:$16 sps:$4 sm:$0xff]   ;;  %v13141_v49 = vld [vmem:[#allocation11 + $0x80] ss:$16 sps:$4 sm:$0xff]  }
 0x3c3   :  { %v6207_v58 = vpop.f32.mrf.mxu0  ;;  %7221 = vmatprep.subr.bf16.mxu0 %v13089_v29  ;;  %v6248_v61 = vpop.f32.mrf.mxu1  ;;  %7262 = vmatprep.subr.bf16.mxu1 %v13092_v31  ;;  %v13144_v52 = vld [vmem:[#allocation11 + $0x280] ss:$16 sps:$4 sm:$0xff]   ;;  %v13149_v55 = vld [vmem:[#allocation11 + $0x64] ss:$16 sps:$4 sm:$0xff]  }
 0x3c4   :  { %v13152_v29 = vld [vmem:[#allocation11 + $0x264] ss:$16 sps:$4 sm:$0xff]   ;;  %v13147_v53 = vld [vmem:[#allocation11 + $0x60] ss:$16 sps:$4 sm:$0xff]  }
 0x3c5   :  { %v13150_v59 = vld [vmem:[#allocation11 + $0x260] ss:$16 sps:$4 sm:$0xff]   ;;  %v13155_v31 = vld [vmem:[#allocation11 + $0x44] ss:$16 sps:$4 sm:$0xff]  }
 0x3c6   :  { %7222 = vmatpush1.bf16.msra.mxu0 %v13087_v60  ;;  %7263 = vmatpush1.bf16.msra.mxu1 %v13090_v13  ;;  %v13158_v1 = vld [vmem:[#allocation11 + $0x244] ss:$16 sps:$4 sm:$0xff]   ;;  %v13153_v45 = vld [vmem:[#allocation11 + $0x40] ss:$16 sps:$4 sm:$0xff]  }
 0x3c7   :  { %7223 = vmatprep.subr.bf16.mxu0 %v13095_v40  ;;  %7264 = vmatprep.subr.bf16.mxu1 %v13098_v63  ;;  %v13156_v60 = vld [vmem:[#allocation11 + $0x240] ss:$16 sps:$4 sm:$0xff]   ;;  %v13161_v58 = vld [vmem:[#allocation11 + $0x24] ss:$16 sps:$4 sm:$0xff]  }
 0x3c8   :  { %v13164_v13 = vld [vmem:[#allocation11 + $0x224] ss:$16 sps:$4 sm:$0xff]   ;;  %v13159_v40 = vld [vmem:[#allocation11 + $0x20] ss:$16 sps:$4 sm:$0xff]  }
 0x3c9   :  { %v13162_v61 = vld [vmem:[#allocation11 + $0x220] ss:$16 sps:$4 sm:$0xff]   ;;  %v13167_v63 = vld [vmem:[#allocation11 + $0x4] ss:$16 sps:$4 sm:$0xff]  }
 0x3ca   :  { %7224 = vmatpush1.bf16.msra.mxu0 %v13093_v30  ;;  %7265 = vmatpush1.bf16.msra.mxu1 %v13096_v2  ;;  %v13170_v30 = vld [vmem:[#allocation11 + $0x204] ss:$16 sps:$4 sm:$0xff]   ;;  %v13165_v2 = vld [vmem:[#allocation11] ss:$16 sps:$4 sm:$0xff]  }
 0x3cb   :  { %7225 = vmatprep.subr.bf16.mxu0 %v13101_v3  ;;  %7266 = vmatprep.subr.bf16.mxu1 %v13104_v0  ;;  %v13168_v3 = vld [vmem:[#allocation11 + $0x200] ss:$16 sps:$4 sm:$0xff]   ;;  %v13173_v0 = vld [vmem:[#allocation11 + $0x1e4] ss:$16 sps:$4 sm:$0xff]  }
 0x3ce   :  { %7226 = vmatpush1.bf16.msra.mxu0 %v13099_v4  ;;  %7267 = vmatpush1.bf16.msra.mxu1 %v13102_v25  ;;  %v13176_v4 = vld [vmem:[#allocation11 + $0x3e4] ss:$16 sps:$4 sm:$0xff]   ;;  %v13171_v25 = vld [vmem:[#allocation11 + $0x1e0] ss:$16 sps:$4 sm:$0xff]  }
 0x3cf   :  { %7227 = vmatprep.subr.bf16.mxu0 %v13107_v54  ;;  %7268 = vmatprep.subr.bf16.mxu1 %v13110_v7  ;;  %v13174_v54 = vld [vmem:[#allocation11 + $0x3e0] ss:$16 sps:$4 sm:$0xff]   ;;  %v13179_v7 = vld [vmem:[#allocation11 + $0x1c4] ss:$16 sps:$4 sm:$0xff]  }
 0x3d2   :  { %7228 = vmatpush1.bf16.msra.mxu0 %v13105_v37  ;;  %7269 = vmatpush1.bf16.msra.mxu1 %v13108_v39  ;;  %v13182_v37 = vld [vmem:[#allocation11 + $0x3c4] ss:$16 sps:$4 sm:$0xff]  }
 0x3d3   :  { %7229 = vmatprep.subr.bf16.mxu0 %v13113_v6  ;;  %7270 = vmatprep.subr.bf16.mxu1 %v13116_v42 }
 0x3d6   :  { %7230 = vmatpush1.bf16.msra.mxu0 %v13111_v9  ;;  %7271 = vmatpush1.bf16.msra.mxu1 %v13114_v26  ;;  %v13177_v9 = vld [vmem:[#allocation11 + $0x1c0] ss:$16 sps:$4 sm:$0xff]  }
 0x3d7   :  { %7231 = vmatprep.subr.bf16.mxu0 %v13119_v12  ;;  %7272 = vmatprep.subr.bf16.mxu1 %v13122_v15  ;;  %v13180_v12 = vld [vmem:[#allocation11 + $0x3c0] ss:$16 sps:$4 sm:$0xff]   ;;  %v13185_v15 = vld [vmem:[#allocation11 + $0x1a4] ss:$16 sps:$4 sm:$0xff]  }
 0x3da   :  { %7232 = vmatpush1.bf16.msra.mxu0 %v13117_v16  ;;  %7273 = vmatpush1.bf16.msra.mxu1 %v13120_v18 }
 0x3db   :  { %9859 = vmatprep.subr.bf16.mxu0 %v13125_v24  ;;  %9900 = vmatprep.subr.bf16.mxu1 %v13128_v19  ;;  %v13188_v19 = vld [vmem:[#allocation11 + $0x3a4] ss:$16 sps:$4 sm:$0xff]  }
 0x3dd   :  { %7250 = vmatmul.mubr.bf16.vlgmr.msra.gmra.mxu0 %v7024_v14  ;;  %7291 = vmatmul.mubr.bf16.vlgmr.msra.gmra.mxu1 %v7024_v14 }
 0x3de   :  { %9860 = vmatpush1.bf16.msra.mxu0 %v13123_v21  ;;  %9891 = vmatprep.mubr.bf16.mxu0 %v14639_v32 }
 0x3df   :  { %9901 = vmatpush1.bf16.msra.mxu1 %v13126_v20  ;;  %9932 = vmatprep.mubr.bf16.mxu1 %v14643_v43 }
 0x3e0   :  { %9861 = vmatprep.subr.bf16.mxu0 %v13131_v34  ;;  %9902 = vmatprep.subr.bf16.mxu1 %v13134_v35  ;;  %v13186_v35 = vld [vmem:[#allocation11 + $0x3a0] ss:$16 sps:$4 sm:$0xff]  }
 0x3e2   :  { %9862 = vmatpush1.bf16.msra.mxu0 %v13129_v5  ;;  %v13191_v5 = vld [vmem:[#allocation11 + $0x184] ss:$16 sps:$4 sm:$0xff]  }
 0x3e3   :  { %9903 = vmatpush1.bf16.msra.mxu1 %v13132_v36  ;;  %9863 = vmatprep.subr.bf16.mxu0 %v13137_v38  ;;  %v13194_v38 = vld [vmem:[#allocation11 + $0x384] ss:$16 sps:$4 sm:$0xff]  }
 0x3e4   :  { %9904 = vmatprep.subr.bf16.mxu1 %v13140_v8  ;;  %v13189_v8 = vld [vmem:[#allocation11 + $0x180] ss:$16 sps:$4 sm:$0xff]  }
 0x3e6   :  { %9864 = vmatpush1.bf16.msra.mxu0 %v13135_v17  ;;  %v13197_v17 = vld [vmem:[#allocation11 + $0x164] ss:$16 sps:$4 sm:$0xff]  }
 0x3e7   :  { %9905 = vmatpush1.bf16.msra.mxu1 %v13138_v44  ;;  %9865 = vmatprep.subr.bf16.mxu0 %v13143_v10  ;;  %v13200_v44 = vld [vmem:[#allocation11 + $0x364] ss:$16 sps:$4 sm:$0xff]   ;;  %v13195_v10 = vld [vmem:[#allocation11 + $0x160] ss:$16 sps:$4 sm:$0xff]  }
 0x3e8   :  { %9906 = vmatprep.subr.bf16.mxu1 %v13146_v46  ;;  %v13198_v46 = vld [vmem:[#allocation11 + $0x360] ss:$16 sps:$4 sm:$0xff]  }
 0x3ea   :  { %9866 = vmatpush1.bf16.msra.mxu0 %v13141_v49  ;;  %v13203_v49 = vld [vmem:[#allocation11 + $0x144] ss:$16 sps:$4 sm:$0xff]  }
 0x3eb   :  { %9907 = vmatpush1.bf16.msra.mxu1 %v13144_v52  ;;  %9867 = vmatprep.subr.bf16.mxu0 %v13149_v55  ;;  %v13206_v52 = vld [vmem:[#allocation11 + $0x344] ss:$16 sps:$4 sm:$0xff]   ;;  %v13201_v55 = vld [vmem:[#allocation11 + $0x140] ss:$16 sps:$4 sm:$0xff]  }
 0x3ec   :  { %9908 = vmatprep.subr.bf16.mxu1 %v13152_v29  ;;  %v13204_v29 = vld [vmem:[#allocation11 + $0x340] ss:$16 sps:$4 sm:$0xff]  }
 0x3ee   :  { %9868 = vmatpush1.bf16.msra.mxu0 %v13147_v53  ;;  %v13209_v53 = vld [vmem:[#allocation11 + $0x124] ss:$16 sps:$4 sm:$0xff]  }
 0x3ef   :  { %9909 = vmatpush1.bf16.msra.mxu1 %v13150_v59  ;;  %9869 = vmatprep.subr.bf16.mxu0 %v13155_v31  ;;  %v13212_v59 = vld [vmem:[#allocation11 + $0x324] ss:$16 sps:$4 sm:$0xff]   ;;  %v13207_v31 = vld [vmem:[#allocation11 + $0x120] ss:$16 sps:$4 sm:$0xff]  }
 0x3f0   :  { %9910 = vmatprep.subr.bf16.mxu1 %v13158_v1  ;;  %v13210_v1 = vld [vmem:[#allocation11 + $0x320] ss:$16 sps:$4 sm:$0xff]  }
 0x3f2   :  { %9870 = vmatpush1.bf16.msra.mxu0 %v13153_v45  ;;  %v13215_v45 = vld [vmem:[#allocation11 + $0x104] ss:$16 sps:$4 sm:$0xff]  }
 0x3f3   :  { %9911 = vmatpush1.bf16.msra.mxu1 %v13156_v60  ;;  %9871 = vmatprep.subr.bf16.mxu0 %v13161_v58  ;;  %v13218_v60 = vld [vmem:[#allocation11 + $0x304] ss:$16 sps:$4 sm:$0xff]   ;;  %v13213_v58 = vld [vmem:[#allocation11 + $0x100] ss:$16 sps:$4 sm:$0xff]  }
 0x3f4   :  { %9912 = vmatprep.subr.bf16.mxu1 %v13164_v13  ;;  %v13216_v13 = vld [vmem:[#allocation11 + $0x300] ss:$16 sps:$4 sm:$0xff]  }
 0x3f6   :  { %9872 = vmatpush1.bf16.msra.mxu0 %v13159_v40  ;;  %v13221_v40 = vld [vmem:[#allocation11 + $0x4e4] ss:$16 sps:$4 sm:$0xff]  }
 0x3f7   :  { %9913 = vmatpush1.bf16.msra.mxu1 %v13162_v61  ;;  %9873 = vmatprep.subr.bf16.mxu0 %v13167_v63  ;;  %v13224_v61 = vld [vmem:[#allocation11 + $0x6e4] ss:$16 sps:$4 sm:$0xff]   ;;  %v13219_v63 = vld [vmem:[#allocation11 + $0x4e0] ss:$16 sps:$4 sm:$0xff]  }
 0x3f8   :  { %9914 = vmatprep.subr.bf16.mxu1 %v13170_v30  ;;  %v14655_v30 = vpack.c.bf16 %v14541_v23, %v14541_v23  ;;  %v14668_v23 = vpack.c.bf16 %v14599_v33, %v14599_v33  ;;  %v13234_v33 = vld [vmem:[#allocation11 + $0x6a0] ss:$16 sps:$4 sm:$0xff]  }
 0x3fa   :  { %9874 = vmatpush1.bf16.msra.mxu0 %v13165_v2  ;;  %v13222_v2 = vld [vmem:[#allocation11 + $0x6e0] ss:$16 sps:$4 sm:$0xff]  }
 0x3fb   :  { %9915 = vmatpush1.bf16.msra.mxu1 %v13168_v3  ;;  %9875 = vmatprep.subr.bf16.mxu0 %v13173_v0  ;;  %v14659_v3 = vpack.c.bf16 %v14559_v62, %v14559_v62  ;;  %v13227_v0 = vld [vmem:[#allocation11 + $0x4c4] ss:$16 sps:$4 sm:$0xff]   ;;  %v13228_v62 = vld [vmem:[#allocation11 + $0x6c0] ss:$16 sps:$4 sm:$0xff]  }
 0x3fc   :  { %9916 = vmatprep.subr.bf16.mxu1 %v13176_v4  ;;  %v14663_v4 = vpack.c.bf16 %v14583_v51, %v14583_v51  ;;  %v13236_v51 = vld [vmem:[#allocation11 + $0x6a4] ss:$16 sps:$4 sm:$0xff]  }
 0x3fd   :  { %v6284_v39 = vpop.f32.mrf.mxu0  ;;  %v6325_v42 = vpop.f32.mrf.mxu1 }
 0x3fe   :  { %v6285_v6 = vadd.f32 %v6284_v39, %v14517_v47  ;;  %9876 = vmatpush2.bf16.msra.mxu0 %v13171_v25  ;;  %v13183_v47 = vld [vmem:[#allocation11 + $0x1a0] ss:$16 sps:$4 sm:$0xff]   ;;  %v13230_v25 = vld [vmem:[#allocation11 + $0x6c4] ss:$16 sps:$4 sm:$0xff]  }
 0x3ff   :  { %9917 = vmatpush2.bf16.msra.mxu1 %v13174_v54  ;;  %v6286_v26 = vpop.f32.mrf.mxu0  ;;  %9877 = vmatprep.subr.bf16.mxu0 %v13179_v7  ;;  %v6327_v24 = vpop.f32.mrf.mxu1  ;;  %v13225_v54 = vld [vmem:[#allocation11 + $0x4c0] ss:$16 sps:$4 sm:$0xff]   ;;  %v13233_v7 = vld [vmem:[#allocation11 + $0x4a4] ss:$16 sps:$4 sm:$0xff]  }
 0x400   :  { %v14648_v16 = vadd.f32 %v6325_v42, %v6285_v6  ;;  %v6287_v18 = vadd.f32 %v6286_v26, %v14523_v50  ;;  %9918 = vmatprep.subr.bf16.mxu1 %v13182_v37  ;;  %v13192_v50 = vld [vmem:[#allocation11 + $0x380] ss:$16 sps:$4 sm:$0xff]   ;;  %v13239_v39 = vld [vmem:[#allocation11 + $0x484] ss:$16 sps:$4 sm:$0xff]  }
 0x401   :  { %v6288_v14 = vpop.f32.mrf.mxu0  ;;  %v6329_v20 = vpop.f32.mrf.mxu1  ;;  %v13231_v37 = vld [vmem:[#allocation11 + $0x4a0] ss:$16 sps:$4 sm:$0xff]   ;;  %v13242_v6 = vld [vmem:[#allocation11 + $0x684] ss:$16 sps:$4 sm:$0xff]  }
 0x402   :  { %v14651_v21 = vadd.f32 %v6327_v24, %v6287_v18  ;;  %9878 = vmatpush2.bf16.msra.mxu0 %v13177_v9  ;;  %v13237_v42 = vld [vmem:[#allocation11 + $0x480] ss:$16 sps:$4 sm:$0xff]   ;;  %v13245_v26 = vld [vmem:[#allocation11 + $0x464] ss:$16 sps:$4 sm:$0xff]  }
 0x403   :  { %9919 = vmatpush2.bf16.msra.mxu1 %v13180_v12  ;;  %v6289_v34 = vpop.f32.mrf.mxu0  ;;  %9879 = vmatprep.subr.bf16.mxu0 %v13185_v15  ;;  %v6330_v36 = vpop.f32.mrf.mxu1  ;;  %v13240_v9 = vld [vmem:[#allocation11 + $0x680] ss:$16 sps:$4 sm:$0xff]   ;;  %v13248_v12 = vld [vmem:[#allocation11 + $0x664] ss:$16 sps:$4 sm:$0xff]  }
 0x404   :  { %9920 = vmatprep.subr.bf16.mxu1 %v13188_v19  ;;  %v13243_v15 = vld [vmem:[#allocation11 + $0x460] ss:$16 sps:$4 sm:$0xff]   ;;  %v13251_v24 = vld [vmem:[#allocation11 + $0x444] ss:$16 sps:$4 sm:$0xff]  }
 0x405   :  { %v13246_v18 = vld [vmem:[#allocation11 + $0x660] ss:$16 sps:$4 sm:$0xff]   ;;  %v13254_v19 = vld [vmem:[#allocation11 + $0x644] ss:$16 sps:$4 sm:$0xff]  }
 0x406   :  { %9880 = vmatpush2.bf16.msra.mxu0 %v13183_v47  ;;  %v13249_v14 = vld [vmem:[#allocation11 + $0x440] ss:$16 sps:$4 sm:$0xff]   ;;  %v13257_v47 = vld [vmem:[#allocation11 + $0x424] ss:$16 sps:$4 sm:$0xff]  }
 0x407   :  { %9921 = vmatpush2.bf16.msra.mxu1 %v13186_v35  ;;  %9881 = vmatprep.subr.bf16.mxu0 %v13191_v5  ;;  %v13252_v20 = vld [vmem:[#allocation11 + $0x640] ss:$16 sps:$4 sm:$0xff]   ;;  %v13260_v34 = vld [vmem:[#allocation11 + $0x624] ss:$16 sps:$4 sm:$0xff]  }
 0x408   :  { %9922 = vmatprep.subr.bf16.mxu1 %v13194_v38  ;;  %v13255_v35 = vld [vmem:[#allocation11 + $0x420] ss:$16 sps:$4 sm:$0xff]   ;;  %v13263_v36 = vld [vmem:[#allocation11 + $0x404] ss:$16 sps:$4 sm:$0xff]  }
 0x409   :  { %v13258_v5 = vld [vmem:[#allocation11 + $0x620] ss:$16 sps:$4 sm:$0xff]   ;;  %v13266_v38 = vld [vmem:[#allocation11 + $0x604] ss:$16 sps:$4 sm:$0xff]  }
 0x40a   :  { %9882 = vmatpush2.bf16.msra.mxu0 %v13189_v8  ;;  %v13261_v8 = vld [vmem:[#allocation11 + $0x400] ss:$16 sps:$4 sm:$0xff]  }
 0x40b   :  { %9923 = vmatpush2.bf16.msra.mxu1 %v13192_v50  ;;  %9883 = vmatprep.subr.bf16.mxu0 %v13197_v17  ;;  %v13264_v50 = vld [vmem:[#allocation11 + $0x600] ss:$16 sps:$4 sm:$0xff]   ;;  %v13269_v17 = vld [vmem:[#allocation11 + $0x5e4] ss:$16 sps:$4 sm:$0xff]  }
 0x40c   :  { %9924 = vmatprep.subr.bf16.mxu1 %v13200_v44  ;;  %v13272_v44 = vld [vmem:[#allocation11 + $0x7e4] ss:$16 sps:$4 sm:$0xff]  }
 0x40e   :  { %9884 = vmatpush2.bf16.msra.mxu0 %v13195_v10  ;;  %v13267_v10 = vld [vmem:[#allocation11 + $0x5e0] ss:$16 sps:$4 sm:$0xff]  }
 0x40f   :  { %9925 = vmatpush2.bf16.msra.mxu1 %v13198_v46  ;;  %9885 = vmatprep.subr.bf16.mxu0 %v13203_v49  ;;  %v13270_v46 = vld [vmem:[#allocation11 + $0x7e0] ss:$16 sps:$4 sm:$0xff]   ;;  %v13275_v49 = vld [vmem:[#allocation11 + $0x5c4] ss:$16 sps:$4 sm:$0xff]  }
 0x410   :  { %9926 = vmatprep.subr.bf16.mxu1 %v13206_v52  ;;  %v13278_v52 = vld [vmem:[#allocation11 + $0x7c4] ss:$16 sps:$4 sm:$0xff]  }
 0x412   :  { %9886 = vmatpush2.bf16.msra.mxu0 %v13201_v55 }
 0x413   :  { %9927 = vmatpush2.bf16.msra.mxu1 %v13204_v29  ;;  %9887 = vmatprep.subr.bf16.mxu0 %v13209_v53 }
 0x414   :  { %9928 = vmatprep.subr.bf16.mxu1 %v13212_v59  ;;  %v13273_v59 = vld [vmem:[#allocation11 + $0x5c0] ss:$16 sps:$4 sm:$0xff]  }
 0x416   :  { %9888 = vmatpush2.bf16.msra.mxu0 %v13207_v31 }
 0x417   :  { %9929 = vmatpush2.bf16.msra.mxu1 %v13210_v1  ;;  %9889 = vmatprep.subr.bf16.mxu0 %v13215_v45  ;;  %v13276_v1 = vld [vmem:[#allocation11 + $0x7c0] ss:$16 sps:$4 sm:$0xff]   ;;  %v13281_v45 = vld [vmem:[#allocation11 + $0x5a4] ss:$16 sps:$4 sm:$0xff]  }
 0x418   :  { %9930 = vmatprep.subr.bf16.mxu1 %v13218_v60 }
 0x41a   :  { %9890 = vmatpush2.bf16.msra.mxu0 %v13213_v58 }
 0x41b   :  { %9931 = vmatpush2.bf16.msra.mxu1 %v13216_v13  ;;  %9941 = vmatprep.subr.bf16.mxu0 %v13221_v40  ;;  %v13284_v13 = vld [vmem:[#allocation11 + $0x7a4] ss:$16 sps:$4 sm:$0xff]  }
 0x41c   :  { %9982 = vmatprep.subr.bf16.mxu1 %v13224_v61 }
 0x41d   :  { %9892 = vmatmul.mubr.bf16.vlgmr.msra.gmra.mxu0 %v14655_v30 }
 0x41e   :  { %9933 = vmatmul.mubr.bf16.vlgmr.msra.gmra.mxu1 %v14659_v3  ;;  %9942 = vmatpush1.bf16.msra.mxu0 %v13219_v63 }
 0x41f   :  { %9973 = vmatprep.mubr.bf16.mxu0 %v14663_v4  ;;  %9983 = vmatpush1.bf16.msra.mxu1 %v13222_v2  ;;  %v13282_v2 = vld [vmem:[#allocation11 + $0x7a0] ss:$16 sps:$4 sm:$0xff]  }
 0x420   :  { %10014 = vmatprep.mubr.bf16.mxu1 %v14668_v23  ;;  %9943 = vmatprep.subr.bf16.mxu0 %v13227_v0  ;;  %v13287_v0 = vld [vmem:[#allocation11 + $0x584] ss:$16 sps:$4 sm:$0xff]  }
 0x421   :  { %9984 = vmatprep.subr.bf16.mxu1 %v13230_v25 }
 0x422   :  { %9944 = vmatpush1.bf16.msra.mxu0 %v13225_v54  ;;  %v13290_v54 = vld [vmem:[#allocation11 + $0x784] ss:$16 sps:$4 sm:$0xff]  }
 0x423   :  { %9985 = vmatpush1.bf16.msra.mxu1 %v13228_v62  ;;  %9945 = vmatprep.subr.bf16.mxu0 %v13233_v7  ;;  %v13285_v62 = vld [vmem:[#allocation11 + $0x580] ss:$16 sps:$4 sm:$0xff]   ;;  %v13293_v7 = vld [vmem:[#allocation11 + $0x564] ss:$16 sps:$4 sm:$0xff]  }
 0x424   :  { %9986 = vmatprep.subr.bf16.mxu1 %v13236_v51  ;;  %v13296_v51 = vld [vmem:[#allocation11 + $0x764] ss:$16 sps:$4 sm:$0xff]  }
 0x426   :  { %9946 = vmatpush1.bf16.msra.mxu0 %v13231_v37  ;;  %v13291_v37 = vld [vmem:[#allocation11 + $0x560] ss:$16 sps:$4 sm:$0xff]  }
 0x427   :  { %9987 = vmatpush1.bf16.msra.mxu1 %v13234_v33  ;;  %9947 = vmatprep.subr.bf16.mxu0 %v13239_v39  ;;  %v13294_v33 = vld [vmem:[#allocation11 + $0x760] ss:$16 sps:$4 sm:$0xff]   ;;  %v13299_v39 = vld [vmem:[#allocation11 + $0x544] ss:$16 sps:$4 sm:$0xff]  }
 0x428   :  { %9988 = vmatprep.subr.bf16.mxu1 %v13242_v6  ;;  %v13302_v6 = vld [vmem:[#allocation11 + $0x744] ss:$16 sps:$4 sm:$0xff]  }
 0x42a   :  { %9948 = vmatpush1.bf16.msra.mxu0 %v13237_v42  ;;  %v13297_v42 = vld [vmem:[#allocation11 + $0x540] ss:$16 sps:$4 sm:$0xff]  }
 0x42b   :  { %9989 = vmatpush1.bf16.msra.mxu1 %v13240_v9  ;;  %9949 = vmatprep.subr.bf16.mxu0 %v13245_v26  ;;  %v13300_v9 = vld [vmem:[#allocation11 + $0x740] ss:$16 sps:$4 sm:$0xff]   ;;  %v13305_v26 = vld [vmem:[#allocation11 + $0x524] ss:$16 sps:$4 sm:$0xff]  }
 0x42c   :  { %9990 = vmatprep.subr.bf16.mxu1 %v13248_v12  ;;  %v13308_v12 = vld [vmem:[#allocation11 + $0x724] ss:$16 sps:$4 sm:$0xff]  }
 0x42e   :  { %9950 = vmatpush1.bf16.msra.mxu0 %v13243_v15  ;;  %v13303_v15 = vld [vmem:[#allocation11 + $0x520] ss:$16 sps:$4 sm:$0xff]  }
 0x42f   :  { %9991 = vmatpush1.bf16.msra.mxu1 %v13246_v18  ;;  %9951 = vmatprep.subr.bf16.mxu0 %v13251_v24  ;;  %v13306_v18 = vld [vmem:[#allocation11 + $0x720] ss:$16 sps:$4 sm:$0xff]   ;;  %v13311_v24 = vld [vmem:[#allocation11 + $0x504] ss:$16 sps:$4 sm:$0xff]  }
 0x430   :  { %9992 = vmatprep.subr.bf16.mxu1 %v13254_v19  ;;  %v13314_v19 = vld [vmem:[#allocation11 + $0x704] ss:$16 sps:$4 sm:$0xff]  }
 0x432   :  { %9952 = vmatpush1.bf16.msra.mxu0 %v13249_v14  ;;  %v13309_v14 = vld [vmem:[#allocation11 + $0x500] ss:$16 sps:$4 sm:$0xff]  }
 0x433   :  { %9993 = vmatpush1.bf16.msra.mxu1 %v13252_v20  ;;  %9953 = vmatprep.subr.bf16.mxu0 %v13257_v47  ;;  %v13312_v20 = vld [vmem:[#allocation11 + $0x700] ss:$16 sps:$4 sm:$0xff]   ;;  %v13317_v47 = vld [vmem:[#allocation11 + $0x8e4] ss:$16 sps:$4 sm:$0xff]  }
 0x434   :  { %9994 = vmatprep.subr.bf16.mxu1 %v13260_v34  ;;  %v13320_v34 = vld [vmem:[#allocation11 + $0xae4] ss:$16 sps:$4 sm:$0xff]  }
 0x436   :  { %9954 = vmatpush1.bf16.msra.mxu0 %v13255_v35  ;;  %v13315_v35 = vld [vmem:[#allocation11 + $0x8e0] ss:$16 sps:$4 sm:$0xff]  }
 0x437   :  { %9995 = vmatpush1.bf16.msra.mxu1 %v13258_v5  ;;  %9955 = vmatprep.subr.bf16.mxu0 %v13263_v36  ;;  %v14685_v5 = vpack.c.bf16 %v14577_v41, %v14577_v41  ;;  %v13318_v36 = vld [vmem:[#allocation11 + $0xae0] ss:$16 sps:$4 sm:$0xff]   ;;  %v14698_v41 = vpack.c.bf16 %v14635_v28, %v14635_v28 }
 0x438   :  { %9996 = vmatprep.subr.bf16.mxu1 %v13266_v38  ;;  %v14689_v38 = vpack.c.bf16 %v14595_v11, %v14595_v11  ;;  %v13324_v11 = vld [vmem:[#allocation11 + $0xac0] ss:$16 sps:$4 sm:$0xff]  }
 0x439   :  { %v13330_v28 = vld [vmem:[#allocation11 + $0xaa0] ss:$16 sps:$4 sm:$0xff]  }
 0x43a   :  { %9956 = vmatpush1.bf16.msra.mxu0 %v13261_v8  ;;  %v13323_v8 = vld [vmem:[#allocation11 + $0x8c4] ss:$16 sps:$4 sm:$0xff]  }
 0x43b   :  { %9997 = vmatpush1.bf16.msra.mxu1 %v13264_v50  ;;  %9957 = vmatprep.subr.bf16.mxu0 %v13269_v17  ;;  %v14693_v50 = vpack.c.bf16 %v14619_v27, %v14619_v27  ;;  %v13326_v17 = vld [vmem:[#allocation11 + $0xac4] ss:$16 sps:$4 sm:$0xff]  }
 0x43c   :  { %9998 = vmatprep.subr.bf16.mxu1 %v13272_v44  ;;  %v13321_v44 = vld [vmem:[#allocation11 + $0x8c0] ss:$16 sps:$4 sm:$0xff]   ;;  %v13332_v27 = vld [vmem:[#allocation11 + $0xaa4] ss:$16 sps:$4 sm:$0xff]  }
 0x43d   :  { %v6366_v55 = vpop.f32.mrf.mxu0  ;;  %v14676_v53 = vpop.f32.mrf.mxu1 }
 0x43e   :  { %v14674_v29 = vadd.f32 %v6366_v55, %v14648_v16  ;;  %9958 = vmatpush2.bf16.msra.mxu0 %v13267_v10  ;;  %v13279_v16 = vld [vmem:[#allocation11 + $0x5a0] ss:$16 sps:$4 sm:$0xff]   ;;  %v13329_v10 = vld [vmem:[#allocation11 + $0x8a4] ss:$16 sps:$4 sm:$0xff]  }
 0x43f   :  { %9999 = vmatpush2.bf16.msra.mxu1 %v13270_v46  ;;  %v6368_v31 = vpop.f32.mrf.mxu0  ;;  %9959 = vmatprep.subr.bf16.mxu0 %v13275_v49  ;;  %v14681_v58 = vpop.f32.mrf.mxu1  ;;  %v13327_v46 = vld [vmem:[#allocation11 + $0x8a0] ss:$16 sps:$4 sm:$0xff]   ;;  %v13335_v49 = vld [vmem:[#allocation11 + $0x884] ss:$16 sps:$4 sm:$0xff]  }
 0x440   :  { %v14679_v60 = vadd.f32 %v6368_v31, %v14651_v21  ;;  %10000 = vmatprep.subr.bf16.mxu1 %v13278_v52  ;;  %v13288_v21 = vld [vmem:[#allocation11 + $0x780] ss:$16 sps:$4 sm:$0xff]   ;;  %v13338_v52 = vld [vmem:[#allocation11 + $0xa84] ss:$16 sps:$4 sm:$0xff]  }
 0x441   :  { %v6370_v40 = vpop.f32.mrf.mxu0  ;;  %v6411_v61 = vpop.f32.mrf.mxu1  ;;  %v13333_v55 = vld [vmem:[#allocation11 + $0x880] ss:$16 sps:$4 sm:$0xff]   ;;  %v13341_v31 = vld [vmem:[#allocation11 + $0x864] ss:$16 sps:$4 sm:$0xff]  }
 0x442   :  { %9960 = vmatpush2.bf16.msra.mxu0 %v13273_v59  ;;  %v13336_v59 = vld [vmem:[#allocation11 + $0xa80] ss:$16 sps:$4 sm:$0xff]   ;;  %v13347_v40 = vld [vmem:[#allocation11 + $0x844] ss:$16 sps:$4 sm:$0xff]  }
 0x443   :  { %10001 = vmatpush2.bf16.msra.mxu1 %v13276_v1  ;;  %v6371_v63 = vpop.f32.mrf.mxu0  ;;  %9961 = vmatprep.subr.bf16.mxu0 %v13281_v45  ;;  %v6412_v25 = vpop.f32.mrf.mxu1  ;;  %v13344_v1 = vld [vmem:[#allocation11 + $0xa64] ss:$16 sps:$4 sm:$0xff]   ;;  %v13339_v45 = vld [vmem:[#allocation11 + $0x860] ss:$16 sps:$4 sm:$0xff]  }
 0x444   :  { %10002 = vmatprep.subr.bf16.mxu1 %v13284_v13  ;;  %v13342_v13 = vld [vmem:[#allocation11 + $0xa60] ss:$16 sps:$4 sm:$0xff]   ;;  %v13350_v61 = vld [vmem:[#allocation11 + $0xa44] ss:$16 sps:$4 sm:$0xff]  }
 0x445   :  { %v13348_v63 = vld [vmem:[#allocation11 + $0xa40] ss:$16 sps:$4 sm:$0xff]  }
 0x446   :  { %9962 = vmatpush2.bf16.msra.mxu0 %v13279_v16  ;;  %v13345_v16 = vld [vmem:[#allocation11 + $0x840] ss:$16 sps:$4 sm:$0xff]  }
 0x447   :  { %10003 = vmatpush2.bf16.msra.mxu1 %v13282_v2  ;;  %9963 = vmatprep.subr.bf16.mxu0 %v13287_v0  ;;  %v13353_v2 = vld [vmem:[#allocation11 + $0x824] ss:$16 sps:$4 sm:$0xff]   ;;  %v13351_v25 = vld [vmem:[#allocation11 + $0x820] ss:$16 sps:$4 sm:$0xff]  }
 0x448   :  { %10004 = vmatprep.subr.bf16.mxu1 %v13290_v54  ;;  %v13356_v0 = vld [vmem:[#allocation11 + $0xa24] ss:$16 sps:$4 sm:$0xff]   ;;  %v13354_v54 = vld [vmem:[#allocation11 + $0xa20] ss:$16 sps:$4 sm:$0xff]  }
 0x44a   :  { %9964 = vmatpush2.bf16.msra.mxu0 %v13285_v62  ;;  %v13359_v62 = vld [vmem:[#allocation11 + $0x804] ss:$16 sps:$4 sm:$0xff]  }
 0x44b   :  { %10005 = vmatpush2.bf16.msra.mxu1 %v13288_v21  ;;  %9965 = vmatprep.subr.bf16.mxu0 %v13293_v7  ;;  %v13362_v21 = vld [vmem:[#allocation11 + $0xa04] ss:$16 sps:$4 sm:$0xff]   ;;  %v13357_v7 = vld [vmem:[#allocation11 + $0x800] ss:$16 sps:$4 sm:$0xff]  }
 0x44c   :  { %10006 = vmatprep.subr.bf16.mxu1 %v13296_v51  ;;  %v13360_v51 = vld [vmem:[#allocation11 + $0xa00] ss:$16 sps:$4 sm:$0xff]  }
 0x44e   :  { %9966 = vmatpush2.bf16.msra.mxu0 %v13291_v37  ;;  %v13365_v37 = vld [vmem:[#allocation11 + $0x9e4] ss:$16 sps:$4 sm:$0xff]  }
 0x44f   :  { %10007 = vmatpush2.bf16.msra.mxu1 %v13294_v33  ;;  %9967 = vmatprep.subr.bf16.mxu0 %v13299_v39  ;;  %v13368_v33 = vld [vmem:[#allocation11 + $0xbe4] ss:$16 sps:$4 sm:$0xff]   ;;  %v13363_v39 = vld [vmem:[#allocation11 + $0x9e0] ss:$16 sps:$4 sm:$0xff]  }
 0x450   :  { %10008 = vmatprep.subr.bf16.mxu1 %v13302_v6  ;;  %v13366_v6 = vld [vmem:[#allocation11 + $0xbe0] ss:$16 sps:$4 sm:$0xff]  }
 0x452   :  { %9968 = vmatpush2.bf16.msra.mxu0 %v13297_v42  ;;  %v13371_v42 = vld [vmem:[#allocation11 + $0x9c4] ss:$16 sps:$4 sm:$0xff]  }
 0x453   :  { %10009 = vmatpush2.bf16.msra.mxu1 %v13300_v9  ;;  %9969 = vmatprep.subr.bf16.mxu0 %v13305_v26  ;;  %v6408_v9 = vadd.f32 %v14676_v53, %v14520_v48  ;;  %v13374_v26 = vld [vmem:[#allocation11 + $0xbc4] ss:$16 sps:$4 sm:$0xff]   ;;  %v13375_v48 = vld [vmem:[#allocation11 + $0x9a0] ss:$16 sps:$4 sm:$0xff]  }
 0x454   :  { %10010 = vmatprep.subr.bf16.mxu1 %v13308_v12 }
 0x456   :  { %9970 = vmatpush2.bf16.msra.mxu0 %v13303_v15 }
 0x457   :  { %10011 = vmatpush2.bf16.msra.mxu1 %v13306_v18  ;;  %9971 = vmatprep.subr.bf16.mxu0 %v13311_v24  ;;  %v13369_v24 = vld [vmem:[#allocation11 + $0x9c0] ss:$16 sps:$4 sm:$0xff]  }
 0x458   :  { %10012 = vmatprep.subr.bf16.mxu1 %v13314_v19 }
 0x45a   :  { %9972 = vmatpush2.bf16.msra.mxu0 %v13309_v14  ;;  %v13372_v14 = vld [vmem:[#allocation11 + $0xbc0] ss:$16 sps:$4 sm:$0xff]  }
 0x45b   :  { %10013 = vmatpush2.bf16.msra.mxu1 %v13312_v20  ;;  %10023 = vmatprep.subr.bf16.mxu0 %v13317_v47  ;;  %v13377_v20 = vld [vmem:[#allocation11 + $0x9a4] ss:$16 sps:$4 sm:$0xff]  }
 0x45c   :  { %10064 = vmatprep.subr.bf16.mxu1 %v13320_v34 }
 0x45d   :  { %9974 = vmatmul.mubr.bf16.vlgmr.msra.gmra.mxu0 %v14685_v5 }
 0x45e   :  { %10015 = vmatmul.mubr.bf16.vlgmr.msra.gmra.mxu1 %v14689_v38  ;;  %10024 = vmatpush1.bf16.msra.mxu0 %v13315_v35  ;;  %v13380_v35 = vld [vmem:[#allocation11 + $0xba4] ss:$16 sps:$4 sm:$0xff]  }
 0x45f   :  { %10055 = vmatprep.mubr.bf16.mxu0 %v14693_v50  ;;  %10065 = vmatpush1.bf16.msra.mxu1 %v13318_v36 }
 0x460   :  { %10096 = vmatprep.mubr.bf16.mxu1 %v14698_v41  ;;  %10025 = vmatprep.subr.bf16.mxu0 %v13323_v8 }
 0x461   :  { %10066 = vmatprep.subr.bf16.mxu1 %v13326_v17  ;;  %v13378_v17 = vld [vmem:[#allocation11 + $0xba0] ss:$16 sps:$4 sm:$0xff]  }
 0x462   :  { %10026 = vmatpush1.bf16.msra.mxu0 %v13321_v44  ;;  %v13383_v44 = vld [vmem:[#allocation11 + $0x984] ss:$16 sps:$4 sm:$0xff]  }
 0x463   :  { %10067 = vmatpush1.bf16.msra.mxu1 %v13324_v11  ;;  %10027 = vmatprep.subr.bf16.mxu0 %v13329_v10  ;;  %v13386_v10 = vld [vmem:[#allocation11 + $0xb84] ss:$16 sps:$4 sm:$0xff]  }
 0x464   :  { %10068 = vmatprep.subr.bf16.mxu1 %v13332_v27  ;;  %v13381_v27 = vld [vmem:[#allocation11 + $0x980] ss:$16 sps:$4 sm:$0xff]  }
 0x466   :  { %10028 = vmatpush1.bf16.msra.mxu0 %v13327_v46  ;;  %v13384_v46 = vld [vmem:[#allocation11 + $0xb80] ss:$16 sps:$4 sm:$0xff]  }
 0x467   :  { %10069 = vmatpush1.bf16.msra.mxu1 %v13330_v28  ;;  %10029 = vmatprep.subr.bf16.mxu0 %v13335_v49  ;;  %v13389_v28 = vld [vmem:[#allocation11 + $0x964] ss:$16 sps:$4 sm:$0xff]  }
 0x468   :  { %10070 = vmatprep.subr.bf16.mxu1 %v13338_v52  ;;  %v13392_v49 = vld [vmem:[#allocation11 + $0xb64] ss:$16 sps:$4 sm:$0xff]   ;;  %v13387_v52 = vld [vmem:[#allocation11 + $0x960] ss:$16 sps:$4 sm:$0xff]  }
 0x46a   :  { %10030 = vmatpush1.bf16.msra.mxu0 %v13333_v55  ;;  %v13390_v55 = vld [vmem:[#allocation11 + $0xb60] ss:$16 sps:$4 sm:$0xff]  }
 0x46b   :  { %10071 = vmatpush1.bf16.msra.mxu1 %v13336_v59  ;;  %10031 = vmatprep.subr.bf16.mxu0 %v13341_v31  ;;  %v13395_v59 = vld [vmem:[#allocation11 + $0x944] ss:$16 sps:$4 sm:$0xff]  }
 0x46c   :  { %10072 = vmatprep.subr.bf16.mxu1 %v13344_v1  ;;  %v13398_v31 = vld [vmem:[#allocation11 + $0xb44] ss:$16 sps:$4 sm:$0xff]   ;;  %v13393_v1 = vld [vmem:[#allocation11 + $0x940] ss:$16 sps:$4 sm:$0xff]  }
 0x46e   :  { %10032 = vmatpush1.bf16.msra.mxu0 %v13339_v45  ;;  %v13396_v45 = vld [vmem:[#allocation11 + $0xb40] ss:$16 sps:$4 sm:$0xff]  }
 0x46f   :  { %10073 = vmatpush1.bf16.msra.mxu1 %v13342_v13  ;;  %10033 = vmatprep.subr.bf16.mxu0 %v13347_v40  ;;  %v13401_v13 = vld [vmem:[#allocation11 + $0x924] ss:$16 sps:$4 sm:$0xff]  }
 0x470   :  { %10074 = vmatprep.subr.bf16.mxu1 %v13350_v61  ;;  %v13404_v40 = vld [vmem:[#allocation11 + $0xb24] ss:$16 sps:$4 sm:$0xff]   ;;  %v13399_v61 = vld [vmem:[#allocation11 + $0x920] ss:$16 sps:$4 sm:$0xff]  }
 0x472   :  { %10034 = vmatpush1.bf16.msra.mxu0 %v13345_v16  ;;  %v13402_v16 = vld [vmem:[#allocation11 + $0xb20] ss:$16 sps:$4 sm:$0xff]  }
 0x473   :  { %10075 = vmatpush1.bf16.msra.mxu1 %v13348_v63  ;;  %10035 = vmatprep.subr.bf16.mxu0 %v13353_v2  ;;  %v13407_v63 = vld [vmem:[#allocation11 + $0x904] ss:$16 sps:$4 sm:$0xff]   ;;  %v6410_v2 = vadd.f32 %v14681_v58, %v14525_v57  ;;  %v13414_v57 = vld [vmem:[#allocation11 + $0xee0] ss:$16 sps:$4 sm:$0xff]   ;;  %v14715_v58 = vpack.c.bf16 %v14631_v56, %v14631_v56 }
 0x474   :  { %10076 = vmatprep.subr.bf16.mxu1 %v13356_v0  ;;  %v13410_v0 = vld [vmem:[#allocation11 + $0xb04] ss:$16 sps:$4 sm:$0xff]   ;;  %v13417_v56 = vld [vmem:[#allocation11 + $0xcc0] ss:$16 sps:$4 sm:$0xff]  }
 0x476   :  { %10036 = vmatpush1.bf16.msra.mxu0 %v13351_v25 }
 0x477   :  { %10077 = vmatpush1.bf16.msra.mxu1 %v13354_v54  ;;  %10037 = vmatprep.subr.bf16.mxu0 %v13359_v62  ;;  %v13405_v54 = vld [vmem:[#allocation11 + $0x900] ss:$16 sps:$4 sm:$0xff]  }
 0x478   :  { %10078 = vmatprep.subr.bf16.mxu1 %v13362_v21  ;;  %v13408_v62 = vld [vmem:[#allocation11 + $0xb00] ss:$16 sps:$4 sm:$0xff]   ;;  %v13413_v21 = vld [vmem:[#allocation11 + $0xce4] ss:$16 sps:$4 sm:$0xff]  }
 0x47a   :  { %10038 = vmatpush1.bf16.msra.mxu0 %v13357_v7  ;;  %v13416_v7 = vld [vmem:[#allocation11 + $0xee4] ss:$16 sps:$4 sm:$0xff]  }
 0x47b   :  { %10079 = vmatpush1.bf16.msra.mxu1 %v13360_v51  ;;  %10039 = vmatprep.subr.bf16.mxu0 %v13365_v37  ;;  %v13411_v37 = vld [vmem:[#allocation11 + $0xce0] ss:$16 sps:$4 sm:$0xff]  }
 0x47c   :  { %10080 = vmatprep.subr.bf16.mxu1 %v13368_v33  ;;  %v14711_v33 = vpack.c.bf16 %v14613_v22, %v14613_v22 }
 0x47d   :  { %v6448_v12 = vpop.f32.mrf.mxu0  ;;  %v6489_v18 = vpop.f32.mrf.mxu1 }
 0x47e   :  { %v6449_v15 = vadd.f32 %v6448_v12, %v6408_v9  ;;  %10040 = vmatpush2.bf16.msra.mxu0 %v13363_v39  ;;  %v13419_v39 = vld [vmem:[#allocation11 + $0xcc4] ss:$16 sps:$4 sm:$0xff]  }
 0x47f   :  { %10081 = vmatpush2.bf16.msra.mxu1 %v13366_v6  ;;  %v6450_v19 = vpop.f32.mrf.mxu0  ;;  %10041 = vmatprep.subr.bf16.mxu0 %v13371_v42  ;;  %v6491_v34 = vpop.f32.mrf.mxu1  ;;  %v14719_v6 = vpack.c.bf16 %v14679_v60, %v14679_v60  ;;  %v13422_v9 = vld [vmem:[#allocation11 + $0xec4] ss:$16 sps:$4 sm:$0xff]   ;;  %v13420_v60 = vld [vmem:[#allocation11 + $0xec0] ss:$16 sps:$4 sm:$0xff]  }
 0x480   :  { %v14705_v47 = vadd.f32 %v6489_v18, %v6449_v15  ;;  %10082 = vmatprep.subr.bf16.mxu1 %v13374_v26  ;;  %v6451_v25 = vadd.f32 %v6450_v19, %v6410_v2  ;;  %v13425_v15 = vld [vmem:[#allocation11 + $0xca4] ss:$16 sps:$4 sm:$0xff]   ;;  %v13459_v2 = vld [vmem:[#allocation11 + $0xde0] ss:$16 sps:$4 sm:$0xff]  }
 0x481   :  { %v6452_v36 = vpop.f32.mrf.mxu0  ;;  %v6493_v8 = vpop.f32.mrf.mxu1 }
 0x482   :  { %10042 = vmatpush2.bf16.msra.mxu0 %v13369_v24  ;;  %v6492_v51 = vadd.f32 %v6491_v34, %v6451_v25  ;;  %v13428_v24 = vld [vmem:[#allocation11 + $0xea4] ss:$16 sps:$4 sm:$0xff]  }
 0x483   :  { %10083 = vmatpush2.bf16.msra.mxu1 %v13372_v14  ;;  %v6453_v53 = vpop.f32.mrf.mxu0  ;;  %10043 = vmatprep.subr.bf16.mxu0 %v13377_v20  ;;  %v6494_v11 = vpop.f32.mrf.mxu1  ;;  %v13423_v20 = vld [vmem:[#allocation11 + $0xca0] ss:$16 sps:$4 sm:$0xff]   ;;  %v13431_v36 = vld [vmem:[#allocation11 + $0xc84] ss:$16 sps:$4 sm:$0xff]  }
 0x484   :  { %10084 = vmatprep.subr.bf16.mxu1 %v13380_v35  ;;  %v14724_v22 = vpack.c.bf16 %v6492_v51, %v6492_v51  ;;  %v13426_v35 = vld [vmem:[#allocation11 + $0xea0] ss:$16 sps:$4 sm:$0xff]   ;;  %v13440_v11 = vld [vmem:[#allocation11 + $0xe64] ss:$16 sps:$4 sm:$0xff]  }
 0x485   :  { %v13429_v53 = vld [vmem:[#allocation11 + $0xc80] ss:$16 sps:$4 sm:$0xff]   ;;  %v13467_v25 = vld [vmem:[#allocation11 + $0xdc4] ss:$16 sps:$4 sm:$0xff]  }
 0x486   :  { %10044 = vmatpush2.bf16.msra.mxu0 %v13375_v48  ;;  %v13434_v48 = vld [vmem:[#allocation11 + $0xe84] ss:$16 sps:$4 sm:$0xff]  }
 0x487   :  { %10085 = vmatpush2.bf16.msra.mxu1 %v13378_v17  ;;  %10045 = vmatprep.subr.bf16.mxu0 %v13383_v44  ;;  %v13432_v17 = vld [vmem:[#allocation11 + $0xe80] ss:$16 sps:$4 sm:$0xff]   ;;  %v13437_v44 = vld [vmem:[#allocation11 + $0xc64] ss:$16 sps:$4 sm:$0xff]  }
 0x488   :  { %10086 = vmatprep.subr.bf16.mxu1 %v13386_v10  ;;  %v13435_v10 = vld [vmem:[#allocation11 + $0xc60] ss:$16 sps:$4 sm:$0xff]   ;;  %v13476_v51 = vld [vmem:[#allocation11 + $0xfa4] ss:$16 sps:$4 sm:$0xff]  }
 0x48a   :  { %10046 = vmatpush2.bf16.msra.mxu0 %v13381_v27  ;;  %v13438_v27 = vld [vmem:[#allocation11 + $0xe60] ss:$16 sps:$4 sm:$0xff]  }
 0x48b   :  { %10087 = vmatpush2.bf16.msra.mxu1 %v13384_v46  ;;  %10047 = vmatprep.subr.bf16.mxu0 %v13389_v28  ;;  %v13443_v46 = vld [vmem:[#allocation11 + $0xc44] ss:$16 sps:$4 sm:$0xff]  }
 0x48c   :  { %10088 = vmatprep.subr.bf16.mxu1 %v13392_v49  ;;  %v13446_v28 = vld [vmem:[#allocation11 + $0xe44] ss:$16 sps:$4 sm:$0xff]   ;;  %v13441_v49 = vld [vmem:[#allocation11 + $0xc40] ss:$16 sps:$4 sm:$0xff]  }
 0x48e   :  { %10048 = vmatpush2.bf16.msra.mxu0 %v13387_v52  ;;  %v13444_v52 = vld [vmem:[#allocation11 + $0xe40] ss:$16 sps:$4 sm:$0xff]  }
 0x48f   :  { %10089 = vmatpush2.bf16.msra.mxu1 %v13390_v55  ;;  %10049 = vmatprep.subr.bf16.mxu0 %v13395_v59  ;;  %v13449_v55 = vld [vmem:[#allocation11 + $0xc24] ss:$16 sps:$4 sm:$0xff]  }
 0x490   :  { %10090 = vmatprep.subr.bf16.mxu1 %v13398_v31  ;;  %v13452_v59 = vld [vmem:[#allocation11 + $0xe24] ss:$16 sps:$4 sm:$0xff]   ;;  %v13447_v31 = vld [vmem:[#allocation11 + $0xc20] ss:$16 sps:$4 sm:$0xff]  }
 0x492   :  { %10050 = vmatpush2.bf16.msra.mxu0 %v13393_v1  ;;  %v13450_v1 = vld [vmem:[#allocation11 + $0xe20] ss:$16 sps:$4 sm:$0xff]  }
 0x493   :  { %10091 = vmatpush2.bf16.msra.mxu1 %v13396_v45  ;;  %10051 = vmatprep.subr.bf16.mxu0 %v13401_v13  ;;  %v13455_v45 = vld [vmem:[#allocation11 + $0xc04] ss:$16 sps:$4 sm:$0xff]  }
 0x494   :  { %10092 = vmatprep.subr.bf16.mxu1 %v13404_v40  ;;  %v13458_v13 = vld [vmem:[#allocation11 + $0xe04] ss:$16 sps:$4 sm:$0xff]   ;;  %v13453_v40 = vld [vmem:[#allocation11 + $0xc00] ss:$16 sps:$4 sm:$0xff]  }
 0x496   :  { %10052 = vmatpush2.bf16.msra.mxu0 %v13399_v61  ;;  %v13456_v61 = vld [vmem:[#allocation11 + $0xe00] ss:$16 sps:$4 sm:$0xff]  }
 0x497   :  { %10093 = vmatpush2.bf16.msra.mxu1 %v13402_v16  ;;  %10053 = vmatprep.subr.bf16.mxu0 %v13407_v63  ;;  %v13461_v16 = vld [vmem:[#allocation11 + $0xde4] ss:$16 sps:$4 sm:$0xff]  }
 0x498   :  { %10094 = vmatprep.subr.bf16.mxu1 %v13410_v0  ;;  %v13464_v63 = vld [vmem:[#allocation11 + $0xfe4] ss:$16 sps:$4 sm:$0xff]   ;;  %v13462_v0 = vld [vmem:[#allocation11 + $0xfe0] ss:$16 sps:$4 sm:$0xff]  }
 0x49a   :  { %10054 = vmatpush2.bf16.msra.mxu0 %v13405_v54  ;;  %v13470_v54 = vld [vmem:[#allocation11 + $0xfc4] ss:$16 sps:$4 sm:$0xff]  }
 0x49b   :  { %10095 = vmatpush2.bf16.msra.mxu1 %v13408_v62  ;;  %10105 = vmatprep.subr.bf16.mxu0 %v13413_v21  ;;  %v13465_v62 = vld [vmem:[#allocation11 + $0xdc0] ss:$16 sps:$4 sm:$0xff]  }
 0x49c   :  { %10146 = vmatprep.subr.bf16.mxu1 %v13416_v7  ;;  %v13468_v21 = vld [vmem:[#allocation11 + $0xfc0] ss:$16 sps:$4 sm:$0xff]   ;;  %v13473_v7 = vld [vmem:[#allocation11 + $0xda4] ss:$16 sps:$4 sm:$0xff]  }
 0x49d   :  { %v14721_v42 = vpop.f32.mrf.mxu0  ;;  %10056 = vmatmul.mubr.bf16.vlgmr.msra.gmra.mxu0 %v14711_v33  ;;  %v14726_v26 = vpop.f32.mrf.mxu1 }
 0x49e   :  { %10097 = vmatmul.mubr.bf16.vlgmr.msra.gmra.mxu1 %v14715_v58  ;;  %10106 = vmatpush1.bf16.msra.mxu0 %v13411_v37  ;;  %v13471_v37 = vld [vmem:[#allocation11 + $0xda0] ss:$16 sps:$4 sm:$0xff]  }
 0x49f   :  { %10137 = vmatprep.mubr.bf16.mxu0 %v14719_v6  ;;  %10147 = vmatpush1.bf16.msra.mxu1 %v13414_v57  ;;  %v14730_v12 = vpop.f32.mrf.mxu0  ;;  %v14733_v18 = vpop.f32.mrf.mxu1  ;;  %v13474_v57 = vld [vmem:[#allocation11 + $0xfa0] ss:$16 sps:$4 sm:$0xff]  }
 0x4a0   :  { %10178 = vmatprep.mubr.bf16.mxu1 %v14724_v22  ;;  %10107 = vmatprep.subr.bf16.mxu0 %v13419_v39  ;;  %v13479_v39 = vld [vmem:[#allocation11 + $0xd84] ss:$16 sps:$4 sm:$0xff]  }
 0x4a1   :  { %v7255_v19 = vpop.f32.mrf.mxu0  ;;  %10148 = vmatprep.subr.bf16.mxu1 %v13422_v9  ;;  %v7296_v14 = vpop.f32.mrf.mxu1  ;;  %v13482_v9 = vld [vmem:[#allocation11 + $0xf84] ss:$16 sps:$4 sm:$0xff]  }
 0x4a2   :  { %10108 = vmatpush1.bf16.msra.mxu0 %v13417_v56  ;;  %v13477_v56 = vld [vmem:[#allocation11 + $0xd80] ss:$16 sps:$4 sm:$0xff]  }
 0x4a3   :  { %10149 = vmatpush1.bf16.msra.mxu1 %v13420_v60  ;;  %v7256_v34 = vpop.f32.mrf.mxu0  ;;  %10109 = vmatprep.subr.bf16.mxu0 %v13425_v15  ;;  %v7297_v8 = vpop.f32.mrf.mxu1  ;;  %v13480_v60 = vld [vmem:[#allocation11 + $0xf80] ss:$16 sps:$4 sm:$0xff]   ;;  %v13485_v15 = vld [vmem:[#allocation11 + $0xd64] ss:$16 sps:$4 sm:$0xff]  }
 0x4a4   :  { %10150 = vmatprep.subr.bf16.mxu1 %v13428_v24  ;;  %v13488_v24 = vld [vmem:[#allocation11 + $0xf64] ss:$16 sps:$4 sm:$0xff]   ;;  %v13483_v19 = vld [vmem:[#allocation11 + $0xd60] ss:$16 sps:$4 sm:$0xff]  }
 0x4a5   :  { %v13486_v14 = vld [vmem:[#allocation11 + $0xf60] ss:$16 sps:$4 sm:$0xff]   ;;  %v13494_v34 = vld [vmem:[#allocation11 + $0xf44] ss:$16 sps:$4 sm:$0xff]  }
 0x4a6   :  { %10110 = vmatpush1.bf16.msra.mxu0 %v13423_v20  ;;  %v13491_v20 = vld [vmem:[#allocation11 + $0xd44] ss:$16 sps:$4 sm:$0xff]  }
 0x4a7   :  { %10151 = vmatpush1.bf16.msra.mxu1 %v13426_v35  ;;  %10111 = vmatprep.subr.bf16.mxu0 %v13431_v36  ;;  %v13489_v35 = vld [vmem:[#allocation11 + $0xd40] ss:$16 sps:$4 sm:$0xff]   ;;  %v13497_v8 = vld [vmem:[#allocation11 + $0xd24] ss:$16 sps:$4 sm:$0xff]  }
 0x4a8   :  { %10152 = vmatprep.subr.bf16.mxu1 %v13434_v48  ;;  %v13492_v36 = vld [vmem:[#allocation11 + $0xf40] ss:$16 sps:$4 sm:$0xff]   ;;  %v13500_v48 = vld [vmem:[#allocation11 + $0xf24] ss:$16 sps:$4 sm:$0xff]  }
 0x4aa   :  { %10112 = vmatpush1.bf16.msra.mxu0 %v13429_v53  ;;  %v13495_v53 = vld [vmem:[#allocation11 + $0xd20] ss:$16 sps:$4 sm:$0xff]  }
 0x4ab   :  { %10153 = vmatpush1.bf16.msra.mxu1 %v13432_v17  ;;  %10113 = vmatprep.subr.bf16.mxu0 %v13437_v44  ;;  %v13498_v17 = vld [vmem:[#allocation11 + $0xf20] ss:$16 sps:$4 sm:$0xff]   ;;  %v13503_v44 = vld [vmem:[#allocation11 + $0xd04] ss:$16 sps:$4 sm:$0xff]  }
 0x4ac   :  { %10154 = vmatprep.subr.bf16.mxu1 %v13440_v11  ;;  %v13506_v11 = vld [vmem:[#allocation11 + $0xf04] ss:$16 sps:$4 sm:$0xff]  }
 0x4ae   :  { %10114 = vmatpush1.bf16.msra.mxu0 %v13435_v10  ;;  %v13501_v10 = vld [vmem:[#allocation11 + $0xd00] ss:$16 sps:$4 sm:$0xff]  }
 0x4af   :  { %10155 = vmatpush1.bf16.msra.mxu1 %v13438_v27  ;;  %10115 = vmatprep.subr.bf16.mxu0 %v13443_v46  ;;  %v13504_v27 = vld [vmem:[#allocation11 + $0xf00] ss:$16 sps:$4 sm:$0xff]   ;;  %v13509_v46 = vld [vmem:[#allocation11 + $0xec] ss:$16 sps:$4 sm:$0xff]  }
 0x4b0   :  { %10156 = vmatprep.subr.bf16.mxu1 %v13446_v28  ;;  %v13512_v28 = vld [vmem:[#allocation11 + $0x2ec] ss:$16 sps:$4 sm:$0xff]  }
 0x4b2   :  { %10116 = vmatpush1.bf16.msra.mxu0 %v13441_v49  ;;  %v13507_v49 = vld [vmem:[#allocation11 + $0xe8] ss:$16 sps:$4 sm:$0xff]  }
 0x4b3   :  { %10157 = vmatpush1.bf16.msra.mxu1 %v13444_v52  ;;  %10117 = vmatprep.subr.bf16.mxu0 %v13449_v55  ;;  %v14737_v52 = vpack.c.bf16 %v14674_v29, %v14674_v29  ;;  %v13510_v55 = vld [vmem:[#allocation11 + $0x2e8] ss:$16 sps:$4 sm:$0xff]  }
 0x4b4   :  { %10158 = vmatprep.subr.bf16.mxu1 %v13452_v59  ;;  %v14741_v59 = vpack.c.bf16 %v14705_v47, %v14705_v47  ;;  %v13513_v29 = vld [vmem:[#allocation11 + $0xc8] ss:$16 sps:$4 sm:$0xff]   ;;  %v13521_v47 = vld [vmem:[#allocation11 + $0xac] ss:$16 sps:$4 sm:$0xff]  }
 0x4b6   :  { %10118 = vmatpush1.bf16.msra.mxu0 %v13447_v31  ;;  %v13515_v31 = vld [vmem:[#allocation11 + $0xcc] ss:$16 sps:$4 sm:$0xff]  }
 0x4b7   :  { %10159 = vmatpush1.bf16.msra.mxu1 %v13450_v1  ;;  %10119 = vmatprep.subr.bf16.mxu0 %v13455_v45  ;;  %v13518_v45 = vld [vmem:[#allocation11 + $0x2cc] ss:$16 sps:$4 sm:$0xff]  }
 0x4b8   :  { %10160 = vmatprep.subr.bf16.mxu1 %v13458_v13 }
 0x4ba   :  { %10120 = vmatpush1.bf16.msra.mxu0 %v13453_v40 }
 0x4bb   :  { %10161 = vmatpush1.bf16.msra.mxu1 %v13456_v61  ;;  %10121 = vmatprep.subr.bf16.mxu0 %v13461_v16  ;;  %v13516_v16 = vld [vmem:[#allocation11 + $0x2c8] ss:$16 sps:$4 sm:$0xff]  }
 0x4bc   :  { %10162 = vmatprep.subr.bf16.mxu1 %v13464_v63 }
 0x4be   :  { %10122 = vmatpush2.bf16.msra.mxu0 %v13459_v2 }
 0x4bf   :  { %10163 = vmatpush2.bf16.msra.mxu1 %v13462_v0  ;;  %10123 = vmatprep.subr.bf16.mxu0 %v13467_v25 }
 0x4c0   :  { %10164 = vmatprep.subr.bf16.mxu1 %v13470_v54 }
 0x4c2   :  { %10124 = vmatpush2.bf16.msra.mxu0 %v13465_v62 }
 0x4c3   :  { %10165 = vmatpush2.bf16.msra.mxu1 %v13468_v21  ;;  %10125 = vmatprep.subr.bf16.mxu0 %v13473_v7  ;;  %v13522_v7 = vld [vmem:[#allocation11 + $0x2a8] ss:$16 sps:$4 sm:$0xff]  }
 0x4c4   :  { %10166 = vmatprep.subr.bf16.mxu1 %v13476_v51  ;;  %v13527_v51 = vld [vmem:[#allocation11 + $0x8c] ss:$16 sps:$4 sm:$0xff]  }
 0x4c6   :  { %10126 = vmatpush2.bf16.msra.mxu0 %v13471_v37 }
 0x4c7   :  { %10167 = vmatpush2.bf16.msra.mxu1 %v13474_v57  ;;  %10127 = vmatprep.subr.bf16.mxu0 %v13479_v39  ;;  %v13528_v57 = vld [vmem:[#allocation11 + $0x288] ss:$16 sps:$4 sm:$0xff]   ;;  %v13533_v39 = vld [vmem:[#allocation11 + $0x6c] ss:$16 sps:$4 sm:$0xff]  }
 0x4c8   :  { %10168 = vmatprep.subr.bf16.mxu1 %v13482_v9  ;;  %v13536_v9 = vld [vmem:[#allocation11 + $0x26c] ss:$16 sps:$4 sm:$0xff]  }
 0x4ca   :  { %10128 = vmatpush2.bf16.msra.mxu0 %v13477_v56  ;;  %v13531_v56 = vld [vmem:[#allocation11 + $0x68] ss:$16 sps:$4 sm:$0xff]  }
 0x4cb   :  { %10169 = vmatpush2.bf16.msra.mxu1 %v13480_v60  ;;  %10129 = vmatprep.subr.bf16.mxu0 %v13485_v15  ;;  %v13534_v60 = vld [vmem:[#allocation11 + $0x268] ss:$16 sps:$4 sm:$0xff]   ;;  %v13539_v15 = vld [vmem:[#allocation11 + $0x4c] ss:$16 sps:$4 sm:$0xff]  }
 0x4cc   :  { %10170 = vmatprep.subr.bf16.mxu1 %v13488_v24  ;;  %v13542_v24 = vld [vmem:[#allocation11 + $0x24c] ss:$16 sps:$4 sm:$0xff]  }
 0x4ce   :  { %10130 = vmatpush2.bf16.msra.mxu0 %v13483_v19  ;;  %v13537_v19 = vld [vmem:[#allocation11 + $0x48] ss:$16 sps:$4 sm:$0xff]  }
 0x4cf   :  { %10171 = vmatpush2.bf16.msra.mxu1 %v13486_v14  ;;  %10131 = vmatprep.subr.bf16.mxu0 %v13491_v20  ;;  %v13540_v14 = vld [vmem:[#allocation11 + $0x248] ss:$16 sps:$4 sm:$0xff]   ;;  %v13545_v20 = vld [vmem:[#allocation11 + $0x2c] ss:$16 sps:$4 sm:$0xff]  }
 0x4d0   :  { %10172 = vmatprep.subr.bf16.mxu1 %v13494_v34  ;;  %v13548_v34 = vld [vmem:[#allocation11 + $0x22c] ss:$16 sps:$4 sm:$0xff]  }
 0x4d2   :  { %10132 = vmatpush2.bf16.msra.mxu0 %v13489_v35  ;;  %v13543_v35 = vld [vmem:[#allocation11 + $0x28] ss:$16 sps:$4 sm:$0xff]  }
 0x4d3   :  { %10173 = vmatpush2.bf16.msra.mxu1 %v13492_v36  ;;  %10133 = vmatprep.subr.bf16.mxu0 %v13497_v8  ;;  %v13546_v36 = vld [vmem:[#allocation11 + $0x228] ss:$16 sps:$4 sm:$0xff]   ;;  %v13551_v8 = vld [vmem:[#allocation11 + $0xc] ss:$16 sps:$4 sm:$0xff]  }
 0x4d4   :  { %10174 = vmatprep.subr.bf16.mxu1 %v13500_v48  ;;  %v13554_v48 = vld [vmem:[#allocation11 + $0x20c] ss:$16 sps:$4 sm:$0xff]  }
 0x4d6   :  { %10134 = vmatpush2.bf16.msra.mxu0 %v13495_v53  ;;  %v13549_v53 = vld [vmem:[#allocation11 + $0x8] ss:$16 sps:$4 sm:$0xff]  }
 0x4d7   :  { %10175 = vmatpush2.bf16.msra.mxu1 %v13498_v17  ;;  %10135 = vmatprep.subr.bf16.mxu0 %v13503_v44  ;;  %v13552_v17 = vld [vmem:[#allocation11 + $0x208] ss:$16 sps:$4 sm:$0xff]   ;;  %v13557_v44 = vld [vmem:[#allocation11 + $0x1ec] ss:$16 sps:$4 sm:$0xff]  }
 0x4d8   :  { %10176 = vmatprep.subr.bf16.mxu1 %v13506_v11  ;;  %v13560_v11 = vld [vmem:[#allocation11 + $0x3ec] ss:$16 sps:$4 sm:$0xff]  }
 0x4da   :  { %10136 = vmatpush2.bf16.msra.mxu0 %v13501_v10  ;;  %v13555_v10 = vld [vmem:[#allocation11 + $0x1e8] ss:$16 sps:$4 sm:$0xff]  }
 0x4db   :  { %10177 = vmatpush2.bf16.msra.mxu1 %v13504_v27  ;;  %10187 = vmatprep.subr.bf16.mxu0 %v13509_v46  ;;  %v13558_v27 = vld [vmem:[#allocation11 + $0x3e8] ss:$16 sps:$4 sm:$0xff]   ;;  %v13563_v46 = vld [vmem:[#allocation11 + $0x1cc] ss:$16 sps:$4 sm:$0xff]  }
 0x4dc   :  { %10228 = vmatprep.subr.bf16.mxu1 %v13512_v28  ;;  %v13566_v28 = vld [vmem:[#allocation11 + $0x3cc] ss:$16 sps:$4 sm:$0xff]  }
 0x4dd   :  { %v9893_v1 = vpop.f32.mrf.mxu0  ;;  %10138 = vmatmul.mubr.bf16.vlgmr.msra.gmra.mxu0 %v14737_v52 }
 0x4de   :  { %v9894_v13 = vadd.f32 %v9893_v1, %v14721_v42  ;;  %v9934_v40 = vpop.f32.mrf.mxu1  ;;  %10179 = vmatmul.mubr.bf16.vlgmr.msra.gmra.mxu1 %v14741_v59  ;;  %10188 = vmatpush1.bf16.msra.mxu0 %v13507_v49  ;;  %v13524_v42 = vld [vmem:[#allocation11 + $0x2ac] ss:$16 sps:$4 sm:$0xff]   ;;  %v13561_v49 = vld [vmem:[#allocation11 + $0x1c8] ss:$16 sps:$4 sm:$0xff]  }
 0x4df   :  { %10219 = vmatprep.mubr.bf16.mxu0 %v14639_v32  ;;  %10229 = vmatpush1.bf16.msra.mxu1 %v13510_v55  ;;  %v9895_v61 = vpop.f32.mrf.mxu0  ;;  %v13519_v32 = vld [vmem:[#allocation11 + $0xa8] ss:$16 sps:$4 sm:$0xff]   ;;  %v13572_v1 = vld [vmem:[#allocation11 + $0x3ac] ss:$16 sps:$4 sm:$0xff]  }
 0x4e0   :  { %v14747_v63 = vadd.f32 %v9934_v40, %v9894_v13  ;;  %10260 = vmatprep.mubr.bf16.mxu1 %v14643_v43  ;;  %v9896_v2 = vadd.f32 %v9895_v61, %v14730_v12  ;;  %v9936_v0 = vpop.f32.mrf.mxu1  ;;  %10189 = vmatprep.subr.bf16.mxu0 %v13515_v31  ;;  %v13530_v43 = vld [vmem:[#allocation11 + $0x28c] ss:$16 sps:$4 sm:$0xff]   ;;  %v13525_v12 = vld [vmem:[#allocation11 + $0x88] ss:$16 sps:$4 sm:$0xff]  }
 0x4e1   :  { %v9897_v25 = vpop.f32.mrf.mxu0  ;;  %10230 = vmatprep.subr.bf16.mxu1 %v13518_v45  ;;  %v13564_v55 = vld [vmem:[#allocation11 + $0x3c8] ss:$16 sps:$4 sm:$0xff]   ;;  %v13569_v31 = vld [vmem:[#allocation11 + $0x1ac] ss:$16 sps:$4 sm:$0xff]  }
 0x4e2   :  { %v14751_v54 = vadd.f32 %v9936_v0, %v9896_v2  ;;  %v9938_v62 = vpop.f32.mrf.mxu1  ;;  %10190 = vmatpush1.bf16.msra.mxu0 %v13513_v29  ;;  %v13567_v45 = vld [vmem:[#allocation11 + $0x1a8] ss:$16 sps:$4 sm:$0xff]   ;;  %v13575_v40 = vld [vmem:[#allocation11 + $0x18c] ss:$16 sps:$4 sm:$0xff]  }
 0x4e3   :  { %10231 = vmatpush1.bf16.msra.mxu1 %v13516_v16  ;;  %v9898_v21 = vpop.f32.mrf.mxu0  ;;  %10191 = vmatprep.subr.bf16.mxu0 %v13521_v47  ;;  %v13570_v13 = vld [vmem:[#allocation11 + $0x3a8] ss:$16 sps:$4 sm:$0xff]   ;;  %v13578_v29 = vld [vmem:[#allocation11 + $0x38c] ss:$16 sps:$4 sm:$0xff]  }
 0x4e4   :  { %v9939_v37 = vpop.f32.mrf.mxu1  ;;  %10232 = vmatprep.subr.bf16.mxu1 %v13524_v42  ;;  %v13573_v61 = vld [vmem:[#allocation11 + $0x188] ss:$16 sps:$4 sm:$0xff]   ;;  %v13581_v47 = vld [vmem:[#allocation11 + $0x16c] ss:$16 sps:$4 sm:$0xff]  }
 0x4e5   :  { %v13576_v16 = vld [vmem:[#allocation11 + $0x388] ss:$16 sps:$4 sm:$0xff]   ;;  %v13584_v2 = vld [vmem:[#allocation11 + $0x36c] ss:$16 sps:$4 sm:$0xff]  }
 0x4e6   :  { %10192 = vmatpush1.bf16.msra.mxu0 %v13519_v32  ;;  %v13579_v0 = vld [vmem:[#allocation11 + $0x168] ss:$16 sps:$4 sm:$0xff]   ;;  %v13587_v25 = vld [vmem:[#allocation11 + $0x14c] ss:$16 sps:$4 sm:$0xff]  }
 0x4e7   :  { %10233 = vmatpush1.bf16.msra.mxu1 %v13522_v7  ;;  %10193 = vmatprep.subr.bf16.mxu0 %v13527_v51  ;;  %v13582_v42 = vld [vmem:[#allocation11 + $0x368] ss:$16 sps:$4 sm:$0xff]   ;;  %v13590_v62 = vld [vmem:[#allocation11 + $0x34c] ss:$16 sps:$4 sm:$0xff]  }
 0x4e8   :  { %10234 = vmatprep.subr.bf16.mxu1 %v13530_v43  ;;  %v13585_v32 = vld [vmem:[#allocation11 + $0x148] ss:$16 sps:$4 sm:$0xff]   ;;  %v13593_v7 = vld [vmem:[#allocation11 + $0x12c] ss:$16 sps:$4 sm:$0xff]  }
 0x4e9   :  { %v13588_v21 = vld [vmem:[#allocation11 + $0x348] ss:$16 sps:$4 sm:$0xff]   ;;  %v13596_v51 = vld [vmem:[#allocation11 + $0x32c] ss:$16 sps:$4 sm:$0xff]  }
 0x4ea   :  { %10194 = vmatpush1.bf16.msra.mxu0 %v13525_v12  ;;  %v13591_v37 = vld [vmem:[#allocation11 + $0x128] ss:$16 sps:$4 sm:$0xff]   ;;  %v13599_v12 = vld [vmem:[#allocation11 + $0x10c] ss:$16 sps:$4 sm:$0xff]  }
 0x4eb   :  { %10235 = vmatpush1.bf16.msra.mxu1 %v13528_v57  ;;  %10195 = vmatprep.subr.bf16.mxu0 %v13533_v39  ;;  %v13594_v43 = vld [vmem:[#allocation11 + $0x328] ss:$16 sps:$4 sm:$0xff]   ;;  %v13602_v57 = vld [vmem:[#allocation11 + $0x30c] ss:$16 sps:$4 sm:$0xff]  }
 0x4ec   :  { %10236 = vmatprep.subr.bf16.mxu1 %v13536_v9  ;;  %v13597_v39 = vld [vmem:[#allocation11 + $0x108] ss:$16 sps:$4 sm:$0xff]  }
 0x4ed   :  { %v13600_v9 = vld [vmem:[#allocation11 + $0x308] ss:$16 sps:$4 sm:$0xff]  }
 0x4ee   :  { %10196 = vmatpush1.bf16.msra.mxu0 %v13531_v56  ;;  %v13605_v56 = vld [vmem:[#allocation11 + $0x4ec] ss:$16 sps:$4 sm:$0xff]  }
 0x4ef   :  { %10237 = vmatpush1.bf16.msra.mxu1 %v13534_v60  ;;  %10197 = vmatprep.subr.bf16.mxu0 %v13539_v15  ;;  %v13608_v60 = vld [vmem:[#allocation11 + $0x6ec] ss:$16 sps:$4 sm:$0xff]   ;;  %v13603_v15 = vld [vmem:[#allocation11 + $0x4e8] ss:$16 sps:$4 sm:$0xff]  }
 0x4f0   :  { %10238 = vmatprep.subr.bf16.mxu1 %v13542_v24  ;;  %v13606_v24 = vld [vmem:[#allocation11 + $0x6e8] ss:$16 sps:$4 sm:$0xff]  }
 0x4f2   :  { %10198 = vmatpush1.bf16.msra.mxu0 %v13537_v19  ;;  %v13611_v19 = vld [vmem:[#allocation11 + $0x4cc] ss:$16 sps:$4 sm:$0xff]  }
 0x4f3   :  { %10239 = vmatpush1.bf16.msra.mxu1 %v13540_v14  ;;  %10199 = vmatprep.subr.bf16.mxu0 %v13545_v20  ;;  %v13614_v20 = vld [vmem:[#allocation11 + $0x6cc] ss:$16 sps:$4 sm:$0xff]  }
 0x4f4   :  { %10240 = vmatprep.subr.bf16.mxu1 %v13548_v34 }
 0x4f6   :  { %10200 = vmatpush1.bf16.msra.mxu0 %v13543_v35 }
 0x4f7   :  { %10241 = vmatpush1.bf16.msra.mxu1 %v13546_v36  ;;  %10201 = vmatprep.subr.bf16.mxu0 %v13551_v8  ;;  %v13609_v36 = vld [vmem:[#allocation11 + $0x4c8] ss:$16 sps:$4 sm:$0xff]  }
 0x4f8   :  { %10242 = vmatprep.subr.bf16.mxu1 %v13554_v48  ;;  %v13612_v48 = vld [vmem:[#allocation11 + $0x6c8] ss:$16 sps:$4 sm:$0xff]  }
 0x4fa   :  { %10202 = vmatpush1.bf16.msra.mxu0 %v13549_v53  ;;  %v13617_v53 = vld [vmem:[#allocation11 + $0x4ac] ss:$16 sps:$4 sm:$0xff]  }
 0x4fb   :  { %10243 = vmatpush1.bf16.msra.mxu1 %v13552_v17  ;;  %10203 = vmatprep.subr.bf16.mxu0 %v13557_v44 }
 0x4fc   :  { %10244 = vmatprep.subr.bf16.mxu1 %v13560_v11 }
 0x4fe   :  { %10204 = vmatpush2.bf16.msra.mxu0 %v13555_v10 }
 0x4ff   :  { %10245 = vmatpush2.bf16.msra.mxu1 %v13558_v27  ;;  %10205 = vmatprep.subr.bf16.mxu0 %v13563_v46  ;;  %v13618_v46 = vld [vmem:[#allocation11 + $0x6a8] ss:$16 sps:$4 sm:$0xff]  }
 0x500   :  { %10246 = vmatprep.subr.bf16.mxu1 %v13566_v28  ;;  %v13623_v28 = vld [vmem:[#allocation11 + $0x48c] ss:$16 sps:$4 sm:$0xff]  }
 0x502   :  { %10206 = vmatpush2.bf16.msra.mxu0 %v13561_v49 }
 0x503   :  { %10247 = vmatpush2.bf16.msra.mxu1 %v13564_v55  ;;  %10207 = vmatprep.subr.bf16.mxu0 %v13569_v31  ;;  %v13624_v55 = vld [vmem:[#allocation11 + $0x688] ss:$16 sps:$4 sm:$0xff]   ;;  %v13629_v31 = vld [vmem:[#allocation11 + $0x46c] ss:$16 sps:$4 sm:$0xff]  }
 0x504   :  { %10248 = vmatprep.subr.bf16.mxu1 %v13572_v1  ;;  %v13632_v1 = vld [vmem:[#allocation11 + $0x66c] ss:$16 sps:$4 sm:$0xff]  }
 0x506   :  { %10208 = vmatpush2.bf16.msra.mxu0 %v13567_v45  ;;  %v13627_v45 = vld [vmem:[#allocation11 + $0x468] ss:$16 sps:$4 sm:$0xff]  }
 0x507   :  { %10249 = vmatpush2.bf16.msra.mxu1 %v13570_v13  ;;  %10209 = vmatprep.subr.bf16.mxu0 %v13575_v40  ;;  %v13630_v13 = vld [vmem:[#allocation11 + $0x668] ss:$16 sps:$4 sm:$0xff]   ;;  %v13635_v40 = vld [vmem:[#allocation11 + $0x44c] ss:$16 sps:$4 sm:$0xff]  }
 0x508   :  { %10250 = vmatprep.subr.bf16.mxu1 %v13578_v29  ;;  %v13638_v29 = vld [vmem:[#allocation11 + $0x64c] ss:$16 sps:$4 sm:$0xff]  }
 0x50a   :  { %10210 = vmatpush2.bf16.msra.mxu0 %v13573_v61  ;;  %v13633_v61 = vld [vmem:[#allocation11 + $0x448] ss:$16 sps:$4 sm:$0xff]  }
 0x50b   :  { %10251 = vmatpush2.bf16.msra.mxu1 %v13576_v16  ;;  %10211 = vmatprep.subr.bf16.mxu0 %v13581_v47  ;;  %v13636_v16 = vld [vmem:[#allocation11 + $0x648] ss:$16 sps:$4 sm:$0xff]   ;;  %v13641_v47 = vld [vmem:[#allocation11 + $0x42c] ss:$16 sps:$4 sm:$0xff]  }
 0x50c   :  { %10252 = vmatprep.subr.bf16.mxu1 %v13584_v2  ;;  %v13644_v2 = vld [vmem:[#allocation11 + $0x62c] ss:$16 sps:$4 sm:$0xff]  }
 0x50e   :  { %10212 = vmatpush2.bf16.msra.mxu0 %v13579_v0  ;;  %v13639_v0 = vld [vmem:[#allocation11 + $0x428] ss:$16 sps:$4 sm:$0xff]  }
 0x50f   :  { %10253 = vmatpush2.bf16.msra.mxu1 %v13582_v42  ;;  %10213 = vmatprep.subr.bf16.mxu0 %v13587_v25  ;;  %v13642_v42 = vld [vmem:[#allocation11 + $0x628] ss:$16 sps:$4 sm:$0xff]   ;;  %v13647_v25 = vld [vmem:[#allocation11 + $0x40c] ss:$16 sps:$4 sm:$0xff]  }
 0x510   :  { %10254 = vmatprep.subr.bf16.mxu1 %v13590_v62  ;;  %v13650_v62 = vld [vmem:[#allocation11 + $0x60c] ss:$16 sps:$4 sm:$0xff]  }
 0x512   :  { %10214 = vmatpush2.bf16.msra.mxu0 %v13585_v32  ;;  %v13645_v32 = vld [vmem:[#allocation11 + $0x408] ss:$16 sps:$4 sm:$0xff]  }
 0x513   :  { %10255 = vmatpush2.bf16.msra.mxu1 %v13588_v21  ;;  %10215 = vmatprep.subr.bf16.mxu0 %v13593_v7  ;;  %v13648_v21 = vld [vmem:[#allocation11 + $0x608] ss:$16 sps:$4 sm:$0xff]   ;;  %v13653_v7 = vld [vmem:[#allocation11 + $0x5ec] ss:$16 sps:$4 sm:$0xff]  }
 0x514   :  { %10256 = vmatprep.subr.bf16.mxu1 %v13596_v51  ;;  %v13656_v51 = vld [vmem:[#allocation11 + $0x7ec] ss:$16 sps:$4 sm:$0xff]  }
 0x516   :  { %10216 = vmatpush2.bf16.msra.mxu0 %v13591_v37  ;;  %v13651_v37 = vld [vmem:[#allocation11 + $0x5e8] ss:$16 sps:$4 sm:$0xff]  }
 0x517   :  { %10257 = vmatpush2.bf16.msra.mxu1 %v13594_v43  ;;  %10217 = vmatprep.subr.bf16.mxu0 %v13599_v12  ;;  %v13654_v43 = vld [vmem:[#allocation11 + $0x7e8] ss:$16 sps:$4 sm:$0xff]   ;;  %v13659_v12 = vld [vmem:[#allocation11 + $0x5cc] ss:$16 sps:$4 sm:$0xff]  }
 0x518   :  { %10258 = vmatprep.subr.bf16.mxu1 %v13602_v57  ;;  %v13662_v57 = vld [vmem:[#allocation11 + $0x7cc] ss:$16 sps:$4 sm:$0xff]  }
 0x51a   :  { %10218 = vmatpush2.bf16.msra.mxu0 %v13597_v39  ;;  %v13657_v39 = vld [vmem:[#allocation11 + $0x5c8] ss:$16 sps:$4 sm:$0xff]  }
 0x51b   :  { %10259 = vmatpush2.bf16.msra.mxu1 %v13600_v9  ;;  %10269 = vmatprep.subr.bf16.mxu0 %v13605_v56  ;;  %v13660_v9 = vld [vmem:[#allocation11 + $0x7c8] ss:$16 sps:$4 sm:$0xff]   ;;  %v13665_v56 = vld [vmem:[#allocation11 + $0x5ac] ss:$16 sps:$4 sm:$0xff]  }
 0x51c   :  { %10310 = vmatprep.subr.bf16.mxu1 %v13608_v60  ;;  %v13668_v60 = vld [vmem:[#allocation11 + $0x7ac] ss:$16 sps:$4 sm:$0xff]  }
 0x51d   :  { %v9975_v14 = vpop.f32.mrf.mxu0  ;;  %10220 = vmatmul.mubr.bf16.vlgmr.msra.gmra.mxu0 %v14655_v30 }
 0x51e   :  { %v9976_v34 = vadd.f32 %v9975_v14, %v14747_v63  ;;  %v10016_v35 = vpop.f32.mrf.mxu1  ;;  %10261 = vmatmul.mubr.bf16.vlgmr.msra.gmra.mxu1 %v14659_v3  ;;  %10270 = vmatpush1.bf16.msra.mxu0 %v13603_v15  ;;  %v13620_v63 = vld [vmem:[#allocation11 + $0x6ac] ss:$16 sps:$4 sm:$0xff]   ;;  %v13663_v15 = vld [vmem:[#allocation11 + $0x5a8] ss:$16 sps:$4 sm:$0xff]  }
 0x51f   :  { %10301 = vmatprep.mubr.bf16.mxu0 %v14663_v4  ;;  %10311 = vmatpush1.bf16.msra.mxu1 %v13606_v24  ;;  %v9977_v8 = vpop.f32.mrf.mxu0  ;;  %v13615_v4 = vld [vmem:[#allocation11 + $0x4a8] ss:$16 sps:$4 sm:$0xff]   ;;  %v13674_v14 = vld [vmem:[#allocation11 + $0x78c] ss:$16 sps:$4 sm:$0xff]  }
 0x520   :  { %v14757_v17 = vadd.f32 %v10016_v35, %v9976_v34  ;;  %10342 = vmatprep.mubr.bf16.mxu1 %v14668_v23  ;;  %v9978_v30 = vadd.f32 %v9977_v8, %v14751_v54  ;;  %v10018_v44 = vpop.f32.mrf.mxu1  ;;  %10271 = vmatprep.subr.bf16.mxu0 %v13611_v19  ;;  %v13626_v23 = vld [vmem:[#allocation11 + $0x68c] ss:$16 sps:$4 sm:$0xff]   ;;  %v13621_v54 = vld [vmem:[#allocation11 + $0x488] ss:$16 sps:$4 sm:$0xff]  }
 0x521   :  { %v9979_v11 = vpop.f32.mrf.mxu0  ;;  %10312 = vmatprep.subr.bf16.mxu1 %v13614_v20  ;;  %v13666_v24 = vld [vmem:[#allocation11 + $0x7a8] ss:$16 sps:$4 sm:$0xff]   ;;  %v13671_v19 = vld [vmem:[#allocation11 + $0x58c] ss:$16 sps:$4 sm:$0xff]  }
 0x522   :  { %v14761_v3 = vadd.f32 %v10018_v44, %v9978_v30  ;;  %v10020_v10 = vpop.f32.mrf.mxu1  ;;  %10272 = vmatpush1.bf16.msra.mxu0 %v13609_v36  ;;  %v13669_v20 = vld [vmem:[#allocation11 + $0x588] ss:$16 sps:$4 sm:$0xff]   ;;  %v13677_v35 = vld [vmem:[#allocation11 + $0x56c] ss:$16 sps:$4 sm:$0xff]  }
 0x523   :  { %10313 = vmatpush1.bf16.msra.mxu1 %v13612_v48  ;;  %v9980_v27 = vpop.f32.mrf.mxu0  ;;  %10273 = vmatprep.subr.bf16.mxu0 %v13617_v53  ;;  %v13672_v34 = vld [vmem:[#allocation11 + $0x788] ss:$16 sps:$4 sm:$0xff]   ;;  %v13680_v36 = vld [vmem:[#allocation11 + $0x76c] ss:$16 sps:$4 sm:$0xff]  }
 0x524   :  { %v10021_v49 = vpop.f32.mrf.mxu1  ;;  %10314 = vmatprep.subr.bf16.mxu1 %v13620_v63  ;;  %v13675_v8 = vld [vmem:[#allocation11 + $0x568] ss:$16 sps:$4 sm:$0xff]   ;;  %v13683_v53 = vld [vmem:[#allocation11 + $0x54c] ss:$16 sps:$4 sm:$0xff]  }
 0x525   :  { %v13678_v48 = vld [vmem:[#allocation11 + $0x768] ss:$16 sps:$4 sm:$0xff]   ;;  %v13686_v30 = vld [vmem:[#allocation11 + $0x74c] ss:$16 sps:$4 sm:$0xff]  }
 0x526   :  { %10274 = vmatpush1.bf16.msra.mxu0 %v13615_v4  ;;  %v13681_v44 = vld [vmem:[#allocation11 + $0x548] ss:$16 sps:$4 sm:$0xff]   ;;  %v13689_v11 = vld [vmem:[#allocation11 + $0x52c] ss:$16 sps:$4 sm:$0xff]  }
 0x527   :  { %10315 = vmatpush1.bf16.msra.mxu1 %v13618_v46  ;;  %10275 = vmatprep.subr.bf16.mxu0 %v13623_v28  ;;  %v13684_v63 = vld [vmem:[#allocation11 + $0x748] ss:$16 sps:$4 sm:$0xff]   ;;  %v13692_v10 = vld [vmem:[#allocation11 + $0x72c] ss:$16 sps:$4 sm:$0xff]  }
 0x528   :  { %10316 = vmatprep.subr.bf16.mxu1 %v13626_v23  ;;  %v13687_v4 = vld [vmem:[#allocation11 + $0x528] ss:$16 sps:$4 sm:$0xff]   ;;  %v13695_v46 = vld [vmem:[#allocation11 + $0x50c] ss:$16 sps:$4 sm:$0xff]  }
 0x529   :  { %v13690_v27 = vld [vmem:[#allocation11 + $0x728] ss:$16 sps:$4 sm:$0xff]   ;;  %v13698_v28 = vld [vmem:[#allocation11 + $0x70c] ss:$16 sps:$4 sm:$0xff]  }
 0x52a   :  { %10276 = vmatpush1.bf16.msra.mxu0 %v13621_v54  ;;  %v13693_v49 = vld [vmem:[#allocation11 + $0x508] ss:$16 sps:$4 sm:$0xff]   ;;  %v13701_v54 = vld [vmem:[#allocation11 + $0x8ec] ss:$16 sps:$4 sm:$0xff]  }
 0x52b   :  { %10317 = vmatpush1.bf16.msra.mxu1 %v13624_v55  ;;  %10277 = vmatprep.subr.bf16.mxu0 %v13629_v31  ;;  %v13696_v23 = vld [vmem:[#allocation11 + $0x708] ss:$16 sps:$4 sm:$0xff]   ;;  %v13704_v55 = vld [vmem:[#allocation11 + $0xaec] ss:$16 sps:$4 sm:$0xff]  }
 0x52c   :  { %10318 = vmatprep.subr.bf16.mxu1 %v13632_v1  ;;  %v13699_v31 = vld [vmem:[#allocation11 + $0x8e8] ss:$16 sps:$4 sm:$0xff]  }
 0x52d   :  { %v13702_v1 = vld [vmem:[#allocation11 + $0xae8] ss:$16 sps:$4 sm:$0xff]  }
 0x52e   :  { %10278 = vmatpush1.bf16.msra.mxu0 %v13627_v45  ;;  %v13707_v45 = vld [vmem:[#allocation11 + $0x8cc] ss:$16 sps:$4 sm:$0xff]  }
 0x52f   :  { %10319 = vmatpush1.bf16.msra.mxu1 %v13630_v13  ;;  %10279 = vmatprep.subr.bf16.mxu0 %v13635_v40  ;;  %v13710_v40 = vld [vmem:[#allocation11 + $0xacc] ss:$16 sps:$4 sm:$0xff]  }
 0x530   :  { %10320 = vmatprep.subr.bf16.mxu1 %v13638_v29 }
 0x532   :  { %10280 = vmatpush1.bf16.msra.mxu0 %v13633_v61 }
 0x533   :  { %10321 = vmatpush1.bf16.msra.mxu1 %v13636_v16  ;;  %10281 = vmatprep.subr.bf16.mxu0 %v13641_v47  ;;  %v13705_v16 = vld [vmem:[#allocation11 + $0x8c8] ss:$16 sps:$4 sm:$0xff]  }
 0x534   :  { %10322 = vmatprep.subr.bf16.mxu1 %v13644_v2  ;;  %v13708_v2 = vld [vmem:[#allocation11 + $0xac8] ss:$16 sps:$4 sm:$0xff]  }
 0x536   :  { %10282 = vmatpush1.bf16.msra.mxu0 %v13639_v0  ;;  %v13713_v0 = vld [vmem:[#allocation11 + $0x8ac] ss:$16 sps:$4 sm:$0xff]  }
 0x537   :  { %10323 = vmatpush1.bf16.msra.mxu1 %v13642_v42  ;;  %10283 = vmatprep.subr.bf16.mxu0 %v13647_v25 }
 0x538   :  { %10324 = vmatprep.subr.bf16.mxu1 %v13650_v62 }
 0x53a   :  { %10284 = vmatpush1.bf16.msra.mxu0 %v13645_v32 }
 0x53b   :  { %10325 = vmatpush1.bf16.msra.mxu1 %v13648_v21  ;;  %10285 = vmatprep.subr.bf16.mxu0 %v13653_v7  ;;  %v13714_v7 = vld [vmem:[#allocation11 + $0xaa8] ss:$16 sps:$4 sm:$0xff]  }
 0x53c   :  { %10326 = vmatprep.subr.bf16.mxu1 %v13656_v51  ;;  %v13719_v51 = vld [vmem:[#allocation11 + $0x88c] ss:$16 sps:$4 sm:$0xff]  }
 0x53e   :  { %10286 = vmatpush2.bf16.msra.mxu0 %v13651_v37 }
 0x53f   :  { %10327 = vmatpush2.bf16.msra.mxu1 %v13654_v43  ;;  %10287 = vmatprep.subr.bf16.mxu0 %v13659_v12  ;;  %v13720_v43 = vld [vmem:[#allocation11 + $0xa88] ss:$16 sps:$4 sm:$0xff]   ;;  %v13725_v12 = vld [vmem:[#allocation11 + $0x86c] ss:$16 sps:$4 sm:$0xff]  }
 0x540   :  { %10328 = vmatprep.subr.bf16.mxu1 %v13662_v57  ;;  %v13728_v57 = vld [vmem:[#allocation11 + $0xa6c] ss:$16 sps:$4 sm:$0xff]  }
 0x542   :  { %10288 = vmatpush2.bf16.msra.mxu0 %v13657_v39  ;;  %v13723_v39 = vld [vmem:[#allocation11 + $0x868] ss:$16 sps:$4 sm:$0xff]  }
 0x543   :  { %10329 = vmatpush2.bf16.msra.mxu1 %v13660_v9  ;;  %10289 = vmatprep.subr.bf16.mxu0 %v13665_v56  ;;  %v13726_v9 = vld [vmem:[#allocation11 + $0xa68] ss:$16 sps:$4 sm:$0xff]   ;;  %v13731_v56 = vld [vmem:[#allocation11 + $0x84c] ss:$16 sps:$4 sm:$0xff]  }
 0x544   :  { %10330 = vmatprep.subr.bf16.mxu1 %v13668_v60  ;;  %v13734_v60 = vld [vmem:[#allocation11 + $0xa4c] ss:$16 sps:$4 sm:$0xff]  }
 0x546   :  { %10290 = vmatpush2.bf16.msra.mxu0 %v13663_v15  ;;  %v13729_v15 = vld [vmem:[#allocation11 + $0x848] ss:$16 sps:$4 sm:$0xff]  }
 0x547   :  { %10331 = vmatpush2.bf16.msra.mxu1 %v13666_v24  ;;  %10291 = vmatprep.subr.bf16.mxu0 %v13671_v19  ;;  %v13732_v24 = vld [vmem:[#allocation11 + $0xa48] ss:$16 sps:$4 sm:$0xff]   ;;  %v13737_v19 = vld [vmem:[#allocation11 + $0x82c] ss:$16 sps:$4 sm:$0xff]  }
 0x548   :  { %10332 = vmatprep.subr.bf16.mxu1 %v13674_v14  ;;  %v13740_v14 = vld [vmem:[#allocation11 + $0xa2c] ss:$16 sps:$4 sm:$0xff]  }
 0x54a   :  { %10292 = vmatpush2.bf16.msra.mxu0 %v13669_v20  ;;  %v13735_v20 = vld [vmem:[#allocation11 + $0x828] ss:$16 sps:$4 sm:$0xff]  }
 0x54b   :  { %10333 = vmatpush2.bf16.msra.mxu1 %v13672_v34  ;;  %10293 = vmatprep.subr.bf16.mxu0 %v13677_v35  ;;  %v13738_v34 = vld [vmem:[#allocation11 + $0xa28] ss:$16 sps:$4 sm:$0xff]   ;;  %v13743_v35 = vld [vmem:[#allocation11 + $0x80c] ss:$16 sps:$4 sm:$0xff]  }
 0x54c   :  { %10334 = vmatprep.subr.bf16.mxu1 %v13680_v36  ;;  %v13746_v36 = vld [vmem:[#allocation11 + $0xa0c] ss:$16 sps:$4 sm:$0xff]  }
 0x54e   :  { %10294 = vmatpush2.bf16.msra.mxu0 %v13675_v8  ;;  %v13741_v8 = vld [vmem:[#allocation11 + $0x808] ss:$16 sps:$4 sm:$0xff]  }
 0x54f   :  { %10335 = vmatpush2.bf16.msra.mxu1 %v13678_v48  ;;  %10295 = vmatprep.subr.bf16.mxu0 %v13683_v53  ;;  %v13744_v48 = vld [vmem:[#allocation11 + $0xa08] ss:$16 sps:$4 sm:$0xff]   ;;  %v13749_v53 = vld [vmem:[#allocation11 + $0x9ec] ss:$16 sps:$4 sm:$0xff]  }
 0x550   :  { %10336 = vmatprep.subr.bf16.mxu1 %v13686_v30  ;;  %v13752_v30 = vld [vmem:[#allocation11 + $0xbec] ss:$16 sps:$4 sm:$0xff]  }
 0x552   :  { %10296 = vmatpush2.bf16.msra.mxu0 %v13681_v44  ;;  %v13747_v44 = vld [vmem:[#allocation11 + $0x9e8] ss:$16 sps:$4 sm:$0xff]  }
 0x553   :  { %10337 = vmatpush2.bf16.msra.mxu1 %v13684_v63  ;;  %10297 = vmatprep.subr.bf16.mxu0 %v13689_v11  ;;  %v13750_v63 = vld [vmem:[#allocation11 + $0xbe8] ss:$16 sps:$4 sm:$0xff]   ;;  %v13755_v11 = vld [vmem:[#allocation11 + $0x9cc] ss:$16 sps:$4 sm:$0xff]  }
 0x554   :  { %10338 = vmatprep.subr.bf16.mxu1 %v13692_v10  ;;  %v13758_v10 = vld [vmem:[#allocation11 + $0xbcc] ss:$16 sps:$4 sm:$0xff]  }
 0x556   :  { %10298 = vmatpush2.bf16.msra.mxu0 %v13687_v4  ;;  %v13753_v4 = vld [vmem:[#allocation11 + $0x9c8] ss:$16 sps:$4 sm:$0xff]  }
 0x557   :  { %10339 = vmatpush2.bf16.msra.mxu1 %v13690_v27  ;;  %10299 = vmatprep.subr.bf16.mxu0 %v13695_v46  ;;  %v13756_v27 = vld [vmem:[#allocation11 + $0xbc8] ss:$16 sps:$4 sm:$0xff]   ;;  %v13761_v46 = vld [vmem:[#allocation11 + $0x9ac] ss:$16 sps:$4 sm:$0xff]  }
 0x558   :  { %10340 = vmatprep.subr.bf16.mxu1 %v13698_v28  ;;  %v13764_v28 = vld [vmem:[#allocation11 + $0xbac] ss:$16 sps:$4 sm:$0xff]  }
 0x55a   :  { %10300 = vmatpush2.bf16.msra.mxu0 %v13693_v49  ;;  %v13759_v49 = vld [vmem:[#allocation11 + $0x9a8] ss:$16 sps:$4 sm:$0xff]  }
 0x55b   :  { %10341 = vmatpush2.bf16.msra.mxu1 %v13696_v23  ;;  %10351 = vmatprep.subr.bf16.mxu0 %v13701_v54  ;;  %v13762_v23 = vld [vmem:[#allocation11 + $0xba8] ss:$16 sps:$4 sm:$0xff]   ;;  %v13767_v54 = vld [vmem:[#allocation11 + $0x98c] ss:$16 sps:$4 sm:$0xff]  }
 0x55c   :  { %10392 = vmatprep.subr.bf16.mxu1 %v13704_v55  ;;  %v13770_v55 = vld [vmem:[#allocation11 + $0xb8c] ss:$16 sps:$4 sm:$0xff]  }
 0x55d   :  { %v10057_v13 = vpop.f32.mrf.mxu0  ;;  %10302 = vmatmul.mubr.bf16.vlgmr.msra.gmra.mxu0 %v14685_v5 }
 0x55e   :  { %v10058_v29 = vadd.f32 %v10057_v13, %v14757_v17  ;;  %v10098_v61 = vpop.f32.mrf.mxu1  ;;  %10343 = vmatmul.mubr.bf16.vlgmr.msra.gmra.mxu1 %v14689_v38  ;;  %10352 = vmatpush1.bf16.msra.mxu0 %v13699_v31  ;;  %v13716_v17 = vld [vmem:[#allocation11 + $0xaac] ss:$16 sps:$4 sm:$0xff]   ;;  %v13765_v31 = vld [vmem:[#allocation11 + $0x988] ss:$16 sps:$4 sm:$0xff]  }
 0x55f   :  { %10383 = vmatprep.mubr.bf16.mxu0 %v14693_v50  ;;  %10393 = vmatpush1.bf16.msra.mxu1 %v13702_v1  ;;  %v10059_v47 = vpop.f32.mrf.mxu0  ;;  %v13711_v50 = vld [vmem:[#allocation11 + $0x8a8] ss:$16 sps:$4 sm:$0xff]   ;;  %v13776_v13 = vld [vmem:[#allocation11 + $0xb6c] ss:$16 sps:$4 sm:$0xff]  }
 0x560   :  { %v14767_v42 = vadd.f32 %v10098_v61, %v10058_v29  ;;  %10424 = vmatprep.mubr.bf16.mxu1 %v14698_v41  ;;  %v10060_v5 = vadd.f32 %v10059_v47, %v14761_v3  ;;  %v10100_v25 = vpop.f32.mrf.mxu1  ;;  %10353 = vmatprep.subr.bf16.mxu0 %v13707_v45  ;;  %v13722_v41 = vld [vmem:[#allocation11 + $0xa8c] ss:$16 sps:$4 sm:$0xff]   ;;  %v13717_v3 = vld [vmem:[#allocation11 + $0x888] ss:$16 sps:$4 sm:$0xff]  }
 0x561   :  { %v10061_v62 = vpop.f32.mrf.mxu0  ;;  %10394 = vmatprep.subr.bf16.mxu1 %v13710_v40  ;;  %v13768_v1 = vld [vmem:[#allocation11 + $0xb88] ss:$16 sps:$4 sm:$0xff]   ;;  %v13773_v45 = vld [vmem:[#allocation11 + $0x96c] ss:$16 sps:$4 sm:$0xff]  }
 0x562   :  { %v14771_v38 = vadd.f32 %v10100_v25, %v10060_v5  ;;  %v10102_v32 = vpop.f32.mrf.mxu1  ;;  %10354 = vmatpush1.bf16.msra.mxu0 %v13705_v16  ;;  %v13771_v40 = vld [vmem:[#allocation11 + $0x968] ss:$16 sps:$4 sm:$0xff]   ;;  %v13779_v61 = vld [vmem:[#allocation11 + $0x94c] ss:$16 sps:$4 sm:$0xff]  }
 0x563   :  { %10395 = vmatpush1.bf16.msra.mxu1 %v13708_v2  ;;  %v10062_v21 = vpop.f32.mrf.mxu0  ;;  %10355 = vmatprep.subr.bf16.mxu0 %v13713_v0  ;;  %v13774_v29 = vld [vmem:[#allocation11 + $0xb68] ss:$16 sps:$4 sm:$0xff]   ;;  %v13782_v16 = vld [vmem:[#allocation11 + $0xb4c] ss:$16 sps:$4 sm:$0xff]  }
 0x564   :  { %v10103_v37 = vpop.f32.mrf.mxu1  ;;  %10396 = vmatprep.subr.bf16.mxu1 %v13716_v17  ;;  %v13777_v47 = vld [vmem:[#allocation11 + $0x948] ss:$16 sps:$4 sm:$0xff]   ;;  %v13785_v0 = vld [vmem:[#allocation11 + $0x92c] ss:$16 sps:$4 sm:$0xff]  }
 0x565   :  { %v13780_v2 = vld [vmem:[#allocation11 + $0xb48] ss:$16 sps:$4 sm:$0xff]   ;;  %v13788_v5 = vld [vmem:[#allocation11 + $0xb2c] ss:$16 sps:$4 sm:$0xff]  }
 0x566   :  { %10356 = vmatpush1.bf16.msra.mxu0 %v13711_v50  ;;  %v13783_v25 = vld [vmem:[#allocation11 + $0x928] ss:$16 sps:$4 sm:$0xff]   ;;  %v13791_v62 = vld [vmem:[#allocation11 + $0x90c] ss:$16 sps:$4 sm:$0xff]  }
 0x567   :  { %10397 = vmatpush1.bf16.msra.mxu1 %v13714_v7  ;;  %10357 = vmatprep.subr.bf16.mxu0 %v13719_v51  ;;  %v13786_v17 = vld [vmem:[#allocation11 + $0xb28] ss:$16 sps:$4 sm:$0xff]   ;;  %v13794_v32 = vld [vmem:[#allocation11 + $0xb0c] ss:$16 sps:$4 sm:$0xff]  }
 0x568   :  { %10398 = vmatprep.subr.bf16.mxu1 %v13722_v41  ;;  %v13789_v50 = vld [vmem:[#allocation11 + $0x908] ss:$16 sps:$4 sm:$0xff]   ;;  %v13797_v7 = vld [vmem:[#allocation11 + $0xcec] ss:$16 sps:$4 sm:$0xff]  }
 0x569   :  { %v13792_v21 = vld [vmem:[#allocation11 + $0xb08] ss:$16 sps:$4 sm:$0xff]   ;;  %v13800_v51 = vld [vmem:[#allocation11 + $0xeec] ss:$16 sps:$4 sm:$0xff]  }
 0x56a   :  { %10358 = vmatpush1.bf16.msra.mxu0 %v13717_v3  ;;  %v13795_v37 = vld [vmem:[#allocation11 + $0xce8] ss:$16 sps:$4 sm:$0xff]   ;;  %v13803_v3 = vld [vmem:[#allocation11 + $0xccc] ss:$16 sps:$4 sm:$0xff]  }
 0x56b   :  { %10399 = vmatpush1.bf16.msra.mxu1 %v13720_v43  ;;  %10359 = vmatprep.subr.bf16.mxu0 %v13725_v12  ;;  %v13798_v41 = vld [vmem:[#allocation11 + $0xee8] ss:$16 sps:$4 sm:$0xff]   ;;  %v13806_v12 = vld [vmem:[#allocation11 + $0xecc] ss:$16 sps:$4 sm:$0xff]  }
 0x56c   :  { %10400 = vmatprep.subr.bf16.mxu1 %v13728_v57 }
 0x56e   :  { %10360 = vmatpush1.bf16.msra.mxu0 %v13723_v39 }
 0x56f   :  { %10401 = vmatpush1.bf16.msra.mxu1 %v13726_v9  ;;  %10361 = vmatprep.subr.bf16.mxu0 %v13731_v56  ;;  %v13801_v9 = vld [vmem:[#allocation11 + $0xcc8] ss:$16 sps:$4 sm:$0xff]  }
 0x570   :  { %10402 = vmatprep.subr.bf16.mxu1 %v13734_v60  ;;  %v13804_v60 = vld [vmem:[#allocation11 + $0xec8] ss:$16 sps:$4 sm:$0xff]  }
 0x572   :  { %10362 = vmatpush1.bf16.msra.mxu0 %v13729_v15  ;;  %v13809_v15 = vld [vmem:[#allocation11 + $0xcac] ss:$16 sps:$4 sm:$0xff]  }
 0x573   :  { %10403 = vmatpush1.bf16.msra.mxu1 %v13732_v24  ;;  %10363 = vmatprep.subr.bf16.mxu0 %v13737_v19 }
 0x574   :  { %10404 = vmatprep.subr.bf16.mxu1 %v13740_v14  ;;  %v13807_v14 = vld [vmem:[#allocation11 + $0xca8] ss:$16 sps:$4 sm:$0xff]  }
 0x576   :  { %10364 = vmatpush1.bf16.msra.mxu0 %v13735_v20  ;;  %v13810_v20 = vld [vmem:[#allocation11 + $0xea8] ss:$16 sps:$4 sm:$0xff]  }
 0x577   :  { %10405 = vmatpush1.bf16.msra.mxu1 %v13738_v34  ;;  %10365 = vmatprep.subr.bf16.mxu0 %v13743_v35  ;;  %v13815_v34 = vld [vmem:[#allocation11 + $0xc8c] ss:$16 sps:$4 sm:$0xff]  }
 0x578   :  { %10406 = vmatprep.subr.bf16.mxu1 %v13746_v36  ;;  %v13818_v36 = vld [vmem:[#allocation11 + $0xe8c] ss:$16 sps:$4 sm:$0xff]  }
 0x57a   :  { %10366 = vmatpush1.bf16.msra.mxu0 %v13741_v8  ;;  %v13813_v8 = vld [vmem:[#allocation11 + $0xc88] ss:$16 sps:$4 sm:$0xff]  }
 0x57b   :  { %10407 = vmatpush1.bf16.msra.mxu1 %v13744_v48  ;;  %10367 = vmatprep.subr.bf16.mxu0 %v13749_v53  ;;  %v13821_v48 = vld [vmem:[#allocation11 + $0xc6c] ss:$16 sps:$4 sm:$0xff]  }
 0x57c   :  { %10408 = vmatprep.subr.bf16.mxu1 %v13752_v30  ;;  %v13824_v53 = vld [vmem:[#allocation11 + $0xe6c] ss:$16 sps:$4 sm:$0xff]   ;;  %v13819_v30 = vld [vmem:[#allocation11 + $0xc68] ss:$16 sps:$4 sm:$0xff]  }
 0x57e   :  { %10368 = vmatpush2.bf16.msra.mxu0 %v13747_v44  ;;  %v13822_v44 = vld [vmem:[#allocation11 + $0xe68] ss:$16 sps:$4 sm:$0xff]  }
 0x57f   :  { %10409 = vmatpush2.bf16.msra.mxu1 %v13750_v63  ;;  %10369 = vmatprep.subr.bf16.mxu0 %v13755_v11  ;;  %v13827_v63 = vld [vmem:[#allocation11 + $0xc4c] ss:$16 sps:$4 sm:$0xff]  }
 0x580   :  { %10410 = vmatprep.subr.bf16.mxu1 %v13758_v10  ;;  %v13830_v11 = vld [vmem:[#allocation11 + $0xe4c] ss:$16 sps:$4 sm:$0xff]   ;;  %v13825_v10 = vld [vmem:[#allocation11 + $0xc48] ss:$16 sps:$4 sm:$0xff]  }
 0x582   :  { %10370 = vmatpush2.bf16.msra.mxu0 %v13753_v4  ;;  %v13828_v4 = vld [vmem:[#allocation11 + $0xe48] ss:$16 sps:$4 sm:$0xff]  }
 0x583   :  { %10411 = vmatpush2.bf16.msra.mxu1 %v13756_v27  ;;  %10371 = vmatprep.subr.bf16.mxu0 %v13761_v46  ;;  %v13833_v27 = vld [vmem:[#allocation11 + $0xc2c] ss:$16 sps:$4 sm:$0xff]  }
 0x584   :  { %10412 = vmatprep.subr.bf16.mxu1 %v13764_v28  ;;  %v13836_v46 = vld [vmem:[#allocation11 + $0xe2c] ss:$16 sps:$4 sm:$0xff]   ;;  %v13831_v28 = vld [vmem:[#allocation11 + $0xc28] ss:$16 sps:$4 sm:$0xff]  }
 0x586   :  { %10372 = vmatpush2.bf16.msra.mxu0 %v13759_v49  ;;  %v13834_v49 = vld [vmem:[#allocation11 + $0xe28] ss:$16 sps:$4 sm:$0xff]  }
 0x587   :  { %10413 = vmatpush2.bf16.msra.mxu1 %v13762_v23  ;;  %10373 = vmatprep.subr.bf16.mxu0 %v13767_v54  ;;  %v13839_v23 = vld [vmem:[#allocation11 + $0xc0c] ss:$16 sps:$4 sm:$0xff]  }
 0x588   :  { %10414 = vmatprep.subr.bf16.mxu1 %v13770_v55  ;;  %v13842_v54 = vld [vmem:[#allocation11 + $0xe0c] ss:$16 sps:$4 sm:$0xff]   ;;  %v13837_v55 = vld [vmem:[#allocation11 + $0xc08] ss:$16 sps:$4 sm:$0xff]  }
 0x58a   :  { %10374 = vmatpush2.bf16.msra.mxu0 %v13765_v31  ;;  %v13840_v31 = vld [vmem:[#allocation11 + $0xe08] ss:$16 sps:$4 sm:$0xff]  }
 0x58b   :  { %10415 = vmatpush2.bf16.msra.mxu1 %v13768_v1  ;;  %10375 = vmatprep.subr.bf16.mxu0 %v13773_v45  ;;  %v13845_v1 = vld [vmem:[#allocation11 + $0xdec] ss:$16 sps:$4 sm:$0xff]  }
 0x58c   :  { %10416 = vmatprep.subr.bf16.mxu1 %v13776_v13  ;;  %v13848_v45 = vld [vmem:[#allocation11 + $0xfec] ss:$16 sps:$4 sm:$0xff]   ;;  %v13843_v13 = vld [vmem:[#allocation11 + $0xde8] ss:$16 sps:$4 sm:$0xff]  }
 0x58e   :  { %10376 = vmatpush2.bf16.msra.mxu0 %v13771_v40  ;;  %v13846_v40 = vld [vmem:[#allocation11 + $0xfe8] ss:$16 sps:$4 sm:$0xff]  }
 0x58f   :  { %10417 = vmatpush2.bf16.msra.mxu1 %v13774_v29  ;;  %10377 = vmatprep.subr.bf16.mxu0 %v13779_v61  ;;  %v13851_v29 = vld [vmem:[#allocation11 + $0xdcc] ss:$16 sps:$4 sm:$0xff]  }
 0x590   :  { %10418 = vmatprep.subr.bf16.mxu1 %v13782_v16  ;;  %v13854_v61 = vld [vmem:[#allocation11 + $0xfcc] ss:$16 sps:$4 sm:$0xff]   ;;  %v13849_v16 = vld [vmem:[#allocation11 + $0xdc8] ss:$16 sps:$4 sm:$0xff]  }
 0x592   :  { %10378 = vmatpush2.bf16.msra.mxu0 %v13777_v47  ;;  %v13852_v47 = vld [vmem:[#allocation11 + $0xfc8] ss:$16 sps:$4 sm:$0xff]  }
 0x593   :  { %10419 = vmatpush2.bf16.msra.mxu1 %v13780_v2  ;;  %10379 = vmatprep.subr.bf16.mxu0 %v13785_v0  ;;  %v13857_v2 = vld [vmem:[#allocation11 + $0xdac] ss:$16 sps:$4 sm:$0xff]  }
 0x594   :  { %10420 = vmatprep.subr.bf16.mxu1 %v13788_v5  ;;  %v13860_v0 = vld [vmem:[#allocation11 + $0xfac] ss:$16 sps:$4 sm:$0xff]   ;;  %v13855_v5 = vld [vmem:[#allocation11 + $0xda8] ss:$16 sps:$4 sm:$0xff]  }
 0x596   :  { %10380 = vmatpush2.bf16.msra.mxu0 %v13783_v25  ;;  %v13858_v25 = vld [vmem:[#allocation11 + $0xfa8] ss:$16 sps:$4 sm:$0xff]  }
 0x597   :  { %10421 = vmatpush2.bf16.msra.mxu1 %v13786_v17  ;;  %10381 = vmatprep.subr.bf16.mxu0 %v13791_v62  ;;  %v13863_v17 = vld [vmem:[#allocation11 + $0xd8c] ss:$16 sps:$4 sm:$0xff]   ;;  %v10517_v62 = vlaneseq }
 0x598   :  { %10422 = vmatprep.subr.bf16.mxu1 %v13794_v32  ;;  %v13866_v32 = vld [vmem:[#allocation11 + $0xf8c] ss:$16 sps:$4 sm:$0xff]  }
 0x59a   :  { %10382 = vmatpush2.bf16.msra.mxu0 %v13789_v50  ;;  %v13861_v50 = vld [vmem:[#allocation11 + $0xd88] ss:$16 sps:$4 sm:$0xff]  }
 0x59b   :  { %10423 = vmatpush2.bf16.msra.mxu1 %v13792_v21  ;;  %10433 = vmatprep.subr.bf16.mxu0 %v13797_v7  ;;  %v13864_v21 = vld [vmem:[#allocation11 + $0xf88] ss:$16 sps:$4 sm:$0xff]   ;;  %v13869_v7 = vld [vmem:[#allocation11 + $0xd6c] ss:$16 sps:$4 sm:$0xff]  }
 0x59c   :  { %10474 = vmatprep.subr.bf16.mxu1 %v13800_v51  ;;  %v14784_v51 = vshrl.u32 %v10517_v62, 7  ;;  %v14001_v62 = vld [vmem:[#allocation16 + $0x264] ss:$16 sps:$4 sm:$0xff]  }
 0x59d   :  { %v10139_v43 = vpop.f32.mrf.mxu0  ;;  %10384 = vmatmul.mubr.bf16.vlgmr.msra.gmra.mxu0 %v14711_v33 }
 0x59e   :  { %v10140_v57 = vadd.f32 %v10139_v43, %v14767_v42  ;;  %v10180_v39 = vpop.f32.mrf.mxu1  ;;  %10425 = vmatmul.mubr.bf16.vlgmr.msra.gmra.mxu1 %v14715_v58  ;;  %10434 = vmatpush1.bf16.msra.mxu0 %v13795_v37  ;;  %v13812_v42 = vld [vmem:[#allocation11 + $0xeac] ss:$16 sps:$4 sm:$0xff]   ;;  %v13867_v43 = vld [vmem:[#allocation11 + $0xd68] ss:$16 sps:$4 sm:$0xff]  }
 0x59f   :  { %10465 = vmatprep.mubr.bf16.mxu0 %v14719_v6  ;;  %10475 = vmatpush1.bf16.msra.mxu1 %v13798_v41  ;;  %v14777_v56 = vpop.f32.mrf.mxu0  ;;  %v13872_v37 = vld [vmem:[#allocation11 + $0xf6c] ss:$16 sps:$4 sm:$0xff]  }
 0x5a0   :  { %v14779_v24 = vadd.f32 %v10180_v39, %v10140_v57  ;;  %10506 = vmatprep.mubr.bf16.mxu1 %v14724_v22  ;;  %v14782_v33 = vpop.f32.mrf.mxu1  ;;  %10435 = vmatprep.subr.bf16.mxu0 %v13803_v3  ;;  %v13816_v22 = vld [vmem:[#allocation11 + $0xe88] ss:$16 sps:$4 sm:$0xff]   ;;  %v10142_v41 = vadd.f32 %v14777_v56, %v14771_v38  ;;  %v10523_v3 = vsub.s32 1, %v14784_v51  ;;  %v13875_v57 = vld [vmem:[#allocation11 + $0xd4c] ss:$16 sps:$4 sm:$0xff]  }
 0x5a1   :  { %v10143_v19 = vpop.f32.mrf.mxu0  ;;  %10476 = vmatprep.subr.bf16.mxu1 %v13806_v12  ;;  %v13870_v12 = vld [vmem:[#allocation11 + $0xf68] ss:$16 sps:$4 sm:$0xff]   ;;  %v13878_v39 = vld [vmem:[#allocation11 + $0xf4c] ss:$16 sps:$4 sm:$0xff]  }
 0x5a2   :  { %v10184_v58 = vpop.f32.mrf.mxu1  ;;  %10436 = vmatpush1.bf16.msra.mxu0 %v13801_v9  ;;  %v14789_v9 = vld [vmem:[#allocation14] sm:$0xf]  ;;  %v13873_v38 = vld [vmem:[#allocation11 + $0xd48] ss:$16 sps:$4 sm:$0xff]   ;;  %v13884_v19 = vld [vmem:[#allocation11 + $0xf2c] ss:$16 sps:$4 sm:$0xff]  }
 0x5a3   :  { %10477 = vmatpush1.bf16.msra.mxu1 %v13804_v60  ;;  %v10144_v6 = vpop.f32.mrf.mxu0  ;;  %10437 = vmatprep.subr.bf16.mxu0 %v13809_v15  ;;  %v10183_v60 = vadd.f32 %v14782_v33, %v10142_v41  ;;  %v10524_v15 = vrot.slane %v14789_v9, %v10523_v3  ;;  %v13876_v56 = vld [vmem:[#allocation11 + $0xf48] ss:$16 sps:$4 sm:$0xff]   ;;  %v13890_v33 = vld [vmem:[#allocation11 + $0xf0c] ss:$16 sps:$4 sm:$0xff]  }
 0x5a4   :  { %v10185_v35 = vpop.f32.mrf.mxu1  ;;  %10478 = vmatprep.subr.bf16.mxu1 %v13812_v42  ;;  %v13881_v42 = vld [vmem:[#allocation11 + $0xd2c] ss:$16 sps:$4 sm:$0xff]   ;;  %v13882_v6 = vld [vmem:[#allocation11 + $0xf28] ss:$16 sps:$4 sm:$0xff]  }
 0x5a5   :  { %v10538_v58 = vadd.f32 %v10524_v15, %v10183_v60  ;;  %v13885_v35 = vld [vmem:[#allocation11 + $0xd08] ss:$16 sps:$4 sm:$0xff]   ;;  %v14005_v60 = vld [vmem:[#allocation16 + $0x220] ss:$16 sps:$4 sm:$0xff]  }
 0x5a6   :  { %10438 = vmatpush1.bf16.msra.mxu0 %v13807_v14  ;;  %v13879_v14 = vld [vmem:[#allocation11 + $0xd28] ss:$16 sps:$4 sm:$0xff]  }
 0x5a7   :  { %10479 = vmatpush1.bf16.msra.mxu1 %v13810_v20  ;;  %10439 = vmatprep.subr.bf16.mxu0 %v13815_v34  ;;  %v13887_v20 = vld [vmem:[#allocation11 + $0xd0c] ss:$16 sps:$4 sm:$0xff]   ;;  %v10546_v34 = vmul.f32 0.2, %v10538_v58  ;;  %vm10542_vm1 = vcmp.gt.f32.partialorder %v10538_v58, 0.0 }
 0x5a8   :  { %10480 = vmatprep.subr.bf16.mxu1 %v13818_v36  ;;  %v13888_v36 = vld [vmem:[#allocation11 + $0xf08] ss:$16 sps:$4 sm:$0xff]  }
 0x5a9   :  { %v13917_v41 = vld [vmem:[#allocation16 + $0x1e4] ss:$16 sps:$4 sm:$0xff]  }
 0x5aa   :  { %10440 = vmatpush1.bf16.msra.mxu0 %v13813_v8  ;;  %v13893_v8 = vld [vmem:[#allocation16 + $0xe4] ss:$16 sps:$4 sm:$0xff]  }
 0x5ab   :  { %10481 = vmatpush1.bf16.msra.mxu1 %v13816_v22  ;;  %10441 = vmatprep.subr.bf16.mxu0 %v13821_v48  ;;  %v13891_v22 = vld [vmem:[#allocation16 + $0xe0] ss:$16 sps:$4 sm:$0xff]   ;;  %v10550_v48 = vsel %vm10542_vm1, %v10538_v58, %v10546_v34  ;;  %v14010_v15 = vld [vmem:[#allocation16 + $0x204] ss:$16 sps:$4 sm:$0xff]  }
 0x5ac   :  { %10482 = vmatprep.subr.bf16.mxu1 %v13824_v53  ;;  %v13896_v53 = vld [vmem:[#allocation16 + $0xc4] ss:$16 sps:$4 sm:$0xff]   ;;  %v13921_v58 = vld [vmem:[#allocation16 + $0x1a0] ss:$16 sps:$4 sm:$0xff]  }
 0x5ad   :  { %v13929_v34 = vld [vmem:[#allocation16 + $0x164] ss:$16 sps:$4 sm:$0xff]  }
 0x5ae   :  { %10442 = vmatpush1.bf16.msra.mxu0 %v13819_v30 }
 0x5af   :  { %10483 = vmatpush1.bf16.msra.mxu1 %v13822_v44  ;;  %10443 = vmatprep.subr.bf16.mxu0 %v13827_v63  ;;  %v14796_v44 = vpack.c.bf16 %v10550_v48, %v10550_v48  ;;  %v13932_v48 = vld [vmem:[#allocation16 + $0x144] ss:$16 sps:$4 sm:$0xff]  }
 0x5b0   :  { %10484 = vmatprep.subr.bf16.mxu1 %v13830_v11 }
 0x5b2   :  { %10444 = vmatpush1.bf16.msra.mxu0 %v13825_v10  ;;  %v13894_v10 = vld [vmem:[#allocation16 + $0xc0] ss:$16 sps:$4 sm:$0xff]  }
 0x5b3   :  { %10485 = vmatpush1.bf16.msra.mxu1 %v13828_v4  ;;  %10445 = vmatprep.subr.bf16.mxu0 %v13833_v27  ;;  %v13899_v27 = vld [vmem:[#allocation16 + $0xa4] ss:$16 sps:$4 sm:$0xff]  }
 0x5b4   :  { %10486 = vmatprep.subr.bf16.mxu1 %v13836_v46 }
 0x5b6   :  { %10446 = vmatpush1.bf16.msra.mxu0 %v13831_v28 }
 0x5b7   :  { %10487 = vmatpush1.bf16.msra.mxu1 %v13834_v49  ;;  %10447 = vmatprep.subr.bf16.mxu0 %v13839_v23 }
 0x5b8   :  { %10488 = vmatprep.subr.bf16.mxu1 %v13842_v54 }
 0x5ba   :  { %10448 = vmatpush1.bf16.msra.mxu0 %v13837_v55 }
 0x5bb   :  { %10489 = vmatpush1.bf16.msra.mxu1 %v13840_v31  ;;  %10449 = vmatprep.subr.bf16.mxu0 %v13845_v1  ;;  %v13987_v1 = vld [vmem:[#allocation16 + $0x2e0] ss:$16 sps:$4 sm:$0xff]  }
 0x5bc   :  { %10490 = vmatprep.subr.bf16.mxu1 %v13848_v45  ;;  %v13989_v45 = vld [vmem:[#allocation16 + $0x2e4] ss:$16 sps:$4 sm:$0xff]  }
 0x5be   :  { %10450 = vmatpush2.bf16.msra.mxu0 %v13843_v13  ;;  %v13992_v13 = vld [vmem:[#allocation16 + $0x2c4] ss:$16 sps:$4 sm:$0xff]  }
 0x5bf   :  { %10491 = vmatpush2.bf16.msra.mxu1 %v13846_v40  ;;  %10451 = vmatprep.subr.bf16.mxu0 %v13851_v29  ;;  %v13900_v40 = vld [vmem:[#allocation16 + $0x80] ss:$16 sps:$4 sm:$0xff]   ;;  %v13905_v29 = vld [vmem:[#allocation16 + $0x64] ss:$16 sps:$4 sm:$0xff]  }
 0x5c0   :  { %10492 = vmatprep.subr.bf16.mxu1 %v13854_v61  ;;  %v13995_v61 = vld [vmem:[#allocation16 + $0x2a4] ss:$16 sps:$4 sm:$0xff]  }
 0x5c2   :  { %10452 = vmatpush2.bf16.msra.mxu0 %v13849_v16  ;;  %v13903_v16 = vld [vmem:[#allocation16 + $0x60] ss:$16 sps:$4 sm:$0xff]  }
 0x5c3   :  { %10493 = vmatpush2.bf16.msra.mxu1 %v13852_v47  ;;  %10453 = vmatprep.subr.bf16.mxu0 %v13857_v2  ;;  %v13908_v47 = vld [vmem:[#allocation16 + $0x44] ss:$16 sps:$4 sm:$0xff]   ;;  %v13993_v2 = vld [vmem:[#allocation16 + $0x2a0] ss:$16 sps:$4 sm:$0xff]  }
 0x5c4   :  { %10494 = vmatprep.subr.bf16.mxu1 %v13860_v0  ;;  %v13998_v0 = vld [vmem:[#allocation16 + $0x284] ss:$16 sps:$4 sm:$0xff]  }
 0x5c6   :  { %10454 = vmatpush2.bf16.msra.mxu0 %v13855_v5  ;;  %v13906_v5 = vld [vmem:[#allocation16 + $0x40] ss:$16 sps:$4 sm:$0xff]  }
 0x5c7   :  { %10495 = vmatpush2.bf16.msra.mxu1 %v13858_v25  ;;  %10455 = vmatprep.subr.bf16.mxu0 %v13863_v17  ;;  %v13911_v25 = vld [vmem:[#allocation16 + $0x24] ss:$16 sps:$4 sm:$0xff]   ;;  %v13996_v17 = vld [vmem:[#allocation16 + $0x280] ss:$16 sps:$4 sm:$0xff]  }
 0x5c8   :  { %10496 = vmatprep.subr.bf16.mxu1 %v13866_v32  ;;  %v13909_v32 = vld [vmem:[#allocation16 + $0x20] ss:$16 sps:$4 sm:$0xff]  }
 0x5ca   :  { %10456 = vmatpush2.bf16.msra.mxu0 %v13861_v50  ;;  %v13914_v50 = vld [vmem:[#allocation16 + $0x4] ss:$16 sps:$4 sm:$0xff]  }
 0x5cb   :  { %10497 = vmatpush2.bf16.msra.mxu1 %v13864_v21  ;;  %10457 = vmatprep.subr.bf16.mxu0 %v13869_v7  ;;  %v13999_v21 = vld [vmem:[#allocation16 + $0x260] ss:$16 sps:$4 sm:$0xff]   ;;  %v14004_v7 = vld [vmem:[#allocation16 + $0x244] ss:$16 sps:$4 sm:$0xff]  }
 0x5cc   :  { %10498 = vmatprep.subr.bf16.mxu1 %v13872_v37  ;;  %v13912_v37 = vld [vmem:[#allocation16] ss:$16 sps:$4 sm:$0xff]  }
 0x5ce   :  { %10458 = vmatpush2.bf16.msra.mxu0 %v13867_v43  ;;  %v14002_v43 = vld [vmem:[#allocation16 + $0x240] ss:$16 sps:$4 sm:$0xff]  }
 0x5cf   :  { %10499 = vmatpush2.bf16.msra.mxu1 %v13870_v12  ;;  %10459 = vmatprep.subr.bf16.mxu0 %v13875_v57  ;;  %v14007_v12 = vld [vmem:[#allocation16 + $0x224] ss:$16 sps:$4 sm:$0xff]   ;;  %v13915_v57 = vld [vmem:[#allocation16 + $0x1e0] ss:$16 sps:$4 sm:$0xff]  }
 0x5d0   :  { %10500 = vmatprep.subr.bf16.mxu1 %v13878_v39  ;;  %v13920_v39 = vld [vmem:[#allocation16 + $0x1c4] ss:$16 sps:$4 sm:$0xff]  }
 0x5d2   :  { %10460 = vmatpush2.bf16.msra.mxu0 %v13873_v38  ;;  %v13918_v38 = vld [vmem:[#allocation16 + $0x1c0] ss:$16 sps:$4 sm:$0xff]  }
 0x5d3   :  { %10501 = vmatpush2.bf16.msra.mxu1 %v13876_v56  ;;  %10461 = vmatprep.subr.bf16.mxu0 %v13881_v42  ;;  %v13923_v56 = vld [vmem:[#allocation16 + $0x1a4] ss:$16 sps:$4 sm:$0xff]   ;;  %v14008_v42 = vld [vmem:[#allocation16 + $0x200] ss:$16 sps:$4 sm:$0xff]  }
 0x5d4   :  { %10502 = vmatprep.subr.bf16.mxu1 %v13884_v19  ;;  %v14013_v19 = vld [vmem:[#allocation16 + $0x3e4] ss:$16 sps:$4 sm:$0xff]  }
 0x5d6   :  { %10462 = vmatpush2.bf16.msra.mxu0 %v13879_v14  ;;  %v13926_v14 = vld [vmem:[#allocation16 + $0x184] ss:$16 sps:$4 sm:$0xff]  }
 0x5d7   :  { %10503 = vmatpush2.bf16.msra.mxu1 %v13882_v6  ;;  %10463 = vmatprep.subr.bf16.mxu0 %v13887_v20  ;;  %v14011_v6 = vld [vmem:[#allocation16 + $0x3e0] ss:$16 sps:$4 sm:$0xff]   ;;  %v14016_v20 = vld [vmem:[#allocation16 + $0x3c4] ss:$16 sps:$4 sm:$0xff]  }
 0x5d8   :  { %10504 = vmatprep.subr.bf16.mxu1 %v13890_v33  ;;  %v13924_v33 = vld [vmem:[#allocation16 + $0x180] ss:$16 sps:$4 sm:$0xff]  }
 0x5da   :  { %10464 = vmatpush2.bf16.msra.mxu0 %v13885_v35  ;;  %v14014_v35 = vld [vmem:[#allocation16 + $0x3c0] ss:$16 sps:$4 sm:$0xff]  }
 0x5db   :  { %10505 = vmatpush2.bf16.msra.mxu1 %v13888_v36  ;;  %11347 = vmatprep.subr.bf16.mxu0 %v13893_v8  ;;  %v10519_v36 = vsub.s32 0, %v14784_v51  ;;  %v14019_v8 = vld [vmem:[#allocation16 + $0x3a4] ss:$16 sps:$4 sm:$0xff]  }
 0x5dc   :  { %11388 = vmatprep.subr.bf16.mxu1 %v13989_v45  ;;  %v13944_v45 = vld [vmem:[#allocation16 + $0xcc] ss:$16 sps:$4 sm:$0xff]  }
 0x5dd   :  { %v10221_v30 = vpop.f32.mrf.mxu0  ;;  %10466 = vmatmul.mubr.bf16.vlgmr.msra.gmra.mxu0 %v14737_v52 }
 0x5de   :  { %v10222_v63 = vadd.f32 %v10221_v30, %v14726_v26  ;;  %v10262_v11 = vpop.f32.mrf.mxu1  ;;  %10507 = vmatmul.mubr.bf16.vlgmr.msra.gmra.mxu1 %v14741_v59  ;;  %11348 = vmatpush1.bf16.msra.mxu0 %v13891_v22  ;;  %v13897_v26 = vld [vmem:[#allocation16 + $0xa0] ss:$16 sps:$4 sm:$0xff]   ;;  %v13902_v59 = vld [vmem:[#allocation16 + $0x84] ss:$16 sps:$4 sm:$0xff]   ;;  %v10520_v30 = vrot.slane %v14789_v9, %v10519_v36 }
 0x5df   :  { %11379 = vmatprep.mubr.bf16.mxu0 %v14796_v44  ;;  %v10223_v4 = vpop.f32.mrf.mxu0  ;;  %11349 = vmatprep.subr.bf16.mxu0 %v13896_v53  ;;  %v13927_v22 = vld [vmem:[#allocation16 + $0x160] ss:$16 sps:$4 sm:$0xff]  }
 0x5e0   :  { %v14801_v46 = vadd.f32 %v10262_v11, %v10222_v63  ;;  %v10224_v28 = vadd.f32 %v10223_v4, %v14733_v18  ;;  %v10264_v49 = vpop.f32.mrf.mxu1  ;;  %11389 = vmatpush1.bf16.msra.mxu1 %v13987_v1  ;;  %v13990_v18 = vld [vmem:[#allocation16 + $0x2c0] ss:$16 sps:$4 sm:$0xff]   ;;  %v14022_v63 = vld [vmem:[#allocation16 + $0x384] ss:$16 sps:$4 sm:$0xff]   ;;  %v13939_v1 = vld [vmem:[#allocation16 + $0xe8] ss:$16 sps:$4 sm:$0xff]  }
 0x5e1   :  { %v10225_v52 = vpop.f32.mrf.mxu0  ;;  %11390 = vmatprep.subr.bf16.mxu1 %v13992_v13  ;;  %v14017_v53 = vld [vmem:[#allocation16 + $0x3a0] ss:$16 sps:$4 sm:$0xff]  }
 0x5e2   :  { %v14804_v23 = vadd.f32 %v10264_v49, %v10224_v28  ;;  %v10266_v54 = vpop.f32.mrf.mxu1  ;;  %11350 = vmatpush1.bf16.msra.mxu0 %v13894_v10  ;;  %v13930_v11 = vld [vmem:[#allocation16 + $0x140] ss:$16 sps:$4 sm:$0xff]   ;;  %v13935_v10 = vld [vmem:[#allocation16 + $0x124] ss:$16 sps:$4 sm:$0xff]  }
 0x5e3   :  { %v10226_v55 = vpop.f32.mrf.mxu0  ;;  %11351 = vmatprep.subr.bf16.mxu0 %v13899_v27  ;;  %v14020_v4 = vld [vmem:[#allocation16 + $0x380] ss:$16 sps:$4 sm:$0xff]   ;;  %v10537_v27 = vadd.f32 %v10520_v30, %v14779_v24  ;;  %v14025_v28 = vld [vmem:[#allocation16 + $0x364] ss:$16 sps:$4 sm:$0xff]   ;;  %v13978_v30 = vld [vmem:[#allocation16 + $0x148] ss:$16 sps:$4 sm:$0xff]  }
 0x5e4   :  { %v10267_v31 = vpop.f32.mrf.mxu1  ;;  %11391 = vmatpush1.bf16.msra.mxu1 %v13990_v18  ;;  %v13933_v49 = vld [vmem:[#allocation16 + $0x120] ss:$16 sps:$4 sm:$0xff]   ;;  %v13938_v52 = vld [vmem:[#allocation16 + $0x104] ss:$16 sps:$4 sm:$0xff]   ;;  %v13942_v18 = vld [vmem:[#allocation16 + $0xc8] ss:$16 sps:$4 sm:$0xff]  }
 0x5e5   :  { %11392 = vmatprep.subr.bf16.mxu1 %v13995_v61  ;;  %v14023_v54 = vld [vmem:[#allocation16 + $0x360] ss:$16 sps:$4 sm:$0xff]   ;;  %vm10541_vm2 = vcmp.gt.f32.partialorder %v10537_v27, 0.0 }
 0x5e6   :  { %11352 = vmatpush1.bf16.msra.mxu0 %v13897_v26  ;;  %v10545_v26 = vmul.f32 0.2, %v10537_v27  ;;  %v13936_v55 = vld [vmem:[#allocation16 + $0x100] ss:$16 sps:$4 sm:$0xff]  }
 0x5e7   :  { %11353 = vmatprep.subr.bf16.mxu0 %v13902_v59  ;;  %v13941_v59 = vld [vmem:[#allocation16 + $0xec] ss:$16 sps:$4 sm:$0xff]  }
 0x5e8   :  { %11393 = vmatpush1.bf16.msra.mxu1 %v13993_v2  ;;  %v10549_v31 = vsel %vm10541_vm2, %v10537_v27, %v10545_v26 }
 0x5e9   :  { %11394 = vmatprep.subr.bf16.mxu1 %v13998_v0  ;;  %v14811_v24 = vpack.c.bf16 %v10549_v31, %v10549_v31 }
 0x5ea   :  { %11354 = vmatpush1.bf16.msra.mxu0 %v13900_v40 }
 0x5eb   :  { %11355 = vmatprep.subr.bf16.mxu0 %v13905_v29 }
 0x5ec   :  { %11395 = vmatpush1.bf16.msra.mxu1 %v13996_v17 }
 0x5ed   :  { %11396 = vmatprep.subr.bf16.mxu1 %v14001_v62 }
 0x5ee   :  { %11356 = vmatpush1.bf16.msra.mxu0 %v13903_v16  ;;  %v13947_v16 = vld [vmem:[#allocation16 + $0xac] ss:$16 sps:$4 sm:$0xff]  }
 0x5ef   :  { %11357 = vmatprep.subr.bf16.mxu0 %v13908_v47  ;;  %v14028_v47 = vld [vmem:[#allocation16 + $0x344] ss:$16 sps:$4 sm:$0xff]  }
 0x5f0   :  { %11397 = vmatpush1.bf16.msra.mxu1 %v13999_v21  ;;  %v14031_v21 = vld [vmem:[#allocation16 + $0x324] ss:$16 sps:$4 sm:$0xff]  }
 0x5f1   :  { %11398 = vmatprep.subr.bf16.mxu1 %v14004_v7 }
 0x5f2   :  { %11358 = vmatpush1.bf16.msra.mxu0 %v13906_v5 }
 0x5f3   :  { %11359 = vmatprep.subr.bf16.mxu0 %v13911_v25  ;;  %v14026_v25 = vld [vmem:[#allocation16 + $0x340] ss:$16 sps:$4 sm:$0xff]  }
 0x5f4   :  { %11399 = vmatpush1.bf16.msra.mxu1 %v14002_v43  ;;  %v14032_v43 = vld [vmem:[#allocation16 + $0x300] ss:$16 sps:$4 sm:$0xff]  }
 0x5f5   :  { %11400 = vmatprep.subr.bf16.mxu1 %v14007_v12  ;;  %v14034_v12 = vld [vmem:[#allocation16 + $0x304] ss:$16 sps:$4 sm:$0xff]  }
 0x5f6   :  { %11360 = vmatpush1.bf16.msra.mxu0 %v13909_v32  ;;  %v13945_v32 = vld [vmem:[#allocation16 + $0xa8] ss:$16 sps:$4 sm:$0xff]  }
 0x5f7   :  { %11361 = vmatprep.subr.bf16.mxu0 %v13914_v50  ;;  %v13950_v50 = vld [vmem:[#allocation16 + $0x8c] ss:$16 sps:$4 sm:$0xff]  }
 0x5f8   :  { %11401 = vmatpush1.bf16.msra.mxu1 %v14005_v60  ;;  %v14037_v60 = vld [vmem:[#allocation16 + $0x2ec] ss:$16 sps:$4 sm:$0xff]  }
 0x5f9   :  { %11402 = vmatprep.subr.bf16.mxu1 %v14010_v15  ;;  %v13954_v15 = vld [vmem:[#allocation16 + $0x48] ss:$16 sps:$4 sm:$0xff]  }
 0x5fa   :  { %11362 = vmatpush1.bf16.msra.mxu0 %v13912_v37  ;;  %v14029_v37 = vld [vmem:[#allocation16 + $0x320] ss:$16 sps:$4 sm:$0xff]  }
 0x5fb   :  { %11363 = vmatprep.subr.bf16.mxu0 %v13917_v41  ;;  %v13948_v41 = vld [vmem:[#allocation16 + $0x88] ss:$16 sps:$4 sm:$0xff]  }
 0x5fc   :  { %11403 = vmatpush1.bf16.msra.mxu1 %v14008_v42  ;;  %v13962_v42 = vld [vmem:[#allocation16 + $0xc] ss:$16 sps:$4 sm:$0xff]  }
 0x5fd   :  { %11404 = vmatprep.subr.bf16.mxu1 %v14013_v19  ;;  %v13960_v19 = vld [vmem:[#allocation16 + $0x8] ss:$16 sps:$4 sm:$0xff]  }
 0x5fe   :  { %11364 = vmatpush2.bf16.msra.mxu0 %v13915_v57  ;;  %v13951_v57 = vld [vmem:[#allocation16 + $0x68] ss:$16 sps:$4 sm:$0xff]  }
 0x5ff   :  { %11365 = vmatprep.subr.bf16.mxu0 %v13920_v39  ;;  %v13956_v39 = vld [vmem:[#allocation16 + $0x4c] ss:$16 sps:$4 sm:$0xff]  }
 0x600   :  { %11405 = vmatpush2.bf16.msra.mxu1 %v14011_v6  ;;  %v13968_v6 = vld [vmem:[#allocation16 + $0x1cc] ss:$16 sps:$4 sm:$0xff]  }
 0x601   :  { %11406 = vmatprep.subr.bf16.mxu1 %v14016_v20  ;;  %v13966_v20 = vld [vmem:[#allocation16 + $0x1c8] ss:$16 sps:$4 sm:$0xff]  }
 0x602   :  { %11366 = vmatpush2.bf16.msra.mxu0 %v13918_v38  ;;  %v13959_v38 = vld [vmem:[#allocation16 + $0x2c] ss:$16 sps:$4 sm:$0xff]  }
 0x603   :  { %11367 = vmatprep.subr.bf16.mxu0 %v13923_v56  ;;  %v13957_v56 = vld [vmem:[#allocation16 + $0x28] ss:$16 sps:$4 sm:$0xff]  }
 0x604   :  { %11407 = vmatpush2.bf16.msra.mxu1 %v14014_v35  ;;  %v13974_v35 = vld [vmem:[#allocation16 + $0x18c] ss:$16 sps:$4 sm:$0xff]  }
 0x605   :  { %11408 = vmatprep.subr.bf16.mxu1 %v14019_v8  ;;  %v13972_v8 = vld [vmem:[#allocation16 + $0x188] ss:$16 sps:$4 sm:$0xff]  }
 0x606   :  { %11368 = vmatpush2.bf16.msra.mxu0 %v13921_v58  ;;  %v13965_v58 = vld [vmem:[#allocation16 + $0x1ec] ss:$16 sps:$4 sm:$0xff]  }
 0x607   :  { %11369 = vmatprep.subr.bf16.mxu0 %v13926_v14  ;;  %v13963_v14 = vld [vmem:[#allocation16 + $0x1e8] ss:$16 sps:$4 sm:$0xff]  }
 0x608   :  { %11409 = vmatpush2.bf16.msra.mxu1 %v14017_v53  ;;  %v13980_v53 = vld [vmem:[#allocation16 + $0x14c] ss:$16 sps:$4 sm:$0xff]  }
 0x609   :  { %11410 = vmatprep.subr.bf16.mxu1 %v14022_v63  ;;  %v13983_v63 = vld [vmem:[#allocation16 + $0x12c] ss:$16 sps:$4 sm:$0xff]  }
 0x60a   :  { %11370 = vmatpush2.bf16.msra.mxu0 %v13924_v33  ;;  %v13971_v33 = vld [vmem:[#allocation16 + $0x1ac] ss:$16 sps:$4 sm:$0xff]  }
 0x60b   :  { %11371 = vmatprep.subr.bf16.mxu0 %v13929_v34  ;;  %v13969_v34 = vld [vmem:[#allocation16 + $0x1a8] ss:$16 sps:$4 sm:$0xff]  }
 0x60c   :  { %11411 = vmatpush2.bf16.msra.mxu1 %v14020_v4  ;;  %v13984_v4 = vld [vmem:[#allocation16 + $0x108] ss:$16 sps:$4 sm:$0xff]  }
 0x60d   :  { %11412 = vmatprep.subr.bf16.mxu1 %v14025_v28 }
 0x60e   :  { %11372 = vmatpush2.bf16.msra.mxu0 %v13927_v22  ;;  %v13977_v22 = vld [vmem:[#allocation16 + $0x16c] ss:$16 sps:$4 sm:$0xff]  }
 0x60f   :  { %11373 = vmatprep.subr.bf16.mxu0 %v13932_v48  ;;  %v13975_v48 = vld [vmem:[#allocation16 + $0x168] ss:$16 sps:$4 sm:$0xff]  }
 0x610   :  { %11413 = vmatpush2.bf16.msra.mxu1 %v14023_v54 }
 0x611   :  { %11414 = vmatprep.subr.bf16.mxu1 %v14028_v47 }
 0x612   :  { %11374 = vmatpush2.bf16.msra.mxu0 %v13930_v11  ;;  %v13981_v11 = vld [vmem:[#allocation16 + $0x128] ss:$16 sps:$4 sm:$0xff]  }
 0x613   :  { %11375 = vmatprep.subr.bf16.mxu0 %v13935_v10  ;;  %v13986_v10 = vld [vmem:[#allocation16 + $0x10c] ss:$16 sps:$4 sm:$0xff]  }
 0x614   :  { %11415 = vmatpush2.bf16.msra.mxu1 %v14026_v25 }
 0x615   :  { %11416 = vmatprep.subr.bf16.mxu1 %v14031_v21 }
 0x616   :  { %11376 = vmatpush2.bf16.msra.mxu0 %v13933_v49 }
 0x617   :  { %11377 = vmatprep.subr.bf16.mxu0 %v13938_v52 }
 0x618   :  { %11417 = vmatpush2.bf16.msra.mxu1 %v14029_v37 }
 0x619   :  { %11418 = vmatprep.subr.bf16.mxu1 %v14034_v12  ;;  %v14035_v12 = vld [vmem:[#allocation16 + $0x2e8] ss:$16 sps:$4 sm:$0xff]  }
 0x61a   :  { %11378 = vmatpush2.bf16.msra.mxu0 %v13936_v55 }
 0x61b   :  { %11429 = vmatprep.subr.bf16.mxu0 %v13941_v59 }
 0x61c   :  { %11419 = vmatpush2.bf16.msra.mxu1 %v14032_v43 }
 0x61d   :  { %v10303_v13 = vpop.f32.mrf.mxu0  ;;  %11380 = vmatmul.mubr.bf16.vlgmr.msra.gmra.mxu0 %v14811_v24  ;;  %11470 = vmatprep.subr.bf16.mxu1 %v14037_v60  ;;  %v14043_v60 = vld [vmem:[#allocation16 + $0x2ac] ss:$16 sps:$4 sm:$0xff]  }
 0x61e   :  { %v10304_v40 = vadd.f32 %v10303_v13, %v14801_v46  ;;  %v10344_v29 = vpop.f32.mrf.mxu1  ;;  %11430 = vmatpush1.bf16.msra.mxu0 %v13939_v1  ;;  %11461 = vmatprep.mubr.bf16.mxu0 %v14796_v44  ;;  %v10527_v13 = vsub.s32 2, %v14784_v51 }
 0x61f   :  { %v10305_v61 = vpop.f32.mrf.mxu0  ;;  %11431 = vmatprep.subr.bf16.mxu0 %v13944_v45 }
 0x620   :  { %v14816_v2 = vadd.f32 %v10344_v29, %v10304_v40  ;;  %v10306_v0 = vadd.f32 %v10305_v61, %v14804_v23  ;;  %v10346_v5 = vpop.f32.mrf.mxu1  ;;  %v13953_v23 = vld [vmem:[#allocation16 + $0x6c] ss:$16 sps:$4 sm:$0xff]   ;;  %v10531_v40 = vsub.s32 3, %v14784_v51 }
 0x621   :  { %v10307_v17 = vpop.f32.mrf.mxu0 }
 0x622   :  { %v14819_v62 = vadd.f32 %v10346_v5, %v10306_v0  ;;  %v10348_v46 = vpop.f32.mrf.mxu1  ;;  %11432 = vmatpush1.bf16.msra.mxu0 %v13942_v18  ;;  %v10532_v25 = vrot.slane %v14789_v9, %v10531_v40 }
 0x623   :  { %v10308_v44 = vpop.f32.mrf.mxu0  ;;  %11433 = vmatprep.subr.bf16.mxu0 %v13947_v16  ;;  %v10528_v16 = vrot.slane %v14789_v9, %v10527_v13  ;;  %v14038_v9 = vld [vmem:[#allocation16 + $0x2c8] ss:$16 sps:$4 sm:$0xff]  }
 0x624   :  { %v10349_v7 = vpop.f32.mrf.mxu1 }
 0x626   :  { %11434 = vmatpush1.bf16.msra.mxu0 %v13945_v32 }
 0x627   :  { %11435 = vmatprep.subr.bf16.mxu0 %v13950_v50 }
 0x62a   :  { %11436 = vmatpush1.bf16.msra.mxu0 %v13948_v41 }
 0x62b   :  { %11437 = vmatprep.subr.bf16.mxu0 %v13953_v23 }
 0x62e   :  { %11438 = vmatpush1.bf16.msra.mxu0 %v13951_v57 }
 0x62f   :  { %11439 = vmatprep.subr.bf16.mxu0 %v13956_v39  ;;  %v14040_v39 = vld [vmem:[#allocation16 + $0x2cc] ss:$16 sps:$4 sm:$0xff]  }
 0x632   :  { %11440 = vmatpush1.bf16.msra.mxu0 %v13954_v15  ;;  %v14041_v15 = vld [vmem:[#allocation16 + $0x2a8] ss:$16 sps:$4 sm:$0xff]  }
 0x633   :  { %11441 = vmatprep.subr.bf16.mxu0 %v13959_v38  ;;  %v14046_v38 = vld [vmem:[#allocation16 + $0x28c] ss:$16 sps:$4 sm:$0xff]  }
 0x636   :  { %11442 = vmatpush1.bf16.msra.mxu0 %v13957_v56  ;;  %v14044_v56 = vld [vmem:[#allocation16 + $0x288] ss:$16 sps:$4 sm:$0xff]  }
 0x637   :  { %11443 = vmatprep.subr.bf16.mxu0 %v13962_v42  ;;  %v14049_v42 = vld [vmem:[#allocation16 + $0x26c] ss:$16 sps:$4 sm:$0xff]  }
 0x63a   :  { %11444 = vmatpush1.bf16.msra.mxu0 %v13960_v19  ;;  %v14047_v19 = vld [vmem:[#allocation16 + $0x268] ss:$16 sps:$4 sm:$0xff]  }
 0x63b   :  { %11445 = vmatprep.subr.bf16.mxu0 %v13965_v58  ;;  %v14052_v58 = vld [vmem:[#allocation16 + $0x24c] ss:$16 sps:$4 sm:$0xff]  }
 0x63e   :  { %11446 = vmatpush2.bf16.msra.mxu0 %v13963_v14  ;;  %v14050_v14 = vld [vmem:[#allocation16 + $0x248] ss:$16 sps:$4 sm:$0xff]  }
 0x63f   :  { %11447 = vmatprep.subr.bf16.mxu0 %v13968_v6  ;;  %v14055_v6 = vld [vmem:[#allocation16 + $0x22c] ss:$16 sps:$4 sm:$0xff]  }
 0x642   :  { %11448 = vmatpush2.bf16.msra.mxu0 %v13966_v20  ;;  %v14053_v20 = vld [vmem:[#allocation16 + $0x228] ss:$16 sps:$4 sm:$0xff]  }
 0x643   :  { %11449 = vmatprep.subr.bf16.mxu0 %v13971_v33  ;;  %v14058_v33 = vld [vmem:[#allocation16 + $0x20c] ss:$16 sps:$4 sm:$0xff]  }
 0x646   :  { %11450 = vmatpush2.bf16.msra.mxu0 %v13969_v34  ;;  %v14056_v34 = vld [vmem:[#allocation16 + $0x208] ss:$16 sps:$4 sm:$0xff]  }
 0x647   :  { %11451 = vmatprep.subr.bf16.mxu0 %v13974_v35  ;;  %v14061_v35 = vld [vmem:[#allocation16 + $0x3ec] ss:$16 sps:$4 sm:$0xff]  }
 0x64a   :  { %11452 = vmatpush2.bf16.msra.mxu0 %v13972_v8  ;;  %v14059_v8 = vld [vmem:[#allocation16 + $0x3e8] ss:$16 sps:$4 sm:$0xff]  }
 0x64b   :  { %11453 = vmatprep.subr.bf16.mxu0 %v13977_v22  ;;  %v14064_v22 = vld [vmem:[#allocation16 + $0x3cc] ss:$16 sps:$4 sm:$0xff]  }
 0x64e   :  { %11454 = vmatpush2.bf16.msra.mxu0 %v13975_v48  ;;  %v14062_v48 = vld [vmem:[#allocation16 + $0x3c8] ss:$16 sps:$4 sm:$0xff]  }
 0x64f   :  { %11455 = vmatprep.subr.bf16.mxu0 %v13980_v53  ;;  %v14067_v53 = vld [vmem:[#allocation16 + $0x3ac] ss:$16 sps:$4 sm:$0xff]  }
 0x652   :  { %11456 = vmatpush2.bf16.msra.mxu0 %v13978_v30  ;;  %v14065_v30 = vld [vmem:[#allocation16 + $0x3a8] ss:$16 sps:$4 sm:$0xff]  }
 0x653   :  { %11457 = vmatprep.subr.bf16.mxu0 %v13983_v63  ;;  %v14070_v63 = vld [vmem:[#allocation16 + $0x38c] ss:$16 sps:$4 sm:$0xff]  }
 0x656   :  { %11458 = vmatpush2.bf16.msra.mxu0 %v13981_v11  ;;  %v14068_v11 = vld [vmem:[#allocation16 + $0x388] ss:$16 sps:$4 sm:$0xff]  }
 0x657   :  { %11459 = vmatprep.subr.bf16.mxu0 %v13986_v10  ;;  %v14073_v10 = vld [vmem:[#allocation16 + $0x36c] ss:$16 sps:$4 sm:$0xff]  }
 0x65a   :  { %11460 = vmatpush2.bf16.msra.mxu0 %v13984_v4  ;;  %v14071_v4 = vld [vmem:[#allocation16 + $0x368] ss:$16 sps:$4 sm:$0xff]  }
 0x65d   :  { %v10385_v27 = vpop.f32.mrf.mxu0  ;;  %11462 = vmatmul.mubr.bf16.vlgmr.msra.gmra.mxu0 %v14811_v24 }
 0x65e   :  { %v10386_v28 = vadd.f32 %v10385_v27, %v14816_v2  ;;  %v10426_v49 = vpop.f32.mrf.mxu1  ;;  %v14076_v27 = vld [vmem:[#allocation16 + $0x34c] ss:$16 sps:$4 sm:$0xff]  }
 0x65f   :  { %v10387_v52 = vpop.f32.mrf.mxu0 }
 0x660   :  { %v10427_v54 = vadd.f32 %v10426_v49, %v10386_v28  ;;  %v10428_v26 = vpop.f32.mrf.mxu1  ;;  %v10388_v45 = vadd.f32 %v10387_v52, %v14819_v62  ;;  %v14074_v49 = vld [vmem:[#allocation16 + $0x348] ss:$16 sps:$4 sm:$0xff]   ;;  %v14079_v52 = vld [vmem:[#allocation16 + $0x32c] ss:$16 sps:$4 sm:$0xff]  }
 0x661   :  { %v10389_v55 = vpop.f32.mrf.mxu0 }
 0x662   :  { %v10430_v59 = vpop.f32.mrf.mxu1  ;;  %v10429_v18 = vadd.f32 %v10428_v26, %v10388_v45  ;;  %v14077_v55 = vld [vmem:[#allocation16 + $0x328] ss:$16 sps:$4 sm:$0xff]   ;;  %v10685_v45 = vld [vmem:[#allocation17] sm:$0xf] }
 0x663   :  { %v10390_v31 = vpop.f32.mrf.mxu0  ;;  %v14082_v59 = vld [vmem:[#allocation16 + $0x30c] ss:$16 sps:$4 sm:$0xff]  }
 0x664   :  { %v10431_v1 = vpop.f32.mrf.mxu1 }
 0x665   :  { %v14080_v1 = vld [vmem:[#allocation16 + $0x308] ss:$16 sps:$4 sm:$0xff]  }
 0x69d   :  { %v10467_v29 = vpop.f32.mrf.mxu0 }
 0x69e   :  { %v10468_v61 = vadd.f32 %v10467_v29, %v10427_v54  ;;  %v10508_v24 = vpop.f32.mrf.mxu1  ;;  %v10698_v29 = vrot.slane %v10685_v45, %v10527_v13 }
 0x69f   :  { %v10469_v47 = vpop.f32.mrf.mxu0 }
 0x6a0   :  { %v10509_v2 = vadd.f32 %v10508_v24, %v10468_v61  ;;  %v10470_v0 = vadd.f32 %v10469_v47, %v10429_v18  ;;  %v10510_v5 = vpop.f32.mrf.mxu1  ;;  %v10702_v18 = vrot.slane %v10685_v45, %v10531_v40 }
 0x6a1   :  { %v10471_v17 = vpop.f32.mrf.mxu0 }
 0x6a2   :  { %v10539_v62 = vadd.f32 %v10528_v16, %v10509_v2  ;;  %v10511_v46 = vadd.f32 %v10510_v5, %v10470_v0  ;;  %v10512_v32 = vpop.f32.mrf.mxu1  ;;  %v10690_v5 = vrot.slane %v10685_v45, %v10519_v36 }
 0x6a3   :  { %v10472_v44 = vpop.f32.mrf.mxu0 }
 0x6a4   :  { %vm10543_vm3 = vcmp.gt.f32.partialorder %v10539_v62, 0.0  ;;  %v10547_v50 = vmul.f32 0.2, %v10539_v62  ;;  %v10540_v21 = vadd.f32 %v10532_v25, %v10511_v46  ;;  %v10513_v7 = vpop.f32.mrf.mxu1  ;;  %v10694_v25 = vrot.slane %v10685_v45, %v10523_v3 }
 0x6a6   :  { %v10548_v37 = vmul.f32 0.2, %v10540_v21  ;;  %vm10544_vm4 = vcmp.gt.f32.partialorder %v10540_v21, 0.0  ;;  %v10551_v41 = vsel %vm10543_vm3, %v10539_v62, %v10547_v50 }
 0x6a7   :  { %v14832_v57 = vpack.c.bf16 %v10551_v41, %v10551_v41 }
 0x6a8   :  { %v10552_v23 = vsel %vm10544_vm4, %v10540_v21, %v10548_v37 }
 0x6a9   :  { %v10556_v43 = vpack.c.bf16 %v10552_v23, %v10552_v23 }
 0x6ab   :  { %11420 = vmatprep.mubr.bf16.mxu1 %v10556_v43 }
 0x6ac   :  { %11421 = vmatmul.mubr.bf16.vlgmr.msra.gmra.mxu1 %v14832_v57 }
 0x6ad   :  { %11471 = vmatpush1.bf16.msra.mxu1 %v14035_v12  ;;  %11502 = vmatprep.mubr.bf16.mxu1 %v10556_v43 }
 0x6ae   :  { %11472 = vmatprep.subr.bf16.mxu1 %v14040_v39 }
 0x6b1   :  { %11473 = vmatpush1.bf16.msra.mxu1 %v14038_v9 }
 0x6b2   :  { %11474 = vmatprep.subr.bf16.mxu1 %v14043_v60 }
 0x6b5   :  { %11475 = vmatpush1.bf16.msra.mxu1 %v14041_v15 }
 0x6b6   :  { %11476 = vmatprep.subr.bf16.mxu1 %v14046_v38 }
 0x6b9   :  { %11477 = vmatpush1.bf16.msra.mxu1 %v14044_v56 }
 0x6ba   :  { %11478 = vmatprep.subr.bf16.mxu1 %v14049_v42 }
 0x6bd   :  { %11479 = vmatpush1.bf16.msra.mxu1 %v14047_v19 }
 0x6be   :  { %11480 = vmatprep.subr.bf16.mxu1 %v14052_v58 }
 0x6c1   :  { %11481 = vmatpush1.bf16.msra.mxu1 %v14050_v14 }
 0x6c2   :  { %11482 = vmatprep.subr.bf16.mxu1 %v14055_v6 }
 0x6c5   :  { %11483 = vmatpush1.bf16.msra.mxu1 %v14053_v20 }
 0x6c6   :  { %11484 = vmatprep.subr.bf16.mxu1 %v14058_v33 }
 0x6c9   :  { %11485 = vmatpush1.bf16.msra.mxu1 %v14056_v34 }
 0x6ca   :  { %11486 = vmatprep.subr.bf16.mxu1 %v14061_v35 }
 0x6cd   :  { %11487 = vmatpush2.bf16.msra.mxu1 %v14059_v8 }
 0x6ce   :  { %11488 = vmatprep.subr.bf16.mxu1 %v14064_v22 }
 0x6d1   :  { %11489 = vmatpush2.bf16.msra.mxu1 %v14062_v48 }
 0x6d2   :  { %11490 = vmatprep.subr.bf16.mxu1 %v14067_v53 }
 0x6d5   :  { %11491 = vmatpush2.bf16.msra.mxu1 %v14065_v30 }
 0x6d6   :  { %11492 = vmatprep.subr.bf16.mxu1 %v14070_v63 }
 0x6d9   :  { %11493 = vmatpush2.bf16.msra.mxu1 %v14068_v11 }
 0x6da   :  { %11494 = vmatprep.subr.bf16.mxu1 %v14073_v10 }
 0x6dd   :  { %11495 = vmatpush2.bf16.msra.mxu1 %v14071_v4  ;;  %v11381_v28 = vpop.f32.mrf.mxu0 }
 0x6de   :  { %11496 = vmatprep.subr.bf16.mxu1 %v14076_v27  ;;  %v11382_v17 = vadd.f32 %v11381_v28, %v10690_v5 }
 0x6df   :  { %v11383_v54 = vpop.f32.mrf.mxu0 }
 0x6e0   :  { %v11384_v46 = vadd.f32 %v11383_v54, %v10694_v25 }
 0x6e1   :  { %11497 = vmatpush2.bf16.msra.mxu1 %v14074_v49  ;;  %v11385_v26 = vpop.f32.mrf.mxu0 }
 0x6e2   :  { %11498 = vmatprep.subr.bf16.mxu1 %v14079_v52 }
 0x6e3   :  { %v11386_v31 = vpop.f32.mrf.mxu0 }
 0x6e5   :  { %11499 = vmatpush2.bf16.msra.mxu1 %v14077_v55 }
 0x6e6   :  { %11500 = vmatprep.subr.bf16.mxu1 %v14082_v59 }
 0x6e9   :  { %11501 = vmatpush2.bf16.msra.mxu1 %v14080_v1 }
 0x6ec   :  { %11503 = vmatmul.mubr.bf16.vlgmr.msra.gmra.mxu1 %v14832_v57 }
 0x71d   :  { %v11463_v61 = vpop.f32.mrf.mxu0 }
 0x71e   :  { %v11464_v24 = vadd.f32 %v11463_v61, %v10698_v29 }
 0x71f   :  { %v11465_v16 = vpop.f32.mrf.mxu0 }
 0x720   :  { %v11466_v47 = vadd.f32 %v11465_v16, %v10702_v18 }
 0x721   :  { %v11467_v2 = vpop.f32.mrf.mxu0 }
 0x723   :  { %v11468_v0 = vpop.f32.mrf.mxu0 }
 0x76c   :  { %v11422_v62 = vpop.f32.mrf.mxu1 }
 0x76d   :  { %v11423_v32 = vadd.f32 %v11422_v62, %v11382_v17 }
 0x76e   :  { %v11424_v13 = vpop.f32.mrf.mxu1 }
 0x76f   :  { %11511 = vst [vmem:[#allocation19] sm:$0xff] %v11423_v32  ;;  %v11425_v44 = vadd.f32 %v11424_v13, %v11384_v46 }
 0x770   :  { %v11426_v40 = vpop.f32.mrf.mxu1 }
 0x771   :  { %11512 = vst [vmem:[#allocation19 + $0x8] sm:$0xff] %v11425_v44 }
 0x772   :  { %v11427_v50 = vpop.f32.mrf.mxu1 }
 0x7ac   :  { %v11504_v21 = vpop.f32.mrf.mxu1 }
 0x7ad   :  { %v11505_v7 = vadd.f32 %v11504_v21, %v11464_v24 }
 0x7ae   :  { %v11506_v37 = vpop.f32.mrf.mxu1 }
 0x7af   :  { %11513 = vst [vmem:[#allocation19 + $0x10] sm:$0xff] %v11505_v7  ;;  %v11507_v36 = vadd.f32 %v11506_v37, %v11466_v47 }
 0x7b0   :  { %v11508_v51 = vpop.f32.mrf.mxu1 }
 0x7b1   :  { %11514 = vst [vmem:[#allocation19 + $0x18] sm:$0xff] %v11507_v36 }
 0x7b2   :  { %v11509_v3 = vpop.f32.mrf.mxu1 }
 0x7b3   :  { %14294 = shalt.err (!%p14291_p12)
}
 0x7b4   :  { %11524 = dma.vmem_to_hbm [thread:$0]  %s11522_s9, 512, %s14857_s10, [#allocation4]  }
 0x7b5   :  { %14315 = dma.done.wait [#allocation4], 512  }
 0x7b6   :  { %14316 = vsyncadd [#allocation4], 4294966784 }
 0x7b7   :  { %11528 = vsyncpa [#allocation3], 1 }
 0x7b8   :  { %11529 = vsyncpa [#allocation6], 1 }
 0x7b9   :  { %11530 = vsyncpa [#allocation9], 1 }
 0x7ba   :  { %11531 = vsyncpa [#allocation12], 1 }
 0x7bb   :  { %11532 = vsyncpa [#allocation15], 1 }
 0x7bc   :  { %11533 = vsyncpa [#allocation18], 1 }
 0x7bd   :  { %11534 = vsyncpa [#allocation4], 1 }

</bundles_post_ra>
